<compile_context>
chip_gen: v7x
topology: tpu7x:2x2x1
jax: 0.10.0
libtpu: 0.0.40
codegen_flags: <defaults>
</compile_context>

<pallas_src>
import jax
import jax.numpy as jnp
from jax.experimental import pallas as pl
from jax.experimental.pallas import tpu as pltpu


# --------------------------- VMEM budget helpers ------------------------------
try:
    _VMEM_CAP = int(pltpu.get_tpu_info().vmem_capacity_bytes)
except Exception:  # pragma: no cover - fall back to the common 128 MiB
    _VMEM_CAP = 128 << 20
_VMEM_MAX = max(32 << 20, min(96 << 20, int(0.75 * _VMEM_CAP)))


def _vmem_limit(need_bytes):
    """Explicit per-kernel scoped-VMEM limit: 2x headroom over the estimated
    working set, clamped to [32 MiB, 0.75 * physical VMEM]."""
    return int(min(max(2 * need_bytes + (4 << 20), 32 << 20), _VMEM_MAX))


# ------------------------------ Pallas kernels --------------------------------
def _proj_kernel(w_ref, z_ref, o_ref):
    """(Cout*16, Cin) @ (Cin, N) -> (Cout*16, N) f32.  First generator block:
    with a 1x1 input the ConvTranspose2d is a pure linear map."""
    o_ref[...] = jnp.dot(w_ref[...], z_ref[...],
                         preferred_element_type=jnp.float32)


def _bn_relu_kernel(x_ref, s_ref, t_ref, o_ref):
    """Fused BatchNorm scale/shift + ReLU over a (rows, C, lanes) block."""
    y = x_ref[...].astype(jnp.float32) * s_ref[...] + t_ref[...]
    o_ref[...] = jnp.maximum(y, 0.0).astype(o_ref.dtype)


def _make_convt_s2_kernel(W, N, with_bias, emit_stats):
    """Stride-2 / pad-1 / k=4 ConvTranspose2d row kernel (4-parity sub-pixel
    decomposition, in-kernel patch assembly).

    Per grid step m it reads 3 overlapping zero-padded input rows (VMEM), runs
    16 small (Cout, Cin) @ (Cin, W*N) MXU GEMMs on statically shifted lane
    windows of those rows, and writes output rows 2m and 2m+1 with the two
    column parities kept on a separate axis (de-interleaved later, fused with
    the next layer's pad in XLA).  Optionally fuses bias+tanh (final layer) or
    per-step BN partial sums (gen blocks)."""
    L = W * N

    def kernel(*refs):
        if with_bias:
            w_ref, r0_ref, r1_ref, r2_ref, b_ref = refs[:5]
            out_refs = refs[5:]
        else:
            w_ref, r0_ref, r1_ref, r2_ref = refs[:4]
            b_ref = None
            out_refs = refs[4:]
        o_ref = out_refs[0]
        st_ref = out_refs[1] if emit_stats else None

        rows = (r0_ref[0], r1_ref[0], r2_ref[0])     # each (Cin, (W+2)*N) bf16
        sum_y = sum_yy = None
        for py in range(2):                          # output-row parity
            for px in range(2):                      # output-column parity
                acc = None
                for a in range(2):                   # row tap (ky = 3-py-2a)
                    row = rows[py + a]
                    for b in range(2):               # col tap (kx = 3-px-2b)
                        t = ((py * 2 + px) * 2 + a) * 2 + b
                        sl = row[:, (px + b) * N:(px + b) * N + L]
                        d = jnp.dot(w_ref[t], sl,
                                    preferred_element_type=jnp.float32)
                        acc = d if acc is None else acc + d
                if with_bias:
                    acc = jnp.tanh(acc + b_ref[0])   # fused bias + tanh
                o_ref[py, px] = acc.astype(o_ref.dtype)
                if emit_stats:                       # BN partial sums (f32 acc)
                    s = jnp.sum(acc, axis=-1, keepdims=True)
                    ss = jnp.sum(acc * acc, axis=-1, keepdims=True)
                    sum_y = s if sum_y is None else sum_y + s
                    sum_yy = ss if sum_yy is None else sum_yy + ss
        if emit_stats:
            st_ref[0, :, 0:1] = sum_y
            st_ref[0, :, 1:2] = sum_yy

    return kernel


# ------------------------------ Pallas wrappers --------------------------------
def proj_gemm(wm, z):
    """Single-step Pallas GEMM (full blocks) for the first generator block."""
    M, K = wm.shape
    Nb = z.shape[1]
    return pl.pallas_call(
        _proj_kernel,
        out_shape=jax.ShapeDtypeStruct((M, Nb), jnp.float32),
        grid_spec=pltpu.PrefetchScalarGridSpec(
            num_scalar_prefetch=0,
            grid=(1,),
            in_specs=[pl.BlockSpec((M, K), lambda i: (0, 0)),
                      pl.BlockSpec((K, Nb), lambda i: (0, 0))],
            out_specs=pl.BlockSpec((M, Nb), lambda i: (0, 0))),
        compiler_params=pltpu.CompilerParams(
            dimension_semantics=("arbitrary",),
            vmem_limit_bytes=_vmem_limit(4 * (M * K + K * Nb) + 4 * M * Nb)),
    )(wm, z)


def convt_s2(xp, wpk, *, N, W, out_dtype, bias=None, emit_stats=True):
    """Stride-2 ConvTranspose2d (k=4, p=1) via the per-row Pallas kernel.

    xp : (H+2, Cin, (W+2)*N) zero-padded input, lane order (w, n), bf16
    wpk: (16, Cout, Cin) packed sub-pixel taps, bf16
    Returns (y, [stats]) with y: (2H, 2, Cout, W*N), stats: (H, Cout, 2)."""
    Hp2, Cin, Lp = xp.shape
    H = Hp2 - 2
    L = W * N
    assert Lp == (W + 2) * N
    ntaps, Cout, Cin_w = wpk.shape
    assert ntaps == 16 and Cin_w == Cin
    Ho = 2 * H

    kern = _make_convt_s2_kernel(W, N, bias is not None, emit_stats)

    # Resident weight taps (constant index map -> DMA'd once).
    in_specs = [pl.BlockSpec((16, Cout, Cin), lambda m: (0, 0, 0))]
    args = [wpk]
    # Three overlapping padded input rows m, m+1, m+2 (in-kernel patch assembly).
    for j in range(3):
        in_specs.append(pl.BlockSpec((1, Cin, Lp), lambda m, j=j: (m + j, 0, 0)))
        args.append(xp)
    if bias is not None:
        in_specs.append(pl.BlockSpec((1, Cout, 1), lambda m: (0, 0, 0)))
        args.append(bias.reshape(1, Cout, 1).astype(jnp.float32))

    out_shape = [jax.ShapeDtypeStruct((Ho, 2, Cout, L), out_dtype)]
    out_specs = [pl.BlockSpec((2, 2, Cout, L), lambda m: (m, 0, 0, 0))]
    if emit_stats:
        out_shape.append(jax.ShapeDtypeStruct((H, Cout, 2), jnp.float32))
        out_specs.append(pl.BlockSpec((1, Cout, 2), lambda m: (m, 0, 0)))

    ob = jnp.dtype(out_dtype).itemsize
    need = (2 * 16 * Cout * Cin * 2            # double-buffered weight taps
            + 3 * 2 * Cin * Lp * 2             # 3 double-buffered input rows
            + 2 * 4 * Cout * L * ob            # double-buffered output block
            + 8 * Cout * L * 4                 # live f32 accumulators
            + 4 * Cin * Lp * 4)                # slack for loaded rows / relayout
    return pl.pallas_call(
        kern,
        out_shape=tuple(out_shape),
        grid_spec=pltpu.PrefetchScalarGridSpec(
            num_scalar_prefetch=0,
            grid=(H,),
            in_specs=in_specs,
            out_specs=tuple(out_specs)),
        compiler_params=pltpu.CompilerParams(
            dimension_semantics=("parallel",),
            vmem_limit_bytes=_vmem_limit(need)),
    )(*args)


def _bn_rows(R, C, L, in_bytes, budget=32 << 20):
    """Largest row-tile dividing R that fits the VMEM budget; keep >=2 grid
    steps when possible so dual-TC chips (v7x) can still split the grid."""
    per_row = max(1, C * L * (in_bytes + 2) * 2)      # in + bf16 out, 2 buffers
    cap = max(1, budget // per_row)
    best = 1
    for th in range(1, R + 1):
        if R % th == 0 and th <= cap:
            best = th
    if best == R and R >= 2:
        for th in range(R // 2, 0, -1):
            if R % th == 0:
                best = th
                break
    return best


def bn_relu(y, scale, shift):
    """y: (R, C, L); scale/shift: (C,) f32 -> (R, C, L) bf16 (fused BN+ReLU)."""
    R, C, L = y.shape
    th = _bn_rows(R, C, L, y.dtype.itemsize)
    need = 2 * th * C * L * (y.dtype.itemsize + 2) + 8 * C
    return pl.pallas_call(
        _bn_relu_kernel,
        out_shape=jax.ShapeDtypeStruct((R, C, L), jnp.bfloat16),
        grid_spec=pltpu.PrefetchScalarGridSpec(
            num_scalar_prefetch=0,
            grid=(R // th,),
            in_specs=[pl.BlockSpec((th, C, L), lambda r: (r, 0, 0)),
                      pl.BlockSpec((1, C, 1), lambda r: (0, 0, 0)),
                      pl.BlockSpec((1, C, 1), lambda r: (0, 0, 0))],
            out_specs=pl.BlockSpec((th, C, L), lambda r: (r, 0, 0))),
        compiler_params=pltpu.CompilerParams(
            dimension_semantics=("parallel",),
            vmem_limit_bytes=_vmem_limit(need)),
    )(y, scale.reshape(1, C, 1).astype(jnp.float32),
      shift.reshape(1, C, 1).astype(jnp.float32))


# -------------------------- layer-level building blocks ------------------------
def _pack_convt_weights(w):
    """w: (Cin, Cout, 4, 4) torch ConvTranspose2d weight -> (16, Cout, Cin) bf16
    ordered by (py, px, a, b) sub-pixel taps, ky = 3-py-2a, kx = 3-px-2b."""
    taps = []
    for py in range(2):
        for px in range(2):
            for a in range(2):
                for b in range(2):
                    ky = 3 - py - 2 * a
                    kx = 3 - px - 2 * b
                    taps.append(w[:, :, ky, kx].T)          # (Cout, Cin)
    return jnp.stack(taps, axis=0).astype(jnp.bfloat16)


def _pad_rows_lanes(a, N):
    """(R, C, W*N) -> (R+2, C, (W+2)*N): one zero row top/bottom and one zero
    column (= N lanes, lane order is (w, n)) on each side."""
    return jnp.pad(a, ((1, 1), (0, 0), (N, N)))


def gen_block(a, w, gamma, beta, N, W, eps=1e-5):
    """ConvTranspose2d(4, 2, 1, bias=False) -> BatchNorm2d(train stats) -> ReLU.
    a: (H, Cin, W*N) bf16 -> (2H, Cout, 2W*N) bf16 (standard (w, n) lanes)."""
    Cout = w.shape[1]
    xp = _pad_rows_lanes(a, N)
    wpk = _pack_convt_weights(w)
    res = convt_s2(xp, wpk, N=N, W=W, out_dtype=jnp.bfloat16, emit_stats=True)
    y, stats = res[0], res[1]
    H = a.shape[0]
    count = (2 * H) * (2 * W) * N
    s = jnp.sum(stats, axis=0)                               # (Cout, 2)
    mean = s[:, 0] / count
    var = jnp.maximum(s[:, 1] / count - mean * mean, 0.0)    # biased (torch train)
    scale = gamma / jnp.sqrt(var + eps)
    shift = beta - mean * scale
    Ho, _, _, L = y.shape
    ybn = bn_relu(y.reshape(Ho * 2, Cout, L), scale, shift)  # bf16
    # De-interleave the column parity back into standard (w, n) lane order;
    # XLA fuses this tiny transpose with the next layer's zero-pad.
    z = (ybn.reshape(Ho, 2, Cout, W, N)
            .transpose(0, 2, 3, 1, 4)
            .reshape(Ho, Cout, 2 * W * N))
    return z


def final_layer(a, w, bias, N, W):
    """ConvTranspose2d(4, 2, 1, bias=True) -> Tanh, fused into the GEMM epilogue.
    Returns standard NCHW f32."""
    Cimg = w.shape[1]
    xp = _pad_rows_lanes(a, N)
    wpk = _pack_convt_weights(w)
    y = convt_s2(xp, wpk, N=N, W=W, out_dtype=jnp.float32,
                 bias=bias, emit_stats=False)[0]             # (Ho, 2, Cimg, W*N)
    Ho = 2 * a.shape[0]
    out = (y.reshape(Ho, 2, Cimg, W, N)
            .transpose(4, 2, 0, 3, 1)                        # (n, c, oy, r, px)
            .reshape(N, Cimg, Ho, 2 * W))
    return out


# ------------------------------ Generator ------------------------------------
def init_generator_params(key, channels_noise, channels_img, features_g):
    fg = features_g
    dims = [(channels_noise, fg * 16),
            (fg * 16, fg * 8),
            (fg * 8, fg * 4),
            (fg * 4, fg * 2)]
    keys = jax.random.split(key, 5)
    params = []
    for kk, (cin, cout) in zip(keys[:4], dims):
        wgt = jax.random.normal(kk, (cin, cout, 4, 4), jnp.float32) * 0.02
        params.append(dict(w=wgt,
                           gamma=jnp.ones((cout,), jnp.float32),
                           beta=jnp.zeros((cout,), jnp.float32)))
    wf = jax.random.normal(keys[4], (fg * 2, channels_img, 4, 4),
                           jnp.float32) * 0.02
    bf = jnp.zeros((channels_img,), jnp.float32)
    return params, dict(w=wf, b=bf)


@jax.jit
def generator_forward(x_nchw, params, final):
    Nb, Cn, Hin, Win = x_nchw.shape
    assert Hin == 1 and Win == 1, "DCGAN generator expects 1x1 noise input"

    # ---- block 1: 1x1 -> 4x4 is a pure linear map (single GEMM) ----
    p0 = params[0]
    C1 = p0["w"].shape[1]
    z = x_nchw.reshape(Nb, Cn).T.astype(jnp.bfloat16)              # (Cn, Nb)
    w1 = p0["w"].transpose(1, 2, 3, 0).reshape(C1 * 16, Cn).astype(jnp.bfloat16)
    y1 = proj_gemm(w1, z)                                          # (C1*16, Nb) f32
    r = y1.reshape(C1, 16, Nb)
    mean = jnp.mean(r, axis=(1, 2))
    var = jnp.maximum(jnp.mean(r * r, axis=(1, 2)) - mean * mean, 0.0)
    scale = p0["gamma"] / jnp.sqrt(var + 1e-5)
    shift = p0["beta"] - mean * scale
    a = y1.reshape(C1, 4, 4, Nb).transpose(1, 0, 2, 3).reshape(4, C1, 4 * Nb)
    a = bn_relu(a, scale, shift)                                   # (4, C1, 4N) bf16

    # ---- blocks 2..4: ConvT(s=2) + BN + ReLU (all-Pallas heavy path) ----
    W_cur = 4
    for p in params[1:]:
        a = gen_block(a, p["w"], p["gamma"], p["beta"], Nb, W_cur)
        W_cur *= 2

    # ---- final: ConvT(s=2, bias=True) + Tanh ----
    return final_layer(a, final["w"], final["b"], Nb, W_cur)


if __name__ == "__main__":
    key = jax.random.PRNGKey(0)
    k_param, k_in = jax.random.split(key)

    channels_noise, channels_img, features_g = 8, 3, 4
    batch = 2

    params, final = init_generator_params(k_param, channels_noise,
                                          channels_img, features_g)
    # Noise input, NCHW, spatial 1x1 (as implied by the first block k=4,s=1,p=0)
    x = jax.random.normal(k_in, (batch, channels_noise, 1, 1), jnp.float32)

    out = generator_forward(x, params, final)
    out = jax.block_until_ready(out)

    assert out.shape == (batch, channels_img, 64, 64), out.shape
    assert bool(jnp.all(jnp.isfinite(out)))
    assert bool(jnp.all(jnp.abs(out) <= 1.0))   # tanh output range
    print("KERNEL_OK")
</pallas_src>

<mosaic_0001>
module attributes {stable_mosaic.version = 11 : i64} {
  func.func @_proj_kernel(%arg0: i32, %arg1: memref<1024x8xbf16, #tpu.memory_space<vmem>>, %arg2: memref<8x2xbf16, #tpu.memory_space<vmem>>, %arg3: memref<1024x2xf32, #tpu.memory_space<vmem>>) attributes {dimension_semantics = [#tpu.dimension_semantics<arbitrary>], iteration_bounds = array<i64: 1>, scalar_prefetch = 0 : i64, scratch_operands = 0 : i64, tpu.core_type = #tpu.core_type<tc>, window_params = [{pipeline_mode = #tpu.pipeline_mode<synchronous>, transform_indices = @transform_0, window_bounds = array<i64: 1024, 8>}, {pipeline_mode = #tpu.pipeline_mode<synchronous>, transform_indices = @transform_1, window_bounds = array<i64: 8, 2>}, {pipeline_mode = #tpu.pipeline_mode<synchronous>, transform_indices = @transform_2, window_bounds = array<i64: 1024, 2>}]} {
    %c0 = arith.constant 0 : index
    %c0_0 = arith.constant 0 : index
    %0 = vector.load %arg1[%c0, %c0_0] : memref<1024x8xbf16, #tpu.memory_space<vmem>>, vector<1024x8xbf16>
    %c0_1 = arith.constant 0 : index
    %c0_2 = arith.constant 0 : index
    %1 = vector.load %arg2[%c0_1, %c0_2] : memref<8x2xbf16, #tpu.memory_space<vmem>>, vector<8x2xbf16>
    %cst = arith.constant dense<0.000000e+00> : vector<1024x2xf32>
    %2 = tpu.matmul %0, %1, %cst {dimension_numbers = #tpu.dot_dimension_numbers<[1], [0], [0], [1], [0, 0, 1, 1], [], []>} : vector<1024x8xbf16>, vector<8x2xbf16>, vector<1024x2xf32> -> vector<1024x2xf32>
    %c0_3 = arith.constant 0 : index
    %c0_4 = arith.constant 0 : index
    %3 = vector.load %arg3[%c0_3, %c0_4] : memref<1024x2xf32, #tpu.memory_space<vmem>>, vector<1024x2xf32>
    tpu.vector_store %arg3[%c0_3, %c0_4], %2 {strides = array<i32>} : memref<1024x2xf32, #tpu.memory_space<vmem>>, vector<1024x2xf32>,
    return
  }
  func.func @transform_0(%arg0: i32) -> (i32, i32) {
    %c0_i32 = arith.constant 0 : i32
    %c0_i32_0 = arith.constant 0 : i32
    %c0_i32_1 = arith.constant 0 : i32
    return %c0_i32, %c0_i32_0 : i32, i32
  }
  func.func @transform_1(%arg0: i32) -> (i32, i32) {
    %c0_i32 = arith.constant 0 : i32
    %c0_i32_0 = arith.constant 0 : i32
    %c0_i32_1 = arith.constant 0 : i32
    return %c0_i32, %c0_i32_0 : i32, i32
  }
  func.func @transform_2(%arg0: i32) -> (i32, i32) {
    %c0_i32 = arith.constant 0 : i32
    %c0_i32_0 = arith.constant 0 : i32
    %c0_i32_1 = arith.constant 0 : i32
    return %c0_i32, %c0_i32_0 : i32, i32
  }
}

module attributes {stable_mosaic.version = 11 : i64} {
  func.func @_bn_relu_kernel(%arg0: i32, %arg1: memref<2x64x8xf32, #tpu.memory_space<vmem>>, %arg2: memref<1x64x1xf32, #tpu.memory_space<vmem>>, %arg3: memref<1x64x1xf32, #tpu.memory_space<vmem>>, %arg4: memref<2x64x8xbf16, #tpu.memory_space<vmem>>) attributes {dimension_semantics = [#tpu.dimension_semantics<parallel>], iteration_bounds = array<i64: 2>, scalar_prefetch = 0 : i64, scratch_operands = 0 : i64, tpu.core_type = #tpu.core_type<tc>, window_params = [{transform_indices = @transform_0, window_bounds = array<i64: 2, 64, 8>}, {pipeline_mode = #tpu.pipeline_mode<synchronous>, transform_indices = @transform_1, window_bounds = array<i64: 1, 64, 1>}, {pipeline_mode = #tpu.pipeline_mode<synchronous>, transform_indices = @transform_2, window_bounds = array<i64: 1, 64, 1>}, {transform_indices = @transform_3, window_bounds = array<i64: 2, 64, 8>}]} {
    %c0 = arith.constant 0 : index
    %c0_0 = arith.constant 0 : index
    %c0_1 = arith.constant 0 : index
    %0 = vector.load %arg1[%c0, %c0_0, %c0_1] : memref<2x64x8xf32, #tpu.memory_space<vmem>>, vector<2x64x8xf32>
    %c0_2 = arith.constant 0 : index
    %c0_3 = arith.constant 0 : index
    %c0_4 = arith.constant 0 : index
    %1 = vector.load %arg2[%c0_2, %c0_3, %c0_4] : memref<1x64x1xf32, #tpu.memory_space<vmem>>, vector<1x64x1xf32>
    %2 = vector.broadcast %1 : vector<1x64x1xf32> to vector<2x64x8xf32>
    %3 = arith.mulf %0, %2 : vector<2x64x8xf32>
    %c0_5 = arith.constant 0 : index
    %c0_6 = arith.constant 0 : index
    %c0_7 = arith.constant 0 : index
    %4 = vector.load %arg3[%c0_5, %c0_6, %c0_7] : memref<1x64x1xf32, #tpu.memory_space<vmem>>, vector<1x64x1xf32>
    %5 = vector.broadcast %4 : vector<1x64x1xf32> to vector<2x64x8xf32>
    %6 = arith.addf %3, %5 : vector<2x64x8xf32>
    %cst = arith.constant 0.000000e+00 : f32
    %7 = vector.broadcast %cst : f32 to vector<2x64x8xf32>
    %8 = arith.maximumf %6, %7 : vector<2x64x8xf32>
    %9 = arith.truncf %8 : vector<2x64x8xf32> to vector<2x64x8xbf16>
    %c0_8 = arith.constant 0 : index
    %c0_9 = arith.constant 0 : index
    %c0_10 = arith.constant 0 : index
    %10 = vector.load %arg4[%c0_8, %c0_9, %c0_10] : memref<2x64x8xbf16, #tpu.memory_space<vmem>>, vector<2x64x8xbf16>
    tpu.vector_store %arg4[%c0_8, %c0_9, %c0_10], %9 {strides = array<i32>} : memref<2x64x8xbf16, #tpu.memory_space<vmem>>, vector<2x64x8xbf16>,
    return
  }
  func.func @transform_0(%arg0: i32) -> (i32, i32, i32) {
    %c0_i32 = arith.constant 0 : i32
    %c0_i32_0 = arith.constant 0 : i32
    %c0_i32_1 = arith.constant 0 : i32
    return %arg0, %c0_i32, %c0_i32_0 : i32, i32, i32
  }
  func.func @transform_1(%arg0: i32) -> (i32, i32, i32) {
    %c0_i32 = arith.constant 0 : i32
    %c0_i32_0 = arith.constant 0 : i32
    %c0_i32_1 = arith.constant 0 : i32
    %c0_i32_2 = arith.constant 0 : i32
    return %c0_i32, %c0_i32_0, %c0_i32_1 : i32, i32, i32
  }
  func.func @transform_2(%arg0: i32) -> (i32, i32, i32) {
    %c0_i32 = arith.constant 0 : i32
    %c0_i32_0 = arith.constant 0 : i32
    %c0_i32_1 = arith.constant 0 : i32
    %c0_i32_2 = arith.constant 0 : i32
    return %c0_i32, %c0_i32_0, %c0_i32_1 : i32, i32, i32
  }
  func.func @transform_3(%arg0: i32) -> (i32, i32, i32) {
    %c0_i32 = arith.constant 0 : i32
    %c0_i32_0 = arith.constant 0 : i32
    %c0_i32_1 = arith.constant 0 : i32
    return %arg0, %c0_i32, %c0_i32_0 : i32, i32, i32
  }
}

module attributes {stable_mosaic.version = 11 : i64} {
  func.func @kernel(%arg0: i32, %arg1: memref<16x32x64xbf16, #tpu.memory_space<vmem>>, %arg2: memref<1x64x12xbf16, #tpu.memory_space<vmem>>, %arg3: memref<1x64x12xbf16, #tpu.memory_space<vmem>>, %arg4: memref<1x64x12xbf16, #tpu.memory_space<vmem>>, %arg5: memref<2x2x32x8xbf16, #tpu.memory_space<vmem>>, %arg6: memref<1x32x2xf32, #tpu.memory_space<vmem>>) attributes {dimension_semantics = [#tpu.dimension_semantics<parallel>], iteration_bounds = array<i64: 4>, scalar_prefetch = 0 : i64, scratch_operands = 0 : i64, tpu.core_type = #tpu.core_type<tc>, window_params = [{pipeline_mode = #tpu.pipeline_mode<synchronous>, transform_indices = @transform_0, window_bounds = array<i64: 16, 32, 64>}, {transform_indices = @transform_1, window_bounds = array<i64: 1, 64, 12>}, {transform_indices = @transform_2, window_bounds = array<i64: 1, 64, 12>}, {transform_indices = @transform_3, window_bounds = array<i64: 1, 64, 12>}, {transform_indices = @transform_4, window_bounds = array<i64: 2, 2, 32, 8>}, {transform_indices = @transform_5, window_bounds = array<i64: 1, 32, 2>}]} {
    %c0 = arith.constant 0 : index
    %c0_0 = arith.constant 0 : index
    %c0_1 = arith.constant 0 : index
    %0 = vector.load %arg2[%c0, %c0_0, %c0_1] : memref<1x64x12xbf16, #tpu.memory_space<vmem>>, vector<1x64x12xbf16>
    %1 = vector.shape_cast %0 : vector<1x64x12xbf16> to vector<64x12xbf16>
    %c0_2 = arith.constant 0 : index
    %c0_3 = arith.constant 0 : index
    %c0_4 = arith.constant 0 : index
    %2 = vector.load %arg3[%c0_2, %c0_3, %c0_4] : memref<1x64x12xbf16, #tpu.memory_space<vmem>>, vector<1x64x12xbf16>
    %3 = vector.shape_cast %2 : vector<1x64x12xbf16> to vector<64x12xbf16>
    %c0_5 = arith.constant 0 : index
    %c0_6 = arith.constant 0 : index
    %c0_7 = arith.constant 0 : index
    %4 = vector.load %arg4[%c0_5, %c0_6, %c0_7] : memref<1x64x12xbf16, #tpu.memory_space<vmem>>, vector<1x64x12xbf16>
    %5 = vector.shape_cast %4 : vector<1x64x12xbf16> to vector<64x12xbf16>
    %6 = vector.extract_strided_slice %1 {offsets = [0, 0], sizes = [64, 8], strides = [1, 1]} : vector<64x12xbf16> to vector<64x8xbf16>
    %c0_8 = arith.constant 0 : index
    %c0_9 = arith.constant 0 : index
    %c0_10 = arith.constant 0 : index
    %7 = vector.load %arg1[%c0_8, %c0_9, %c0_10] : memref<16x32x64xbf16, #tpu.memory_space<vmem>>, vector<1x32x64xbf16>
    %8 = vector.shape_cast %7 : vector<1x32x64xbf16> to vector<32x64xbf16>
    %cst = arith.constant dense<0.000000e+00> : vector<32x8xf32>
    %9 = tpu.matmul %8, %6, %cst {dimension_numbers = #tpu.dot_dimension_numbers<[1], [0], [0], [1], [0, 0, 1, 1], [], []>} : vector<32x64xbf16>, vector<64x8xbf16>, vector<32x8xf32> -> vector<32x8xf32>
    %10 = vector.extract_strided_slice %1 {offsets = [0, 2], sizes = [64, 8], strides = [1, 1]} : vector<64x12xbf16> to vector<64x8xbf16>
    %c1 = arith.constant 1 : index
    %c0_11 = arith.constant 0 : index
    %c0_12 = arith.constant 0 : index
    %11 = vector.load %arg1[%c1, %c0_11, %c0_12] : memref<16x32x64xbf16, #tpu.memory_space<vmem>>, vector<1x32x64xbf16>
    %12 = vector.shape_cast %11 : vector<1x32x64xbf16> to vector<32x64xbf16>
    %cst_13 = arith.constant dense<0.000000e+00> : vector<32x8xf32>
    %13 = tpu.matmul %12, %10, %cst_13 {dimension_numbers = #tpu.dot_dimension_numbers<[1], [0], [0], [1], [0, 0, 1, 1], [], []>} : vector<32x64xbf16>, vector<64x8xbf16>, vector<32x8xf32> -> vector<32x8xf32>
    %14 = arith.addf %9, %13 : vector<32x8xf32>
    %15 = vector.extract_strided_slice %3 {offsets = [0, 0], sizes = [64, 8], strides = [1, 1]} : vector<64x12xbf16> to vector<64x8xbf16>
    %c2 = arith.constant 2 : index
    %c0_14 = arith.constant 0 : index
    %c0_15 = arith.constant 0 : index
    %16 = vector.load %arg1[%c2, %c0_14, %c0_15] : memref<16x32x64xbf16, #tpu.memory_space<vmem>>, vector<1x32x64xbf16>
    %17 = vector.shape_cast %16 : vector<1x32x64xbf16> to vector<32x64xbf16>
    %cst_16 = arith.constant dense<0.000000e+00> : vector<32x8xf32>
    %18 = tpu.matmul %17, %15, %cst_16 {dimension_numbers = #tpu.dot_dimension_numbers<[1], [0], [0], [1], [0, 0, 1, 1], [], []>} : vector<32x64xbf16>, vector<64x8xbf16>, vector<32x8xf32> -> vector<32x8xf32>
    %19 = arith.addf %14, %18 : vector<32x8xf32>
    %20 = vector.extract_strided_slice %3 {offsets = [0, 2], sizes = [64, 8], strides = [1, 1]} : vector<64x12xbf16> to vector<64x8xbf16>
    %c3 = arith.constant 3 : index
    %c0_17 = arith.constant 0 : index
    %c0_18 = arith.constant 0 : index
    %21 = vector.load %arg1[%c3, %c0_17, %c0_18] : memref<16x32x64xbf16, #tpu.memory_space<vmem>>, vector<1x32x64xbf16>
    %22 = vector.shape_cast %21 : vector<1x32x64xbf16> to vector<32x64xbf16>
    %cst_19 = arith.constant dense<0.000000e+00> : vector<32x8xf32>
    %23 = tpu.matmul %22, %20, %cst_19 {dimension_numbers = #tpu.dot_dimension_numbers<[1], [0], [0], [1], [0, 0, 1, 1], [], []>} : vector<32x64xbf16>, vector<64x8xbf16>, vector<32x8xf32> -> vector<32x8xf32>
    %24 = arith.addf %19, %23 : vector<32x8xf32>
    %25 = arith.truncf %24 : vector<32x8xf32> to vector<32x8xbf16>
    %c0_20 = arith.constant 0 : index
    %c0_21 = arith.constant 0 : index
    %c0_22 = arith.constant 0 : index
    %c0_23 = arith.constant 0 : index
    %26 = vector.load %arg5[%c0_20, %c0_21, %c0_22, %c0_23] : memref<2x2x32x8xbf16, #tpu.memory_space<vmem>>, vector<1x1x32x8xbf16>
    %27 = vector.shape_cast %26 : vector<1x1x32x8xbf16> to vector<32x8xbf16>
    %28 = vector.shape_cast %25 : vector<32x8xbf16> to vector<1x1x32x8xbf16>
    tpu.vector_store %arg5[%c0_20, %c0_21, %c0_22, %c0_23], %28 {strides = array<i32>} : memref<2x2x32x8xbf16, #tpu.memory_space<vmem>>, vector<1x1x32x8xbf16>,
    %cst_24 = arith.constant dense<0.000000e+00> : vector<32xf32>
    %29 = vector.multi_reduction <add>, %24, %cst_24 [1] : vector<32x8xf32> to vector<32xf32>
    %30 = vector.shape_cast %29 : vector<32xf32> to vector<32x1xf32>
    %31 = arith.mulf %24, %24 : vector<32x8xf32>
    %cst_25 = arith.constant dense<0.000000e+00> : vector<32xf32>
    %32 = vector.multi_reduction <add>, %31, %cst_25 [1] : vector<32x8xf32> to vector<32xf32>
    %33 = vector.shape_cast %32 : vector<32xf32> to vector<32x1xf32>
    %34 = vector.extract_strided_slice %1 {offsets = [0, 2], sizes = [64, 8], strides = [1, 1]} : vector<64x12xbf16> to vector<64x8xbf16>
    %c4 = arith.constant 4 : index
    %c0_26 = arith.constant 0 : index
    %c0_27 = arith.constant 0 : index
    %35 = vector.load %arg1[%c4, %c0_26, %c0_27] : memref<16x32x64xbf16, #tpu.memory_space<vmem>>, vector<1x32x64xbf16>
    %36 = vector.shape_cast %35 : vector<1x32x64xbf16> to vector<32x64xbf16>
    %cst_28 = arith.constant dense<0.000000e+00> : vector<32x8xf32>
    %37 = tpu.matmul %36, %34, %cst_28 {dimension_numbers = #tpu.dot_dimension_numbers<[1], [0], [0], [1], [0, 0, 1, 1], [], []>} : vector<32x64xbf16>, vector<64x8xbf16>, vector<32x8xf32> -> vector<32x8xf32>
    %38 = vector.extract_strided_slice %1 {offsets = [0, 4], sizes = [64, 8], strides = [1, 1]} : vector<64x12xbf16> to vector<64x8xbf16>
    %c5 = arith.constant 5 : index
    %c0_29 = arith.constant 0 : index
    %c0_30 = arith.constant 0 : index
    %39 = vector.load %arg1[%c5, %c0_29, %c0_30] : memref<16x32x64xbf16, #tpu.memory_space<vmem>>, vector<1x32x64xbf16>
    %40 = vector.shape_cast %39 : vector<1x32x64xbf16> to vector<32x64xbf16>
    %cst_31 = arith.constant dense<0.000000e+00> : vector<32x8xf32>
    %41 = tpu.matmul %40, %38, %cst_31 {dimension_numbers = #tpu.dot_dimension_numbers<[1], [0], [0], [1], [0, 0, 1, 1], [], []>} : vector<32x64xbf16>, vector<64x8xbf16>, vector<32x8xf32> -> vector<32x8xf32>
    %42 = arith.addf %37, %41 : vector<32x8xf32>
    %43 = vector.extract_strided_slice %3 {offsets = [0, 2], sizes = [64, 8], strides = [1, 1]} : vector<64x12xbf16> to vector<64x8xbf16>
    %c6 = arith.constant 6 : index
    %c0_32 = arith.constant 0 : index
    %c0_33 = arith.constant 0 : index
    %44 = vector.load %arg1[%c6, %c0_32, %c0_33] : memref<16x32x64xbf16, #tpu.memory_space<vmem>>, vector<1x32x64xbf16>
    %45 = vector.shape_cast %44 : vector<1x32x64xbf16> to vector<32x64xbf16>
    %cst_34 = arith.constant dense<0.000000e+00> : vector<32x8xf32>
    %46 = tpu.matmul %45, %43, %cst_34 {dimension_numbers = #tpu.dot_dimension_numbers<[1], [0], [0], [1], [0, 0, 1, 1], [], []>} : vector<32x64xbf16>, vector<64x8xbf16>, vector<32x8xf32> -> vector<32x8xf32>
    %47 = arith.addf %42, %46 : vector<32x8xf32>
    %48 = vector.extract_strided_slice %3 {offsets = [0, 4], sizes = [64, 8], strides = [1, 1]} : vector<64x12xbf16> to vector<64x8xbf16>
    %c7 = arith.constant 7 : index
    %c0_35 = arith.constant 0 : index
    %c0_36 = arith.constant 0 : index
    %49 = vector.load %arg1[%c7, %c0_35, %c0_36] : memref<16x32x64xbf16, #tpu.memory_space<vmem>>, vector<1x32x64xbf16>
    %50 = vector.shape_cast %49 : vector<1x32x64xbf16> to vector<32x64xbf16>
    %cst_37 = arith.constant dense<0.000000e+00> : vector<32x8xf32>
    %51 = tpu.matmul %50, %48, %cst_37 {dimension_numbers = #tpu.dot_dimension_numbers<[1], [0], [0], [1], [0, 0, 1, 1], [], []>} : vector<32x64xbf16>, vector<64x8xbf16>, vector<32x8xf32> -> vector<32x8xf32>
    %52 = arith.addf %47, %51 : vector<32x8xf32>
    %53 = arith.truncf %52 : vector<32x8xf32> to vector<32x8xbf16>
    %c0_38 = arith.constant 0 : index
    %c1_39 = arith.constant 1 : index
    %c0_40 = arith.constant 0 : index
    %c0_41 = arith.constant 0 : index
    %54 = vector.load %arg5[%c0_38, %c1_39, %c0_40, %c0_41] : memref<2x2x32x8xbf16, #tpu.memory_space<vmem>>, vector<1x1x32x8xbf16>
    %55 = vector.shape_cast %54 : vector<1x1x32x8xbf16> to vector<32x8xbf16>
    %56 = vector.shape_cast %53 : vector<32x8xbf16> to vector<1x1x32x8xbf16>
    tpu.vector_store %arg5[%c0_38, %c1_39, %c0_40, %c0_41], %56 {strides = array<i32>} : memref<2x2x32x8xbf16, #tpu.memory_space<vmem>>, vector<1x1x32x8xbf16>,
    %cst_42 = arith.constant dense<0.000000e+00> : vector<32xf32>
    %57 = vector.multi_reduction <add>, %52, %cst_42 [1] : vector<32x8xf32> to vector<32xf32>
    %58 = vector.shape_cast %57 : vector<32xf32> to vector<32x1xf32>
    %59 = arith.mulf %52, %52 : vector<32x8xf32>
    %cst_43 = arith.constant dense<0.000000e+00> : vector<32xf32>
    %60 = vector.multi_reduction <add>, %59, %cst_43 [1] : vector<32x8xf32> to vector<32xf32>
    %61 = vector.shape_cast %60 : vector<32xf32> to vector<32x1xf32>
    %62 = arith.addf %30, %58 : vector<32x1xf32>
    %63 = arith.addf %33, %61 : vector<32x1xf32>
    %64 = vector.extract_strided_slice %3 {offsets = [0, 0], sizes = [64, 8], strides = [1, 1]} : vector<64x12xbf16> to vector<64x8xbf16>
    %c8 = arith.constant 8 : index
    %c0_44 = arith.constant 0 : index
    %c0_45 = arith.constant 0 : index
    %65 = vector.load %arg1[%c8, %c0_44, %c0_45] : memref<16x32x64xbf16, #tpu.memory_space<vmem>>, vector<1x32x64xbf16>
    %66 = vector.shape_cast %65 : vector<1x32x64xbf16> to vector<32x64xbf16>
    %cst_46 = arith.constant dense<0.000000e+00> : vector<32x8xf32>
    %67 = tpu.matmul %66, %64, %cst_46 {dimension_numbers = #tpu.dot_dimension_numbers<[1], [0], [0], [1], [0, 0, 1, 1], [], []>} : vector<32x64xbf16>, vector<64x8xbf16>, vector<32x8xf32> -> vector<32x8xf32>
    %68 = vector.extract_strided_slice %3 {offsets = [0, 2], sizes = [64, 8], strides = [1, 1]} : vector<64x12xbf16> to vector<64x8xbf16>
    %c9 = arith.constant 9 : index
    %c0_47 = arith.constant 0 : index
    %c0_48 = arith.constant 0 : index
    %69 = vector.load %arg1[%c9, %c0_47, %c0_48] : memref<16x32x64xbf16, #tpu.memory_space<vmem>>, vector<1x32x64xbf16>
    %70 = vector.shape_cast %69 : vector<1x32x64xbf16> to vector<32x64xbf16>
    %cst_49 = arith.constant dense<0.000000e+00> : vector<32x8xf32>
    %71 = tpu.matmul %70, %68, %cst_49 {dimension_numbers = #tpu.dot_dimension_numbers<[1], [0], [0], [1], [0, 0, 1, 1], [], []>} : vector<32x64xbf16>, vector<64x8xbf16>, vector<32x8xf32> -> vector<32x8xf32>
    %72 = arith.addf %67, %71 : vector<32x8xf32>
    %73 = vector.extract_strided_slice %5 {offsets = [0, 0], sizes = [64, 8], strides = [1, 1]} : vector<64x12xbf16> to vector<64x8xbf16>
    %c10 = arith.constant 10 : index
    %c0_50 = arith.constant 0 : index
    %c0_51 = arith.constant 0 : index
    %74 = vector.load %arg1[%c10, %c0_50, %c0_51] : memref<16x32x64xbf16, #tpu.memory_space<vmem>>, vector<1x32x64xbf16>
    %75 = vector.shape_cast %74 : vector<1x32x64xbf16> to vector<32x64xbf16>
    %cst_52 = arith.constant dense<0.000000e+00> : vector<32x8xf32>
    %76 = tpu.matmul %75, %73, %cst_52 {dimension_numbers = #tpu.dot_dimension_numbers<[1], [0], [0], [1], [0, 0, 1, 1], [], []>} : vector<32x64xbf16>, vector<64x8xbf16>, vector<32x8xf32> -> vector<32x8xf32>
    %77 = arith.addf %72, %76 : vector<32x8xf32>
    %78 = vector.extract_strided_slice %5 {offsets = [0, 2], sizes = [64, 8], strides = [1, 1]} : vector<64x12xbf16> to vector<64x8xbf16>
    %c11 = arith.constant 11 : index
    %c0_53 = arith.constant 0 : index
    %c0_54 = arith.constant 0 : index
    %79 = vector.load %arg1[%c11, %c0_53, %c0_54] : memref<16x32x64xbf16, #tpu.memory_space<vmem>>, vector<1x32x64xbf16>
    %80 = vector.shape_cast %79 : vector<1x32x64xbf16> to vector<32x64xbf16>
    %cst_55 = arith.constant dense<0.000000e+00> : vector<32x8xf32>
    %81 = tpu.matmul %80, %78, %cst_55 {dimension_numbers = #tpu.dot_dimension_numbers<[1], [0], [0], [1], [0, 0, 1, 1], [], []>} : vector<32x64xbf16>, vector<64x8xbf16>, vector<32x8xf32> -> vector<32x8xf32>
    %82 = arith.addf %77, %81 : vector<32x8xf32>
    %83 = arith.truncf %82 : vector<32x8xf32> to vector<32x8xbf16>
    %c1_56 = arith.constant 1 : index
    %c0_57 = arith.constant 0 : index
    %c0_58 = arith.constant 0 : index
    %c0_59 = arith.constant 0 : index
    %84 = vector.load %arg5[%c1_56, %c0_57, %c0_58, %c0_59] : memref<2x2x32x8xbf16, #tpu.memory_space<vmem>>, vector<1x1x32x8xbf16>
    %85 = vector.shape_cast %84 : vector<1x1x32x8xbf16> to vector<32x8xbf16>
    %86 = vector.shape_cast %83 : vector<32x8xbf16> to vector<1x1x32x8xbf16>
    tpu.vector_store %arg5[%c1_56, %c0_57, %c0_58, %c0_59], %86 {strides = array<i32>} : memref<2x2x32x8xbf16, #tpu.memory_space<vmem>>, vector<1x1x32x8xbf16>,
    %cst_60 = arith.constant dense<0.000000e+00> : vector<32xf32>
    %87 = vector.multi_reduction <add>, %82, %cst_60 [1] : vector<32x8xf32> to vector<32xf32>
    %88 = vector.shape_cast %87 : vector<32xf32> to vector<32x1xf32>
    %89 = arith.mulf %82, %82 : vector<32x8xf32>
    %cst_61 = arith.constant dense<0.000000e+00> : vector<32xf32>
    %90 = vector.multi_reduction <add>, %89, %cst_61 [1] : vector<32x8xf32> to vector<32xf32>
    %91 = vector.shape_cast %90 : vector<32xf32> to vector<32x1xf32>
    %92 = arith.addf %62, %88 : vector<32x1xf32>
    %93 = arith.addf %63, %91 : vector<32x1xf32>
    %94 = vector.extract_strided_slice %3 {offsets = [0, 2], sizes = [64, 8], strides = [1, 1]} : vector<64x12xbf16> to vector<64x8xbf16>
    %c12 = arith.constant 12 : index
    %c0_62 = arith.constant 0 : index
    %c0_63 = arith.constant 0 : index
    %95 = vector.load %arg1[%c12, %c0_62, %c0_63] : memref<16x32x64xbf16, #tpu.memory_space<vmem>>, vector<1x32x64xbf16>
    %96 = vector.shape_cast %95 : vector<1x32x64xbf16> to vector<32x64xbf16>
    %cst_64 = arith.constant dense<0.000000e+00> : vector<32x8xf32>
    %97 = tpu.matmul %96, %94, %cst_64 {dimension_numbers = #tpu.dot_dimension_numbers<[1], [0], [0], [1], [0, 0, 1, 1], [], []>} : vector<32x64xbf16>, vector<64x8xbf16>, vector<32x8xf32> -> vector<32x8xf32>
    %98 = vector.extract_strided_slice %3 {offsets = [0, 4], sizes = [64, 8], strides = [1, 1]} : vector<64x12xbf16> to vector<64x8xbf16>
    %c13 = arith.constant 13 : index
    %c0_65 = arith.constant 0 : index
    %c0_66 = arith.constant 0 : index
    %99 = vector.load %arg1[%c13, %c0_65, %c0_66] : memref<16x32x64xbf16, #tpu.memory_space<vmem>>, vector<1x32x64xbf16>
    %100 = vector.shape_cast %99 : vector<1x32x64xbf16> to vector<32x64xbf16>
    %cst_67 = arith.constant dense<0.000000e+00> : vector<32x8xf32>
    %101 = tpu.matmul %100, %98, %cst_67 {dimension_numbers = #tpu.dot_dimension_numbers<[1], [0], [0], [1], [0, 0, 1, 1], [], []>} : vector<32x64xbf16>, vector<64x8xbf16>, vector<32x8xf32> -> vector<32x8xf32>
    %102 = arith.addf %97, %101 : vector<32x8xf32>
    %103 = vector.extract_strided_slice %5 {offsets = [0, 2], sizes = [64, 8], strides = [1, 1]} : vector<64x12xbf16> to vector<64x8xbf16>
    %c14 = arith.constant 14 : index
    %c0_68 = arith.constant 0 : index
    %c0_69 = arith.constant 0 : index
    %104 = vector.load %arg1[%c14, %c0_68, %c0_69] : memref<16x32x64xbf16, #tpu.memory_space<vmem>>, vector<1x32x64xbf16>
    %105 = vector.shape_cast %104 : vector<1x32x64xbf16> to vector<32x64xbf16>
    %cst_70 = arith.constant dense<0.000000e+00> : vector<32x8xf32>
    %106 = tpu.matmul %105, %103, %cst_70 {dimension_numbers = #tpu.dot_dimension_numbers<[1], [0], [0], [1], [0, 0, 1, 1], [], []>} : vector<32x64xbf16>, vector<64x8xbf16>, vector<32x8xf32> -> vector<32x8xf32>
    %107 = arith.addf %102, %106 : vector<32x8xf32>
    %108 = vector.extract_strided_slice %5 {offsets = [0, 4], sizes = [64, 8], strides = [1, 1]} : vector<64x12xbf16> to vector<64x8xbf16>
    %c15 = arith.constant 15 : index
    %c0_71 = arith.constant 0 : index
    %c0_72 = arith.constant 0 : index
    %109 = vector.load %arg1[%c15, %c0_71, %c0_72] : memref<16x32x64xbf16, #tpu.memory_space<vmem>>, vector<1x32x64xbf16>
    %110 = vector.shape_cast %109 : vector<1x32x64xbf16> to vector<32x64xbf16>
    %cst_73 = arith.constant dense<0.000000e+00> : vector<32x8xf32>
    %111 = tpu.matmul %110, %108, %cst_73 {dimension_numbers = #tpu.dot_dimension_numbers<[1], [0], [0], [1], [0, 0, 1, 1], [], []>} : vector<32x64xbf16>, vector<64x8xbf16>, vector<32x8xf32> -> vector<32x8xf32>
    %112 = arith.addf %107, %111 : vector<32x8xf32>
    %113 = arith.truncf %112 : vector<32x8xf32> to vector<32x8xbf16>
    %c1_74 = arith.constant 1 : index
    %c1_75 = arith.constant 1 : index
    %c0_76 = arith.constant 0 : index
    %c0_77 = arith.constant 0 : index
    %114 = vector.load %arg5[%c1_74, %c1_75, %c0_76, %c0_77] : memref<2x2x32x8xbf16, #tpu.memory_space<vmem>>, vector<1x1x32x8xbf16>
    %115 = vector.shape_cast %114 : vector<1x1x32x8xbf16> to vector<32x8xbf16>
    %116 = vector.shape_cast %113 : vector<32x8xbf16> to vector<1x1x32x8xbf16>
    tpu.vector_store %arg5[%c1_74, %c1_75, %c0_76, %c0_77], %116 {strides = array<i32>} : memref<2x2x32x8xbf16, #tpu.memory_space<vmem>>, vector<1x1x32x8xbf16>,
    %cst_78 = arith.constant dense<0.000000e+00> : vector<32xf32>
    %117 = vector.multi_reduction <add>, %112, %cst_78 [1] : vector<32x8xf32> to vector<32xf32>
    %118 = vector.shape_cast %117 : vector<32xf32> to vector<32x1xf32>
    %119 = arith.mulf %112, %112 : vector<32x8xf32>
    %cst_79 = arith.constant dense<0.000000e+00> : vector<32xf32>
    %120 = vector.multi_reduction <add>, %119, %cst_79 [1] : vector<32x8xf32> to vector<32xf32>
    %121 = vector.shape_cast %120 : vector<32xf32> to vector<32x1xf32>
    %122 = arith.addf %92, %118 : vector<32x1xf32>
    %123 = arith.addf %93, %121 : vector<32x1xf32>
    %c0_80 = arith.constant 0 : index
    %c0_81 = arith.constant 0 : index
    %c0_82 = arith.constant 0 : index
    %124 = vector.load %arg6[%c0_80, %c0_81, %c0_82] : memref<1x32x2xf32, #tpu.memory_space<vmem>>, vector<1x32x1xf32>
    %125 = vector.shape_cast %124 : vector<1x32x1xf32> to vector<32x1xf32>
    %126 = vector.shape_cast %122 : vector<32x1xf32> to vector<1x32x1xf32>
    tpu.vector_store %arg6[%c0_80, %c0_81, %c0_82], %126 {strides = array<i32>} : memref<1x32x2xf32, #tpu.memory_space<vmem>>, vector<1x32x1xf32>,
    %c0_83 = arith.constant 0 : index
    %c0_84 = arith.constant 0 : index
    %c1_85 = arith.constant 1 : index
    %127 = vector.load %arg6[%c0_83, %c0_84, %c1_85] : memref<1x32x2xf32, #tpu.memory_space<vmem>>, vector<1x32x1xf32>
    %128 = vector.shape_cast %127 : vector<1x32x1xf32> to vector<32x1xf32>
    %129 = vector.shape_cast %123 : vector<32x1xf32> to vector<1x32x1xf32>
    tpu.vector_store %arg6[%c0_83, %c0_84, %c1_85], %129 {strides = array<i32>} : memref<1x32x2xf32, #tpu.memory_space<vmem>>, vector<1x32x1xf32>,
    return
  }
  func.func @transform_0(%arg0: i32) -> (i32, i32, i32) {
    %c0_i32 = arith.constant 0 : i32
    %c0_i32_0 = arith.constant 0 : i32
    %c0_i32_1 = arith.constant 0 : i32
    %c0_i32_2 = arith.constant 0 : i32
    return %c0_i32, %c0_i32_0, %c0_i32_1 : i32, i32, i32
  }
  func.func @transform_1(%arg0: i32) -> (i32, i32, i32) {
    %c0_i32 = arith.constant 0 : i32
    %0 = arith.addi %arg0, %c0_i32 : i32
    %c0_i32_0 = arith.constant 0 : i32
    %c0_i32_1 = arith.constant 0 : i32
    %c0_i32_2 = arith.constant 0 : i32
    return %0, %c0_i32_0, %c0_i32_1 : i32, i32, i32
  }
  func.func @transform_2(%arg0: i32) -> (i32, i32, i32) {
    %c1_i32 = arith.constant 1 : i32
    %0 = arith.addi %arg0, %c1_i32 : i32
    %c0_i32 = arith.constant 0 : i32
    %c0_i32_0 = arith.constant 0 : i32
    %c0_i32_1 = arith.constant 0 : i32
    return %0, %c0_i32, %c0_i32_0 : i32, i32, i32
  }
  func.func @transform_3(%arg0: i32) -> (i32, i32, i32) {
    %c2_i32 = arith.constant 2 : i32
    %0 = arith.addi %arg0, %c2_i32 : i32
    %c0_i32 = arith.constant 0 : i32
    %c0_i32_0 = arith.constant 0 : i32
    %c0_i32_1 = arith.constant 0 : i32
    return %0, %c0_i32, %c0_i32_0 : i32, i32, i32
  }
  func.func @transform_4(%arg0: i32) -> (i32, i32, i32, i32) {
    %c0_i32 = arith.constant 0 : i32
    %c0_i32_0 = arith.constant 0 : i32
    %c0_i32_1 = arith.constant 0 : i32
    %c0_i32_2 = arith.constant 0 : i32
    return %arg0, %c0_i32, %c0_i32_0, %c0_i32_1 : i32, i32, i32, i32
  }
  func.func @transform_5(%arg0: i32) -> (i32, i32, i32) {
    %c0_i32 = arith.constant 0 : i32
    %c0_i32_0 = arith.constant 0 : i32
    %c0_i32_1 = arith.constant 0 : i32
    return %arg0, %c0_i32, %c0_i32_0 : i32, i32, i32
  }
}

module attributes {stable_mosaic.version = 11 : i64} {
  func.func @_bn_relu_kernel(%arg0: i32, %arg1: memref<8x32x8xbf16, #tpu.memory_space<vmem>>, %arg2: memref<1x32x1xf32, #tpu.memory_space<vmem>>, %arg3: memref<1x32x1xf32, #tpu.memory_space<vmem>>, %arg4: memref<8x32x8xbf16, #tpu.memory_space<vmem>>) attributes {dimension_semantics = [#tpu.dimension_semantics<parallel>], iteration_bounds = array<i64: 2>, scalar_prefetch = 0 : i64, scratch_operands = 0 : i64, tpu.core_type = #tpu.core_type<tc>, window_params = [{transform_indices = @transform_0, window_bounds = array<i64: 8, 32, 8>}, {pipeline_mode = #tpu.pipeline_mode<synchronous>, transform_indices = @transform_1, window_bounds = array<i64: 1, 32, 1>}, {pipeline_mode = #tpu.pipeline_mode<synchronous>, transform_indices = @transform_2, window_bounds = array<i64: 1, 32, 1>}, {transform_indices = @transform_3, window_bounds = array<i64: 8, 32, 8>}]} {
    %c0 = arith.constant 0 : index
    %c0_0 = arith.constant 0 : index
    %c0_1 = arith.constant 0 : index
    %0 = vector.load %arg1[%c0, %c0_0, %c0_1] : memref<8x32x8xbf16, #tpu.memory_space<vmem>>, vector<8x32x8xbf16>
    %1 = arith.extf %0 : vector<8x32x8xbf16> to vector<8x32x8xf32>
    %c0_2 = arith.constant 0 : index
    %c0_3 = arith.constant 0 : index
    %c0_4 = arith.constant 0 : index
    %2 = vector.load %arg2[%c0_2, %c0_3, %c0_4] : memref<1x32x1xf32, #tpu.memory_space<vmem>>, vector<1x32x1xf32>
    %3 = vector.broadcast %2 : vector<1x32x1xf32> to vector<8x32x8xf32>
    %4 = arith.mulf %1, %3 : vector<8x32x8xf32>
    %c0_5 = arith.constant 0 : index
    %c0_6 = arith.constant 0 : index
    %c0_7 = arith.constant 0 : index
    %5 = vector.load %arg3[%c0_5, %c0_6, %c0_7] : memref<1x32x1xf32, #tpu.memory_space<vmem>>, vector<1x32x1xf32>
    %6 = vector.broadcast %5 : vector<1x32x1xf32> to vector<8x32x8xf32>
    %7 = arith.addf %4, %6 : vector<8x32x8xf32>
    %cst = arith.constant 0.000000e+00 : f32
    %8 = vector.broadcast %cst : f32 to vector<8x32x8xf32>
    %9 = arith.maximumf %7, %8 : vector<8x32x8xf32>
    %10 = arith.truncf %9 : vector<8x32x8xf32> to vector<8x32x8xbf16>
    %c0_8 = arith.constant 0 : index
    %c0_9 = arith.constant 0 : index
    %c0_10 = arith.constant 0 : index
    %11 = vector.load %arg4[%c0_8, %c0_9, %c0_10] : memref<8x32x8xbf16, #tpu.memory_space<vmem>>, vector<8x32x8xbf16>
    tpu.vector_store %arg4[%c0_8, %c0_9, %c0_10], %10 {strides = array<i32>} : memref<8x32x8xbf16, #tpu.memory_space<vmem>>, vector<8x32x8xbf16>,
    return
  }
  func.func @transform_0(%arg0: i32) -> (i32, i32, i32) {
    %c0_i32 = arith.constant 0 : i32
    %c0_i32_0 = arith.constant 0 : i32
    %c0_i32_1 = arith.constant 0 : i32
    return %arg0, %c0_i32, %c0_i32_0 : i32, i32, i32
  }
  func.func @transform_1(%arg0: i32) -> (i32, i32, i32) {
    %c0_i32 = arith.constant 0 : i32
    %c0_i32_0 = arith.constant 0 : i32
    %c0_i32_1 = arith.constant 0 : i32
    %c0_i32_2 = arith.constant 0 : i32
    return %c0_i32, %c0_i32_0, %c0_i32_1 : i32, i32, i32
  }
  func.func @transform_2(%arg0: i32) -> (i32, i32, i32) {
    %c0_i32 = arith.constant 0 : i32
    %c0_i32_0 = arith.constant 0 : i32
    %c0_i32_1 = arith.constant 0 : i32
    %c0_i32_2 = arith.constant 0 : i32
    return %c0_i32, %c0_i32_0, %c0_i32_1 : i32, i32, i32
  }
  func.func @transform_3(%arg0: i32) -> (i32, i32, i32) {
    %c0_i32 = arith.constant 0 : i32
    %c0_i32_0 = arith.constant 0 : i32
    %c0_i32_1 = arith.constant 0 : i32
    return %arg0, %c0_i32, %c0_i32_0 : i32, i32, i32
  }
}

module attributes {stable_mosaic.version = 11 : i64} {
  func.func @kernel(%arg0: i32, %arg1: memref<16x16x32xbf16, #tpu.memory_space<vmem>>, %arg2: memref<1x32x20xbf16, #tpu.memory_space<vmem>>, %arg3: memref<1x32x20xbf16, #tpu.memory_space<vmem>>, %arg4: memref<1x32x20xbf16, #tpu.memory_space<vmem>>, %arg5: memref<2x2x16x16xbf16, #tpu.memory_space<vmem>>, %arg6: memref<1x16x2xf32, #tpu.memory_space<vmem>>) attributes {dimension_semantics = [#tpu.dimension_semantics<parallel>], iteration_bounds = array<i64: 8>, scalar_prefetch = 0 : i64, scratch_operands = 0 : i64, tpu.core_type = #tpu.core_type<tc>, window_params = [{pipeline_mode = #tpu.pipeline_mode<synchronous>, transform_indices = @transform_0, window_bounds = array<i64: 16, 16, 32>}, {transform_indices = @transform_1, window_bounds = array<i64: 1, 32, 20>}, {transform_indices = @transform_2, window_bounds = array<i64: 1, 32, 20>}, {transform_indices = @transform_3, window_bounds = array<i64: 1, 32, 20>}, {transform_indices = @transform_4, window_bounds = array<i64: 2, 2, 16, 16>}, {transform_indices = @transform_5, window_bounds = array<i64: 1, 16, 2>}]} {
    %c0 = arith.constant 0 : index
    %c0_0 = arith.constant 0 : index
    %c0_1 = arith.constant 0 : index
    %0 = vector.load %arg2[%c0, %c0_0, %c0_1] : memref<1x32x20xbf16, #tpu.memory_space<vmem>>, vector<1x32x20xbf16>
    %1 = vector.shape_cast %0 : vector<1x32x20xbf16> to vector<32x20xbf16>
    %c0_2 = arith.constant 0 : index
    %c0_3 = arith.constant 0 : index
    %c0_4 = arith.constant 0 : index
    %2 = vector.load %arg3[%c0_2, %c0_3, %c0_4] : memref<1x32x20xbf16, #tpu.memory_space<vmem>>, vector<1x32x20xbf16>
    %3 = vector.shape_cast %2 : vector<1x32x20xbf16> to vector<32x20xbf16>
    %c0_5 = arith.constant 0 : index
    %c0_6 = arith.constant 0 : index
    %c0_7 = arith.constant 0 : index
    %4 = vector.load %arg4[%c0_5, %c0_6, %c0_7] : memref<1x32x20xbf16, #tpu.memory_space<vmem>>, vector<1x32x20xbf16>
    %5 = vector.shape_cast %4 : vector<1x32x20xbf16> to vector<32x20xbf16>
    %6 = vector.extract_strided_slice %1 {offsets = [0, 0], sizes = [32, 16], strides = [1, 1]} : vector<32x20xbf16> to vector<32x16xbf16>
    %c0_8 = arith.constant 0 : index
    %c0_9 = arith.constant 0 : index
    %c0_10 = arith.constant 0 : index
    %7 = vector.load %arg1[%c0_8, %c0_9, %c0_10] : memref<16x16x32xbf16, #tpu.memory_space<vmem>>, vector<1x16x32xbf16>
    %8 = vector.shape_cast %7 : vector<1x16x32xbf16> to vector<16x32xbf16>
    %cst = arith.constant dense<0.000000e+00> : vector<16x16xf32>
    %9 = tpu.matmul %8, %6, %cst {dimension_numbers = #tpu.dot_dimension_numbers<[1], [0], [0], [1], [0, 0, 1, 1], [], []>} : vector<16x32xbf16>, vector<32x16xbf16>, vector<16x16xf32> -> vector<16x16xf32>
    %10 = vector.extract_strided_slice %1 {offsets = [0, 2], sizes = [32, 16], strides = [1, 1]} : vector<32x20xbf16> to vector<32x16xbf16>
    %c1 = arith.constant 1 : index
    %c0_11 = arith.constant 0 : index
    %c0_12 = arith.constant 0 : index
    %11 = vector.load %arg1[%c1, %c0_11, %c0_12] : memref<16x16x32xbf16, #tpu.memory_space<vmem>>, vector<1x16x32xbf16>
    %12 = vector.shape_cast %11 : vector<1x16x32xbf16> to vector<16x32xbf16>
    %cst_13 = arith.constant dense<0.000000e+00> : vector<16x16xf32>
    %13 = tpu.matmul %12, %10, %cst_13 {dimension_numbers = #tpu.dot_dimension_numbers<[1], [0], [0], [1], [0, 0, 1, 1], [], []>} : vector<16x32xbf16>, vector<32x16xbf16>, vector<16x16xf32> -> vector<16x16xf32>
    %14 = arith.addf %9, %13 : vector<16x16xf32>
    %15 = vector.extract_strided_slice %3 {offsets = [0, 0], sizes = [32, 16], strides = [1, 1]} : vector<32x20xbf16> to vector<32x16xbf16>
    %c2 = arith.constant 2 : index
    %c0_14 = arith.constant 0 : index
    %c0_15 = arith.constant 0 : index
    %16 = vector.load %arg1[%c2, %c0_14, %c0_15] : memref<16x16x32xbf16, #tpu.memory_space<vmem>>, vector<1x16x32xbf16>
    %17 = vector.shape_cast %16 : vector<1x16x32xbf16> to vector<16x32xbf16>
    %cst_16 = arith.constant dense<0.000000e+00> : vector<16x16xf32>
    %18 = tpu.matmul %17, %15, %cst_16 {dimension_numbers = #tpu.dot_dimension_numbers<[1], [0], [0], [1], [0, 0, 1, 1], [], []>} : vector<16x32xbf16>, vector<32x16xbf16>, vector<16x16xf32> -> vector<16x16xf32>
    %19 = arith.addf %14, %18 : vector<16x16xf32>
    %20 = vector.extract_strided_slice %3 {offsets = [0, 2], sizes = [32, 16], strides = [1, 1]} : vector<32x20xbf16> to vector<32x16xbf16>
    %c3 = arith.constant 3 : index
    %c0_17 = arith.constant 0 : index
    %c0_18 = arith.constant 0 : index
    %21 = vector.load %arg1[%c3, %c0_17, %c0_18] : memref<16x16x32xbf16, #tpu.memory_space<vmem>>, vector<1x16x32xbf16>
    %22 = vector.shape_cast %21 : vector<1x16x32xbf16> to vector<16x32xbf16>
    %cst_19 = arith.constant dense<0.000000e+00> : vector<16x16xf32>
    %23 = tpu.matmul %22, %20, %cst_19 {dimension_numbers = #tpu.dot_dimension_numbers<[1], [0], [0], [1], [0, 0, 1, 1], [], []>} : vector<16x32xbf16>, vector<32x16xbf16>, vector<16x16xf32> -> vector<16x16xf32>
    %24 = arith.addf %19, %23 : vector<16x16xf32>
    %25 = arith.truncf %24 : vector<16x16xf32> to vector<16x16xbf16>
    %c0_20 = arith.constant 0 : index
    %c0_21 = arith.constant 0 : index
    %c0_22 = arith.constant 0 : index
    %c0_23 = arith.constant 0 : index
    %26 = vector.load %arg5[%c0_20, %c0_21, %c0_22, %c0_23] : memref<2x2x16x16xbf16, #tpu.memory_space<vmem>>, vector<1x1x16x16xbf16>
    %27 = vector.shape_cast %26 : vector<1x1x16x16xbf16> to vector<16x16xbf16>
    %28 = vector.shape_cast %25 : vector<16x16xbf16> to vector<1x1x16x16xbf16>
    tpu.vector_store %arg5[%c0_20, %c0_21, %c0_22, %c0_23], %28 {strides = array<i32>} : memref<2x2x16x16xbf16, #tpu.memory_space<vmem>>, vector<1x1x16x16xbf16>,
    %cst_24 = arith.constant dense<0.000000e+00> : vector<16xf32>
    %29 = vector.multi_reduction <add>, %24, %cst_24 [1] : vector<16x16xf32> to vector<16xf32>
    %30 = vector.shape_cast %29 : vector<16xf32> to vector<16x1xf32>
    %31 = arith.mulf %24, %24 : vector<16x16xf32>
    %cst_25 = arith.constant dense<0.000000e+00> : vector<16xf32>
    %32 = vector.multi_reduction <add>, %31, %cst_25 [1] : vector<16x16xf32> to vector<16xf32>
    %33 = vector.shape_cast %32 : vector<16xf32> to vector<16x1xf32>
    %34 = vector.extract_strided_slice %1 {offsets = [0, 2], sizes = [32, 16], strides = [1, 1]} : vector<32x20xbf16> to vector<32x16xbf16>
    %c4 = arith.constant 4 : index
    %c0_26 = arith.constant 0 : index
    %c0_27 = arith.constant 0 : index
    %35 = vector.load %arg1[%c4, %c0_26, %c0_27] : memref<16x16x32xbf16, #tpu.memory_space<vmem>>, vector<1x16x32xbf16>
    %36 = vector.shape_cast %35 : vector<1x16x32xbf16> to vector<16x32xbf16>
    %cst_28 = arith.constant dense<0.000000e+00> : vector<16x16xf32>
    %37 = tpu.matmul %36, %34, %cst_28 {dimension_numbers = #tpu.dot_dimension_numbers<[1], [0], [0], [1], [0, 0, 1, 1], [], []>} : vector<16x32xbf16>, vector<32x16xbf16>, vector<16x16xf32> -> vector<16x16xf32>
    %38 = vector.extract_strided_slice %1 {offsets = [0, 4], sizes = [32, 16], strides = [1, 1]} : vector<32x20xbf16> to vector<32x16xbf16>
    %c5 = arith.constant 5 : index
    %c0_29 = arith.constant 0 : index
    %c0_30 = arith.constant 0 : index
    %39 = vector.load %arg1[%c5, %c0_29, %c0_30] : memref<16x16x32xbf16, #tpu.memory_space<vmem>>, vector<1x16x32xbf16>
    %40 = vector.shape_cast %39 : vector<1x16x32xbf16> to vector<16x32xbf16>
    %cst_31 = arith.constant dense<0.000000e+00> : vector<16x16xf32>
    %41 = tpu.matmul %40, %38, %cst_31 {dimension_numbers = #tpu.dot_dimension_numbers<[1], [0], [0], [1], [0, 0, 1, 1], [], []>} : vector<16x32xbf16>, vector<32x16xbf16>, vector<16x16xf32> -> vector<16x16xf32>
    %42 = arith.addf %37, %41 : vector<16x16xf32>
    %43 = vector.extract_strided_slice %3 {offsets = [0, 2], sizes = [32, 16], strides = [1, 1]} : vector<32x20xbf16> to vector<32x16xbf16>
    %c6 = arith.constant 6 : index
    %c0_32 = arith.constant 0 : index
    %c0_33 = arith.constant 0 : index
    %44 = vector.load %arg1[%c6, %c0_32, %c0_33] : memref<16x16x32xbf16, #tpu.memory_space<vmem>>, vector<1x16x32xbf16>
    %45 = vector.shape_cast %44 : vector<1x16x32xbf16> to vector<16x32xbf16>
    %cst_34 = arith.constant dense<0.000000e+00> : vector<16x16xf32>
    %46 = tpu.matmul %45, %43, %cst_34 {dimension_numbers = #tpu.dot_dimension_numbers<[1], [0], [0], [1], [0, 0, 1, 1], [], []>} : vector<16x32xbf16>, vector<32x16xbf16>, vector<16x16xf32> -> vector<16x16xf32>
    %47 = arith.addf %42, %46 : vector<16x16xf32>
    %48 = vector.extract_strided_slice %3 {offsets = [0, 4], sizes = [32, 16], strides = [1, 1]} : vector<32x20xbf16> to vector<32x16xbf16>
    %c7 = arith.constant 7 : index
    %c0_35 = arith.constant 0 : index
    %c0_36 = arith.constant 0 : index
    %49 = vector.load %arg1[%c7, %c0_35, %c0_36] : memref<16x16x32xbf16, #tpu.memory_space<vmem>>, vector<1x16x32xbf16>
    %50 = vector.shape_cast %49 : vector<1x16x32xbf16> to vector<16x32xbf16>
    %cst_37 = arith.constant dense<0.000000e+00> : vector<16x16xf32>
    %51 = tpu.matmul %50, %48, %cst_37 {dimension_numbers = #tpu.dot_dimension_numbers<[1], [0], [0], [1], [0, 0, 1, 1], [], []>} : vector<16x32xbf16>, vector<32x16xbf16>, vector<16x16xf32> -> vector<16x16xf32>
    %52 = arith.addf %47, %51 : vector<16x16xf32>
    %53 = arith.truncf %52 : vector<16x16xf32> to vector<16x16xbf16>
    %c0_38 = arith.constant 0 : index
    %c1_39 = arith.constant 1 : index
    %c0_40 = arith.constant 0 : index
    %c0_41 = arith.constant 0 : index
    %54 = vector.load %arg5[%c0_38, %c1_39, %c0_40, %c0_41] : memref<2x2x16x16xbf16, #tpu.memory_space<vmem>>, vector<1x1x16x16xbf16>
    %55 = vector.shape_cast %54 : vector<1x1x16x16xbf16> to vector<16x16xbf16>
    %56 = vector.shape_cast %53 : vector<16x16xbf16> to vector<1x1x16x16xbf16>
    tpu.vector_store %arg5[%c0_38, %c1_39, %c0_40, %c0_41], %56 {strides = array<i32>} : memref<2x2x16x16xbf16, #tpu.memory_space<vmem>>, vector<1x1x16x16xbf16>,
    %cst_42 = arith.constant dense<0.000000e+00> : vector<16xf32>
    %57 = vector.multi_reduction <add>, %52, %cst_42 [1] : vector<16x16xf32> to vector<16xf32>
    %58 = vector.shape_cast %57 : vector<16xf32> to vector<16x1xf32>
    %59 = arith.mulf %52, %52 : vector<16x16xf32>
    %cst_43 = arith.constant dense<0.000000e+00> : vector<16xf32>
    %60 = vector.multi_reduction <add>, %59, %cst_43 [1] : vector<16x16xf32> to vector<16xf32>
    %61 = vector.shape_cast %60 : vector<16xf32> to vector<16x1xf32>
    %62 = arith.addf %30, %58 : vector<16x1xf32>
    %63 = arith.addf %33, %61 : vector<16x1xf32>
    %64 = vector.extract_strided_slice %3 {offsets = [0, 0], sizes = [32, 16], strides = [1, 1]} : vector<32x20xbf16> to vector<32x16xbf16>
    %c8 = arith.constant 8 : index
    %c0_44 = arith.constant 0 : index
    %c0_45 = arith.constant 0 : index
    %65 = vector.load %arg1[%c8, %c0_44, %c0_45] : memref<16x16x32xbf16, #tpu.memory_space<vmem>>, vector<1x16x32xbf16>
    %66 = vector.shape_cast %65 : vector<1x16x32xbf16> to vector<16x32xbf16>
    %cst_46 = arith.constant dense<0.000000e+00> : vector<16x16xf32>
    %67 = tpu.matmul %66, %64, %cst_46 {dimension_numbers = #tpu.dot_dimension_numbers<[1], [0], [0], [1], [0, 0, 1, 1], [], []>} : vector<16x32xbf16>, vector<32x16xbf16>, vector<16x16xf32> -> vector<16x16xf32>
    %68 = vector.extract_strided_slice %3 {offsets = [0, 2], sizes = [32, 16], strides = [1, 1]} : vector<32x20xbf16> to vector<32x16xbf16>
    %c9 = arith.constant 9 : index
    %c0_47 = arith.constant 0 : index
    %c0_48 = arith.constant 0 : index
    %69 = vector.load %arg1[%c9, %c0_47, %c0_48] : memref<16x16x32xbf16, #tpu.memory_space<vmem>>, vector<1x16x32xbf16>
    %70 = vector.shape_cast %69 : vector<1x16x32xbf16> to vector<16x32xbf16>
    %cst_49 = arith.constant dense<0.000000e+00> : vector<16x16xf32>
    %71 = tpu.matmul %70, %68, %cst_49 {dimension_numbers = #tpu.dot_dimension_numbers<[1], [0], [0], [1], [0, 0, 1, 1], [], []>} : vector<16x32xbf16>, vector<32x16xbf16>, vector<16x16xf32> -> vector<16x16xf32>
    %72 = arith.addf %67, %71 : vector<16x16xf32>
    %73 = vector.extract_strided_slice %5 {offsets = [0, 0], sizes = [32, 16], strides = [1, 1]} : vector<32x20xbf16> to vector<32x16xbf16>
    %c10 = arith.constant 10 : index
    %c0_50 = arith.constant 0 : index
    %c0_51 = arith.constant 0 : index
    %74 = vector.load %arg1[%c10, %c0_50, %c0_51] : memref<16x16x32xbf16, #tpu.memory_space<vmem>>, vector<1x16x32xbf16>
    %75 = vector.shape_cast %74 : vector<1x16x32xbf16> to vector<16x32xbf16>
    %cst_52 = arith.constant dense<0.000000e+00> : vector<16x16xf32>
    %76 = tpu.matmul %75, %73, %cst_52 {dimension_numbers = #tpu.dot_dimension_numbers<[1], [0], [0], [1], [0, 0, 1, 1], [], []>} : vector<16x32xbf16>, vector<32x16xbf16>, vector<16x16xf32> -> vector<16x16xf32>
    %77 = arith.addf %72, %76 : vector<16x16xf32>
    %78 = vector.extract_strided_slice %5 {offsets = [0, 2], sizes = [32, 16], strides = [1, 1]} : vector<32x20xbf16> to vector<32x16xbf16>
    %c11 = arith.constant 11 : index
    %c0_53 = arith.constant 0 : index
    %c0_54 = arith.constant 0 : index
    %79 = vector.load %arg1[%c11, %c0_53, %c0_54] : memref<16x16x32xbf16, #tpu.memory_space<vmem>>, vector<1x16x32xbf16>
    %80 = vector.shape_cast %79 : vector<1x16x32xbf16> to vector<16x32xbf16>
    %cst_55 = arith.constant dense<0.000000e+00> : vector<16x16xf32>
    %81 = tpu.matmul %80, %78, %cst_55 {dimension_numbers = #tpu.dot_dimension_numbers<[1], [0], [0], [1], [0, 0, 1, 1], [], []>} : vector<16x32xbf16>, vector<32x16xbf16>, vector<16x16xf32> -> vector<16x16xf32>
    %82 = arith.addf %77, %81 : vector<16x16xf32>
    %83 = arith.truncf %82 : vector<16x16xf32> to vector<16x16xbf16>
    %c1_56 = arith.constant 1 : index
    %c0_57 = arith.constant 0 : index
    %c0_58 = arith.constant 0 : index
    %c0_59 = arith.constant 0 : index
    %84 = vector.load %arg5[%c1_56, %c0_57, %c0_58, %c0_59] : memref<2x2x16x16xbf16, #tpu.memory_space<vmem>>, vector<1x1x16x16xbf16>
    %85 = vector.shape_cast %84 : vector<1x1x16x16xbf16> to vector<16x16xbf16>
    %86 = vector.shape_cast %83 : vector<16x16xbf16> to vector<1x1x16x16xbf16>
    tpu.vector_store %arg5[%c1_56, %c0_57, %c0_58, %c0_59], %86 {strides = array<i32>} : memref<2x2x16x16xbf16, #tpu.memory_space<vmem>>, vector<1x1x16x16xbf16>,
    %cst_60 = arith.constant dense<0.000000e+00> : vector<16xf32>
    %87 = vector.multi_reduction <add>, %82, %cst_60 [1] : vector<16x16xf32> to vector<16xf32>
    %88 = vector.shape_cast %87 : vector<16xf32> to vector<16x1xf32>
    %89 = arith.mulf %82, %82 : vector<16x16xf32>
    %cst_61 = arith.constant dense<0.000000e+00> : vector<16xf32>
    %90 = vector.multi_reduction <add>, %89, %cst_61 [1] : vector<16x16xf32> to vector<16xf32>
    %91 = vector.shape_cast %90 : vector<16xf32> to vector<16x1xf32>
    %92 = arith.addf %62, %88 : vector<16x1xf32>
    %93 = arith.addf %63, %91 : vector<16x1xf32>
    %94 = vector.extract_strided_slice %3 {offsets = [0, 2], sizes = [32, 16], strides = [1, 1]} : vector<32x20xbf16> to vector<32x16xbf16>
    %c12 = arith.constant 12 : index
    %c0_62 = arith.constant 0 : index
    %c0_63 = arith.constant 0 : index
    %95 = vector.load %arg1[%c12, %c0_62, %c0_63] : memref<16x16x32xbf16, #tpu.memory_space<vmem>>, vector<1x16x32xbf16>
    %96 = vector.shape_cast %95 : vector<1x16x32xbf16> to vector<16x32xbf16>
    %cst_64 = arith.constant dense<0.000000e+00> : vector<16x16xf32>
    %97 = tpu.matmul %96, %94, %cst_64 {dimension_numbers = #tpu.dot_dimension_numbers<[1], [0], [0], [1], [0, 0, 1, 1], [], []>} : vector<16x32xbf16>, vector<32x16xbf16>, vector<16x16xf32> -> vector<16x16xf32>
    %98 = vector.extract_strided_slice %3 {offsets = [0, 4], sizes = [32, 16], strides = [1, 1]} : vector<32x20xbf16> to vector<32x16xbf16>
    %c13 = arith.constant 13 : index
    %c0_65 = arith.constant 0 : index
    %c0_66 = arith.constant 0 : index
    %99 = vector.load %arg1[%c13, %c0_65, %c0_66] : memref<16x16x32xbf16, #tpu.memory_space<vmem>>, vector<1x16x32xbf16>
    %100 = vector.shape_cast %99 : vector<1x16x32xbf16> to vector<16x32xbf16>
    %cst_67 = arith.constant dense<0.000000e+00> : vector<16x16xf32>
    %101 = tpu.matmul %100, %98, %cst_67 {dimension_numbers = #tpu.dot_dimension_numbers<[1], [0], [0], [1], [0, 0, 1, 1], [], []>} : vector<16x32xbf16>, vector<32x16xbf16>, vector<16x16xf32> -> vector<16x16xf32>
    %102 = arith.addf %97, %101 : vector<16x16xf32>
    %103 = vector.extract_strided_slice %5 {offsets = [0, 2], sizes = [32, 16], strides = [1, 1]} : vector<32x20xbf16> to vector<32x16xbf16>
    %c14 = arith.constant 14 : index
    %c0_68 = arith.constant 0 : index
    %c0_69 = arith.constant 0 : index
    %104 = vector.load %arg1[%c14, %c0_68, %c0_69] : memref<16x16x32xbf16, #tpu.memory_space<vmem>>, vector<1x16x32xbf16>
    %105 = vector.shape_cast %104 : vector<1x16x32xbf16> to vector<16x32xbf16>
    %cst_70 = arith.constant dense<0.000000e+00> : vector<16x16xf32>
    %106 = tpu.matmul %105, %103, %cst_70 {dimension_numbers = #tpu.dot_dimension_numbers<[1], [0], [0], [1], [0, 0, 1, 1], [], []>} : vector<16x32xbf16>, vector<32x16xbf16>, vector<16x16xf32> -> vector<16x16xf32>
    %107 = arith.addf %102, %106 : vector<16x16xf32>
    %108 = vector.extract_strided_slice %5 {offsets = [0, 4], sizes = [32, 16], strides = [1, 1]} : vector<32x20xbf16> to vector<32x16xbf16>
    %c15 = arith.constant 15 : index
    %c0_71 = arith.constant 0 : index
    %c0_72 = arith.constant 0 : index
    %109 = vector.load %arg1[%c15, %c0_71, %c0_72] : memref<16x16x32xbf16, #tpu.memory_space<vmem>>, vector<1x16x32xbf16>
    %110 = vector.shape_cast %109 : vector<1x16x32xbf16> to vector<16x32xbf16>
    %cst_73 = arith.constant dense<0.000000e+00> : vector<16x16xf32>
    %111 = tpu.matmul %110, %108, %cst_73 {dimension_numbers = #tpu.dot_dimension_numbers<[1], [0], [0], [1], [0, 0, 1, 1], [], []>} : vector<16x32xbf16>, vector<32x16xbf16>, vector<16x16xf32> -> vector<16x16xf32>
    %112 = arith.addf %107, %111 : vector<16x16xf32>
    %113 = arith.truncf %112 : vector<16x16xf32> to vector<16x16xbf16>
    %c1_74 = arith.constant 1 : index
    %c1_75 = arith.constant 1 : index
    %c0_76 = arith.constant 0 : index
    %c0_77 = arith.constant 0 : index
    %114 = vector.load %arg5[%c1_74, %c1_75, %c0_76, %c0_77] : memref<2x2x16x16xbf16, #tpu.memory_space<vmem>>, vector<1x1x16x16xbf16>
    %115 = vector.shape_cast %114 : vector<1x1x16x16xbf16> to vector<16x16xbf16>
    %116 = vector.shape_cast %113 : vector<16x16xbf16> to vector<1x1x16x16xbf16>
    tpu.vector_store %arg5[%c1_74, %c1_75, %c0_76, %c0_77], %116 {strides = array<i32>} : memref<2x2x16x16xbf16, #tpu.memory_space<vmem>>, vector<1x1x16x16xbf16>,
    %cst_78 = arith.constant dense<0.000000e+00> : vector<16xf32>
    %117 = vector.multi_reduction <add>, %112, %cst_78 [1] : vector<16x16xf32> to vector<16xf32>
    %118 = vector.shape_cast %117 : vector<16xf32> to vector<16x1xf32>
    %119 = arith.mulf %112, %112 : vector<16x16xf32>
    %cst_79 = arith.constant dense<0.000000e+00> : vector<16xf32>
    %120 = vector.multi_reduction <add>, %119, %cst_79 [1] : vector<16x16xf32> to vector<16xf32>
    %121 = vector.shape_cast %120 : vector<16xf32> to vector<16x1xf32>
    %122 = arith.addf %92, %118 : vector<16x1xf32>
    %123 = arith.addf %93, %121 : vector<16x1xf32>
    %c0_80 = arith.constant 0 : index
    %c0_81 = arith.constant 0 : index
    %c0_82 = arith.constant 0 : index
    %124 = vector.load %arg6[%c0_80, %c0_81, %c0_82] : memref<1x16x2xf32, #tpu.memory_space<vmem>>, vector<1x16x1xf32>
    %125 = vector.shape_cast %124 : vector<1x16x1xf32> to vector<16x1xf32>
    %126 = vector.shape_cast %122 : vector<16x1xf32> to vector<1x16x1xf32>
    tpu.vector_store %arg6[%c0_80, %c0_81, %c0_82], %126 {strides = array<i32>} : memref<1x16x2xf32, #tpu.memory_space<vmem>>, vector<1x16x1xf32>,
    %c0_83 = arith.constant 0 : index
    %c0_84 = arith.constant 0 : index
    %c1_85 = arith.constant 1 : index
    %127 = vector.load %arg6[%c0_83, %c0_84, %c1_85] : memref<1x16x2xf32, #tpu.memory_space<vmem>>, vector<1x16x1xf32>
    %128 = vector.shape_cast %127 : vector<1x16x1xf32> to vector<16x1xf32>
    %129 = vector.shape_cast %123 : vector<16x1xf32> to vector<1x16x1xf32>
    tpu.vector_store %arg6[%c0_83, %c0_84, %c1_85], %129 {strides = array<i32>} : memref<1x16x2xf32, #tpu.memory_space<vmem>>, vector<1x16x1xf32>,
    return
  }
  func.func @transform_0(%arg0: i32) -> (i32, i32, i32) {
    %c0_i32 = arith.constant 0 : i32
    %c0_i32_0 = arith.constant 0 : i32
    %c0_i32_1 = arith.constant 0 : i32
    %c0_i32_2 = arith.constant 0 : i32
    return %c0_i32, %c0_i32_0, %c0_i32_1 : i32, i32, i32
  }
  func.func @transform_1(%arg0: i32) -> (i32, i32, i32) {
    %c0_i32 = arith.constant 0 : i32
    %0 = arith.addi %arg0, %c0_i32 : i32
    %c0_i32_0 = arith.constant 0 : i32
    %c0_i32_1 = arith.constant 0 : i32
    %c0_i32_2 = arith.constant 0 : i32
    return %0, %c0_i32_0, %c0_i32_1 : i32, i32, i32
  }
  func.func @transform_2(%arg0: i32) -> (i32, i32, i32) {
    %c1_i32 = arith.constant 1 : i32
    %0 = arith.addi %arg0, %c1_i32 : i32
    %c0_i32 = arith.constant 0 : i32
    %c0_i32_0 = arith.constant 0 : i32
    %c0_i32_1 = arith.constant 0 : i32
    return %0, %c0_i32, %c0_i32_0 : i32, i32, i32
  }
  func.func @transform_3(%arg0: i32) -> (i32, i32, i32) {
    %c2_i32 = arith.constant 2 : i32
    %0 = arith.addi %arg0, %c2_i32 : i32
    %c0_i32 = arith.constant 0 : i32
    %c0_i32_0 = arith.constant 0 : i32
    %c0_i32_1 = arith.constant 0 : i32
    return %0, %c0_i32, %c0_i32_0 : i32, i32, i32
  }
  func.func @transform_4(%arg0: i32) -> (i32, i32, i32, i32) {
    %c0_i32 = arith.constant 0 : i32
    %c0_i32_0 = arith.constant 0 : i32
    %c0_i32_1 = arith.constant 0 : i32
    %c0_i32_2 = arith.constant 0 : i32
    return %arg0, %c0_i32, %c0_i32_0, %c0_i32_1 : i32, i32, i32, i32
  }
  func.func @transform_5(%arg0: i32) -> (i32, i32, i32) {
    %c0_i32 = arith.constant 0 : i32
    %c0_i32_0 = arith.constant 0 : i32
    %c0_i32_1 = arith.constant 0 : i32
    return %arg0, %c0_i32, %c0_i32_0 : i32, i32, i32
  }
}

module attributes {stable_mosaic.version = 11 : i64} {
  func.func @_bn_relu_kernel(%arg0: i32, %arg1: memref<16x16x16xbf16, #tpu.memory_space<vmem>>, %arg2: memref<1x16x1xf32, #tpu.memory_space<vmem>>, %arg3: memref<1x16x1xf32, #tpu.memory_space<vmem>>, %arg4: memref<16x16x16xbf16, #tpu.memory_space<vmem>>) attributes {dimension_semantics = [#tpu.dimension_semantics<parallel>], iteration_bounds = array<i64: 2>, scalar_prefetch = 0 : i64, scratch_operands = 0 : i64, tpu.core_type = #tpu.core_type<tc>, window_params = [{transform_indices = @transform_0, window_bounds = array<i64: 16, 16, 16>}, {pipeline_mode = #tpu.pipeline_mode<synchronous>, transform_indices = @transform_1, window_bounds = array<i64: 1, 16, 1>}, {pipeline_mode = #tpu.pipeline_mode<synchronous>, transform_indices = @transform_2, window_bounds = array<i64: 1, 16, 1>}, {transform_indices = @transform_3, window_bounds = array<i64: 16, 16, 16>}]} {
    %c0 = arith.constant 0 : index
    %c0_0 = arith.constant 0 : index
    %c0_1 = arith.constant 0 : index
    %0 = vector.load %arg1[%c0, %c0_0, %c0_1] : memref<16x16x16xbf16, #tpu.memory_space<vmem>>, vector<16x16x16xbf16>
    %1 = arith.extf %0 : vector<16x16x16xbf16> to vector<16x16x16xf32>
    %c0_2 = arith.constant 0 : index
    %c0_3 = arith.constant 0 : index
    %c0_4 = arith.constant 0 : index
    %2 = vector.load %arg2[%c0_2, %c0_3, %c0_4] : memref<1x16x1xf32, #tpu.memory_space<vmem>>, vector<1x16x1xf32>
    %3 = vector.broadcast %2 : vector<1x16x1xf32> to vector<16x16x16xf32>
    %4 = arith.mulf %1, %3 : vector<16x16x16xf32>
    %c0_5 = arith.constant 0 : index
    %c0_6 = arith.constant 0 : index
    %c0_7 = arith.constant 0 : index
    %5 = vector.load %arg3[%c0_5, %c0_6, %c0_7] : memref<1x16x1xf32, #tpu.memory_space<vmem>>, vector<1x16x1xf32>
    %6 = vector.broadcast %5 : vector<1x16x1xf32> to vector<16x16x16xf32>
    %7 = arith.addf %4, %6 : vector<16x16x16xf32>
    %cst = arith.constant 0.000000e+00 : f32
    %8 = vector.broadcast %cst : f32 to vector<16x16x16xf32>
    %9 = arith.maximumf %7, %8 : vector<16x16x16xf32>
    %10 = arith.truncf %9 : vector<16x16x16xf32> to vector<16x16x16xbf16>
    %c0_8 = arith.constant 0 : index
    %c0_9 = arith.constant 0 : index
    %c0_10 = arith.constant 0 : index
    %11 = vector.load %arg4[%c0_8, %c0_9, %c0_10] : memref<16x16x16xbf16, #tpu.memory_space<vmem>>, vector<16x16x16xbf16>
    tpu.vector_store %arg4[%c0_8, %c0_9, %c0_10], %10 {strides = array<i32>} : memref<16x16x16xbf16, #tpu.memory_space<vmem>>, vector<16x16x16xbf16>,
    return
  }
  func.func @transform_0(%arg0: i32) -> (i32, i32, i32) {
    %c0_i32 = arith.constant 0 : i32
    %c0_i32_0 = arith.constant 0 : i32
    %c0_i32_1 = arith.constant 0 : i32
    return %arg0, %c0_i32, %c0_i32_0 : i32, i32, i32
  }
  func.func @transform_1(%arg0: i32) -> (i32, i32, i32) {
    %c0_i32 = arith.constant 0 : i32
    %c0_i32_0 = arith.constant 0 : i32
    %c0_i32_1 = arith.constant 0 : i32
    %c0_i32_2 = arith.constant 0 : i32
    return %c0_i32, %c0_i32_0, %c0_i32_1 : i32, i32, i32
  }
  func.func @transform_2(%arg0: i32) -> (i32, i32, i32) {
    %c0_i32 = arith.constant 0 : i32
    %c0_i32_0 = arith.constant 0 : i32
    %c0_i32_1 = arith.constant 0 : i32
    %c0_i32_2 = arith.constant 0 : i32
    return %c0_i32, %c0_i32_0, %c0_i32_1 : i32, i32, i32
  }
  func.func @transform_3(%arg0: i32) -> (i32, i32, i32) {
    %c0_i32 = arith.constant 0 : i32
    %c0_i32_0 = arith.constant 0 : i32
    %c0_i32_1 = arith.constant 0 : i32
    return %arg0, %c0_i32, %c0_i32_0 : i32, i32, i32
  }
}

module attributes {stable_mosaic.version = 11 : i64} {
  func.func @_bn_relu_kernel(%arg0: i32, %arg1: memref<32x8x32xbf16, #tpu.memory_space<vmem>>, %arg2: memref<1x8x1xf32, #tpu.memory_space<vmem>>, %arg3: memref<1x8x1xf32, #tpu.memory_space<vmem>>, %arg4: memref<32x8x32xbf16, #tpu.memory_space<vmem>>) attributes {dimension_semantics = [#tpu.dimension_semantics<parallel>], iteration_bounds = array<i64: 2>, scalar_prefetch = 0 : i64, scratch_operands = 0 : i64, tpu.core_type = #tpu.core_type<tc>, window_params = [{transform_indices = @transform_0, window_bounds = array<i64: 32, 8, 32>}, {pipeline_mode = #tpu.pipeline_mode<synchronous>, transform_indices = @transform_1, window_bounds = array<i64: 1, 8, 1>}, {pipeline_mode = #tpu.pipeline_mode<synchronous>, transform_indices = @transform_2, window_bounds = array<i64: 1, 8, 1>}, {transform_indices = @transform_3, window_bounds = array<i64: 32, 8, 32>}]} {
    %c0 = arith.constant 0 : index
    %c0_0 = arith.constant 0 : index
    %c0_1 = arith.constant 0 : index
    %0 = vector.load %arg1[%c0, %c0_0, %c0_1] : memref<32x8x32xbf16, #tpu.memory_space<vmem>>, vector<32x8x32xbf16>
    %1 = arith.extf %0 : vector<32x8x32xbf16> to vector<32x8x32xf32>
    %c0_2 = arith.constant 0 : index
    %c0_3 = arith.constant 0 : index
    %c0_4 = arith.constant 0 : index
    %2 = vector.load %arg2[%c0_2, %c0_3, %c0_4] : memref<1x8x1xf32, #tpu.memory_space<vmem>>, vector<1x8x1xf32>
    %3 = vector.broadcast %2 : vector<1x8x1xf32> to vector<32x8x32xf32>
    %4 = arith.mulf %1, %3 : vector<32x8x32xf32>
    %c0_5 = arith.constant 0 : index
    %c0_6 = arith.constant 0 : index
    %c0_7 = arith.constant 0 : index
    %5 = vector.load %arg3[%c0_5, %c0_6, %c0_7] : memref<1x8x1xf32, #tpu.memory_space<vmem>>, vector<1x8x1xf32>
    %6 = vector.broadcast %5 : vector<1x8x1xf32> to vector<32x8x32xf32>
    %7 = arith.addf %4, %6 : vector<32x8x32xf32>
    %cst = arith.constant 0.000000e+00 : f32
    %8 = vector.broadcast %cst : f32 to vector<32x8x32xf32>
    %9 = arith.maximumf %7, %8 : vector<32x8x32xf32>
    %10 = arith.truncf %9 : vector<32x8x32xf32> to vector<32x8x32xbf16>
    %c0_8 = arith.constant 0 : index
    %c0_9 = arith.constant 0 : index
    %c0_10 = arith.constant 0 : index
    %11 = vector.load %arg4[%c0_8, %c0_9, %c0_10] : memref<32x8x32xbf16, #tpu.memory_space<vmem>>, vector<32x8x32xbf16>
    tpu.vector_store %arg4[%c0_8, %c0_9, %c0_10], %10 {strides = array<i32>} : memref<32x8x32xbf16, #tpu.memory_space<vmem>>, vector<32x8x32xbf16>,
    return
  }
  func.func @transform_0(%arg0: i32) -> (i32, i32, i32) {
    %c0_i32 = arith.constant 0 : i32
    %c0_i32_0 = arith.constant 0 : i32
    %c0_i32_1 = arith.constant 0 : i32
    return %arg0, %c0_i32, %c0_i32_0 : i32, i32, i32
  }
  func.func @transform_1(%arg0: i32) -> (i32, i32, i32) {
    %c0_i32 = arith.constant 0 : i32
    %c0_i32_0 = arith.constant 0 : i32
    %c0_i32_1 = arith.constant 0 : i32
    %c0_i32_2 = arith.constant 0 : i32
    return %c0_i32, %c0_i32_0, %c0_i32_1 : i32, i32, i32
  }
  func.func @transform_2(%arg0: i32) -> (i32, i32, i32) {
    %c0_i32 = arith.constant 0 : i32
    %c0_i32_0 = arith.constant 0 : i32
    %c0_i32_1 = arith.constant 0 : i32
    %c0_i32_2 = arith.constant 0 : i32
    return %c0_i32, %c0_i32_0, %c0_i32_1 : i32, i32, i32
  }
  func.func @transform_3(%arg0: i32) -> (i32, i32, i32) {
    %c0_i32 = arith.constant 0 : i32
    %c0_i32_0 = arith.constant 0 : i32
    %c0_i32_1 = arith.constant 0 : i32
    return %arg0, %c0_i32, %c0_i32_0 : i32, i32, i32
  }
}

module attributes {stable_mosaic.version = 11 : i64} {
  func.func @kernel(%arg0: i32, %arg1: memref<16x8x16xbf16, #tpu.memory_space<vmem>>, %arg2: memref<1x16x36xbf16, #tpu.memory_space<vmem>>, %arg3: memref<1x16x36xbf16, #tpu.memory_space<vmem>>, %arg4: memref<1x16x36xbf16, #tpu.memory_space<vmem>>, %arg5: memref<2x2x8x32xbf16, #tpu.memory_space<vmem>>, %arg6: memref<1x8x2xf32, #tpu.memory_space<vmem>>) attributes {dimension_semantics = [#tpu.dimension_semantics<parallel>], iteration_bounds = array<i64: 16>, scalar_prefetch = 0 : i64, scratch_operands = 0 : i64, tpu.core_type = #tpu.core_type<tc>, window_params = [{pipeline_mode = #tpu.pipeline_mode<synchronous>, transform_indices = @transform_0, window_bounds = array<i64: 16, 8, 16>}, {transform_indices = @transform_1, window_bounds = array<i64: 1, 16, 36>}, {transform_indices = @transform_2, window_bounds = array<i64: 1, 16, 36>}, {transform_indices = @transform_3, window_bounds = array<i64: 1, 16, 36>}, {transform_indices = @transform_4, window_bounds = array<i64: 2, 2, 8, 32>}, {transform_indices = @transform_5, window_bounds = array<i64: 1, 8, 2>}]} {
    %c0 = arith.constant 0 : index
    %c0_0 = arith.constant 0 : index
    %c0_1 = arith.constant 0 : index
    %0 = vector.load %arg2[%c0, %c0_0, %c0_1] : memref<1x16x36xbf16, #tpu.memory_space<vmem>>, vector<1x16x36xbf16>
    %1 = vector.shape_cast %0 : vector<1x16x36xbf16> to vector<16x36xbf16>
    %c0_2 = arith.constant 0 : index
    %c0_3 = arith.constant 0 : index
    %c0_4 = arith.constant 0 : index
    %2 = vector.load %arg3[%c0_2, %c0_3, %c0_4] : memref<1x16x36xbf16, #tpu.memory_space<vmem>>, vector<1x16x36xbf16>
    %3 = vector.shape_cast %2 : vector<1x16x36xbf16> to vector<16x36xbf16>
    %c0_5 = arith.constant 0 : index
    %c0_6 = arith.constant 0 : index
    %c0_7 = arith.constant 0 : index
    %4 = vector.load %arg4[%c0_5, %c0_6, %c0_7] : memref<1x16x36xbf16, #tpu.memory_space<vmem>>, vector<1x16x36xbf16>
    %5 = vector.shape_cast %4 : vector<1x16x36xbf16> to vector<16x36xbf16>
    %6 = vector.extract_strided_slice %1 {offsets = [0, 0], sizes = [16, 32], strides = [1, 1]} : vector<16x36xbf16> to vector<16x32xbf16>
    %c0_8 = arith.constant 0 : index
    %c0_9 = arith.constant 0 : index
    %c0_10 = arith.constant 0 : index
    %7 = vector.load %arg1[%c0_8, %c0_9, %c0_10] : memref<16x8x16xbf16, #tpu.memory_space<vmem>>, vector<1x8x16xbf16>
    %8 = vector.shape_cast %7 : vector<1x8x16xbf16> to vector<8x16xbf16>
    %cst = arith.constant dense<0.000000e+00> : vector<8x32xf32>
    %9 = tpu.matmul %8, %6, %cst {dimension_numbers = #tpu.dot_dimension_numbers<[1], [0], [0], [1], [0, 0, 1, 1], [], []>} : vector<8x16xbf16>, vector<16x32xbf16>, vector<8x32xf32> -> vector<8x32xf32>
    %10 = vector.extract_strided_slice %1 {offsets = [0, 2], sizes = [16, 32], strides = [1, 1]} : vector<16x36xbf16> to vector<16x32xbf16>
    %c1 = arith.constant 1 : index
    %c0_11 = arith.constant 0 : index
    %c0_12 = arith.constant 0 : index
    %11 = vector.load %arg1[%c1, %c0_11, %c0_12] : memref<16x8x16xbf16, #tpu.memory_space<vmem>>, vector<1x8x16xbf16>
    %12 = vector.shape_cast %11 : vector<1x8x16xbf16> to vector<8x16xbf16>
    %cst_13 = arith.constant dense<0.000000e+00> : vector<8x32xf32>
    %13 = tpu.matmul %12, %10, %cst_13 {dimension_numbers = #tpu.dot_dimension_numbers<[1], [0], [0], [1], [0, 0, 1, 1], [], []>} : vector<8x16xbf16>, vector<16x32xbf16>, vector<8x32xf32> -> vector<8x32xf32>
    %14 = arith.addf %9, %13 : vector<8x32xf32>
    %15 = vector.extract_strided_slice %3 {offsets = [0, 0], sizes = [16, 32], strides = [1, 1]} : vector<16x36xbf16> to vector<16x32xbf16>
    %c2 = arith.constant 2 : index
    %c0_14 = arith.constant 0 : index
    %c0_15 = arith.constant 0 : index
    %16 = vector.load %arg1[%c2, %c0_14, %c0_15] : memref<16x8x16xbf16, #tpu.memory_space<vmem>>, vector<1x8x16xbf16>
    %17 = vector.shape_cast %16 : vector<1x8x16xbf16> to vector<8x16xbf16>
    %cst_16 = arith.constant dense<0.000000e+00> : vector<8x32xf32>
    %18 = tpu.matmul %17, %15, %cst_16 {dimension_numbers = #tpu.dot_dimension_numbers<[1], [0], [0], [1], [0, 0, 1, 1], [], []>} : vector<8x16xbf16>, vector<16x32xbf16>, vector<8x32xf32> -> vector<8x32xf32>
    %19 = arith.addf %14, %18 : vector<8x32xf32>
    %20 = vector.extract_strided_slice %3 {offsets = [0, 2], sizes = [16, 32], strides = [1, 1]} : vector<16x36xbf16> to vector<16x32xbf16>
    %c3 = arith.constant 3 : index
    %c0_17 = arith.constant 0 : index
    %c0_18 = arith.constant 0 : index
    %21 = vector.load %arg1[%c3, %c0_17, %c0_18] : memref<16x8x16xbf16, #tpu.memory_space<vmem>>, vector<1x8x16xbf16>
    %22 = vector.shape_cast %21 : vector<1x8x16xbf16> to vector<8x16xbf16>
    %cst_19 = arith.constant dense<0.000000e+00> : vector<8x32xf32>
    %23 = tpu.matmul %22, %20, %cst_19 {dimension_numbers = #tpu.dot_dimension_numbers<[1], [0], [0], [1], [0, 0, 1, 1], [], []>} : vector<8x16xbf16>, vector<16x32xbf16>, vector<8x32xf32> -> vector<8x32xf32>
    %24 = arith.addf %19, %23 : vector<8x32xf32>
    %25 = arith.truncf %24 : vector<8x32xf32> to vector<8x32xbf16>
    %c0_20 = arith.constant 0 : index
    %c0_21 = arith.constant 0 : index
    %c0_22 = arith.constant 0 : index
    %c0_23 = arith.constant 0 : index
    %26 = vector.load %arg5[%c0_20, %c0_21, %c0_22, %c0_23] : memref<2x2x8x32xbf16, #tpu.memory_space<vmem>>, vector<1x1x8x32xbf16>
    %27 = vector.shape_cast %26 : vector<1x1x8x32xbf16> to vector<8x32xbf16>
    %28 = vector.shape_cast %25 : vector<8x32xbf16> to vector<1x1x8x32xbf16>
    tpu.vector_store %arg5[%c0_20, %c0_21, %c0_22, %c0_23], %28 {strides = array<i32>} : memref<2x2x8x32xbf16, #tpu.memory_space<vmem>>, vector<1x1x8x32xbf16>,
    %cst_24 = arith.constant dense<0.000000e+00> : vector<8xf32>
    %29 = vector.multi_reduction <add>, %24, %cst_24 [1] : vector<8x32xf32> to vector<8xf32>
    %30 = vector.shape_cast %29 : vector<8xf32> to vector<8x1xf32>
    %31 = arith.mulf %24, %24 : vector<8x32xf32>
    %cst_25 = arith.constant dense<0.000000e+00> : vector<8xf32>
    %32 = vector.multi_reduction <add>, %31, %cst_25 [1] : vector<8x32xf32> to vector<8xf32>
    %33 = vector.shape_cast %32 : vector<8xf32> to vector<8x1xf32>
    %34 = vector.extract_strided_slice %1 {offsets = [0, 2], sizes = [16, 32], strides = [1, 1]} : vector<16x36xbf16> to vector<16x32xbf16>
    %c4 = arith.constant 4 : index
    %c0_26 = arith.constant 0 : index
    %c0_27 = arith.constant 0 : index
    %35 = vector.load %arg1[%c4, %c0_26, %c0_27] : memref<16x8x16xbf16, #tpu.memory_space<vmem>>, vector<1x8x16xbf16>
    %36 = vector.shape_cast %35 : vector<1x8x16xbf16> to vector<8x16xbf16>
    %cst_28 = arith.constant dense<0.000000e+00> : vector<8x32xf32>
    %37 = tpu.matmul %36, %34, %cst_28 {dimension_numbers = #tpu.dot_dimension_numbers<[1], [0], [0], [1], [0, 0, 1, 1], [], []>} : vector<8x16xbf16>, vector<16x32xbf16>, vector<8x32xf32> -> vector<8x32xf32>
    %38 = vector.extract_strided_slice %1 {offsets = [0, 4], sizes = [16, 32], strides = [1, 1]} : vector<16x36xbf16> to vector<16x32xbf16>
    %c5 = arith.constant 5 : index
    %c0_29 = arith.constant 0 : index
    %c0_30 = arith.constant 0 : index
    %39 = vector.load %arg1[%c5, %c0_29, %c0_30] : memref<16x8x16xbf16, #tpu.memory_space<vmem>>, vector<1x8x16xbf16>
    %40 = vector.shape_cast %39 : vector<1x8x16xbf16> to vector<8x16xbf16>
    %cst_31 = arith.constant dense<0.000000e+00> : vector<8x32xf32>
    %41 = tpu.matmul %40, %38, %cst_31 {dimension_numbers = #tpu.dot_dimension_numbers<[1], [0], [0], [1], [0, 0, 1, 1], [], []>} : vector<8x16xbf16>, vector<16x32xbf16>, vector<8x32xf32> -> vector<8x32xf32>
    %42 = arith.addf %37, %41 : vector<8x32xf32>
    %43 = vector.extract_strided_slice %3 {offsets = [0, 2], sizes = [16, 32], strides = [1, 1]} : vector<16x36xbf16> to vector<16x32xbf16>
    %c6 = arith.constant 6 : index
    %c0_32 = arith.constant 0 : index
    %c0_33 = arith.constant 0 : index
    %44 = vector.load %arg1[%c6, %c0_32, %c0_33] : memref<16x8x16xbf16, #tpu.memory_space<vmem>>, vector<1x8x16xbf16>
    %45 = vector.shape_cast %44 : vector<1x8x16xbf16> to vector<8x16xbf16>
    %cst_34 = arith.constant dense<0.000000e+00> : vector<8x32xf32>
    %46 = tpu.matmul %45, %43, %cst_34 {dimension_numbers = #tpu.dot_dimension_numbers<[1], [0], [0], [1], [0, 0, 1, 1], [], []>} : vector<8x16xbf16>, vector<16x32xbf16>, vector<8x32xf32> -> vector<8x32xf32>
    %47 = arith.addf %42, %46 : vector<8x32xf32>
    %48 = vector.extract_strided_slice %3 {offsets = [0, 4], sizes = [16, 32], strides = [1, 1]} : vector<16x36xbf16> to vector<16x32xbf16>
    %c7 = arith.constant 7 : index
    %c0_35 = arith.constant 0 : index
    %c0_36 = arith.constant 0 : index
    %49 = vector.load %arg1[%c7, %c0_35, %c0_36] : memref<16x8x16xbf16, #tpu.memory_space<vmem>>, vector<1x8x16xbf16>
    %50 = vector.shape_cast %49 : vector<1x8x16xbf16> to vector<8x16xbf16>
    %cst_37 = arith.constant dense<0.000000e+00> : vector<8x32xf32>
    %51 = tpu.matmul %50, %48, %cst_37 {dimension_numbers = #tpu.dot_dimension_numbers<[1], [0], [0], [1], [0, 0, 1, 1], [], []>} : vector<8x16xbf16>, vector<16x32xbf16>, vector<8x32xf32> -> vector<8x32xf32>
    %52 = arith.addf %47, %51 : vector<8x32xf32>
    %53 = arith.truncf %52 : vector<8x32xf32> to vector<8x32xbf16>
    %c0_38 = arith.constant 0 : index
    %c1_39 = arith.constant 1 : index
    %c0_40 = arith.constant 0 : index
    %c0_41 = arith.constant 0 : index
    %54 = vector.load %arg5[%c0_38, %c1_39, %c0_40, %c0_41] : memref<2x2x8x32xbf16, #tpu.memory_space<vmem>>, vector<1x1x8x32xbf16>
    %55 = vector.shape_cast %54 : vector<1x1x8x32xbf16> to vector<8x32xbf16>
    %56 = vector.shape_cast %53 : vector<8x32xbf16> to vector<1x1x8x32xbf16>
    tpu.vector_store %arg5[%c0_38, %c1_39, %c0_40, %c0_41], %56 {strides = array<i32>} : memref<2x2x8x32xbf16, #tpu.memory_space<vmem>>, vector<1x1x8x32xbf16>,
    %cst_42 = arith.constant dense<0.000000e+00> : vector<8xf32>
    %57 = vector.multi_reduction <add>, %52, %cst_42 [1] : vector<8x32xf32> to vector<8xf32>
    %58 = vector.shape_cast %57 : vector<8xf32> to vector<8x1xf32>
    %59 = arith.mulf %52, %52 : vector<8x32xf32>
    %cst_43 = arith.constant dense<0.000000e+00> : vector<8xf32>
    %60 = vector.multi_reduction <add>, %59, %cst_43 [1] : vector<8x32xf32> to vector<8xf32>
    %61 = vector.shape_cast %60 : vector<8xf32> to vector<8x1xf32>
    %62 = arith.addf %30, %58 : vector<8x1xf32>
    %63 = arith.addf %33, %61 : vector<8x1xf32>
    %64 = vector.extract_strided_slice %3 {offsets = [0, 0], sizes = [16, 32], strides = [1, 1]} : vector<16x36xbf16> to vector<16x32xbf16>
    %c8 = arith.constant 8 : index
    %c0_44 = arith.constant 0 : index
    %c0_45 = arith.constant 0 : index
    %65 = vector.load %arg1[%c8, %c0_44, %c0_45] : memref<16x8x16xbf16, #tpu.memory_space<vmem>>, vector<1x8x16xbf16>
    %66 = vector.shape_cast %65 : vector<1x8x16xbf16> to vector<8x16xbf16>
    %cst_46 = arith.constant dense<0.000000e+00> : vector<8x32xf32>
    %67 = tpu.matmul %66, %64, %cst_46 {dimension_numbers = #tpu.dot_dimension_numbers<[1], [0], [0], [1], [0, 0, 1, 1], [], []>} : vector<8x16xbf16>, vector<16x32xbf16>, vector<8x32xf32> -> vector<8x32xf32>
    %68 = vector.extract_strided_slice %3 {offsets = [0, 2], sizes = [16, 32], strides = [1, 1]} : vector<16x36xbf16> to vector<16x32xbf16>
    %c9 = arith.constant 9 : index
    %c0_47 = arith.constant 0 : index
    %c0_48 = arith.constant 0 : index
    %69 = vector.load %arg1[%c9, %c0_47, %c0_48] : memref<16x8x16xbf16, #tpu.memory_space<vmem>>, vector<1x8x16xbf16>
    %70 = vector.shape_cast %69 : vector<1x8x16xbf16> to vector<8x16xbf16>
    %cst_49 = arith.constant dense<0.000000e+00> : vector<8x32xf32>
    %71 = tpu.matmul %70, %68, %cst_49 {dimension_numbers = #tpu.dot_dimension_numbers<[1], [0], [0], [1], [0, 0, 1, 1], [], []>} : vector<8x16xbf16>, vector<16x32xbf16>, vector<8x32xf32> -> vector<8x32xf32>
    %72 = arith.addf %67, %71 : vector<8x32xf32>
    %73 = vector.extract_strided_slice %5 {offsets = [0, 0], sizes = [16, 32], strides = [1, 1]} : vector<16x36xbf16> to vector<16x32xbf16>
    %c10 = arith.constant 10 : index
    %c0_50 = arith.constant 0 : index
    %c0_51 = arith.constant 0 : index
    %74 = vector.load %arg1[%c10, %c0_50, %c0_51] : memref<16x8x16xbf16, #tpu.memory_space<vmem>>, vector<1x8x16xbf16>
    %75 = vector.shape_cast %74 : vector<1x8x16xbf16> to vector<8x16xbf16>
    %cst_52 = arith.constant dense<0.000000e+00> : vector<8x32xf32>
    %76 = tpu.matmul %75, %73, %cst_52 {dimension_numbers = #tpu.dot_dimension_numbers<[1], [0], [0], [1], [0, 0, 1, 1], [], []>} : vector<8x16xbf16>, vector<16x32xbf16>, vector<8x32xf32> -> vector<8x32xf32>
    %77 = arith.addf %72, %76 : vector<8x32xf32>
    %78 = vector.extract_strided_slice %5 {offsets = [0, 2], sizes = [16, 32], strides = [1, 1]} : vector<16x36xbf16> to vector<16x32xbf16>
    %c11 = arith.constant 11 : index
    %c0_53 = arith.constant 0 : index
    %c0_54 = arith.constant 0 : index
    %79 = vector.load %arg1[%c11, %c0_53, %c0_54] : memref<16x8x16xbf16, #tpu.memory_space<vmem>>, vector<1x8x16xbf16>
    %80 = vector.shape_cast %79 : vector<1x8x16xbf16> to vector<8x16xbf16>
    %cst_55 = arith.constant dense<0.000000e+00> : vector<8x32xf32>
    %81 = tpu.matmul %80, %78, %cst_55 {dimension_numbers = #tpu.dot_dimension_numbers<[1], [0], [0], [1], [0, 0, 1, 1], [], []>} : vector<8x16xbf16>, vector<16x32xbf16>, vector<8x32xf32> -> vector<8x32xf32>
    %82 = arith.addf %77, %81 : vector<8x32xf32>
    %83 = arith.truncf %82 : vector<8x32xf32> to vector<8x32xbf16>
    %c1_56 = arith.constant 1 : index
    %c0_57 = arith.constant 0 : index
    %c0_58 = arith.constant 0 : index
    %c0_59 = arith.constant 0 : index
    %84 = vector.load %arg5[%c1_56, %c0_57, %c0_58, %c0_59] : memref<2x2x8x32xbf16, #tpu.memory_space<vmem>>, vector<1x1x8x32xbf16>
    %85 = vector.shape_cast %84 : vector<1x1x8x32xbf16> to vector<8x32xbf16>
    %86 = vector.shape_cast %83 : vector<8x32xbf16> to vector<1x1x8x32xbf16>
    tpu.vector_store %arg5[%c1_56, %c0_57, %c0_58, %c0_59], %86 {strides = array<i32>} : memref<2x2x8x32xbf16, #tpu.memory_space<vmem>>, vector<1x1x8x32xbf16>,
    %cst_60 = arith.constant dense<0.000000e+00> : vector<8xf32>
    %87 = vector.multi_reduction <add>, %82, %cst_60 [1] : vector<8x32xf32> to vector<8xf32>
    %88 = vector.shape_cast %87 : vector<8xf32> to vector<8x1xf32>
    %89 = arith.mulf %82, %82 : vector<8x32xf32>
    %cst_61 = arith.constant dense<0.000000e+00> : vector<8xf32>
    %90 = vector.multi_reduction <add>, %89, %cst_61 [1] : vector<8x32xf32> to vector<8xf32>
    %91 = vector.shape_cast %90 : vector<8xf32> to vector<8x1xf32>
    %92 = arith.addf %62, %88 : vector<8x1xf32>
    %93 = arith.addf %63, %91 : vector<8x1xf32>
    %94 = vector.extract_strided_slice %3 {offsets = [0, 2], sizes = [16, 32], strides = [1, 1]} : vector<16x36xbf16> to vector<16x32xbf16>
    %c12 = arith.constant 12 : index
    %c0_62 = arith.constant 0 : index
    %c0_63 = arith.constant 0 : index
    %95 = vector.load %arg1[%c12, %c0_62, %c0_63] : memref<16x8x16xbf16, #tpu.memory_space<vmem>>, vector<1x8x16xbf16>
    %96 = vector.shape_cast %95 : vector<1x8x16xbf16> to vector<8x16xbf16>
    %cst_64 = arith.constant dense<0.000000e+00> : vector<8x32xf32>
    %97 = tpu.matmul %96, %94, %cst_64 {dimension_numbers = #tpu.dot_dimension_numbers<[1], [0], [0], [1], [0, 0, 1, 1], [], []>} : vector<8x16xbf16>, vector<16x32xbf16>, vector<8x32xf32> -> vector<8x32xf32>
    %98 = vector.extract_strided_slice %3 {offsets = [0, 4], sizes = [16, 32], strides = [1, 1]} : vector<16x36xbf16> to vector<16x32xbf16>
    %c13 = arith.constant 13 : index
    %c0_65 = arith.constant 0 : index
    %c0_66 = arith.constant 0 : index
    %99 = vector.load %arg1[%c13, %c0_65, %c0_66] : memref<16x8x16xbf16, #tpu.memory_space<vmem>>, vector<1x8x16xbf16>
    %100 = vector.shape_cast %99 : vector<1x8x16xbf16> to vector<8x16xbf16>
    %cst_67 = arith.constant dense<0.000000e+00> : vector<8x32xf32>
    %101 = tpu.matmul %100, %98, %cst_67 {dimension_numbers = #tpu.dot_dimension_numbers<[1], [0], [0], [1], [0, 0, 1, 1], [], []>} : vector<8x16xbf16>, vector<16x32xbf16>, vector<8x32xf32> -> vector<8x32xf32>
    %102 = arith.addf %97, %101 : vector<8x32xf32>
    %103 = vector.extract_strided_slice %5 {offsets = [0, 2], sizes = [16, 32], strides = [1, 1]} : vector<16x36xbf16> to vector<16x32xbf16>
    %c14 = arith.constant 14 : index
    %c0_68 = arith.constant 0 : index
    %c0_69 = arith.constant 0 : index
    %104 = vector.load %arg1[%c14, %c0_68, %c0_69] : memref<16x8x16xbf16, #tpu.memory_space<vmem>>, vector<1x8x16xbf16>
    %105 = vector.shape_cast %104 : vector<1x8x16xbf16> to vector<8x16xbf16>
    %cst_70 = arith.constant dense<0.000000e+00> : vector<8x32xf32>
    %106 = tpu.matmul %105, %103, %cst_70 {dimension_numbers = #tpu.dot_dimension_numbers<[1], [0], [0], [1], [0, 0, 1, 1], [], []>} : vector<8x16xbf16>, vector<16x32xbf16>, vector<8x32xf32> -> vector<8x32xf32>
    %107 = arith.addf %102, %106 : vector<8x32xf32>
    %108 = vector.extract_strided_slice %5 {offsets = [0, 4], sizes = [16, 32], strides = [1, 1]} : vector<16x36xbf16> to vector<16x32xbf16>
    %c15 = arith.constant 15 : index
    %c0_71 = arith.constant 0 : index
    %c0_72 = arith.constant 0 : index
    %109 = vector.load %arg1[%c15, %c0_71, %c0_72] : memref<16x8x16xbf16, #tpu.memory_space<vmem>>, vector<1x8x16xbf16>
    %110 = vector.shape_cast %109 : vector<1x8x16xbf16> to vector<8x16xbf16>
    %cst_73 = arith.constant dense<0.000000e+00> : vector<8x32xf32>
    %111 = tpu.matmul %110, %108, %cst_73 {dimension_numbers = #tpu.dot_dimension_numbers<[1], [0], [0], [1], [0, 0, 1, 1], [], []>} : vector<8x16xbf16>, vector<16x32xbf16>, vector<8x32xf32> -> vector<8x32xf32>
    %112 = arith.addf %107, %111 : vector<8x32xf32>
    %113 = arith.truncf %112 : vector<8x32xf32> to vector<8x32xbf16>
    %c1_74 = arith.constant 1 : index
    %c1_75 = arith.constant 1 : index
    %c0_76 = arith.constant 0 : index
    %c0_77 = arith.constant 0 : index
    %114 = vector.load %arg5[%c1_74, %c1_75, %c0_76, %c0_77] : memref<2x2x8x32xbf16, #tpu.memory_space<vmem>>, vector<1x1x8x32xbf16>
    %115 = vector.shape_cast %114 : vector<1x1x8x32xbf16> to vector<8x32xbf16>
    %116 = vector.shape_cast %113 : vector<8x32xbf16> to vector<1x1x8x32xbf16>
    tpu.vector_store %arg5[%c1_74, %c1_75, %c0_76, %c0_77], %116 {strides = array<i32>} : memref<2x2x8x32xbf16, #tpu.memory_space<vmem>>, vector<1x1x8x32xbf16>,
    %cst_78 = arith.constant dense<0.000000e+00> : vector<8xf32>
    %117 = vector.multi_reduction <add>, %112, %cst_78 [1] : vector<8x32xf32> to vector<8xf32>
    %118 = vector.shape_cast %117 : vector<8xf32> to vector<8x1xf32>
    %119 = arith.mulf %112, %112 : vector<8x32xf32>
    %cst_79 = arith.constant dense<0.000000e+00> : vector<8xf32>
    %120 = vector.multi_reduction <add>, %119, %cst_79 [1] : vector<8x32xf32> to vector<8xf32>
    %121 = vector.shape_cast %120 : vector<8xf32> to vector<8x1xf32>
    %122 = arith.addf %92, %118 : vector<8x1xf32>
    %123 = arith.addf %93, %121 : vector<8x1xf32>
    %c0_80 = arith.constant 0 : index
    %c0_81 = arith.constant 0 : index
    %c0_82 = arith.constant 0 : index
    %124 = vector.load %arg6[%c0_80, %c0_81, %c0_82] : memref<1x8x2xf32, #tpu.memory_space<vmem>>, vector<1x8x1xf32>
    %125 = vector.shape_cast %124 : vector<1x8x1xf32> to vector<8x1xf32>
    %126 = vector.shape_cast %122 : vector<8x1xf32> to vector<1x8x1xf32>
    tpu.vector_store %arg6[%c0_80, %c0_81, %c0_82], %126 {strides = array<i32>} : memref<1x8x2xf32, #tpu.memory_space<vmem>>, vector<1x8x1xf32>,
    %c0_83 = arith.constant 0 : index
    %c0_84 = arith.constant 0 : index
    %c1_85 = arith.constant 1 : index
    %127 = vector.load %arg6[%c0_83, %c0_84, %c1_85] : memref<1x8x2xf32, #tpu.memory_space<vmem>>, vector<1x8x1xf32>
    %128 = vector.shape_cast %127 : vector<1x8x1xf32> to vector<8x1xf32>
    %129 = vector.shape_cast %123 : vector<8x1xf32> to vector<1x8x1xf32>
    tpu.vector_store %arg6[%c0_83, %c0_84, %c1_85], %129 {strides = array<i32>} : memref<1x8x2xf32, #tpu.memory_space<vmem>>, vector<1x8x1xf32>,
    return
  }
  func.func @transform_0(%arg0: i32) -> (i32, i32, i32) {
    %c0_i32 = arith.constant 0 : i32
    %c0_i32_0 = arith.constant 0 : i32
    %c0_i32_1 = arith.constant 0 : i32
    %c0_i32_2 = arith.constant 0 : i32
    return %c0_i32, %c0_i32_0, %c0_i32_1 : i32, i32, i32
  }
  func.func @transform_1(%arg0: i32) -> (i32, i32, i32) {
    %c0_i32 = arith.constant 0 : i32
    %0 = arith.addi %arg0, %c0_i32 : i32
    %c0_i32_0 = arith.constant 0 : i32
    %c0_i32_1 = arith.constant 0 : i32
    %c0_i32_2 = arith.constant 0 : i32
    return %0, %c0_i32_0, %c0_i32_1 : i32, i32, i32
  }
  func.func @transform_2(%arg0: i32) -> (i32, i32, i32) {
    %c1_i32 = arith.constant 1 : i32
    %0 = arith.addi %arg0, %c1_i32 : i32
    %c0_i32 = arith.constant 0 : i32
    %c0_i32_0 = arith.constant 0 : i32
    %c0_i32_1 = arith.constant 0 : i32
    return %0, %c0_i32, %c0_i32_0 : i32, i32, i32
  }
  func.func @transform_3(%arg0: i32) -> (i32, i32, i32) {
    %c2_i32 = arith.constant 2 : i32
    %0 = arith.addi %arg0, %c2_i32 : i32
    %c0_i32 = arith.constant 0 : i32
    %c0_i32_0 = arith.constant 0 : i32
    %c0_i32_1 = arith.constant 0 : i32
    return %0, %c0_i32, %c0_i32_0 : i32, i32, i32
  }
  func.func @transform_4(%arg0: i32) -> (i32, i32, i32, i32) {
    %c0_i32 = arith.constant 0 : i32
    %c0_i32_0 = arith.constant 0 : i32
    %c0_i32_1 = arith.constant 0 : i32
    %c0_i32_2 = arith.constant 0 : i32
    return %arg0, %c0_i32, %c0_i32_0, %c0_i32_1 : i32, i32, i32, i32
  }
  func.func @transform_5(%arg0: i32) -> (i32, i32, i32) {
    %c0_i32 = arith.constant 0 : i32
    %c0_i32_0 = arith.constant 0 : i32
    %c0_i32_1 = arith.constant 0 : i32
    return %arg0, %c0_i32, %c0_i32_0 : i32, i32, i32
  }
}

module attributes {stable_mosaic.version = 11 : i64} {
  func.func @kernel(%arg0: i32, %arg1: memref<16x3x8xbf16, #tpu.memory_space<vmem>>, %arg2: memref<1x8x68xbf16, #tpu.memory_space<vmem>>, %arg3: memref<1x8x68xbf16, #tpu.memory_space<vmem>>, %arg4: memref<1x8x68xbf16, #tpu.memory_space<vmem>>, %arg5: memref<1x3x1xf32, #tpu.memory_space<vmem>>, %arg6: memref<2x2x3x64xf32, #tpu.memory_space<vmem>>) attributes {dimension_semantics = [#tpu.dimension_semantics<parallel>], iteration_bounds = array<i64: 32>, scalar_prefetch = 0 : i64, scratch_operands = 0 : i64, tpu.core_type = #tpu.core_type<tc>, window_params = [{pipeline_mode = #tpu.pipeline_mode<synchronous>, transform_indices = @transform_0, window_bounds = array<i64: 16, 3, 8>}, {transform_indices = @transform_1, window_bounds = array<i64: 1, 8, 68>}, {transform_indices = @transform_2, window_bounds = array<i64: 1, 8, 68>}, {transform_indices = @transform_3, window_bounds = array<i64: 1, 8, 68>}, {pipeline_mode = #tpu.pipeline_mode<synchronous>, transform_indices = @transform_4, window_bounds = array<i64: 1, 3, 1>}, {transform_indices = @transform_5, window_bounds = array<i64: 2, 2, 3, 64>}]} {
    %c0 = arith.constant 0 : index
    %c0_0 = arith.constant 0 : index
    %c0_1 = arith.constant 0 : index
    %0 = vector.load %arg2[%c0, %c0_0, %c0_1] : memref<1x8x68xbf16, #tpu.memory_space<vmem>>, vector<1x8x68xbf16>
    %1 = vector.shape_cast %0 : vector<1x8x68xbf16> to vector<8x68xbf16>
    %c0_2 = arith.constant 0 : index
    %c0_3 = arith.constant 0 : index
    %c0_4 = arith.constant 0 : index
    %2 = vector.load %arg3[%c0_2, %c0_3, %c0_4] : memref<1x8x68xbf16, #tpu.memory_space<vmem>>, vector<1x8x68xbf16>
    %3 = vector.shape_cast %2 : vector<1x8x68xbf16> to vector<8x68xbf16>
    %c0_5 = arith.constant 0 : index
    %c0_6 = arith.constant 0 : index
    %c0_7 = arith.constant 0 : index
    %4 = vector.load %arg4[%c0_5, %c0_6, %c0_7] : memref<1x8x68xbf16, #tpu.memory_space<vmem>>, vector<1x8x68xbf16>
    %5 = vector.shape_cast %4 : vector<1x8x68xbf16> to vector<8x68xbf16>
    %6 = vector.extract_strided_slice %1 {offsets = [0, 0], sizes = [8, 64], strides = [1, 1]} : vector<8x68xbf16> to vector<8x64xbf16>
    %c0_8 = arith.constant 0 : index
    %c0_9 = arith.constant 0 : index
    %c0_10 = arith.constant 0 : index
    %7 = vector.load %arg1[%c0_8, %c0_9, %c0_10] : memref<16x3x8xbf16, #tpu.memory_space<vmem>>, vector<1x3x8xbf16>
    %8 = vector.shape_cast %7 : vector<1x3x8xbf16> to vector<3x8xbf16>
    %cst = arith.constant dense<0.000000e+00> : vector<3x64xf32>
    %9 = tpu.matmul %8, %6, %cst {dimension_numbers = #tpu.dot_dimension_numbers<[1], [0], [0], [1], [0, 0, 1, 1], [], []>} : vector<3x8xbf16>, vector<8x64xbf16>, vector<3x64xf32> -> vector<3x64xf32>
    %10 = vector.extract_strided_slice %1 {offsets = [0, 2], sizes = [8, 64], strides = [1, 1]} : vector<8x68xbf16> to vector<8x64xbf16>
    %c1 = arith.constant 1 : index
    %c0_11 = arith.constant 0 : index
    %c0_12 = arith.constant 0 : index
    %11 = vector.load %arg1[%c1, %c0_11, %c0_12] : memref<16x3x8xbf16, #tpu.memory_space<vmem>>, vector<1x3x8xbf16>
    %12 = vector.shape_cast %11 : vector<1x3x8xbf16> to vector<3x8xbf16>
    %cst_13 = arith.constant dense<0.000000e+00> : vector<3x64xf32>
    %13 = tpu.matmul %12, %10, %cst_13 {dimension_numbers = #tpu.dot_dimension_numbers<[1], [0], [0], [1], [0, 0, 1, 1], [], []>} : vector<3x8xbf16>, vector<8x64xbf16>, vector<3x64xf32> -> vector<3x64xf32>
    %14 = arith.addf %9, %13 : vector<3x64xf32>
    %15 = vector.extract_strided_slice %3 {offsets = [0, 0], sizes = [8, 64], strides = [1, 1]} : vector<8x68xbf16> to vector<8x64xbf16>
    %c2 = arith.constant 2 : index
    %c0_14 = arith.constant 0 : index
    %c0_15 = arith.constant 0 : index
    %16 = vector.load %arg1[%c2, %c0_14, %c0_15] : memref<16x3x8xbf16, #tpu.memory_space<vmem>>, vector<1x3x8xbf16>
    %17 = vector.shape_cast %16 : vector<1x3x8xbf16> to vector<3x8xbf16>
    %cst_16 = arith.constant dense<0.000000e+00> : vector<3x64xf32>
    %18 = tpu.matmul %17, %15, %cst_16 {dimension_numbers = #tpu.dot_dimension_numbers<[1], [0], [0], [1], [0, 0, 1, 1], [], []>} : vector<3x8xbf16>, vector<8x64xbf16>, vector<3x64xf32> -> vector<3x64xf32>
    %19 = arith.addf %14, %18 : vector<3x64xf32>
    %20 = vector.extract_strided_slice %3 {offsets = [0, 2], sizes = [8, 64], strides = [1, 1]} : vector<8x68xbf16> to vector<8x64xbf16>
    %c3 = arith.constant 3 : index
    %c0_17 = arith.constant 0 : index
    %c0_18 = arith.constant 0 : index
    %21 = vector.load %arg1[%c3, %c0_17, %c0_18] : memref<16x3x8xbf16, #tpu.memory_space<vmem>>, vector<1x3x8xbf16>
    %22 = vector.shape_cast %21 : vector<1x3x8xbf16> to vector<3x8xbf16>
    %cst_19 = arith.constant dense<0.000000e+00> : vector<3x64xf32>
    %23 = tpu.matmul %22, %20, %cst_19 {dimension_numbers = #tpu.dot_dimension_numbers<[1], [0], [0], [1], [0, 0, 1, 1], [], []>} : vector<3x8xbf16>, vector<8x64xbf16>, vector<3x64xf32> -> vector<3x64xf32>
    %24 = arith.addf %19, %23 : vector<3x64xf32>
    %c0_20 = arith.constant 0 : index
    %c0_21 = arith.constant 0 : index
    %c0_22 = arith.constant 0 : index
    %25 = vector.load %arg5[%c0_20, %c0_21, %c0_22] : memref<1x3x1xf32, #tpu.memory_space<vmem>>, vector<1x3x1xf32>
    %26 = vector.shape_cast %25 : vector<1x3x1xf32> to vector<3x1xf32>
    %27 = vector.broadcast %26 : vector<3x1xf32> to vector<3x64xf32>
    %28 = arith.addf %24, %27 : vector<3x64xf32>
    %29 = math.tanh %28 : vector<3x64xf32>
    %c0_23 = arith.constant 0 : index
    %c0_24 = arith.constant 0 : index
    %c0_25 = arith.constant 0 : index
    %c0_26 = arith.constant 0 : index
    %30 = vector.load %arg6[%c0_23, %c0_24, %c0_25, %c0_26] : memref<2x2x3x64xf32, #tpu.memory_space<vmem>>, vector<1x1x3x64xf32>
    %31 = vector.shape_cast %30 : vector<1x1x3x64xf32> to vector<3x64xf32>
    %32 = vector.shape_cast %29 : vector<3x64xf32> to vector<1x1x3x64xf32>
    tpu.vector_store %arg6[%c0_23, %c0_24, %c0_25, %c0_26], %32 {strides = array<i32>} : memref<2x2x3x64xf32, #tpu.memory_space<vmem>>, vector<1x1x3x64xf32>,
    %33 = vector.extract_strided_slice %1 {offsets = [0, 2], sizes = [8, 64], strides = [1, 1]} : vector<8x68xbf16> to vector<8x64xbf16>
    %c4 = arith.constant 4 : index
    %c0_27 = arith.constant 0 : index
    %c0_28 = arith.constant 0 : index
    %34 = vector.load %arg1[%c4, %c0_27, %c0_28] : memref<16x3x8xbf16, #tpu.memory_space<vmem>>, vector<1x3x8xbf16>
    %35 = vector.shape_cast %34 : vector<1x3x8xbf16> to vector<3x8xbf16>
    %cst_29 = arith.constant dense<0.000000e+00> : vector<3x64xf32>
    %36 = tpu.matmul %35, %33, %cst_29 {dimension_numbers = #tpu.dot_dimension_numbers<[1], [0], [0], [1], [0, 0, 1, 1], [], []>} : vector<3x8xbf16>, vector<8x64xbf16>, vector<3x64xf32> -> vector<3x64xf32>
    %37 = vector.extract_strided_slice %1 {offsets = [0, 4], sizes = [8, 64], strides = [1, 1]} : vector<8x68xbf16> to vector<8x64xbf16>
    %c5 = arith.constant 5 : index
    %c0_30 = arith.constant 0 : index
    %c0_31 = arith.constant 0 : index
    %38 = vector.load %arg1[%c5, %c0_30, %c0_31] : memref<16x3x8xbf16, #tpu.memory_space<vmem>>, vector<1x3x8xbf16>
    %39 = vector.shape_cast %38 : vector<1x3x8xbf16> to vector<3x8xbf16>
    %cst_32 = arith.constant dense<0.000000e+00> : vector<3x64xf32>
    %40 = tpu.matmul %39, %37, %cst_32 {dimension_numbers = #tpu.dot_dimension_numbers<[1], [0], [0], [1], [0, 0, 1, 1], [], []>} : vector<3x8xbf16>, vector<8x64xbf16>, vector<3x64xf32> -> vector<3x64xf32>
    %41 = arith.addf %36, %40 : vector<3x64xf32>
    %42 = vector.extract_strided_slice %3 {offsets = [0, 2], sizes = [8, 64], strides = [1, 1]} : vector<8x68xbf16> to vector<8x64xbf16>
    %c6 = arith.constant 6 : index
    %c0_33 = arith.constant 0 : index
    %c0_34 = arith.constant 0 : index
    %43 = vector.load %arg1[%c6, %c0_33, %c0_34] : memref<16x3x8xbf16, #tpu.memory_space<vmem>>, vector<1x3x8xbf16>
    %44 = vector.shape_cast %43 : vector<1x3x8xbf16> to vector<3x8xbf16>
    %cst_35 = arith.constant dense<0.000000e+00> : vector<3x64xf32>
    %45 = tpu.matmul %44, %42, %cst_35 {dimension_numbers = #tpu.dot_dimension_numbers<[1], [0], [0], [1], [0, 0, 1, 1], [], []>} : vector<3x8xbf16>, vector<8x64xbf16>, vector<3x64xf32> -> vector<3x64xf32>
    %46 = arith.addf %41, %45 : vector<3x64xf32>
    %47 = vector.extract_strided_slice %3 {offsets = [0, 4], sizes = [8, 64], strides = [1, 1]} : vector<8x68xbf16> to vector<8x64xbf16>
    %c7 = arith.constant 7 : index
    %c0_36 = arith.constant 0 : index
    %c0_37 = arith.constant 0 : index
    %48 = vector.load %arg1[%c7, %c0_36, %c0_37] : memref<16x3x8xbf16, #tpu.memory_space<vmem>>, vector<1x3x8xbf16>
    %49 = vector.shape_cast %48 : vector<1x3x8xbf16> to vector<3x8xbf16>
    %cst_38 = arith.constant dense<0.000000e+00> : vector<3x64xf32>
    %50 = tpu.matmul %49, %47, %cst_38 {dimension_numbers = #tpu.dot_dimension_numbers<[1], [0], [0], [1], [0, 0, 1, 1], [], []>} : vector<3x8xbf16>, vector<8x64xbf16>, vector<3x64xf32> -> vector<3x64xf32>
    %51 = arith.addf %46, %50 : vector<3x64xf32>
    %c0_39 = arith.constant 0 : index
    %c0_40 = arith.constant 0 : index
    %c0_41 = arith.constant 0 : index
    %52 = vector.load %arg5[%c0_39, %c0_40, %c0_41] : memref<1x3x1xf32, #tpu.memory_space<vmem>>, vector<1x3x1xf32>
    %53 = vector.shape_cast %52 : vector<1x3x1xf32> to vector<3x1xf32>
    %54 = vector.broadcast %53 : vector<3x1xf32> to vector<3x64xf32>
    %55 = arith.addf %51, %54 : vector<3x64xf32>
    %56 = math.tanh %55 : vector<3x64xf32>
    %c0_42 = arith.constant 0 : index
    %c1_43 = arith.constant 1 : index
    %c0_44 = arith.constant 0 : index
    %c0_45 = arith.constant 0 : index
    %57 = vector.load %arg6[%c0_42, %c1_43, %c0_44, %c0_45] : memref<2x2x3x64xf32, #tpu.memory_space<vmem>>, vector<1x1x3x64xf32>
    %58 = vector.shape_cast %57 : vector<1x1x3x64xf32> to vector<3x64xf32>
    %59 = vector.shape_cast %56 : vector<3x64xf32> to vector<1x1x3x64xf32>
    tpu.vector_store %arg6[%c0_42, %c1_43, %c0_44, %c0_45], %59 {strides = array<i32>} : memref<2x2x3x64xf32, #tpu.memory_space<vmem>>, vector<1x1x3x64xf32>,
    %60 = vector.extract_strided_slice %3 {offsets = [0, 0], sizes = [8, 64], strides = [1, 1]} : vector<8x68xbf16> to vector<8x64xbf16>
    %c8 = arith.constant 8 : index
    %c0_46 = arith.constant 0 : index
    %c0_47 = arith.constant 0 : index
    %61 = vector.load %arg1[%c8, %c0_46, %c0_47] : memref<16x3x8xbf16, #tpu.memory_space<vmem>>, vector<1x3x8xbf16>
    %62 = vector.shape_cast %61 : vector<1x3x8xbf16> to vector<3x8xbf16>
    %cst_48 = arith.constant dense<0.000000e+00> : vector<3x64xf32>
    %63 = tpu.matmul %62, %60, %cst_48 {dimension_numbers = #tpu.dot_dimension_numbers<[1], [0], [0], [1], [0, 0, 1, 1], [], []>} : vector<3x8xbf16>, vector<8x64xbf16>, vector<3x64xf32> -> vector<3x64xf32>
    %64 = vector.extract_strided_slice %3 {offsets = [0, 2], sizes = [8, 64], strides = [1, 1]} : vector<8x68xbf16> to vector<8x64xbf16>
    %c9 = arith.constant 9 : index
    %c0_49 = arith.constant 0 : index
    %c0_50 = arith.constant 0 : index
    %65 = vector.load %arg1[%c9, %c0_49, %c0_50] : memref<16x3x8xbf16, #tpu.memory_space<vmem>>, vector<1x3x8xbf16>
    %66 = vector.shape_cast %65 : vector<1x3x8xbf16> to vector<3x8xbf16>
    %cst_51 = arith.constant dense<0.000000e+00> : vector<3x64xf32>
    %67 = tpu.matmul %66, %64, %cst_51 {dimension_numbers = #tpu.dot_dimension_numbers<[1], [0], [0], [1], [0, 0, 1, 1], [], []>} : vector<3x8xbf16>, vector<8x64xbf16>, vector<3x64xf32> -> vector<3x64xf32>
    %68 = arith.addf %63, %67 : vector<3x64xf32>
    %69 = vector.extract_strided_slice %5 {offsets = [0, 0], sizes = [8, 64], strides = [1, 1]} : vector<8x68xbf16> to vector<8x64xbf16>
    %c10 = arith.constant 10 : index
    %c0_52 = arith.constant 0 : index
    %c0_53 = arith.constant 0 : index
    %70 = vector.load %arg1[%c10, %c0_52, %c0_53] : memref<16x3x8xbf16, #tpu.memory_space<vmem>>, vector<1x3x8xbf16>
    %71 = vector.shape_cast %70 : vector<1x3x8xbf16> to vector<3x8xbf16>
    %cst_54 = arith.constant dense<0.000000e+00> : vector<3x64xf32>
    %72 = tpu.matmul %71, %69, %cst_54 {dimension_numbers = #tpu.dot_dimension_numbers<[1], [0], [0], [1], [0, 0, 1, 1], [], []>} : vector<3x8xbf16>, vector<8x64xbf16>, vector<3x64xf32> -> vector<3x64xf32>
    %73 = arith.addf %68, %72 : vector<3x64xf32>
    %74 = vector.extract_strided_slice %5 {offsets = [0, 2], sizes = [8, 64], strides = [1, 1]} : vector<8x68xbf16> to vector<8x64xbf16>
    %c11 = arith.constant 11 : index
    %c0_55 = arith.constant 0 : index
    %c0_56 = arith.constant 0 : index
    %75 = vector.load %arg1[%c11, %c0_55, %c0_56] : memref<16x3x8xbf16, #tpu.memory_space<vmem>>, vector<1x3x8xbf16>
    %76 = vector.shape_cast %75 : vector<1x3x8xbf16> to vector<3x8xbf16>
    %cst_57 = arith.constant dense<0.000000e+00> : vector<3x64xf32>
    %77 = tpu.matmul %76, %74, %cst_57 {dimension_numbers = #tpu.dot_dimension_numbers<[1], [0], [0], [1], [0, 0, 1, 1], [], []>} : vector<3x8xbf16>, vector<8x64xbf16>, vector<3x64xf32> -> vector<3x64xf32>
    %78 = arith.addf %73, %77 : vector<3x64xf32>
    %c0_58 = arith.constant 0 : index
    %c0_59 = arith.constant 0 : index
    %c0_60 = arith.constant 0 : index
    %79 = vector.load %arg5[%c0_58, %c0_59, %c0_60] : memref<1x3x1xf32, #tpu.memory_space<vmem>>, vector<1x3x1xf32>
    %80 = vector.shape_cast %79 : vector<1x3x1xf32> to vector<3x1xf32>
    %81 = vector.broadcast %80 : vector<3x1xf32> to vector<3x64xf32>
    %82 = arith.addf %78, %81 : vector<3x64xf32>
    %83 = math.tanh %82 : vector<3x64xf32>
    %c1_61 = arith.constant 1 : index
    %c0_62 = arith.constant 0 : index
    %c0_63 = arith.constant 0 : index
    %c0_64 = arith.constant 0 : index
    %84 = vector.load %arg6[%c1_61, %c0_62, %c0_63, %c0_64] : memref<2x2x3x64xf32, #tpu.memory_space<vmem>>, vector<1x1x3x64xf32>
    %85 = vector.shape_cast %84 : vector<1x1x3x64xf32> to vector<3x64xf32>
    %86 = vector.shape_cast %83 : vector<3x64xf32> to vector<1x1x3x64xf32>
    tpu.vector_store %arg6[%c1_61, %c0_62, %c0_63, %c0_64], %86 {strides = array<i32>} : memref<2x2x3x64xf32, #tpu.memory_space<vmem>>, vector<1x1x3x64xf32>,
    %87 = vector.extract_strided_slice %3 {offsets = [0, 2], sizes = [8, 64], strides = [1, 1]} : vector<8x68xbf16> to vector<8x64xbf16>
    %c12 = arith.constant 12 : index
    %c0_65 = arith.constant 0 : index
    %c0_66 = arith.constant 0 : index
    %88 = vector.load %arg1[%c12, %c0_65, %c0_66] : memref<16x3x8xbf16, #tpu.memory_space<vmem>>, vector<1x3x8xbf16>
    %89 = vector.shape_cast %88 : vector<1x3x8xbf16> to vector<3x8xbf16>
    %cst_67 = arith.constant dense<0.000000e+00> : vector<3x64xf32>
    %90 = tpu.matmul %89, %87, %cst_67 {dimension_numbers = #tpu.dot_dimension_numbers<[1], [0], [0], [1], [0, 0, 1, 1], [], []>} : vector<3x8xbf16>, vector<8x64xbf16>, vector<3x64xf32> -> vector<3x64xf32>
    %91 = vector.extract_strided_slice %3 {offsets = [0, 4], sizes = [8, 64], strides = [1, 1]} : vector<8x68xbf16> to vector<8x64xbf16>
    %c13 = arith.constant 13 : index
    %c0_68 = arith.constant 0 : index
    %c0_69 = arith.constant 0 : index
    %92 = vector.load %arg1[%c13, %c0_68, %c0_69] : memref<16x3x8xbf16, #tpu.memory_space<vmem>>, vector<1x3x8xbf16>
    %93 = vector.shape_cast %92 : vector<1x3x8xbf16> to vector<3x8xbf16>
    %cst_70 = arith.constant dense<0.000000e+00> : vector<3x64xf32>
    %94 = tpu.matmul %93, %91, %cst_70 {dimension_numbers = #tpu.dot_dimension_numbers<[1], [0], [0], [1], [0, 0, 1, 1], [], []>} : vector<3x8xbf16>, vector<8x64xbf16>, vector<3x64xf32> -> vector<3x64xf32>
    %95 = arith.addf %90, %94 : vector<3x64xf32>
    %96 = vector.extract_strided_slice %5 {offsets = [0, 2], sizes = [8, 64], strides = [1, 1]} : vector<8x68xbf16> to vector<8x64xbf16>
    %c14 = arith.constant 14 : index
    %c0_71 = arith.constant 0 : index
    %c0_72 = arith.constant 0 : index
    %97 = vector.load %arg1[%c14, %c0_71, %c0_72] : memref<16x3x8xbf16, #tpu.memory_space<vmem>>, vector<1x3x8xbf16>
    %98 = vector.shape_cast %97 : vector<1x3x8xbf16> to vector<3x8xbf16>
    %cst_73 = arith.constant dense<0.000000e+00> : vector<3x64xf32>
    %99 = tpu.matmul %98, %96, %cst_73 {dimension_numbers = #tpu.dot_dimension_numbers<[1], [0], [0], [1], [0, 0, 1, 1], [], []>} : vector<3x8xbf16>, vector<8x64xbf16>, vector<3x64xf32> -> vector<3x64xf32>
    %100 = arith.addf %95, %99 : vector<3x64xf32>
    %101 = vector.extract_strided_slice %5 {offsets = [0, 4], sizes = [8, 64], strides = [1, 1]} : vector<8x68xbf16> to vector<8x64xbf16>
    %c15 = arith.constant 15 : index
    %c0_74 = arith.constant 0 : index
    %c0_75 = arith.constant 0 : index
    %102 = vector.load %arg1[%c15, %c0_74, %c0_75] : memref<16x3x8xbf16, #tpu.memory_space<vmem>>, vector<1x3x8xbf16>
    %103 = vector.shape_cast %102 : vector<1x3x8xbf16> to vector<3x8xbf16>
    %cst_76 = arith.constant dense<0.000000e+00> : vector<3x64xf32>
    %104 = tpu.matmul %103, %101, %cst_76 {dimension_numbers = #tpu.dot_dimension_numbers<[1], [0], [0], [1], [0, 0, 1, 1], [], []>} : vector<3x8xbf16>, vector<8x64xbf16>, vector<3x64xf32> -> vector<3x64xf32>
    %105 = arith.addf %100, %104 : vector<3x64xf32>
    %c0_77 = arith.constant 0 : index
    %c0_78 = arith.constant 0 : index
    %c0_79 = arith.constant 0 : index
    %106 = vector.load %arg5[%c0_77, %c0_78, %c0_79] : memref<1x3x1xf32, #tpu.memory_space<vmem>>, vector<1x3x1xf32>
    %107 = vector.shape_cast %106 : vector<1x3x1xf32> to vector<3x1xf32>
    %108 = vector.broadcast %107 : vector<3x1xf32> to vector<3x64xf32>
    %109 = arith.addf %105, %108 : vector<3x64xf32>
    %110 = math.tanh %109 : vector<3x64xf32>
    %c1_80 = arith.constant 1 : index
    %c1_81 = arith.constant 1 : index
    %c0_82 = arith.constant 0 : index
    %c0_83 = arith.constant 0 : index
    %111 = vector.load %arg6[%c1_80, %c1_81, %c0_82, %c0_83] : memref<2x2x3x64xf32, #tpu.memory_space<vmem>>, vector<1x1x3x64xf32>
    %112 = vector.shape_cast %111 : vector<1x1x3x64xf32> to vector<3x64xf32>
    %113 = vector.shape_cast %110 : vector<3x64xf32> to vector<1x1x3x64xf32>
    tpu.vector_store %arg6[%c1_80, %c1_81, %c0_82, %c0_83], %113 {strides = array<i32>} : memref<2x2x3x64xf32, #tpu.memory_space<vmem>>, vector<1x1x3x64xf32>,
    return
  }
  func.func @transform_0(%arg0: i32) -> (i32, i32, i32) {
    %c0_i32 = arith.constant 0 : i32
    %c0_i32_0 = arith.constant 0 : i32
    %c0_i32_1 = arith.constant 0 : i32
    %c0_i32_2 = arith.constant 0 : i32
    return %c0_i32, %c0_i32_0, %c0_i32_1 : i32, i32, i32
  }
  func.func @transform_1(%arg0: i32) -> (i32, i32, i32) {
    %c0_i32 = arith.constant 0 : i32
    %0 = arith.addi %arg0, %c0_i32 : i32
    %c0_i32_0 = arith.constant 0 : i32
    %c0_i32_1 = arith.constant 0 : i32
    %c0_i32_2 = arith.constant 0 : i32
    return %0, %c0_i32_0, %c0_i32_1 : i32, i32, i32
  }
  func.func @transform_2(%arg0: i32) -> (i32, i32, i32) {
    %c1_i32 = arith.constant 1 : i32
    %0 = arith.addi %arg0, %c1_i32 : i32
    %c0_i32 = arith.constant 0 : i32
    %c0_i32_0 = arith.constant 0 : i32
    %c0_i32_1 = arith.constant 0 : i32
    return %0, %c0_i32, %c0_i32_0 : i32, i32, i32
  }
  func.func @transform_3(%arg0: i32) -> (i32, i32, i32) {
    %c2_i32 = arith.constant 2 : i32
    %0 = arith.addi %arg0, %c2_i32 : i32
    %c0_i32 = arith.constant 0 : i32
    %c0_i32_0 = arith.constant 0 : i32
    %c0_i32_1 = arith.constant 0 : i32
    return %0, %c0_i32, %c0_i32_0 : i32, i32, i32
  }
  func.func @transform_4(%arg0: i32) -> (i32, i32, i32) {
    %c0_i32 = arith.constant 0 : i32
    %c0_i32_0 = arith.constant 0 : i32
    %c0_i32_1 = arith.constant 0 : i32
    %c0_i32_2 = arith.constant 0 : i32
    return %c0_i32, %c0_i32_0, %c0_i32_1 : i32, i32, i32
  }
  func.func @transform_5(%arg0: i32) -> (i32, i32, i32, i32) {
    %c0_i32 = arith.constant 0 : i32
    %c0_i32_0 = arith.constant 0 : i32
    %c0_i32_1 = arith.constant 0 : i32
    %c0_i32_2 = arith.constant 0 : i32
    return %arg0, %c0_i32, %c0_i32_0, %c0_i32_1 : i32, i32, i32, i32
  }
}

</mosaic_0001>

<bundles_post_ra>
// kernel: generator_forward.10
= control target key start
LH: loop header
LB: loop body
LE: loop exit
PB: predicated region body
PF: predicated region fallthrough
CT: control target
= control target key end

     0   :  { %s565_s12 = smov 0   ;;  %s696_s0 = inlined_call_operand.vmem [shape: f32[4,64,8], index: 0, kind: input, shape index: {}]   ;;  %s697_s1 = inlined_call_operand.vmem [shape: f32[1,64,1], index: 1, kind: input, shape index: {}]   ;;  %s698_s2 = inlined_call_operand.vmem [shape: f32[1,64,1], index: 2, kind: input, shape index: {}]   ;;  %s699_s3 = inlined_call_operand.vmem [shape: bf16[4,64,8], index: 3, kind: output, shape index: {}]  }
   0x1 LB: > { %s478_s13 = sadd.s32 4294967295, %s542_s12   ;;  %p482_p0 = scmp.ge.s32.totalorder %s542_s12, 1  ;;  %s542_s12 = sphi %s565_s12, %s13_s12  }
   0x2   : > { %p139_p1 = scmp.lt.s32.totalorder %s542_s12, 3 }
   0x4   : > { %p140_p2 = pnand %p482_p0, %p139_p1 }
   0x5   : > { %v197_v0 = vld [vmem:[%s697_s1 + $0x10] sm:$0xff] (!%p140_p2)  ;;  %v195_v1 = vld [vmem:[%s697_s1] sm:$0xff] (!%p140_p2)  ;;  %v544_v2 = vmov (!%p140_p2), 0   ;;  %v198_v3 = vld [vmem:[%s697_s1 + $0x18] sm:$0xff] (!%p140_p2)  ;;  %s483_s21 = sshll.u32 (!%p140_p2), %s478_s13, 1  ;;  %vm403_vm0 = vcmask (!%p140_p2), 60416  }
   0x6   : > { %143 = sbr.rel (%p140_p2) target bundleno = 172 (0xac), region = 32  ;;  %535 = vset.pattern.permute.xlu1 (!%p140_p2), %v544_v2  ;;  %534 = vset.pattern.permute.xlu0 (!%p140_p2), %v544_v2  ;;  %v196_v4 = vld [vmem:[%s697_s1 + $0x8] sm:$0xff] (!%p140_p2)  ;;  %v199_v6 = vld [vmem:[%s697_s1 + $0x20] sm:$0xff] (!%p140_p2)  ;;  %v202_v7 = vld [vmem:[%s697_s1 + $0x38] sm:$0xff] (!%p140_p2)  ;;  %p166_p3 = scmp.lt.s32.totalorder (!%p140_p2), %s483_s21, 3 }
   0x7   : > { %215 = vperm.xlu1 (!%p140_p2), %535, %v197_v0   ;;  %205 = vperm.xlu0 (!%p140_p2), %534, %v195_v1   ;;  %v200_v5 = vld [vmem:[%s697_s1 + $0x28] sm:$0xff] (!%p140_p2)  ;;  %v201_v8 = vld [vmem:[%s697_s1 + $0x30] sm:$0xff] (!%p140_p2)  ;;  %v259_v10 = vld [vmem:[%s698_s2] sm:$0xff] (!%p140_p2) }
   0x8   : > { %v260_v9 = vld [vmem:[%s698_s2 + $0x8] sm:$0xff] (!%p140_p2)  ;;  %v262_v11 = vld [vmem:[%s698_s2 + $0x18] sm:$0xff] (!%p140_p2)  ;;  %v261_v12 = vld [vmem:[%s698_s2 + $0x10] sm:$0xff] (!%p140_p2) }
   0x9   : > { %v264_v13 = vld [vmem:[%s698_s2 + $0x28] sm:$0xff] (!%p140_p2)  ;;  %v263_v14 = vld [vmem:[%s698_s2 + $0x20] sm:$0xff] (!%p140_p2)  ;;  %v266_v15 = vld [vmem:[%s698_s2 + $0x38] sm:$0xff] (!%p140_p2) }
   0xa   : > { %v265_v16 = vld [vmem:[%s698_s2 + $0x30] sm:$0xff] (!%p140_p2) }
   0xb   : > { %220 = vperm.xlu1 (!%p140_p2), %535, %v198_v3   ;;  %210 = vperm.xlu0 (!%p140_p2), %534, %v196_v4  }
   0xd   : > { %s701_s21 = smov (!%p166_p3, %s483_s21), 3 }
   0xe   : > { %s507_s22 = sshll.u32 %s701_s21, 6  ;;  %s508_s13 = sshll.u32 %s701_s21, 5 }
   0xf   : > { %230 = vperm.xlu1 %535, %v200_v5   ;;  %225 = vperm.xlu0 %534, %v199_v6   ;;  %s629_s25 = scalar_lea.vmem %s696_s0, %s507_s22  ;;  %s651_s28 = scalar_lea.vmem %s699_s3, %s508_s13 }
  0x10   : > { %v179_v23 = vld [vmem:[%s629_s25] sm:$0xff]  ;;  %v180_v25 = vld [vmem:[%s629_s25 + $0x8] sm:$0xff]  ;;  %v181_v33 = vld [vmem:[%s629_s25 + $0x10] sm:$0xff] }
  0x11   : > { %v187_v24 = vld [vmem:[%s629_s25 + $0x40] sm:$0xff]  ;;  %v188_v26 = vld [vmem:[%s629_s25 + $0x48] sm:$0xff]  ;;  %v189_v36 = vld [vmem:[%s629_s25 + $0x50] sm:$0xff] }
  0x12   : > { %v182_v37 = vld [vmem:[%s629_s25 + $0x18] sm:$0xff]  ;;  %v184_v43 = vld [vmem:[%s629_s25 + $0x28] sm:$0xff]  ;;  %v183_v53 = vld [vmem:[%s629_s25 + $0x20] sm:$0xff] }
  0x13   : > { %240 = vperm.xlu1 %535, %v202_v7   ;;  %235 = vperm.xlu0 %534, %v201_v8   ;;  %v190_v38 = vld [vmem:[%s629_s25 + $0x58] sm:$0xff]  ;;  %v192_v52 = vld [vmem:[%s629_s25 + $0x68] sm:$0xff]  ;;  %v191_v54 = vld [vmem:[%s629_s25 + $0x60] sm:$0xff] }
  0x14   : > { %v186_v5 = vld [vmem:[%s629_s25 + $0x38] sm:$0xff] }
  0x17   : > { %274 = vperm.xlu1 %535, %v260_v9   ;;  %269 = vperm.xlu0 %534, %v259_v10  }
  0x1b   : > { %284 = vperm.xlu1 %535, %v262_v11   ;;  %279 = vperm.xlu0 %534, %v261_v12   ;;  %v194_v12 = vld [vmem:[%s629_s25 + $0x78] sm:$0xff] }
  0x1f   : > { %294 = vperm.xlu1 %535, %v264_v13   ;;  %289 = vperm.xlu0 %534, %v263_v14   ;;  %v185_v13 = vld [vmem:[%s629_s25 + $0x30] sm:$0xff] }
  0x20   : > { %v193_v14 = vld [vmem:[%s629_s25 + $0x70] sm:$0xff] }
  0x23   : > { %304 = vperm.xlu1 %535, %v266_v15   ;;  %299 = vperm.xlu0 %534, %v265_v16  }
  0x86   : > { %v216_v17 = vpop.permute.xlu1 %215  ;;  %v206_v18 = vpop.permute.xlu0 %205 }
  0x87   : > { %v243_v29 = vmul.f32 %v206_v18, %v179_v23  ;;  %v251_v30 = vmul.f32 %v206_v18, %v187_v24  ;;  %v245_v48 = vmul.f32 %v216_v17, %v181_v33  ;;  %v253_v49 = vmul.f32 %v216_v17, %v189_v36 }
  0x8a   : > { %v221_v19 = vpop.permute.xlu1 %220  ;;  %v211_v20 = vpop.permute.xlu0 %210 }
  0x8b   : > { %v244_v31 = vmul.f32 %v211_v20, %v180_v25  ;;  %v252_v32 = vmul.f32 %v211_v20, %v188_v26  ;;  %v246_v50 = vmul.f32 %v221_v19, %v182_v37  ;;  %v254_v51 = vmul.f32 %v221_v19, %v190_v38 }
  0x8e   : > { %v231_v21 = vpop.permute.xlu1 %230  ;;  %v226_v22 = vpop.permute.xlu0 %225 }
  0x8f   : > { %v248_v1 = vmul.f32 %v231_v21, %v184_v43  ;;  %v256_v2 = vmul.f32 %v231_v21, %v192_v52  ;;  %v247_v3 = vmul.f32 %v226_v22, %v183_v53  ;;  %v255_v4 = vmul.f32 %v226_v22, %v191_v54 }
  0x92   : > { %v635_v27 = vpop.permute.xlu1 %240  ;;  %v637_v28 = vpop.permute.xlu0 %235 }
  0x96   : > { %v275_v34 = vpop.permute.xlu1 %274  ;;  %v270_v35 = vpop.permute.xlu0 %269 }
  0x97   : > { %v308_v39 = vadd.f32 %v275_v34, %v244_v31  ;;  %v316_v40 = vadd.f32 %v275_v34, %v252_v32  ;;  %v307_v41 = vadd.f32 %v270_v35, %v243_v29  ;;  %v315_v42 = vadd.f32 %v270_v35, %v251_v30 }
  0x98   : > { %v250_v29 = vmul.f32 %v635_v27, %v186_v5  ;;  %v258_v30 = vmul.f32 %v635_v27, %v194_v12  ;;  %v249_v31 = vmul.f32 %v637_v28, %v185_v13  ;;  %v257_v32 = vmul.f32 %v637_v28, %v193_v14 }
  0x99   : > { %v324_v44 = vmax.f32 %v308_v39, 0.0  ;;  %v332_v45 = vmax.f32 %v316_v40, 0.0  ;;  %v323_v46 = vmax.f32 %v307_v41, 0.0  ;;  %v331_v47 = vmax.f32 %v315_v42, 0.0 }
  0x9a   : > { %v285_v55 = vpop.permute.xlu1 %284  ;;  %v280_v56 = vpop.permute.xlu0 %279 }
  0x9b   : > { %v510_v57 = vpack.c.bf16 %v324_v44, %v324_v44  ;;  %v518_v58 = vpack.c.bf16 %v332_v45, %v332_v45  ;;  %v509_v59 = vpack.c.bf16 %v323_v46, %v323_v46  ;;  %v517_v60 = vpack.c.bf16 %v331_v47, %v331_v47 }
  0x9c   : > { %v310_v61 = vadd.f32 %v285_v55, %v246_v50  ;;  %v318_v62 = vadd.f32 %v285_v55, %v254_v51  ;;  %v309_v63 = vadd.f32 %v280_v56, %v245_v48  ;;  %v317_v0 = vadd.f32 %v280_v56, %v253_v49 }
  0x9d   : > { %405 = vst.msk [vmem:[%s651_s28 + $0x4] sm:$0xf] %vm403_vm0, %v510_v57  ;;  %404 = vst.msk [vmem:[%s651_s28] sm:$0xf] %vm403_vm0, %v509_v59 }
  0x9e   : > { %413 = vst.msk [vmem:[%s651_s28 + $0x24] sm:$0xf] %vm403_vm0, %v518_v58  ;;  %412 = vst.msk [vmem:[%s651_s28 + $0x20] sm:$0xf] %vm403_vm0, %v517_v60  ;;  %v326_v6 = vmax.f32 %v310_v61, 0.0  ;;  %v334_v7 = vmax.f32 %v318_v62, 0.0  ;;  %v295_v10 = vpop.permute.xlu1 %294  ;;  %v290_v11 = vpop.permute.xlu0 %289 }
  0x9f   : > { %v325_v8 = vmax.f32 %v309_v63, 0.0  ;;  %v333_v9 = vmax.f32 %v317_v0, 0.0  ;;  %v312_v15 = vadd.f32 %v295_v10, %v248_v1  ;;  %v320_v16 = vadd.f32 %v295_v10, %v256_v2 }
  0xa0   : > { %v311_v17 = vadd.f32 %v290_v11, %v247_v3  ;;  %v319_v18 = vadd.f32 %v290_v11, %v255_v4  ;;  %v512_v19 = vpack.c.bf16 %v326_v6, %v326_v6  ;;  %v520_v20 = vpack.c.bf16 %v334_v7, %v334_v7 }
  0xa1   : > { %v511_v21 = vpack.c.bf16 %v325_v8, %v325_v8  ;;  %v519_v22 = vpack.c.bf16 %v333_v9, %v333_v9  ;;  %v328_v23 = vmax.f32 %v312_v15, 0.0  ;;  %v336_v24 = vmax.f32 %v320_v16, 0.0 }
  0xa2   : > { %v327_v25 = vmax.f32 %v311_v17, 0.0  ;;  %v335_v26 = vmax.f32 %v319_v18, 0.0  ;;  %407 = vst.msk [vmem:[%s651_s28 + $0xc] sm:$0xf] %vm403_vm0, %v512_v19  ;;  %v305_v33 = vpop.permute.xlu1 %304  ;;  %v300_v34 = vpop.permute.xlu0 %299  ;;  %415 = vst.msk [vmem:[%s651_s28 + $0x2c] sm:$0xf] %vm403_vm0, %v520_v20 }
  0xa3   : > { %406 = vst.msk [vmem:[%s651_s28 + $0x8] sm:$0xf] %vm403_vm0, %v511_v21  ;;  %414 = vst.msk [vmem:[%s651_s28 + $0x28] sm:$0xf] %vm403_vm0, %v519_v22  ;;  %v514_v35 = vpack.c.bf16 %v328_v23, %v328_v23  ;;  %v522_v27 = vpack.c.bf16 %v336_v24, %v336_v24  ;;  %v314_v38 = vadd.f32 %v305_v33, %v250_v29 }
  0xa4   : > { %v513_v36 = vpack.c.bf16 %v327_v25, %v327_v25  ;;  %v521_v37 = vpack.c.bf16 %v335_v26, %v335_v26  ;;  %v322_v28 = vadd.f32 %v305_v33, %v258_v30  ;;  %v313_v39 = vadd.f32 %v300_v34, %v249_v31 }
  0xa5   : > { %v321_v40 = vadd.f32 %v300_v34, %v257_v32  ;;  %409 = vst.msk [vmem:[%s651_s28 + $0x14] sm:$0xf] %vm403_vm0, %v514_v35  ;;  %417 = vst.msk [vmem:[%s651_s28 + $0x34] sm:$0xf] %vm403_vm0, %v522_v27  ;;  %v330_v41 = vmax.f32 %v314_v38, 0.0 }
  0xa6   : > { %408 = vst.msk [vmem:[%s651_s28 + $0x10] sm:$0xf] %vm403_vm0, %v513_v36  ;;  %416 = vst.msk [vmem:[%s651_s28 + $0x30] sm:$0xf] %vm403_vm0, %v521_v37  ;;  %v338_v42 = vmax.f32 %v322_v28, 0.0  ;;  %v329_v43 = vmax.f32 %v313_v39, 0.0 }
  0xa7   : > { %v337_v44 = vmax.f32 %v321_v40, 0.0  ;;  %v516_v45 = vpack.c.bf16 %v330_v41, %v330_v41 }
  0xa8   : > { %v524_v46 = vpack.c.bf16 %v338_v42, %v338_v42  ;;  %v515_v47 = vpack.c.bf16 %v329_v43, %v329_v43 }
  0xa9   : > { %v523_v48 = vpack.c.bf16 %v337_v44, %v337_v44  ;;  %411 = vst.msk [vmem:[%s651_s28 + $0x1c] sm:$0xf] %vm403_vm0, %v516_v45 }
  0xaa   : > { %410 = vst.msk [vmem:[%s651_s28 + $0x18] sm:$0xf] %vm403_vm0, %v515_v47  ;;  %419 = vst.msk [vmem:[%s651_s28 + $0x3c] sm:$0xf] %vm403_vm0, %v524_v46 }
  0xab   : > { %418 = vst.msk [vmem:[%s651_s28 + $0x38] sm:$0xf] %vm403_vm0, %v523_v48 }
  0xac PF: > { %s13_s12 = sadd.s32 1, %s542_s12  }
  0xad   : > { %p10_p4 = scmp.ge.s32.totalorder %s13_s12, 4  }
  0xaf   :  { %12 = sbr.rel (!%p10_p4) target bundleno = 1 (0x1), region = 62 }

// kernel: generator_forward.9
= control target key start
LH: loop header
LB: loop body
LE: loop exit
PB: predicated region body
PF: predicated region fallthrough
CT: control target
= control target key end

     0   :  { %vm654_vm0 = vcmask 1043456   ;;  %vm461_vm1 = vcmask 64512   ;;  %vm1203_vm2 = vcmask 15360   ;;  %s2513_s1 = inlined_call_operand.vmem [shape: bf16[8,2], index: 1, kind: input, shape index: {}]   ;;  %s2514_s0 = inlined_call_operand.vmem [shape: bf16[1024,8], index: 0, kind: input, shape index: {}]   ;;  %s2515_s2 = inlined_call_operand.vmem [shape: f32[1024,2], index: 2, kind: output, shape index: {}]  }
   0x1   :  { %v140_v0 = vld [vmem:[%s2513_s1] sm:$0xf]  ;;  %v1665_v4 = vld [vmem:[%s2514_s0 + $0x8] sm:$0xff]   ;;  %v1667_v6 = vld [vmem:[%s2514_s0 + $0x10] sm:$0xff]  }
   0x2   :  { %1661 = vmatprep.subr.msk.bf16.mxu0 %vm654_vm0, %v140_v0  ;;  %1662 = vmatprep.subr.msk.bf16.mxu1 %vm654_vm0, %v140_v0  ;;  %v656_v1 = vsel %vm654_vm0, %v140_v0, 0  ;;  %v1663_v2 = vld [vmem:[%s2514_s0] sm:$0xff]   ;;  %v1666_v5 = vld [vmem:[%s2514_s0 + $0x108] sm:$0xff]   ;;  %v1668_v7 = vld [vmem:[%s2514_s0 + $0x110] sm:$0xff]  }
   0x3   :  { %1530 = vmatpush3.bf16.msra.mxu0 %v656_v1  ;;  %1660 = vmatpush3.bf16.msra.mxu1 %v656_v1  ;;  %v1664_v3 = vld [vmem:[%s2514_s0 + $0x100] sm:$0xff]   ;;  %v1669_v8 = vld [vmem:[%s2514_s0 + $0x18] sm:$0xff]   ;;  %v1673_v12 = vld [vmem:[%s2514_s0 + $0x28] sm:$0xff]  }
   0x4   :  { %1531 = vmatprep.mubr.msk.bf16.mxu0 %vm461_vm1, %v1663_v2  ;;  %1595 = vmatprep.mubr.msk.bf16.mxu1 %vm461_vm1, %v1664_v3  ;;  %v1670_v9 = vld [vmem:[%s2514_s0 + $0x118] sm:$0xff]   ;;  %v1671_v10 = vld [vmem:[%s2514_s0 + $0x20] sm:$0xff]   ;;  %v1674_v13 = vld [vmem:[%s2514_s0 + $0x128] sm:$0xff]  }
   0x5   :  { %v1672_v11 = vld [vmem:[%s2514_s0 + $0x120] sm:$0xff]   ;;  %v1675_v14 = vld [vmem:[%s2514_s0 + $0x30] sm:$0xff]   ;;  %v1677_v16 = vld [vmem:[%s2514_s0 + $0x38] sm:$0xff]  }
   0x6   :  { %1532 = vmatmul.mubr.msk.bf16.vlgmr.msra.gmra.mrb[0].mxu0 %vm461_vm1, %v1665_v4  ;;  %1596 = vmatmul.mubr.msk.bf16.vlgmr.msra.gmra.mrb[0].mxu1 %vm461_vm1, %v1666_v5  ;;  %v1676_v15 = vld [vmem:[%s2514_s0 + $0x130] sm:$0xff]   ;;  %v1678_v17 = vld [vmem:[%s2514_s0 + $0x138] sm:$0xff]   ;;  %v1679_v18 = vld [vmem:[%s2514_s0 + $0x40] sm:$0xff]  }
   0x7   :  { %1535 = vmatprep.mubr.msk.bf16.mxu0 %vm461_vm1, %v1667_v6  ;;  %1599 = vmatprep.mubr.msk.bf16.mxu1 %vm461_vm1, %v1668_v7  ;;  %v1680_v19 = vld [vmem:[%s2514_s0 + $0x140] sm:$0xff]   ;;  %v1681_v20 = vld [vmem:[%s2514_s0 + $0x48] sm:$0xff]   ;;  %v1683_v22 = vld [vmem:[%s2514_s0 + $0x50] sm:$0xff]  }
   0x8   :  { %v1682_v21 = vld [vmem:[%s2514_s0 + $0x148] sm:$0xff]   ;;  %v1684_v23 = vld [vmem:[%s2514_s0 + $0x150] sm:$0xff]   ;;  %v1685_v24 = vld [vmem:[%s2514_s0 + $0x58] sm:$0xff]  }
   0x9   :  { %v1686_v25 = vld [vmem:[%s2514_s0 + $0x158] sm:$0xff]   ;;  %v1687_v26 = vld [vmem:[%s2514_s0 + $0x60] sm:$0xff]   ;;  %v1689_v28 = vld [vmem:[%s2514_s0 + $0x68] sm:$0xff]  }
   0xa   :  { %v1688_v27 = vld [vmem:[%s2514_s0 + $0x160] sm:$0xff]   ;;  %v1690_v29 = vld [vmem:[%s2514_s0 + $0x168] sm:$0xff]   ;;  %v1691_v30 = vld [vmem:[%s2514_s0 + $0x70] sm:$0xff]  }
   0xb   :  { %v1692_v31 = vld [vmem:[%s2514_s0 + $0x170] sm:$0xff]   ;;  %v1693_v32 = vld [vmem:[%s2514_s0 + $0x78] sm:$0xff]   ;;  %v1695_v34 = vld [vmem:[%s2514_s0 + $0x80] sm:$0xff]  }
   0xc   :  { %v1694_v33 = vld [vmem:[%s2514_s0 + $0x178] sm:$0xff]   ;;  %v1696_v35 = vld [vmem:[%s2514_s0 + $0x180] sm:$0xff]   ;;  %v1697_v36 = vld [vmem:[%s2514_s0 + $0x88] sm:$0xff]  }
   0xd   :  { %v1698_v37 = vld [vmem:[%s2514_s0 + $0x188] sm:$0xff]   ;;  %v1699_v38 = vld [vmem:[%s2514_s0 + $0x90] sm:$0xff]   ;;  %v1701_v40 = vld [vmem:[%s2514_s0 + $0x98] sm:$0xff]  }
   0xe   :  { %1536 = vmatmul.mubr.msk.bf16.gmra.mrb[4].mxu0 %vm461_vm1, %v1669_v8  ;;  %1600 = vmatmul.mubr.msk.bf16.gmra.mrb[4].mxu1 %vm461_vm1, %v1670_v9  ;;  %v1700_v39 = vld [vmem:[%s2514_s0 + $0x190] sm:$0xff]   ;;  %v1702_v41 = vld [vmem:[%s2514_s0 + $0x198] sm:$0xff]   ;;  %v1703_v42 = vld [vmem:[%s2514_s0 + $0xa0] sm:$0xff]  }
   0xf   :  { %1539 = vmatprep.mubr.msk.bf16.mxu0 %vm461_vm1, %v1671_v10  ;;  %1603 = vmatprep.mubr.msk.bf16.mxu1 %vm461_vm1, %v1672_v11  ;;  %v1704_v43 = vld [vmem:[%s2514_s0 + $0x1a0] sm:$0xff]   ;;  %v1705_v44 = vld [vmem:[%s2514_s0 + $0xa8] sm:$0xff]   ;;  %v1707_v46 = vld [vmem:[%s2514_s0 + $0xb0] sm:$0xff]  }
  0x10   :  { %v1706_v45 = vld [vmem:[%s2514_s0 + $0x1a8] sm:$0xff]   ;;  %v1708_v47 = vld [vmem:[%s2514_s0 + $0x1b0] sm:$0xff]   ;;  %v1709_v48 = vld [vmem:[%s2514_s0 + $0xb8] sm:$0xff]  }
  0x11   :  { %v1710_v49 = vld [vmem:[%s2514_s0 + $0x1b8] sm:$0xff]   ;;  %v1711_v50 = vld [vmem:[%s2514_s0 + $0xc0] sm:$0xff]   ;;  %v1713_v52 = vld [vmem:[%s2514_s0 + $0xc8] sm:$0xff]  }
  0x12   :  { %v1712_v51 = vld [vmem:[%s2514_s0 + $0x1c0] sm:$0xff]   ;;  %v1714_v53 = vld [vmem:[%s2514_s0 + $0x1c8] sm:$0xff]   ;;  %v1715_v54 = vld [vmem:[%s2514_s0 + $0xd0] sm:$0xff]  }
  0x13   :  { %v1716_v55 = vld [vmem:[%s2514_s0 + $0x1d0] sm:$0xff]   ;;  %v1717_v56 = vld [vmem:[%s2514_s0 + $0xd8] sm:$0xff]   ;;  %v1719_v58 = vld [vmem:[%s2514_s0 + $0xe0] sm:$0xff]  }
  0x14   :  { %v1718_v57 = vld [vmem:[%s2514_s0 + $0x1d8] sm:$0xff]   ;;  %v1720_v59 = vld [vmem:[%s2514_s0 + $0x1e0] sm:$0xff]   ;;  %v1721_v60 = vld [vmem:[%s2514_s0 + $0xe8] sm:$0xff]  }
  0x15   :  { %v1722_v61 = vld [vmem:[%s2514_s0 + $0x1e8] sm:$0xff]   ;;  %v1723_v62 = vld [vmem:[%s2514_s0 + $0xf0] sm:$0xff]   ;;  %v1725_v0 = vld [vmem:[%s2514_s0 + $0xf8] sm:$0xff]  }
  0x16   :  { %1540 = vmatmul.mubr.msk.bf16.gmra.mrb[8].mxu0 %vm461_vm1, %v1673_v12  ;;  %1604 = vmatmul.mubr.msk.bf16.gmra.mrb[8].mxu1 %vm461_vm1, %v1674_v13  ;;  %v1724_v63 = vld [vmem:[%s2514_s0 + $0x1f0] sm:$0xff]   ;;  %v1726_v1 = vld [vmem:[%s2514_s0 + $0x1f8] sm:$0xff]  }
  0x17   :  { %1543 = vmatprep.mubr.msk.bf16.mxu0 %vm461_vm1, %v1675_v14  ;;  %1607 = vmatprep.mubr.msk.bf16.mxu1 %vm461_vm1, %v1676_v15 }
  0x1e   :  { %1544 = vmatmul.mubr.msk.bf16.gmra.mrb[12].mxu0 %vm461_vm1, %v1677_v16  ;;  %1608 = vmatmul.mubr.msk.bf16.gmra.mrb[12].mxu1 %vm461_vm1, %v1678_v17 }
  0x1f   :  { %1547 = vmatprep.mubr.msk.bf16.mxu0 %vm461_vm1, %v1679_v18  ;;  %1611 = vmatprep.mubr.msk.bf16.mxu1 %vm461_vm1, %v1680_v19 }
  0x26   :  { %1548 = vmatmul.mubr.msk.bf16.gmra.mrb[16].mxu0 %vm461_vm1, %v1681_v20  ;;  %1612 = vmatmul.mubr.msk.bf16.gmra.mrb[16].mxu1 %vm461_vm1, %v1682_v21 }
  0x27   :  { %1551 = vmatprep.mubr.msk.bf16.mxu0 %vm461_vm1, %v1683_v22  ;;  %1615 = vmatprep.mubr.msk.bf16.mxu1 %vm461_vm1, %v1684_v23 }
  0x2e   :  { %1552 = vmatmul.mubr.msk.bf16.gmra.mrb[20].mxu0 %vm461_vm1, %v1685_v24  ;;  %1616 = vmatmul.mubr.msk.bf16.gmra.mrb[20].mxu1 %vm461_vm1, %v1686_v25 }
  0x2f   :  { %1555 = vmatprep.mubr.msk.bf16.mxu0 %vm461_vm1, %v1687_v26  ;;  %1619 = vmatprep.mubr.msk.bf16.mxu1 %vm461_vm1, %v1688_v27 }
  0x36   :  { %1556 = vmatmul.mubr.msk.bf16.gmra.mrb[24].mxu0 %vm461_vm1, %v1689_v28  ;;  %1620 = vmatmul.mubr.msk.bf16.gmra.mrb[24].mxu1 %vm461_vm1, %v1690_v29 }
  0x37   :  { %1559 = vmatprep.mubr.msk.bf16.mxu0 %vm461_vm1, %v1691_v30  ;;  %1623 = vmatprep.mubr.msk.bf16.mxu1 %vm461_vm1, %v1692_v31 }
  0x3e   :  { %1560 = vmatmul.mubr.msk.bf16.gmra.mrb[28].mxu0 %vm461_vm1, %v1693_v32  ;;  %1624 = vmatmul.mubr.msk.bf16.gmra.mrb[28].mxu1 %vm461_vm1, %v1694_v33 }
  0x3f   :  { %1563 = vmatprep.mubr.msk.bf16.mxu0 %vm461_vm1, %v1695_v34  ;;  %1627 = vmatprep.mubr.msk.bf16.mxu1 %vm461_vm1, %v1696_v35 }
  0x46   :  { %1564 = vmatmul.mubr.msk.bf16.gmra.mrb[32].mxu0 %vm461_vm1, %v1697_v36  ;;  %1628 = vmatmul.mubr.msk.bf16.gmra.mrb[32].mxu1 %vm461_vm1, %v1698_v37 }
  0x47   :  { %1567 = vmatprep.mubr.msk.bf16.mxu0 %vm461_vm1, %v1699_v38  ;;  %1631 = vmatprep.mubr.msk.bf16.mxu1 %vm461_vm1, %v1700_v39 }
  0x4e   :  { %1568 = vmatmul.mubr.msk.bf16.gmra.mrb[36].mxu0 %vm461_vm1, %v1701_v40  ;;  %1632 = vmatmul.mubr.msk.bf16.gmra.mrb[36].mxu1 %vm461_vm1, %v1702_v41 }
  0x4f   :  { %1571 = vmatprep.mubr.msk.bf16.mxu0 %vm461_vm1, %v1703_v42  ;;  %1635 = vmatprep.mubr.msk.bf16.mxu1 %vm461_vm1, %v1704_v43 }
  0x56   :  { %1572 = vmatmul.mubr.msk.bf16.gmra.mrb[40].mxu0 %vm461_vm1, %v1705_v44  ;;  %1636 = vmatmul.mubr.msk.bf16.gmra.mrb[40].mxu1 %vm461_vm1, %v1706_v45 }
  0x57   :  { %1575 = vmatprep.mubr.msk.bf16.mxu0 %vm461_vm1, %v1707_v46  ;;  %1639 = vmatprep.mubr.msk.bf16.mxu1 %vm461_vm1, %v1708_v47 }
  0x5e   :  { %1576 = vmatmul.mubr.msk.bf16.gmra.mrb[44].mxu0 %vm461_vm1, %v1709_v48  ;;  %1640 = vmatmul.mubr.msk.bf16.gmra.mrb[44].mxu1 %vm461_vm1, %v1710_v49 }
  0x5f   :  { %1579 = vmatprep.mubr.msk.bf16.mxu0 %vm461_vm1, %v1711_v50  ;;  %1643 = vmatprep.mubr.msk.bf16.mxu1 %vm461_vm1, %v1712_v51 }
  0x66   :  { %1580 = vmatmul.mubr.msk.bf16.gmra.mrb[48].mxu0 %vm461_vm1, %v1713_v52  ;;  %1644 = vmatmul.mubr.msk.bf16.gmra.mrb[48].mxu1 %vm461_vm1, %v1714_v53 }
  0x67   :  { %1583 = vmatprep.mubr.msk.bf16.mxu0 %vm461_vm1, %v1715_v54  ;;  %1647 = vmatprep.mubr.msk.bf16.mxu1 %vm461_vm1, %v1716_v55 }
  0x6e   :  { %1584 = vmatmul.mubr.msk.bf16.gmra.mrb[52].mxu0 %vm461_vm1, %v1717_v56  ;;  %1648 = vmatmul.mubr.msk.bf16.gmra.mrb[52].mxu1 %vm461_vm1, %v1718_v57 }
  0x6f   :  { %1587 = vmatprep.mubr.msk.bf16.mxu0 %vm461_vm1, %v1719_v58  ;;  %1651 = vmatprep.mubr.msk.bf16.mxu1 %vm461_vm1, %v1720_v59 }
  0x76   :  { %1588 = vmatmul.mubr.msk.bf16.gmra.mrb[56].mxu0 %vm461_vm1, %v1721_v60  ;;  %1652 = vmatmul.mubr.msk.bf16.gmra.mrb[56].mxu1 %vm461_vm1, %v1722_v61 }
  0x77   :  { %1591 = vmatprep.mubr.msk.bf16.mxu0 %vm461_vm1, %v1723_v62  ;;  %1655 = vmatprep.mubr.msk.bf16.mxu1 %vm461_vm1, %v1724_v63 }
  0x7e   :  { %1592 = vmatmul.mubr.msk.bf16.gmra.mrb[60].mxu0 %vm461_vm1, %v1725_v0  ;;  %1656 = vmatmul.mubr.msk.bf16.gmra.mrb[60].mxu1 %vm461_vm1, %v1726_v1 }
  0xd9   :  { %v1533_v2 = vpop.f32.mrb[0].mxu0  ;;  %v1597_v3 = vpop.f32.mrb[0].mxu1 }
  0xda   :  { %1206 = vst.msk [vmem:[%s2515_s2 + $0x10] sm:$0xff] %vm1203_vm2, %v1533_v2  ;;  %v692_v4 = vpop.f32.mrb[1].mxu0  ;;  %1270 = vst.msk [vmem:[%s2515_s2 + $0x210] sm:$0xff] %vm1203_vm2, %v1597_v3  ;;  %v948_v5 = vpop.f32.mrb[1].mxu1 }
  0xdb   :  { %1204 = vst.msk [vmem:[%s2515_s2] sm:$0xff] %vm1203_vm2, %v692_v4  ;;  %v1534_v6 = vpop.f32.mrb[2].mxu0  ;;  %1268 = vst.msk [vmem:[%s2515_s2 + $0x200] sm:$0xff] %vm1203_vm2, %v948_v5  ;;  %v1598_v7 = vpop.f32.mrb[2].mxu1 }
  0xdc   :  { %1207 = vst.msk [vmem:[%s2515_s2 + $0x18] sm:$0xff] %vm1203_vm2, %v1534_v6  ;;  %v695_v8 = vpop.f32.mrb[3].mxu0  ;;  %1271 = vst.msk [vmem:[%s2515_s2 + $0x218] sm:$0xff] %vm1203_vm2, %v1598_v7  ;;  %v951_v9 = vpop.f32.mrb[3].mxu1 }
  0xdd   :  { %1205 = vst.msk [vmem:[%s2515_s2 + $0x8] sm:$0xff] %vm1203_vm2, %v695_v8  ;;  %1269 = vst.msk [vmem:[%s2515_s2 + $0x208] sm:$0xff] %vm1203_vm2, %v951_v9 }
  0xe1   :  { %v1537_v10 = vpop.f32.mrb[4].mxu0  ;;  %v1601_v11 = vpop.f32.mrb[4].mxu1 }
  0xe2   :  { %1210 = vst.msk [vmem:[%s2515_s2 + $0x30] sm:$0xff] %vm1203_vm2, %v1537_v10  ;;  %v708_v12 = vpop.f32.mrb[5].mxu0  ;;  %1274 = vst.msk [vmem:[%s2515_s2 + $0x230] sm:$0xff] %vm1203_vm2, %v1601_v11  ;;  %v964_v13 = vpop.f32.mrb[5].mxu1 }
  0xe3   :  { %1208 = vst.msk [vmem:[%s2515_s2 + $0x20] sm:$0xff] %vm1203_vm2, %v708_v12  ;;  %v1538_v14 = vpop.f32.mrb[6].mxu0  ;;  %1272 = vst.msk [vmem:[%s2515_s2 + $0x220] sm:$0xff] %vm1203_vm2, %v964_v13  ;;  %v1602_v15 = vpop.f32.mrb[6].mxu1 }
  0xe4   :  { %1211 = vst.msk [vmem:[%s2515_s2 + $0x38] sm:$0xff] %vm1203_vm2, %v1538_v14  ;;  %v711_v16 = vpop.f32.mrb[7].mxu0  ;;  %1275 = vst.msk [vmem:[%s2515_s2 + $0x238] sm:$0xff] %vm1203_vm2, %v1602_v15  ;;  %v967_v17 = vpop.f32.mrb[7].mxu1 }
  0xe5   :  { %1209 = vst.msk [vmem:[%s2515_s2 + $0x28] sm:$0xff] %vm1203_vm2, %v711_v16  ;;  %1273 = vst.msk [vmem:[%s2515_s2 + $0x228] sm:$0xff] %vm1203_vm2, %v967_v17 }
  0xe9   :  { %v1541_v18 = vpop.f32.mrb[8].mxu0  ;;  %v1605_v19 = vpop.f32.mrb[8].mxu1 }
  0xea   :  { %1214 = vst.msk [vmem:[%s2515_s2 + $0x50] sm:$0xff] %vm1203_vm2, %v1541_v18  ;;  %v724_v20 = vpop.f32.mrb[9].mxu0  ;;  %1278 = vst.msk [vmem:[%s2515_s2 + $0x250] sm:$0xff] %vm1203_vm2, %v1605_v19  ;;  %v980_v21 = vpop.f32.mrb[9].mxu1 }
  0xeb   :  { %1212 = vst.msk [vmem:[%s2515_s2 + $0x40] sm:$0xff] %vm1203_vm2, %v724_v20  ;;  %v1542_v22 = vpop.f32.mrb[10].mxu0  ;;  %1276 = vst.msk [vmem:[%s2515_s2 + $0x240] sm:$0xff] %vm1203_vm2, %v980_v21  ;;  %v1606_v23 = vpop.f32.mrb[10].mxu1 }
  0xec   :  { %1215 = vst.msk [vmem:[%s2515_s2 + $0x58] sm:$0xff] %vm1203_vm2, %v1542_v22  ;;  %v727_v24 = vpop.f32.mrb[11].mxu0  ;;  %1279 = vst.msk [vmem:[%s2515_s2 + $0x258] sm:$0xff] %vm1203_vm2, %v1606_v23  ;;  %v983_v25 = vpop.f32.mrb[11].mxu1 }
  0xed   :  { %1213 = vst.msk [vmem:[%s2515_s2 + $0x48] sm:$0xff] %vm1203_vm2, %v727_v24  ;;  %1277 = vst.msk [vmem:[%s2515_s2 + $0x248] sm:$0xff] %vm1203_vm2, %v983_v25 }
  0xf1   :  { %v1545_v26 = vpop.f32.mrb[12].mxu0  ;;  %v1609_v27 = vpop.f32.mrb[12].mxu1 }
  0xf2   :  { %1218 = vst.msk [vmem:[%s2515_s2 + $0x70] sm:$0xff] %vm1203_vm2, %v1545_v26  ;;  %v740_v28 = vpop.f32.mrb[13].mxu0  ;;  %1282 = vst.msk [vmem:[%s2515_s2 + $0x270] sm:$0xff] %vm1203_vm2, %v1609_v27  ;;  %v996_v29 = vpop.f32.mrb[13].mxu1 }
  0xf3   :  { %1216 = vst.msk [vmem:[%s2515_s2 + $0x60] sm:$0xff] %vm1203_vm2, %v740_v28  ;;  %v1546_v30 = vpop.f32.mrb[14].mxu0  ;;  %1280 = vst.msk [vmem:[%s2515_s2 + $0x260] sm:$0xff] %vm1203_vm2, %v996_v29  ;;  %v1610_v31 = vpop.f32.mrb[14].mxu1 }
  0xf4   :  { %1219 = vst.msk [vmem:[%s2515_s2 + $0x78] sm:$0xff] %vm1203_vm2, %v1546_v30  ;;  %v743_v32 = vpop.f32.mrb[15].mxu0  ;;  %1283 = vst.msk [vmem:[%s2515_s2 + $0x278] sm:$0xff] %vm1203_vm2, %v1610_v31  ;;  %v999_v33 = vpop.f32.mrb[15].mxu1 }
  0xf5   :  { %1217 = vst.msk [vmem:[%s2515_s2 + $0x68] sm:$0xff] %vm1203_vm2, %v743_v32  ;;  %1281 = vst.msk [vmem:[%s2515_s2 + $0x268] sm:$0xff] %vm1203_vm2, %v999_v33 }
  0xf9   :  { %v1549_v34 = vpop.f32.mrb[16].mxu0  ;;  %v1613_v35 = vpop.f32.mrb[16].mxu1 }
  0xfa   :  { %1222 = vst.msk [vmem:[%s2515_s2 + $0x90] sm:$0xff] %vm1203_vm2, %v1549_v34  ;;  %v756_v36 = vpop.f32.mrb[17].mxu0  ;;  %1286 = vst.msk [vmem:[%s2515_s2 + $0x290] sm:$0xff] %vm1203_vm2, %v1613_v35  ;;  %v1012_v37 = vpop.f32.mrb[17].mxu1 }
  0xfb   :  { %1220 = vst.msk [vmem:[%s2515_s2 + $0x80] sm:$0xff] %vm1203_vm2, %v756_v36  ;;  %v1550_v38 = vpop.f32.mrb[18].mxu0  ;;  %1284 = vst.msk [vmem:[%s2515_s2 + $0x280] sm:$0xff] %vm1203_vm2, %v1012_v37  ;;  %v1614_v39 = vpop.f32.mrb[18].mxu1 }
  0xfc   :  { %1223 = vst.msk [vmem:[%s2515_s2 + $0x98] sm:$0xff] %vm1203_vm2, %v1550_v38  ;;  %v759_v40 = vpop.f32.mrb[19].mxu0  ;;  %1287 = vst.msk [vmem:[%s2515_s2 + $0x298] sm:$0xff] %vm1203_vm2, %v1614_v39  ;;  %v1015_v41 = vpop.f32.mrb[19].mxu1 }
  0xfd   :  { %1221 = vst.msk [vmem:[%s2515_s2 + $0x88] sm:$0xff] %vm1203_vm2, %v759_v40  ;;  %1285 = vst.msk [vmem:[%s2515_s2 + $0x288] sm:$0xff] %vm1203_vm2, %v1015_v41 }
 0x101   :  { %v1553_v42 = vpop.f32.mrb[20].mxu0  ;;  %v1617_v43 = vpop.f32.mrb[20].mxu1 }
 0x102   :  { %1226 = vst.msk [vmem:[%s2515_s2 + $0xb0] sm:$0xff] %vm1203_vm2, %v1553_v42  ;;  %v772_v44 = vpop.f32.mrb[21].mxu0  ;;  %1290 = vst.msk [vmem:[%s2515_s2 + $0x2b0] sm:$0xff] %vm1203_vm2, %v1617_v43  ;;  %v1028_v45 = vpop.f32.mrb[21].mxu1 }
 0x103   :  { %1224 = vst.msk [vmem:[%s2515_s2 + $0xa0] sm:$0xff] %vm1203_vm2, %v772_v44  ;;  %v1554_v46 = vpop.f32.mrb[22].mxu0  ;;  %1288 = vst.msk [vmem:[%s2515_s2 + $0x2a0] sm:$0xff] %vm1203_vm2, %v1028_v45  ;;  %v1618_v47 = vpop.f32.mrb[22].mxu1 }
 0x104   :  { %1227 = vst.msk [vmem:[%s2515_s2 + $0xb8] sm:$0xff] %vm1203_vm2, %v1554_v46  ;;  %v775_v48 = vpop.f32.mrb[23].mxu0  ;;  %1291 = vst.msk [vmem:[%s2515_s2 + $0x2b8] sm:$0xff] %vm1203_vm2, %v1618_v47  ;;  %v1031_v49 = vpop.f32.mrb[23].mxu1 }
 0x105   :  { %1225 = vst.msk [vmem:[%s2515_s2 + $0xa8] sm:$0xff] %vm1203_vm2, %v775_v48  ;;  %1289 = vst.msk [vmem:[%s2515_s2 + $0x2a8] sm:$0xff] %vm1203_vm2, %v1031_v49 }
 0x109   :  { %v1557_v50 = vpop.f32.mrb[24].mxu0  ;;  %v1621_v51 = vpop.f32.mrb[24].mxu1 }
 0x10a   :  { %1230 = vst.msk [vmem:[%s2515_s2 + $0xd0] sm:$0xff] %vm1203_vm2, %v1557_v50  ;;  %v788_v52 = vpop.f32.mrb[25].mxu0  ;;  %1294 = vst.msk [vmem:[%s2515_s2 + $0x2d0] sm:$0xff] %vm1203_vm2, %v1621_v51  ;;  %v1044_v53 = vpop.f32.mrb[25].mxu1 }
 0x10b   :  { %1228 = vst.msk [vmem:[%s2515_s2 + $0xc0] sm:$0xff] %vm1203_vm2, %v788_v52  ;;  %v1558_v54 = vpop.f32.mrb[26].mxu0  ;;  %1292 = vst.msk [vmem:[%s2515_s2 + $0x2c0] sm:$0xff] %vm1203_vm2, %v1044_v53  ;;  %v1622_v55 = vpop.f32.mrb[26].mxu1 }
 0x10c   :  { %1231 = vst.msk [vmem:[%s2515_s2 + $0xd8] sm:$0xff] %vm1203_vm2, %v1558_v54  ;;  %v791_v56 = vpop.f32.mrb[27].mxu0  ;;  %1295 = vst.msk [vmem:[%s2515_s2 + $0x2d8] sm:$0xff] %vm1203_vm2, %v1622_v55  ;;  %v1047_v57 = vpop.f32.mrb[27].mxu1 }
 0x10d   :  { %1229 = vst.msk [vmem:[%s2515_s2 + $0xc8] sm:$0xff] %vm1203_vm2, %v791_v56  ;;  %1293 = vst.msk [vmem:[%s2515_s2 + $0x2c8] sm:$0xff] %vm1203_vm2, %v1047_v57 }
 0x111   :  { %v1561_v58 = vpop.f32.mrb[28].mxu0  ;;  %v1625_v59 = vpop.f32.mrb[28].mxu1 }
 0x112   :  { %1234 = vst.msk [vmem:[%s2515_s2 + $0xf0] sm:$0xff] %vm1203_vm2, %v1561_v58  ;;  %v804_v60 = vpop.f32.mrb[29].mxu0  ;;  %1298 = vst.msk [vmem:[%s2515_s2 + $0x2f0] sm:$0xff] %vm1203_vm2, %v1625_v59  ;;  %v1060_v61 = vpop.f32.mrb[29].mxu1 }
 0x113   :  { %1232 = vst.msk [vmem:[%s2515_s2 + $0xe0] sm:$0xff] %vm1203_vm2, %v804_v60  ;;  %v1562_v62 = vpop.f32.mrb[30].mxu0  ;;  %1296 = vst.msk [vmem:[%s2515_s2 + $0x2e0] sm:$0xff] %vm1203_vm2, %v1060_v61  ;;  %v1626_v63 = vpop.f32.mrb[30].mxu1 }
 0x114   :  { %1235 = vst.msk [vmem:[%s2515_s2 + $0xf8] sm:$0xff] %vm1203_vm2, %v1562_v62  ;;  %v807_v0 = vpop.f32.mrb[31].mxu0  ;;  %1299 = vst.msk [vmem:[%s2515_s2 + $0x2f8] sm:$0xff] %vm1203_vm2, %v1626_v63  ;;  %v1063_v1 = vpop.f32.mrb[31].mxu1 }
 0x115   :  { %1233 = vst.msk [vmem:[%s2515_s2 + $0xe8] sm:$0xff] %vm1203_vm2, %v807_v0  ;;  %1297 = vst.msk [vmem:[%s2515_s2 + $0x2e8] sm:$0xff] %vm1203_vm2, %v1063_v1 }
 0x119   :  { %v1565_v2 = vpop.f32.mrb[32].mxu0  ;;  %v1629_v3 = vpop.f32.mrb[32].mxu1 }
 0x11a   :  { %1238 = vst.msk [vmem:[%s2515_s2 + $0x110] sm:$0xff] %vm1203_vm2, %v1565_v2  ;;  %v820_v4 = vpop.f32.mrb[33].mxu0  ;;  %1302 = vst.msk [vmem:[%s2515_s2 + $0x310] sm:$0xff] %vm1203_vm2, %v1629_v3  ;;  %v1076_v5 = vpop.f32.mrb[33].mxu1 }
 0x11b   :  { %1236 = vst.msk [vmem:[%s2515_s2 + $0x100] sm:$0xff] %vm1203_vm2, %v820_v4  ;;  %v1566_v6 = vpop.f32.mrb[34].mxu0  ;;  %1300 = vst.msk [vmem:[%s2515_s2 + $0x300] sm:$0xff] %vm1203_vm2, %v1076_v5  ;;  %v1630_v7 = vpop.f32.mrb[34].mxu1 }
 0x11c   :  { %1239 = vst.msk [vmem:[%s2515_s2 + $0x118] sm:$0xff] %vm1203_vm2, %v1566_v6  ;;  %v823_v8 = vpop.f32.mrb[35].mxu0  ;;  %1303 = vst.msk [vmem:[%s2515_s2 + $0x318] sm:$0xff] %vm1203_vm2, %v1630_v7  ;;  %v1079_v9 = vpop.f32.mrb[35].mxu1 }
 0x11d   :  { %1237 = vst.msk [vmem:[%s2515_s2 + $0x108] sm:$0xff] %vm1203_vm2, %v823_v8  ;;  %1301 = vst.msk [vmem:[%s2515_s2 + $0x308] sm:$0xff] %vm1203_vm2, %v1079_v9 }
 0x121   :  { %v1569_v10 = vpop.f32.mrb[36].mxu0  ;;  %v1633_v11 = vpop.f32.mrb[36].mxu1 }
 0x122   :  { %1242 = vst.msk [vmem:[%s2515_s2 + $0x130] sm:$0xff] %vm1203_vm2, %v1569_v10  ;;  %v836_v12 = vpop.f32.mrb[37].mxu0  ;;  %1306 = vst.msk [vmem:[%s2515_s2 + $0x330] sm:$0xff] %vm1203_vm2, %v1633_v11  ;;  %v1092_v13 = vpop.f32.mrb[37].mxu1 }
 0x123   :  { %1240 = vst.msk [vmem:[%s2515_s2 + $0x120] sm:$0xff] %vm1203_vm2, %v836_v12  ;;  %v1570_v14 = vpop.f32.mrb[38].mxu0  ;;  %1304 = vst.msk [vmem:[%s2515_s2 + $0x320] sm:$0xff] %vm1203_vm2, %v1092_v13  ;;  %v1634_v15 = vpop.f32.mrb[38].mxu1 }
 0x124   :  { %1243 = vst.msk [vmem:[%s2515_s2 + $0x138] sm:$0xff] %vm1203_vm2, %v1570_v14  ;;  %v839_v16 = vpop.f32.mrb[39].mxu0  ;;  %1307 = vst.msk [vmem:[%s2515_s2 + $0x338] sm:$0xff] %vm1203_vm2, %v1634_v15  ;;  %v1095_v17 = vpop.f32.mrb[39].mxu1 }
 0x125   :  { %1241 = vst.msk [vmem:[%s2515_s2 + $0x128] sm:$0xff] %vm1203_vm2, %v839_v16  ;;  %1305 = vst.msk [vmem:[%s2515_s2 + $0x328] sm:$0xff] %vm1203_vm2, %v1095_v17 }
 0x129   :  { %v1573_v18 = vpop.f32.mrb[40].mxu0  ;;  %v1637_v19 = vpop.f32.mrb[40].mxu1 }
 0x12a   :  { %1246 = vst.msk [vmem:[%s2515_s2 + $0x150] sm:$0xff] %vm1203_vm2, %v1573_v18  ;;  %v852_v20 = vpop.f32.mrb[41].mxu0  ;;  %1310 = vst.msk [vmem:[%s2515_s2 + $0x350] sm:$0xff] %vm1203_vm2, %v1637_v19  ;;  %v1108_v21 = vpop.f32.mrb[41].mxu1 }
 0x12b   :  { %1244 = vst.msk [vmem:[%s2515_s2 + $0x140] sm:$0xff] %vm1203_vm2, %v852_v20  ;;  %v1574_v22 = vpop.f32.mrb[42].mxu0  ;;  %1308 = vst.msk [vmem:[%s2515_s2 + $0x340] sm:$0xff] %vm1203_vm2, %v1108_v21  ;;  %v1638_v23 = vpop.f32.mrb[42].mxu1 }
 0x12c   :  { %1247 = vst.msk [vmem:[%s2515_s2 + $0x158] sm:$0xff] %vm1203_vm2, %v1574_v22  ;;  %v855_v24 = vpop.f32.mrb[43].mxu0  ;;  %1311 = vst.msk [vmem:[%s2515_s2 + $0x358] sm:$0xff] %vm1203_vm2, %v1638_v23  ;;  %v1111_v25 = vpop.f32.mrb[43].mxu1 }
 0x12d   :  { %1245 = vst.msk [vmem:[%s2515_s2 + $0x148] sm:$0xff] %vm1203_vm2, %v855_v24  ;;  %1309 = vst.msk [vmem:[%s2515_s2 + $0x348] sm:$0xff] %vm1203_vm2, %v1111_v25 }
 0x131   :  { %v1577_v26 = vpop.f32.mrb[44].mxu0  ;;  %v1641_v27 = vpop.f32.mrb[44].mxu1 }
 0x132   :  { %1250 = vst.msk [vmem:[%s2515_s2 + $0x170] sm:$0xff] %vm1203_vm2, %v1577_v26  ;;  %v868_v28 = vpop.f32.mrb[45].mxu0  ;;  %1314 = vst.msk [vmem:[%s2515_s2 + $0x370] sm:$0xff] %vm1203_vm2, %v1641_v27  ;;  %v1124_v29 = vpop.f32.mrb[45].mxu1 }
 0x133   :  { %1248 = vst.msk [vmem:[%s2515_s2 + $0x160] sm:$0xff] %vm1203_vm2, %v868_v28  ;;  %v1578_v30 = vpop.f32.mrb[46].mxu0  ;;  %1312 = vst.msk [vmem:[%s2515_s2 + $0x360] sm:$0xff] %vm1203_vm2, %v1124_v29  ;;  %v1642_v31 = vpop.f32.mrb[46].mxu1 }
 0x134   :  { %1251 = vst.msk [vmem:[%s2515_s2 + $0x178] sm:$0xff] %vm1203_vm2, %v1578_v30  ;;  %v871_v32 = vpop.f32.mrb[47].mxu0  ;;  %1315 = vst.msk [vmem:[%s2515_s2 + $0x378] sm:$0xff] %vm1203_vm2, %v1642_v31  ;;  %v1127_v33 = vpop.f32.mrb[47].mxu1 }
 0x135   :  { %1249 = vst.msk [vmem:[%s2515_s2 + $0x168] sm:$0xff] %vm1203_vm2, %v871_v32  ;;  %1313 = vst.msk [vmem:[%s2515_s2 + $0x368] sm:$0xff] %vm1203_vm2, %v1127_v33 }
 0x139   :  { %v1581_v34 = vpop.f32.mrb[48].mxu0  ;;  %v1645_v35 = vpop.f32.mrb[48].mxu1 }
 0x13a   :  { %1254 = vst.msk [vmem:[%s2515_s2 + $0x190] sm:$0xff] %vm1203_vm2, %v1581_v34  ;;  %v884_v36 = vpop.f32.mrb[49].mxu0  ;;  %1318 = vst.msk [vmem:[%s2515_s2 + $0x390] sm:$0xff] %vm1203_vm2, %v1645_v35  ;;  %v1140_v37 = vpop.f32.mrb[49].mxu1 }
 0x13b   :  { %1252 = vst.msk [vmem:[%s2515_s2 + $0x180] sm:$0xff] %vm1203_vm2, %v884_v36  ;;  %v1582_v38 = vpop.f32.mrb[50].mxu0  ;;  %1316 = vst.msk [vmem:[%s2515_s2 + $0x380] sm:$0xff] %vm1203_vm2, %v1140_v37  ;;  %v1646_v39 = vpop.f32.mrb[50].mxu1 }
 0x13c   :  { %1255 = vst.msk [vmem:[%s2515_s2 + $0x198] sm:$0xff] %vm1203_vm2, %v1582_v38  ;;  %v887_v40 = vpop.f32.mrb[51].mxu0  ;;  %1319 = vst.msk [vmem:[%s2515_s2 + $0x398] sm:$0xff] %vm1203_vm2, %v1646_v39  ;;  %v1143_v41 = vpop.f32.mrb[51].mxu1 }
 0x13d   :  { %1253 = vst.msk [vmem:[%s2515_s2 + $0x188] sm:$0xff] %vm1203_vm2, %v887_v40  ;;  %1317 = vst.msk [vmem:[%s2515_s2 + $0x388] sm:$0xff] %vm1203_vm2, %v1143_v41 }
 0x141   :  { %v1585_v42 = vpop.f32.mrb[52].mxu0  ;;  %v1649_v43 = vpop.f32.mrb[52].mxu1 }
 0x142   :  { %1258 = vst.msk [vmem:[%s2515_s2 + $0x1b0] sm:$0xff] %vm1203_vm2, %v1585_v42  ;;  %v900_v44 = vpop.f32.mrb[53].mxu0  ;;  %1322 = vst.msk [vmem:[%s2515_s2 + $0x3b0] sm:$0xff] %vm1203_vm2, %v1649_v43  ;;  %v1156_v45 = vpop.f32.mrb[53].mxu1 }
 0x143   :  { %1256 = vst.msk [vmem:[%s2515_s2 + $0x1a0] sm:$0xff] %vm1203_vm2, %v900_v44  ;;  %v1586_v46 = vpop.f32.mrb[54].mxu0  ;;  %1320 = vst.msk [vmem:[%s2515_s2 + $0x3a0] sm:$0xff] %vm1203_vm2, %v1156_v45  ;;  %v1650_v47 = vpop.f32.mrb[54].mxu1 }
 0x144   :  { %1259 = vst.msk [vmem:[%s2515_s2 + $0x1b8] sm:$0xff] %vm1203_vm2, %v1586_v46  ;;  %v903_v48 = vpop.f32.mrb[55].mxu0  ;;  %1323 = vst.msk [vmem:[%s2515_s2 + $0x3b8] sm:$0xff] %vm1203_vm2, %v1650_v47  ;;  %v1159_v49 = vpop.f32.mrb[55].mxu1 }
 0x145   :  { %1257 = vst.msk [vmem:[%s2515_s2 + $0x1a8] sm:$0xff] %vm1203_vm2, %v903_v48  ;;  %1321 = vst.msk [vmem:[%s2515_s2 + $0x3a8] sm:$0xff] %vm1203_vm2, %v1159_v49 }
 0x149   :  { %v1589_v50 = vpop.f32.mrb[56].mxu0  ;;  %v1653_v51 = vpop.f32.mrb[56].mxu1 }
 0x14a   :  { %1262 = vst.msk [vmem:[%s2515_s2 + $0x1d0] sm:$0xff] %vm1203_vm2, %v1589_v50  ;;  %v916_v52 = vpop.f32.mrb[57].mxu0  ;;  %1326 = vst.msk [vmem:[%s2515_s2 + $0x3d0] sm:$0xff] %vm1203_vm2, %v1653_v51  ;;  %v1172_v53 = vpop.f32.mrb[57].mxu1 }
 0x14b   :  { %1260 = vst.msk [vmem:[%s2515_s2 + $0x1c0] sm:$0xff] %vm1203_vm2, %v916_v52  ;;  %v1590_v54 = vpop.f32.mrb[58].mxu0  ;;  %1324 = vst.msk [vmem:[%s2515_s2 + $0x3c0] sm:$0xff] %vm1203_vm2, %v1172_v53  ;;  %v1654_v55 = vpop.f32.mrb[58].mxu1 }
 0x14c   :  { %1263 = vst.msk [vmem:[%s2515_s2 + $0x1d8] sm:$0xff] %vm1203_vm2, %v1590_v54  ;;  %v919_v56 = vpop.f32.mrb[59].mxu0  ;;  %1327 = vst.msk [vmem:[%s2515_s2 + $0x3d8] sm:$0xff] %vm1203_vm2, %v1654_v55  ;;  %v1175_v57 = vpop.f32.mrb[59].mxu1 }
 0x14d   :  { %1261 = vst.msk [vmem:[%s2515_s2 + $0x1c8] sm:$0xff] %vm1203_vm2, %v919_v56  ;;  %1325 = vst.msk [vmem:[%s2515_s2 + $0x3c8] sm:$0xff] %vm1203_vm2, %v1175_v57 }
 0x151   :  { %v1593_v58 = vpop.f32.mrb[60].mxu0  ;;  %v1657_v59 = vpop.f32.mrb[60].mxu1 }
 0x152   :  { %1266 = vst.msk [vmem:[%s2515_s2 + $0x1f0] sm:$0xff] %vm1203_vm2, %v1593_v58  ;;  %v932_v60 = vpop.f32.mrb[61].mxu0  ;;  %1330 = vst.msk [vmem:[%s2515_s2 + $0x3f0] sm:$0xff] %vm1203_vm2, %v1657_v59  ;;  %v1188_v61 = vpop.f32.mrb[61].mxu1 }
 0x153   :  { %1264 = vst.msk [vmem:[%s2515_s2 + $0x1e0] sm:$0xff] %vm1203_vm2, %v932_v60  ;;  %v1594_v62 = vpop.f32.mrb[62].mxu0  ;;  %1328 = vst.msk [vmem:[%s2515_s2 + $0x3e0] sm:$0xff] %vm1203_vm2, %v1188_v61  ;;  %v1658_v63 = vpop.f32.mrb[62].mxu1 }
 0x154   :  { %1267 = vst.msk [vmem:[%s2515_s2 + $0x1f8] sm:$0xff] %vm1203_vm2, %v1594_v62  ;;  %v935_v0 = vpop.f32.mrb[63].mxu0  ;;  %1331 = vst.msk [vmem:[%s2515_s2 + $0x3f8] sm:$0xff] %vm1203_vm2, %v1658_v63  ;;  %v1191_v1 = vpop.f32.mrb[63].mxu1 }
 0x155   :  { %1265 = vst.msk [vmem:[%s2515_s2 + $0x1e8] sm:$0xff] %vm1203_vm2, %v935_v0  ;;  %1329 = vst.msk [vmem:[%s2515_s2 + $0x3e8] sm:$0xff] %vm1203_vm2, %v1191_v1 }

// kernel: generator_forward.12
= control target key start
LH: loop header
LB: loop body
LE: loop exit
PB: predicated region body
PF: predicated region fallthrough
CT: control target
= control target key end

     0   :  { %s804_s12 = smov 0   ;;  %s1040_s0 = inlined_call_operand.vmem [shape: bf16[16,32,8], index: 0, kind: input, shape index: {}]   ;;  %s1041_s1 = inlined_call_operand.vmem [shape: f32[1,32,1], index: 1, kind: input, shape index: {}]   ;;  %s1042_s2 = inlined_call_operand.vmem [shape: f32[1,32,1], index: 2, kind: input, shape index: {}]   ;;  %s1043_s3 = inlined_call_operand.vmem [shape: bf16[16,32,8], index: 3, kind: output, shape index: {}]  }
   0x1 LB: > { %s606_s13 = sadd.s32 4294967295, %s781_s12   ;;  %p610_p0 = scmp.ge.s32.totalorder %s781_s12, 1  ;;  %s781_s12 = sphi %s804_s12, %s13_s12  }
   0x2   : > { %p139_p1 = scmp.lt.s32.totalorder %s781_s12, 3 }
   0x4   : > { %p140_p2 = pnand %p610_p0, %p139_p1 }
   0x5   : > { %v245_v0 = vld [vmem:[%s1041_s1 + $0x10] sm:$0xff] (!%p140_p2)  ;;  %v243_v1 = vld [vmem:[%s1041_s1] sm:$0xff] (!%p140_p2)  ;;  %v783_v2 = vmov (!%p140_p2), 0   ;;  %v246_v3 = vld [vmem:[%s1041_s1 + $0x18] sm:$0xff] (!%p140_p2)  ;;  %s611_s30 = sshll.u32 (!%p140_p2), %s606_s13, 3  ;;  %vm515_vm0 = vcmask (!%p140_p2), 60416  }
   0x6   : > { %143 = sbr.rel (%p140_p2) target bundleno = 172 (0xac), region = 32  ;;  %774 = vset.pattern.permute.xlu1 (!%p140_p2), %v783_v2  ;;  %773 = vset.pattern.permute.xlu0 (!%p140_p2), %v783_v2  ;;  %v244_v4 = vld [vmem:[%s1041_s1 + $0x8] sm:$0xff] (!%p140_p2)  ;;  %v299_v6 = vld [vmem:[%s1042_s2] sm:$0xff] (!%p140_p2)  ;;  %v302_v7 = vld [vmem:[%s1042_s2 + $0x18] sm:$0xff] (!%p140_p2)  ;;  %p166_p3 = scmp.lt.s32.totalorder (!%p140_p2), %s611_s30, 15 }
   0x7   : > { %259 = vperm.xlu1 (!%p140_p2), %774, %v245_v0   ;;  %249 = vperm.xlu0 (!%p140_p2), %773, %v243_v1   ;;  %v300_v5 = vld [vmem:[%s1042_s2 + $0x8] sm:$0xff] (!%p140_p2)  ;;  %v301_v8 = vld [vmem:[%s1042_s2 + $0x10] sm:$0xff] (!%p140_p2) }
   0xb   : > { %264 = vperm.xlu1 (!%p140_p2), %774, %v246_v3   ;;  %254 = vperm.xlu0 (!%p140_p2), %773, %v244_v4  }
   0xd   : > { %s1045_s30 = smov (!%p166_p3, %s611_s30), 15 }
   0xe   : > { %s651_s4 = sshll.u32 %s1045_s30, 4 }
   0xf   : > { %310 = vperm.xlu1 %774, %v300_v5   ;;  %305 = vperm.xlu0 %773, %v299_v6   ;;  %s844_s7 = scalar_lea.vmem %s1040_s0, %s651_s4  ;;  %s947_s10 = scalar_lea.vmem %s1043_s3, %s651_s4 }
  0x10   : > { %v847_v9 = vld [vmem:[%s844_s7] sm:$0xff]   ;;  %v850_v10 = vld [vmem:[%s844_s7 + $0x10] sm:$0xff]   ;;  %v749_v29 = vld [vmem:[%s844_s7 + $0x8] sm:$0xff]  }
  0x11   : > { %v853_v11 = vld [vmem:[%s844_s7 + $0x20] sm:$0xff]   ;;  %v856_v12 = vld [vmem:[%s844_s7 + $0x30] sm:$0xff]   ;;  %v687_v17 = vunpack.c.l.bf16 %v847_v9  ;;  %v695_v18 = vunpack.c.l.bf16 %v850_v10  ;;  %v688_v20 = vunpack.c.h.bf16 %v847_v9  ;;  %v696_v24 = vunpack.c.h.bf16 %v850_v10  ;;  %v751_v30 = vld [vmem:[%s844_s7 + $0x18] sm:$0xff]  }
  0x12   : > { %v859_v13 = vld [vmem:[%s844_s7 + $0x40] sm:$0xff]   ;;  %v862_v14 = vld [vmem:[%s844_s7 + $0x50] sm:$0xff]   ;;  %v703_v19 = vunpack.c.l.bf16 %v853_v11  ;;  %v711_v21 = vunpack.c.l.bf16 %v856_v12  ;;  %v704_v27 = vunpack.c.h.bf16 %v853_v11  ;;  %v712_v28 = vunpack.c.h.bf16 %v856_v12  ;;  %v753_v35 = vld [vmem:[%s844_s7 + $0x28] sm:$0xff]  }
  0x13   : > { %320 = vperm.xlu1 %774, %v302_v7   ;;  %315 = vperm.xlu0 %773, %v301_v8   ;;  %v865_v15 = vld [vmem:[%s844_s7 + $0x60] sm:$0xff]   ;;  %v868_v16 = vld [vmem:[%s844_s7 + $0x70] sm:$0xff]   ;;  %v719_v22 = vunpack.c.l.bf16 %v859_v13  ;;  %v727_v23 = vunpack.c.l.bf16 %v862_v14  ;;  %v720_v31 = vunpack.c.h.bf16 %v859_v13  ;;  %v728_v32 = vunpack.c.h.bf16 %v862_v14  ;;  %v755_v36 = vld [vmem:[%s844_s7 + $0x38] sm:$0xff]  }
  0x14   : > { %v735_v25 = vunpack.c.l.bf16 %v865_v15  ;;  %v743_v26 = vunpack.c.l.bf16 %v868_v16  ;;  %v736_v33 = vunpack.c.h.bf16 %v865_v15  ;;  %v744_v34 = vunpack.c.h.bf16 %v868_v16  ;;  %v757_v37 = vld [vmem:[%s844_s7 + $0x48] sm:$0xff]   ;;  %v759_v42 = vld [vmem:[%s844_s7 + $0x58] sm:$0xff]  }
  0x15   : > { %v692_v38 = vunpack.c.h.bf16 %v749_v29  ;;  %v700_v39 = vunpack.c.h.bf16 %v751_v30  ;;  %v708_v40 = vunpack.c.h.bf16 %v753_v35  ;;  %v716_v41 = vunpack.c.h.bf16 %v755_v36  ;;  %v761_v43 = vld [vmem:[%s844_s7 + $0x68] sm:$0xff]   ;;  %v763_v44 = vld [vmem:[%s844_s7 + $0x78] sm:$0xff]  }
  0x16   : > { %v724_v45 = vunpack.c.h.bf16 %v757_v37  ;;  %v732_v46 = vunpack.c.h.bf16 %v759_v42  ;;  %v740_v47 = vunpack.c.h.bf16 %v761_v43  ;;  %v748_v48 = vunpack.c.h.bf16 %v763_v44 }
  0x17   : > { %v691_v49 = vunpack.c.l.bf16 %v749_v29  ;;  %v699_v50 = vunpack.c.l.bf16 %v751_v30  ;;  %v707_v51 = vunpack.c.l.bf16 %v753_v35  ;;  %v715_v52 = vunpack.c.l.bf16 %v755_v36 }
  0x18   : > { %v723_v55 = vunpack.c.l.bf16 %v757_v37  ;;  %v731_v56 = vunpack.c.l.bf16 %v759_v42  ;;  %v739_v57 = vunpack.c.l.bf16 %v761_v43  ;;  %v747_v58 = vunpack.c.l.bf16 %v763_v44 }
  0x86   : > { %v260_v53 = vpop.permute.xlu1 %259  ;;  %v250_v54 = vpop.permute.xlu0 %249 }
  0x87   : > { %v894_v59 = vmul.f32 %v687_v17, %v250_v54  ;;  %v896_v60 = vmul.f32 %v695_v18, %v250_v54  ;;  %v898_v61 = vmul.f32 %v703_v19, %v250_v54  ;;  %v900_v62 = vmul.f32 %v711_v21, %v250_v54 }
  0x88   : > { %v902_v63 = vmul.f32 %v719_v22, %v250_v54  ;;  %v904_v0 = vmul.f32 %v727_v23, %v250_v54  ;;  %v906_v1 = vmul.f32 %v735_v25, %v250_v54  ;;  %v908_v2 = vmul.f32 %v743_v26, %v250_v54 }
  0x89   : > { %v910_v3 = vmul.f32 %v691_v49, %v260_v53  ;;  %v912_v4 = vmul.f32 %v699_v50, %v260_v53  ;;  %v914_v5 = vmul.f32 %v707_v51, %v260_v53  ;;  %v916_v6 = vmul.f32 %v715_v52, %v260_v53 }
  0x8a   : > { %v265_v7 = vpop.permute.xlu1 %264  ;;  %v255_v8 = vpop.permute.xlu0 %254  ;;  %v918_v9 = vmul.f32 %v723_v55, %v260_v53  ;;  %v920_v10 = vmul.f32 %v731_v56, %v260_v53  ;;  %v922_v11 = vmul.f32 %v739_v57, %v260_v53  ;;  %v924_v12 = vmul.f32 %v747_v58, %v260_v53 }
  0x8b   : > { %v268_v13 = vmul.f32 %v688_v20, %v255_v8  ;;  %v272_v14 = vmul.f32 %v696_v24, %v255_v8  ;;  %v276_v15 = vmul.f32 %v704_v27, %v255_v8  ;;  %v280_v16 = vmul.f32 %v712_v28, %v255_v8 }
  0x8c   : > { %v284_v17 = vmul.f32 %v720_v31, %v255_v8  ;;  %v288_v18 = vmul.f32 %v728_v32, %v255_v8  ;;  %v292_v19 = vmul.f32 %v736_v33, %v255_v8  ;;  %v296_v21 = vmul.f32 %v744_v34, %v255_v8 }
  0x8d   : > { %v926_v22 = vmul.f32 %v692_v38, %v265_v7  ;;  %v928_v23 = vmul.f32 %v700_v39, %v265_v7  ;;  %v930_v25 = vmul.f32 %v708_v40, %v265_v7  ;;  %v932_v26 = vmul.f32 %v716_v41, %v265_v7 }
  0x8e   : > { %v311_v29 = vpop.permute.xlu1 %310  ;;  %v934_v30 = vmul.f32 %v724_v45, %v265_v7  ;;  %v936_v20 = vmul.f32 %v732_v46, %v265_v7  ;;  %v938_v24 = vmul.f32 %v740_v47, %v265_v7  ;;  %v940_v27 = vmul.f32 %v748_v48, %v265_v7  ;;  %v306_v46 = vpop.permute.xlu0 %305 }
  0x8f   : > { %v324_v28 = vadd.f32 %v311_v29, %v268_v13  ;;  %v328_v31 = vadd.f32 %v311_v29, %v272_v14  ;;  %v332_v32 = vadd.f32 %v311_v29, %v276_v15  ;;  %v336_v33 = vadd.f32 %v311_v29, %v280_v16 }
  0x90   : > { %v340_v34 = vadd.f32 %v311_v29, %v284_v17  ;;  %v344_v35 = vadd.f32 %v311_v29, %v288_v18  ;;  %v348_v36 = vadd.f32 %v311_v29, %v292_v19  ;;  %v352_v37 = vadd.f32 %v311_v29, %v296_v21 }
  0x91   : > { %v356_v38 = vmax.f32 %v324_v28, 0.0  ;;  %v360_v39 = vmax.f32 %v328_v31, 0.0  ;;  %v364_v40 = vmax.f32 %v332_v32, 0.0  ;;  %v368_v41 = vmax.f32 %v336_v33, 0.0 }
  0x92   : > { %v372_v42 = vmax.f32 %v340_v34, 0.0  ;;  %v376_v43 = vmax.f32 %v344_v35, 0.0  ;;  %v380_v44 = vmax.f32 %v348_v36, 0.0  ;;  %v384_v45 = vmax.f32 %v352_v37, 0.0  ;;  %v321_v19 = vpop.permute.xlu1 %320 }
  0x93   : > { %v654_v47 = vpack.c.bf16 %v356_v38, %v356_v38  ;;  %v658_v48 = vpack.c.bf16 %v360_v39, %v360_v39  ;;  %v662_v49 = vpack.c.bf16 %v364_v40, %v364_v40  ;;  %v666_v50 = vpack.c.bf16 %v368_v41, %v368_v41 }
  0x94   : > { %v670_v51 = vpack.c.bf16 %v372_v42, %v372_v42  ;;  %v674_v52 = vpack.c.bf16 %v376_v43, %v376_v43  ;;  %v678_v53 = vpack.c.bf16 %v380_v44, %v380_v44  ;;  %v682_v54 = vpack.c.bf16 %v384_v45, %v384_v45  ;;  %v316_v44 = vpop.permute.xlu0 %315 }
  0x95   : > { %517 = vst.msk [vmem:[%s947_s10 + $0x4] sm:$0xf] %vm515_vm0, %v654_v47  ;;  %521 = vst.msk [vmem:[%s947_s10 + $0x14] sm:$0xf] %vm515_vm0, %v658_v48  ;;  %v323_v55 = vadd.f32 %v306_v46, %v894_v59  ;;  %v327_v56 = vadd.f32 %v306_v46, %v896_v60  ;;  %v331_v57 = vadd.f32 %v306_v46, %v898_v61 }
  0x96   : > { %525 = vst.msk [vmem:[%s947_s10 + $0x24] sm:$0xf] %vm515_vm0, %v662_v49  ;;  %529 = vst.msk [vmem:[%s947_s10 + $0x34] sm:$0xf] %vm515_vm0, %v666_v50  ;;  %v335_v58 = vadd.f32 %v306_v46, %v900_v62  ;;  %v339_v7 = vadd.f32 %v306_v46, %v902_v63  ;;  %v343_v8 = vadd.f32 %v306_v46, %v904_v0 }
  0x97   : > { %533 = vst.msk [vmem:[%s947_s10 + $0x44] sm:$0xf] %vm515_vm0, %v670_v51  ;;  %537 = vst.msk [vmem:[%s947_s10 + $0x54] sm:$0xf] %vm515_vm0, %v674_v52  ;;  %v347_v59 = vadd.f32 %v306_v46, %v906_v1  ;;  %v351_v60 = vadd.f32 %v306_v46, %v908_v2  ;;  %v355_v13 = vmax.f32 %v323_v55, 0.0  ;;  %v359_v61 = vmax.f32 %v327_v56, 0.0 }
  0x98   : > { %541 = vst.msk [vmem:[%s947_s10 + $0x64] sm:$0xf] %vm515_vm0, %v678_v53  ;;  %545 = vst.msk [vmem:[%s947_s10 + $0x74] sm:$0xf] %vm515_vm0, %v682_v54  ;;  %v363_v62 = vmax.f32 %v331_v57, 0.0  ;;  %v367_v14 = vmax.f32 %v335_v58, 0.0  ;;  %v326_v32 = vadd.f32 %v321_v19, %v926_v22  ;;  %v330_v33 = vadd.f32 %v321_v19, %v928_v23 }
  0x99   : > { %v371_v15 = vmax.f32 %v339_v7, 0.0  ;;  %v375_v16 = vmax.f32 %v343_v8, 0.0  ;;  %v379_v17 = vmax.f32 %v347_v59, 0.0  ;;  %v383_v18 = vmax.f32 %v351_v60, 0.0 }
  0x9a   : > { %v653_v63 = vpack.c.bf16 %v355_v13, %v355_v13  ;;  %v657_v0 = vpack.c.bf16 %v359_v61, %v359_v61  ;;  %v661_v1 = vpack.c.bf16 %v363_v62, %v363_v62  ;;  %v665_v2 = vpack.c.bf16 %v367_v14, %v367_v14 }
  0x9b   : > { %v669_v21 = vpack.c.bf16 %v371_v15, %v371_v15  ;;  %v673_v29 = vpack.c.bf16 %v375_v16, %v375_v16  ;;  %v677_v28 = vpack.c.bf16 %v379_v17, %v379_v17  ;;  %v681_v31 = vpack.c.bf16 %v383_v18, %v383_v18 }
  0x9c   : > { %516 = vst.msk [vmem:[%s947_s10] sm:$0xf] %vm515_vm0, %v653_v63  ;;  %520 = vst.msk [vmem:[%s947_s10 + $0x10] sm:$0xf] %vm515_vm0, %v657_v0  ;;  %v334_v34 = vadd.f32 %v321_v19, %v930_v25  ;;  %v338_v35 = vadd.f32 %v321_v19, %v932_v26  ;;  %v342_v36 = vadd.f32 %v321_v19, %v934_v30  ;;  %v358_v38 = vmax.f32 %v326_v32, 0.0 }
  0x9d   : > { %524 = vst.msk [vmem:[%s947_s10 + $0x20] sm:$0xf] %vm515_vm0, %v661_v1  ;;  %528 = vst.msk [vmem:[%s947_s10 + $0x30] sm:$0xf] %vm515_vm0, %v665_v2  ;;  %v346_v37 = vadd.f32 %v321_v19, %v936_v20  ;;  %v350_v22 = vadd.f32 %v321_v19, %v938_v24  ;;  %v354_v23 = vadd.f32 %v321_v19, %v940_v27  ;;  %v362_v25 = vmax.f32 %v330_v33, 0.0 }
  0x9e   : > { %532 = vst.msk [vmem:[%s947_s10 + $0x40] sm:$0xf] %vm515_vm0, %v669_v21  ;;  %536 = vst.msk [vmem:[%s947_s10 + $0x50] sm:$0xf] %vm515_vm0, %v673_v29  ;;  %v366_v26 = vmax.f32 %v334_v34, 0.0  ;;  %v370_v39 = vmax.f32 %v338_v35, 0.0  ;;  %v656_v30 = vpack.c.bf16 %v358_v38, %v358_v38  ;;  %v325_v49 = vadd.f32 %v316_v44, %v910_v3 }
  0x9f   : > { %540 = vst.msk [vmem:[%s947_s10 + $0x60] sm:$0xf] %vm515_vm0, %v677_v28  ;;  %544 = vst.msk [vmem:[%s947_s10 + $0x70] sm:$0xf] %vm515_vm0, %v681_v31  ;;  %v374_v40 = vmax.f32 %v342_v36, 0.0  ;;  %v378_v41 = vmax.f32 %v346_v37, 0.0  ;;  %v660_v20 = vpack.c.bf16 %v362_v25, %v362_v25  ;;  %v329_v50 = vadd.f32 %v316_v44, %v912_v4 }
  0xa0   : > { %v382_v42 = vmax.f32 %v350_v22, 0.0  ;;  %v386_v43 = vmax.f32 %v354_v23, 0.0  ;;  %v664_v24 = vpack.c.bf16 %v366_v26, %v366_v26  ;;  %v668_v27 = vpack.c.bf16 %v370_v39, %v370_v39  ;;  %519 = vst.msk [vmem:[%s947_s10 + $0xc] sm:$0xf] %vm515_vm0, %v656_v30 }
  0xa1   : > { %v672_v45 = vpack.c.bf16 %v374_v40, %v374_v40  ;;  %v676_v46 = vpack.c.bf16 %v378_v41, %v378_v41  ;;  %523 = vst.msk [vmem:[%s947_s10 + $0x1c] sm:$0xf] %vm515_vm0, %v660_v20  ;;  %v333_v51 = vadd.f32 %v316_v44, %v914_v5  ;;  %v337_v52 = vadd.f32 %v316_v44, %v916_v6 }
  0xa2   : > { %v680_v47 = vpack.c.bf16 %v382_v42, %v382_v42  ;;  %v684_v48 = vpack.c.bf16 %v386_v43, %v386_v43  ;;  %527 = vst.msk [vmem:[%s947_s10 + $0x2c] sm:$0xf] %vm515_vm0, %v664_v24  ;;  %531 = vst.msk [vmem:[%s947_s10 + $0x3c] sm:$0xf] %vm515_vm0, %v668_v27  ;;  %v341_v53 = vadd.f32 %v316_v44, %v918_v9  ;;  %v357_v55 = vmax.f32 %v325_v49, 0.0 }
  0xa3   : > { %535 = vst.msk [vmem:[%s947_s10 + $0x4c] sm:$0xf] %vm515_vm0, %v672_v45  ;;  %539 = vst.msk [vmem:[%s947_s10 + $0x5c] sm:$0xf] %vm515_vm0, %v676_v46  ;;  %v345_v54 = vadd.f32 %v316_v44, %v920_v10  ;;  %v349_v3 = vadd.f32 %v316_v44, %v922_v11  ;;  %v353_v4 = vadd.f32 %v316_v44, %v924_v12  ;;  %v361_v5 = vmax.f32 %v329_v50, 0.0 }
  0xa4   : > { %543 = vst.msk [vmem:[%s947_s10 + $0x6c] sm:$0xf] %vm515_vm0, %v680_v47  ;;  %547 = vst.msk [vmem:[%s947_s10 + $0x7c] sm:$0xf] %vm515_vm0, %v684_v48  ;;  %v365_v6 = vmax.f32 %v333_v51, 0.0  ;;  %v369_v56 = vmax.f32 %v337_v52, 0.0  ;;  %v655_v10 = vpack.c.bf16 %v357_v55, %v357_v55 }
  0xa5   : > { %v373_v57 = vmax.f32 %v341_v53, 0.0  ;;  %v377_v58 = vmax.f32 %v345_v54, 0.0  ;;  %v381_v7 = vmax.f32 %v349_v3, 0.0  ;;  %v385_v9 = vmax.f32 %v353_v4, 0.0 }
  0xa6   : > { %v659_v11 = vpack.c.bf16 %v361_v5, %v361_v5  ;;  %v663_v8 = vpack.c.bf16 %v365_v6, %v365_v6  ;;  %v667_v12 = vpack.c.bf16 %v369_v56, %v369_v56  ;;  %518 = vst.msk [vmem:[%s947_s10 + $0x8] sm:$0xf] %vm515_vm0, %v655_v10 }
  0xa7   : > { %v671_v59 = vpack.c.bf16 %v373_v57, %v373_v57  ;;  %v675_v60 = vpack.c.bf16 %v377_v58, %v377_v58  ;;  %v679_v13 = vpack.c.bf16 %v381_v7, %v381_v7  ;;  %v683_v61 = vpack.c.bf16 %v385_v9, %v385_v9 }
  0xa8   : > { %522 = vst.msk [vmem:[%s947_s10 + $0x18] sm:$0xf] %vm515_vm0, %v659_v11  ;;  %526 = vst.msk [vmem:[%s947_s10 + $0x28] sm:$0xf] %vm515_vm0, %v663_v8 }
  0xa9   : > { %530 = vst.msk [vmem:[%s947_s10 + $0x38] sm:$0xf] %vm515_vm0, %v667_v12  ;;  %534 = vst.msk [vmem:[%s947_s10 + $0x48] sm:$0xf] %vm515_vm0, %v671_v59 }
  0xaa   : > { %538 = vst.msk [vmem:[%s947_s10 + $0x58] sm:$0xf] %vm515_vm0, %v675_v60  ;;  %542 = vst.msk [vmem:[%s947_s10 + $0x68] sm:$0xf] %vm515_vm0, %v679_v13 }
  0xab   : > { %546 = vst.msk [vmem:[%s947_s10 + $0x78] sm:$0xf] %vm515_vm0, %v683_v61 }
  0xac PF: > { %s13_s12 = sadd.s32 1, %s781_s12  }
  0xad   : > { %p10_p4 = scmp.ge.s32.totalorder %s13_s12, 4  }
  0xaf   :  { %12 = sbr.rel (!%p10_p4) target bundleno = 1 (0x1), region = 62 }

// kernel: generator_forward.11
= control target key start
LH: loop header
LB: loop body
LE: loop exit
PB: predicated region body
PF: predicated region fallthrough
CT: control target
= control target key end

     0   :  { %s2595_s18 = smov 0   ;;  %s2986_s0 = inlined_call_operand.vmem [shape: bf16[16,32,64], index: 0, kind: input, shape index: {}]   ;;  %s2987_s1 = inlined_call_operand.vmem [shape: bf16[6,64,12], index: 1, kind: input, shape index: {}, may-alias: {1,2,3}]   ;;  %s2988_s2 = inlined_call_operand.vmem [shape: bf16[6,64,12], index: 2, kind: input, shape index: {}, may-alias: {1,2,3}]   ;;  %s2989_s3 = inlined_call_operand.vmem [shape: bf16[6,64,12], index: 3, kind: input, shape index: {}, may-alias: {1,2,3}]   ;;  %s2990_s4 = inlined_call_operand.vmem [shape: bf16[8,2,32,8], index: 4, kind: output, shape index: {0}]   ;;  %s2991_s5 = inlined_call_operand.vmem [shape: f32[4,32,2], index: 5, kind: output, shape index: {1}]  }
   0x1 LB: > { %s2601_s19 = sadd.s32 4294967295, %s2561_s18   ;;  %p1966_p0 = scmp.ge.s32.totalorder %s2561_s18, 1  ;;  %s2561_s18 = sphi %s2595_s18, %s16_s18  }
   0x2   : > { %p218_p1 = scmp.lt.s32.totalorder %s2561_s18, 5 }
   0x4   : > { %p219_p2 = pnand %p1966_p0, %p218_p1 }
   0x5   : > { %p264_p3 = scmp.lt.s32.totalorder (!%p219_p2), %s2601_s19, 5  ;;  %s269_s20 = sadd.s32 (!%p219_p2), 1, %s2601_s19  ;;  %vm371_vm0 = vcmask (!%p219_p2), 523264   ;;  %v2523_v5 = vld [vmem:[%s2986_s0 + $0x10] sm:$0xff] (!%p219_p2)   ;;  %v2524_v22 = vld [vmem:[%s2986_s0 + $0x18] sm:$0xff] (!%p219_p2)   ;;  %v2527_v23 = vld [vmem:[%s2986_s0] sm:$0xff] (!%p219_p2)  }
   0x6   : > { %222 = sbr.rel (%p219_p2) target bundleno = 649 (0x289), region = 36  ;;  %p270_p4 = scmp.lt.s32.totalorder (!%p219_p2), %s269_s20, 5  ;;  %v2525_v6 = vld [vmem:[%s2986_s0 + $0x50] sm:$0xff] (!%p219_p2)   ;;  %2269 = vmatprep.mubr.msk.bf16.mxu0 (!%p219_p2), %vm371_vm0, %v2523_v5  ;;  %v2526_v24 = vld [vmem:[%s2986_s0 + $0x58] sm:$0xff] (!%p219_p2)   ;;  %v2529_v25 = vld [vmem:[%s2986_s0 + $0x40] sm:$0xff] (!%p219_p2)   ;;  %vm701_vm1 = vcmask (!%p219_p2), 64512  }
   0x7   : > { %s276_s22 = sadd.s32 (!%p219_p2), 2, %s2601_s19  ;;  %s2563_s27 = smov (!%p219_p2), 126   ;;  %2317 = vmatprep.mubr.msk.bf16.mxu1 (!%p219_p2), %vm371_vm0, %v2525_v6  ;;  %v2528_v26 = vld [vmem:[%s2986_s0 + $0x8] sm:$0xff] (!%p219_p2)   ;;  %v2531_v28 = vld [vmem:[%s2986_s0 + $0x20] sm:$0xff] (!%p219_p2)   ;;  %v2535_v36 = vld [vmem:[%s2986_s0 + $0x30] sm:$0xff] (!%p219_p2)   ;;  %vm696_vm2 = vcmask (!%p219_p2), 60416  }
   0x8   : > { %p277_p5 = scmp.lt.s32.totalorder (!%p219_p2), %s276_s22, 5  ;;  %s2564_s8 = smov (!%p219_p2), 124   ;;  %v2530_v29 = vld [vmem:[%s2986_s0 + $0x48] sm:$0xff] (!%p219_p2)   ;;  %v2533_v31 = vld [vmem:[%s2986_s0 + $0x60] sm:$0xff] (!%p219_p2)   ;;  %v2537_v39 = vld [vmem:[%s2986_s0 + $0x70] sm:$0xff] (!%p219_p2)   ;;  %vm1837_vm3 = vcmask (!%p219_p2), 7168  }
   0x9   : > { %v2532_v34 = vld [vmem:[%s2986_s0 + $0x28] sm:$0xff] (!%p219_p2)   ;;  %v2536_v42 = vld [vmem:[%s2986_s0 + $0x38] sm:$0xff] (!%p219_p2)   ;;  %v2539_v43 = vld [vmem:[%s2986_s0 + $0x90] sm:$0xff] (!%p219_p2)   ;;  %p290_p7 = scmp.lt.s32.totalorder (!%p219_p2), %s2601_s19, 3  ;;  %vm1842_vm4 = vcmask (!%p219_p2), 15368  }
   0xa   : > { %v2534_v37 = vld [vmem:[%s2986_s0 + $0x68] sm:$0xff] (!%p219_p2)   ;;  %v2538_v44 = vld [vmem:[%s2986_s0 + $0x78] sm:$0xff] (!%p219_p2)   ;;  %v2541_v45 = vld [vmem:[%s2986_s0 + $0xd0] sm:$0xff] (!%p219_p2)  }
   0xb   : > { %v2540_v46 = vld [vmem:[%s2986_s0 + $0x98] sm:$0xff] (!%p219_p2)   ;;  %v2543_v47 = vld [vmem:[%s2986_s0 + $0x80] sm:$0xff] (!%p219_p2)   ;;  %v2544_v50 = vld [vmem:[%s2986_s0 + $0x88] sm:$0xff] (!%p219_p2)  }
   0xc   : > { %v2542_v48 = vld [vmem:[%s2986_s0 + $0xd8] sm:$0xff] (!%p219_p2)   ;;  %v2545_v49 = vld [vmem:[%s2986_s0 + $0xc0] sm:$0xff] (!%p219_p2)   ;;  %v2546_v53 = vld [vmem:[%s2986_s0 + $0xc8] sm:$0xff] (!%p219_p2)  }
   0xd   : > { %s265_s21 = scalar_select %p264_p3, %s2601_s19, 5  ;;  %v2547_v52 = vld [vmem:[%s2986_s0 + $0xa0] sm:$0xff]   ;;  %v2548_v58 = vld [vmem:[%s2986_s0 + $0xa8] sm:$0xff]   ;;  %v2551_v60 = vld [vmem:[%s2986_s0 + $0xb0] sm:$0xff]  }
   0xe   : > { %s2993_s20 = smov (!%p270_p4, %s269_s20), 5  ;;  %s2995_s22 = smov (!%p277_p5, %s276_s22), 5  ;;  %v2549_v55 = vld [vmem:[%s2986_s0 + $0xe0] sm:$0xff]   ;;  %v2550_v61 = vld [vmem:[%s2986_s0 + $0xe8] sm:$0xff]   ;;  %v2553_v63 = vld [vmem:[%s2986_s0 + $0xf0] sm:$0xff]  }
   0xf   : > { %s2144_s23 = sshll.u32 %s265_s21, 5  ;;  %s2145_s28 = sshll.u32 %s2993_s20, 5 }
  0x10   : > { %s268_s26 = scalar_lea.vmem %s2987_s1, %s2144_s23  ;;  %s274_s6 = scalar_lea.vmem %s2988_s2, %s2145_s28 }
  0x11   : > { %v2612_v0 = vld [vmem:[%s268_s26] sm:$0xff]   ;;  %v2614_v1 = vld [vmem:[%s268_s26 + $0x8] sm:$0xff]   ;;  %s2146_s7 = sshll.u32 %s2995_s22, 5  ;;  %v2625_v2 = vld [vmem:[%s268_s26 + $0x10] sm:$0xff]  }
  0x12   : > { %359 = vrot.lane.b32.xlu0 %v2612_v0, %s2563_s27  ;;  %361 = vrot.lane.b32.xlu1 %v2614_v1, %s2563_s27  ;;  %s281_s11 = scalar_lea.vmem %s2989_s3, %s2146_s7  ;;  %v2634_v3 = vld [vmem:[%s268_s26 + $0x18] sm:$0xff]   ;;  %v2638_v4 = vld [vmem:[%s274_s6] sm:$0xff]   ;;  %s1973_s7 = sshll.u32 %s2601_s19, 1 }
  0x13   : > { %v2646_v7 = vld [vmem:[%s274_s6 + $0x8] sm:$0xff]   ;;  %v2654_v8 = vld [vmem:[%s274_s6 + $0x10] sm:$0xff]   ;;  %v2660_v9 = vld [vmem:[%s274_s6 + $0x18] sm:$0xff]   ;;  %p284_p6 = scmp.lt.s32.totalorder %s1973_s7, 7  ;;  %s2999_s19 = smov (!%p290_p7, %s2601_s19), 3 }
  0x14   : > { %v2670_v10 = vld [vmem:[%s281_s11] sm:$0xff]   ;;  %v2676_v11 = vld [vmem:[%s281_s11 + $0x8] sm:$0xff]   ;;  %v2680_v12 = vld [vmem:[%s281_s11 + $0x10] sm:$0xff]   ;;  %s2148_s12 = sshll.u32 %s2999_s19, 5 }
  0x15   : > { %v2684_v13 = vld [vmem:[%s281_s11 + $0x18] sm:$0xff]   ;;  %s2997_s7 = smov (!%p284_p6, %s1973_s7), 7  ;;  %s2965_s15 = scalar_lea.vmem %s2991_s5, %s2148_s12 }
  0x16   : > { %750 = vrot.lane.b32.xlu0 %v2612_v0, %s2564_s8  ;;  %752 = vrot.lane.b32.xlu1 %v2614_v1, %s2564_s8 }
  0x1a   : > { %363 = vrot.lane.b32.xlu0 %v2625_v2, %s2563_s27  ;;  %754 = vrot.lane.b32.xlu1 %v2625_v2, %s2564_s8 }
  0x1e   : > { %365 = vrot.lane.b32.xlu0 %v2634_v3, %s2563_s27  ;;  %756 = vrot.lane.b32.xlu1 %v2634_v3, %s2564_s8 }
  0x22   : > { %609 = vrot.lane.b32.xlu0 %v2638_v4, %s2563_s27  ;;  %611 = vrot.lane.b32.xlu1 %v2646_v7, %s2563_s27 }
  0x26   : > { %613 = vrot.lane.b32.xlu0 %v2654_v8, %s2563_s27  ;;  %615 = vrot.lane.b32.xlu1 %v2660_v9, %s2563_s27 }
  0x2a   : > { %971 = vrot.lane.b32.xlu0 %v2638_v4, %s2564_s8  ;;  %973 = vrot.lane.b32.xlu1 %v2646_v7, %s2564_s8 }
  0x2e   : > { %975 = vrot.lane.b32.xlu0 %v2654_v8, %s2564_s8  ;;  %977 = vrot.lane.b32.xlu1 %v2660_v9, %s2564_s8 }
  0x32   : > { %1352 = vrot.lane.b32.xlu0 %v2670_v10, %s2563_s27  ;;  %1354 = vrot.lane.b32.xlu1 %v2676_v11, %s2563_s27 }
  0x36   : > { %1356 = vrot.lane.b32.xlu0 %v2680_v12, %s2563_s27  ;;  %1358 = vrot.lane.b32.xlu1 %v2684_v13, %s2563_s27 }
  0x3a   : > { %1709 = vrot.lane.b32.xlu0 %v2670_v10, %s2564_s8  ;;  %1711 = vrot.lane.b32.xlu1 %v2676_v11, %s2564_s8 }
  0x3e   : > { %1713 = vrot.lane.b32.xlu0 %v2680_v12, %s2564_s8  ;;  %1715 = vrot.lane.b32.xlu1 %v2684_v13, %s2564_s8  ;;  %s2147_s8 = sshll.u32 %s2997_s7, 5 }
  0x3f   : > { %s2894_s11 = scalar_lea.vmem %s2990_s4, %s2147_s8 }
  0x84   : > { %v360_v14 = vpop.permute.xlu0 %359  ;;  %v362_v15 = vpop.permute.xlu1 %361 }
  0x85   : > { %2261 = vmatprep.subr.bf16.mxu0 %v360_v14 }
  0x86   : > { %2262 = vmatpush3.bf16.msra.mxu0 %v360_v14 }
  0x87   : > { %2263 = vmatprep.subr.bf16.mxu0 %v362_v15 }
  0x88   : > { %v751_v16 = vpop.permute.xlu0 %750  ;;  %v753_v17 = vpop.permute.xlu1 %752 }
  0x89   : > { %2309 = vmatprep.subr.bf16.mxu1 %v751_v16 }
  0x8a   : > { %2264 = vmatpush3.bf16.msra.mxu0 %v362_v15  ;;  %2310 = vmatpush3.bf16.msra.mxu1 %v751_v16 }
  0x8b   : > { %2311 = vmatprep.subr.bf16.mxu1 %v753_v17 }
  0x8c   : > { %v364_v18 = vpop.permute.xlu0 %363  ;;  %v755_v19 = vpop.permute.xlu1 %754 }
  0x8d   : > { %2265 = vmatprep.subr.bf16.mxu0 %v364_v18 }
  0x8e   : > { %2266 = vmatpush3.bf16.msra.mxu0 %v364_v18  ;;  %2312 = vmatpush3.bf16.msra.mxu1 %v753_v17 }
  0x8f   : > { %2313 = vmatprep.subr.bf16.mxu1 %v755_v19 }
  0x90   : > { %v366_v20 = vpop.permute.xlu0 %365  ;;  %v757_v21 = vpop.permute.xlu1 %756 }
  0x91   : > { %2267 = vmatprep.subr.bf16.mxu0 %v366_v20 }
  0x92   : > { %2268 = vmatpush3.bf16.msra.mxu0 %v366_v20  ;;  %2314 = vmatpush3.bf16.msra.mxu1 %v755_v19 }
  0x93   : > { %2273 = vmatprep.subr.bf16.mxu0 %v2612_v0  ;;  %2315 = vmatprep.subr.bf16.mxu1 %v757_v21 }
  0x94   : > { %v2726_v27 = vpop.permute.xlu0 %609  ;;  %v2738_v30 = vpop.permute.xlu1 %611 }
  0x95   : > { %2270 = vmatmul.mubr.msk.bf16.vlgmr.msra.gmra.mrb[0].mxu0 %vm371_vm0, %v2524_v22 }
  0x96   : > { %2274 = vmatpush3.bf16.msra.mxu0 %v2612_v0  ;;  %2316 = vmatpush3.bf16.msra.mxu1 %v757_v21 }
  0x97   : > { %2321 = vmatprep.subr.bf16.mxu1 %v360_v14  ;;  %2275 = vmatprep.subr.bf16.mxu0 %v2614_v1 }
  0x98   : > { %2281 = vmatprep.mubr.msk.bf16.mxu0 %vm371_vm0, %v2527_v23  ;;  %v2749_v32 = vpop.permute.xlu0 %613  ;;  %v2756_v33 = vpop.permute.xlu1 %615 }
  0x99   : > { %2318 = vmatmul.mubr.msk.bf16.vlgmr.msra.gmra.mrb[0].mxu1 %vm371_vm0, %v2526_v24 }
  0x9a   : > { %2276 = vmatpush3.bf16.msra.mxu0 %v2614_v1  ;;  %2322 = vmatpush3.bf16.msra.mxu1 %v360_v14 }
  0x9b   : > { %2323 = vmatprep.subr.bf16.mxu1 %v362_v15  ;;  %2277 = vmatprep.subr.bf16.mxu0 %v2625_v2 }
  0x9c   : > { %2329 = vmatprep.mubr.msk.bf16.mxu1 %vm371_vm0, %v2529_v25  ;;  %v972_v35 = vpop.permute.xlu0 %971  ;;  %v974_v38 = vpop.permute.xlu1 %973 }
  0x9e   : > { %2278 = vmatpush3.bf16.msra.mxu0 %v2625_v2  ;;  %2324 = vmatpush3.bf16.msra.mxu1 %v362_v15  ;;  %v2552_v2 = vld [vmem:[%s2986_s0 + $0xb8] sm:$0xff]  }
  0x9f   : > { %2325 = vmatprep.subr.bf16.mxu1 %v364_v18  ;;  %2279 = vmatprep.subr.bf16.mxu0 %v2634_v3 }
  0xa0   : > { %v976_v40 = vpop.permute.xlu0 %975  ;;  %v978_v41 = vpop.permute.xlu1 %977 }
  0xa2   : > { %2280 = vmatpush3.bf16.msra.mxu0 %v2634_v3  ;;  %2326 = vmatpush3.bf16.msra.mxu1 %v364_v18  ;;  %v2554_v3 = vld [vmem:[%s2986_s0 + $0xf8] sm:$0xff]  }
  0xa3   : > { %2327 = vmatprep.subr.bf16.mxu1 %v366_v20  ;;  %2285 = vmatprep.subr.bf16.mxu0 %v2638_v4 }
  0xa4   : > { %v1353_v51 = vpop.permute.xlu0 %1352  ;;  %v1355_v54 = vpop.permute.xlu1 %1354 }
  0xa5   : > { %2282 = vmatmul.mubr.msk.bf16.vlgmr.msra.gmra.mrb[0].mxu0 %vm371_vm0, %v2528_v26 }
  0xa6   : > { %2286 = vmatpush3.bf16.msra.mxu0 %v2638_v4  ;;  %2328 = vmatpush3.bf16.msra.mxu1 %v366_v20 }
  0xa7   : > { %2287 = vmatprep.subr.bf16.mxu0 %v2646_v7  ;;  %2333 = vmatprep.subr.bf16.mxu1 %v2726_v27 }
  0xa8   : > { %2293 = vmatprep.mubr.msk.bf16.mxu0 %vm371_vm0, %v2531_v28  ;;  %v1357_v56 = vpop.permute.xlu0 %1356  ;;  %v1359_v57 = vpop.permute.xlu1 %1358 }
  0xa9   : > { %2330 = vmatmul.mubr.msk.bf16.vlgmr.msra.gmra.mrb[0].mxu1 %vm371_vm0, %v2530_v29 }
  0xaa   : > { %2288 = vmatpush3.bf16.msra.mxu0 %v2646_v7  ;;  %2334 = vmatpush3.bf16.msra.mxu1 %v2726_v27 }
  0xab   : > { %2289 = vmatprep.subr.bf16.mxu0 %v2654_v8  ;;  %2335 = vmatprep.subr.bf16.mxu1 %v2738_v30 }
  0xac   : > { %2341 = vmatprep.mubr.msk.bf16.mxu1 %vm371_vm0, %v2533_v31  ;;  %v1710_v59 = vpop.permute.xlu0 %1709  ;;  %v1712_v62 = vpop.permute.xlu1 %1711 }
  0xae   : > { %2290 = vmatpush3.bf16.msra.mxu0 %v2654_v8  ;;  %2336 = vmatpush3.bf16.msra.mxu1 %v2738_v30 }
  0xaf   : > { %2291 = vmatprep.subr.bf16.mxu0 %v2660_v9  ;;  %2337 = vmatprep.subr.bf16.mxu1 %v2749_v32 }
  0xb0   : > { %v1714_v0 = vpop.permute.xlu0 %1713  ;;  %v1716_v1 = vpop.permute.xlu1 %1715 }
  0xb2   : > { %2292 = vmatpush3.bf16.msra.mxu0 %v2660_v9  ;;  %2338 = vmatpush3.bf16.msra.mxu1 %v2749_v32 }
  0xb3   : > { %2297 = vmatprep.subr.bf16.mxu0 %v2726_v27  ;;  %2339 = vmatprep.subr.bf16.mxu1 %v2756_v33 }
  0xb5   : > { %2294 = vmatmul.mubr.msk.bf16.vlgmr.msra.gmra.mrb[0].mxu0 %vm371_vm0, %v2532_v34 }
  0xb6   : > { %2298 = vmatpush3.bf16.msra.mxu0 %v2726_v27  ;;  %2340 = vmatpush3.bf16.msra.mxu1 %v2756_v33 }
  0xb7   : > { %2299 = vmatprep.subr.bf16.mxu0 %v2738_v30  ;;  %2345 = vmatprep.subr.bf16.mxu1 %v972_v35 }
  0xb8   : > { %2305 = vmatprep.mubr.msk.bf16.mxu0 %vm371_vm0, %v2535_v36 }
  0xb9   : > { %2342 = vmatmul.mubr.msk.bf16.vlgmr.msra.gmra.mrb[0].mxu1 %vm371_vm0, %v2534_v37 }
  0xba   : > { %2300 = vmatpush3.bf16.msra.mxu0 %v2738_v30  ;;  %2346 = vmatpush3.bf16.msra.mxu1 %v972_v35 }
  0xbb   : > { %2301 = vmatprep.subr.bf16.mxu0 %v2749_v32  ;;  %2347 = vmatprep.subr.bf16.mxu1 %v974_v38 }
  0xbc   : > { %2353 = vmatprep.mubr.msk.bf16.mxu1 %vm371_vm0, %v2537_v39 }
  0xbe   : > { %2302 = vmatpush3.bf16.msra.mxu0 %v2749_v32  ;;  %2348 = vmatpush3.bf16.msra.mxu1 %v974_v38 }
  0xbf   : > { %2303 = vmatprep.subr.bf16.mxu0 %v2756_v33  ;;  %2349 = vmatprep.subr.bf16.mxu1 %v976_v40 }
  0xc2   : > { %2304 = vmatpush3.bf16.msra.mxu0 %v2756_v33  ;;  %2350 = vmatpush3.bf16.msra.mxu1 %v976_v40 }
  0xc3   : > { %2357 = vmatprep.subr.bf16.mxu0 %v2726_v27  ;;  %2351 = vmatprep.subr.bf16.mxu1 %v978_v41 }
  0xc5   : > { %2306 = vmatmul.mubr.msk.bf16.vlgmr.msra.gmra.mrb[0].mxu0 %vm371_vm0, %v2536_v42 }
  0xc6   : > { %2352 = vmatpush3.bf16.msra.mxu1 %v978_v41  ;;  %2358 = vmatpush3.bf16.msra.mxu0 %v2726_v27 }
  0xc7   : > { %2359 = vmatprep.subr.bf16.mxu0 %v2738_v30  ;;  %2405 = vmatprep.subr.bf16.mxu1 %v972_v35 }
  0xc8   : > { %2365 = vmatprep.mubr.msk.bf16.mxu0 %vm371_vm0, %v2539_v43 }
  0xc9   : > { %2354 = vmatmul.mubr.msk.bf16.vlgmr.msra.gmra.mrb[0].mxu1 %vm371_vm0, %v2538_v44 }
  0xca   : > { %2360 = vmatpush3.bf16.msra.mxu0 %v2738_v30  ;;  %2406 = vmatpush3.bf16.msra.mxu1 %v972_v35 }
  0xcb   : > { %2361 = vmatprep.subr.bf16.mxu0 %v2749_v32  ;;  %2407 = vmatprep.subr.bf16.mxu1 %v974_v38 }
  0xcc   : > { %2413 = vmatprep.mubr.msk.bf16.mxu1 %vm371_vm0, %v2541_v45 }
  0xce   : > { %2362 = vmatpush3.bf16.msra.mxu0 %v2749_v32  ;;  %2408 = vmatpush3.bf16.msra.mxu1 %v974_v38 }
  0xcf   : > { %2363 = vmatprep.subr.bf16.mxu0 %v2756_v33  ;;  %2409 = vmatprep.subr.bf16.mxu1 %v976_v40 }
  0xd2   : > { %2364 = vmatpush3.bf16.msra.mxu0 %v2756_v33  ;;  %2410 = vmatpush3.bf16.msra.mxu1 %v976_v40 }
  0xd3   : > { %2411 = vmatprep.subr.bf16.mxu1 %v978_v41  ;;  %2369 = vmatprep.subr.bf16.mxu0 %v2638_v4 }
  0xd5   : > { %2366 = vmatmul.mubr.msk.bf16.vlgmr.msra.gmra.mrb[4].mxu0 %vm371_vm0, %v2540_v46 }
  0xd6   : > { %2370 = vmatpush3.bf16.msra.mxu0 %v2638_v4  ;;  %2412 = vmatpush3.bf16.msra.mxu1 %v978_v41 }
  0xd7   : > { %2417 = vmatprep.subr.bf16.mxu1 %v2726_v27  ;;  %2371 = vmatprep.subr.bf16.mxu0 %v2646_v7 }
  0xd8   : > { %2377 = vmatprep.mubr.msk.bf16.mxu0 %vm371_vm0, %v2543_v47 }
  0xd9   : > { %2414 = vmatmul.mubr.msk.bf16.vlgmr.msra.gmra.mrb[4].mxu1 %vm371_vm0, %v2542_v48 }
  0xda   : > { %2372 = vmatpush3.bf16.msra.mxu0 %v2646_v7  ;;  %2418 = vmatpush3.bf16.msra.mxu1 %v2726_v27 }
  0xdb   : > { %2419 = vmatprep.subr.bf16.mxu1 %v2738_v30  ;;  %2373 = vmatprep.subr.bf16.mxu0 %v2654_v8 }
  0xdc   : > { %2425 = vmatprep.mubr.msk.bf16.mxu1 %vm371_vm0, %v2545_v49 }
  0xde   : > { %2374 = vmatpush3.bf16.msra.mxu0 %v2654_v8  ;;  %2420 = vmatpush3.bf16.msra.mxu1 %v2738_v30 }
  0xdf   : > { %2421 = vmatprep.subr.bf16.mxu1 %v2749_v32  ;;  %2375 = vmatprep.subr.bf16.mxu0 %v2660_v9 }
  0xe2   : > { %2376 = vmatpush3.bf16.msra.mxu0 %v2660_v9  ;;  %2422 = vmatpush3.bf16.msra.mxu1 %v2749_v32 }
  0xe3   : > { %2423 = vmatprep.subr.bf16.mxu1 %v2756_v33  ;;  %2381 = vmatprep.subr.bf16.mxu0 %v2670_v10 }
  0xe5   : > { %2378 = vmatmul.mubr.msk.bf16.vlgmr.msra.gmra.mrb[4].mxu0 %vm371_vm0, %v2544_v50 }
  0xe6   : > { %2382 = vmatpush3.bf16.msra.mxu0 %v2670_v10  ;;  %2424 = vmatpush3.bf16.msra.mxu1 %v2756_v33 }
  0xe7   : > { %2383 = vmatprep.subr.bf16.mxu0 %v2676_v11  ;;  %2429 = vmatprep.subr.bf16.mxu1 %v1353_v51 }
  0xe8   : > { %2389 = vmatprep.mubr.msk.bf16.mxu0 %vm371_vm0, %v2547_v52 }
  0xe9   : > { %2426 = vmatmul.mubr.msk.bf16.vlgmr.msra.gmra.mrb[4].mxu1 %vm371_vm0, %v2546_v53 }
  0xea   : > { %2384 = vmatpush3.bf16.msra.mxu0 %v2676_v11  ;;  %2430 = vmatpush3.bf16.msra.mxu1 %v1353_v51 }
  0xeb   : > { %2385 = vmatprep.subr.bf16.mxu0 %v2680_v12  ;;  %2431 = vmatprep.subr.bf16.mxu1 %v1355_v54 }
  0xec   : > { %2437 = vmatprep.mubr.msk.bf16.mxu1 %vm371_vm0, %v2549_v55 }
  0xee   : > { %2386 = vmatpush3.bf16.msra.mxu0 %v2680_v12  ;;  %2432 = vmatpush3.bf16.msra.mxu1 %v1355_v54 }
  0xef   : > { %2387 = vmatprep.subr.bf16.mxu0 %v2684_v13  ;;  %2433 = vmatprep.subr.bf16.mxu1 %v1357_v56 }
  0xf2   : > { %2388 = vmatpush3.bf16.msra.mxu0 %v2684_v13  ;;  %2434 = vmatpush3.bf16.msra.mxu1 %v1357_v56 }
  0xf3   : > { %2393 = vmatprep.subr.bf16.mxu0 %v1353_v51  ;;  %2435 = vmatprep.subr.bf16.mxu1 %v1359_v57 }
  0xf5   : > { %2390 = vmatmul.mubr.msk.bf16.vlgmr.msra.gmra.mrb[4].mxu0 %vm371_vm0, %v2548_v58 }
  0xf6   : > { %2394 = vmatpush3.bf16.msra.mxu0 %v1353_v51  ;;  %2436 = vmatpush3.bf16.msra.mxu1 %v1359_v57 }
  0xf7   : > { %2395 = vmatprep.subr.bf16.mxu0 %v1355_v54  ;;  %2441 = vmatprep.subr.bf16.mxu1 %v1710_v59 }
  0xf8   : > { %2401 = vmatprep.mubr.msk.bf16.mxu0 %vm371_vm0, %v2551_v60 }
  0xf9   : > { %2438 = vmatmul.mubr.msk.bf16.vlgmr.msra.gmra.mrb[4].mxu1 %vm371_vm0, %v2550_v61 }
  0xfa   : > { %2396 = vmatpush3.bf16.msra.mxu0 %v1355_v54  ;;  %2442 = vmatpush3.bf16.msra.mxu1 %v1710_v59 }
  0xfb   : > { %2397 = vmatprep.subr.bf16.mxu0 %v1357_v56  ;;  %2443 = vmatprep.subr.bf16.mxu1 %v1712_v62 }
  0xfc   : > { %2449 = vmatprep.mubr.msk.bf16.mxu1 %vm371_vm0, %v2553_v63 }
  0xfe   : > { %2398 = vmatpush3.bf16.msra.mxu0 %v1357_v56  ;;  %2444 = vmatpush3.bf16.msra.mxu1 %v1712_v62 }
  0xff   : > { %2399 = vmatprep.subr.bf16.mxu0 %v1359_v57  ;;  %2445 = vmatprep.subr.bf16.mxu1 %v1714_v0 }
 0x102   : > { %2400 = vmatpush3.bf16.msra.mxu0 %v1359_v57  ;;  %2446 = vmatpush3.bf16.msra.mxu1 %v1714_v0 }
 0x103   : > { %2447 = vmatprep.subr.bf16.mxu1 %v1716_v1 }
 0x105   : > { %2402 = vmatmul.mubr.msk.bf16.vlgmr.msra.gmra.mrb[4].mxu0 %vm371_vm0, %v2552_v2 }
 0x106   : > { %2448 = vmatpush3.bf16.msra.mxu1 %v1716_v1 }
 0x109   : > { %2450 = vmatmul.mubr.msk.bf16.vlgmr.msra.gmra.mrb[4].mxu1 %vm371_vm0, %v2554_v3 }
 0x198   : > { %v2307_v4 = vpop.f32.mrb[0].mxu0 }
 0x199   : > { %v2151_v5 = vpack.c.bf16 %v2307_v4, %v2307_v4  ;;  %v661_v6 = vpop.f32.mrb[1].mxu0  ;;  %v708_v7 = vsel %vm701_vm1, %v2307_v4, 0.0  ;;  %v716_v25 = vmul.f32 %v2307_v4, %v2307_v4 }
 0x19a   : > { %v2149_v8 = vpack.c.bf16 %v661_v6, %v661_v6  ;;  %709 = vadd.xlane.f32.xlu0 %v708_v7  ;;  %v2308_v9 = vpop.f32.mrb[2].mxu0  ;;  %v702_v16 = vsel %vm701_vm1, %v661_v6, 0.0  ;;  %v714_v34 = vmul.f32 %v661_v6, %v661_v6 }
 0x19b   : > { %699 = vst.msk [vmem:[%s2894_s11 + $0x8] sm:$0xf] %vm696_vm2, %v2151_v5  ;;  %v2152_v10 = vpack.c.bf16 %v2308_v9, %v2308_v9  ;;  %v664_v11 = vpop.f32.mrb[3].mxu0  ;;  %v711_v23 = vsel %vm701_vm1, %v2308_v9, 0.0  ;;  %v724_v26 = vsel %vm701_vm1, %v716_v25, 0.0  ;;  %v717_v31 = vmul.f32 %v2308_v9, %v2308_v9 }
 0x19c   : > { %697 = vst.msk [vmem:[%s2894_s11] sm:$0xf] %vm696_vm2, %v2149_v8  ;;  %v2150_v12 = vpack.c.bf16 %v664_v11, %v664_v11  ;;  %v2355_v13 = vpop.f32.mrb[0].mxu1  ;;  %v705_v32 = vsel %vm701_vm1, %v664_v11, 0.0  ;;  %v718_v36 = vsel %vm701_vm1, %v714_v34, 0.0  ;;  %v715_v39 = vmul.f32 %v664_v11, %v664_v11 }
 0x19d   : > { %700 = vst.msk [vmem:[%s2894_s11 + $0xc] sm:$0xf] %vm696_vm2, %v2152_v10  ;;  %v2155_v14 = vpack.c.bf16 %v2355_v13, %v2355_v13  ;;  %v1023_v15 = vpop.f32.mrb[1].mxu1  ;;  %v1069_v17 = vsel %vm701_vm1, %v2355_v13, 0.0  ;;  %v1077_v28 = vmul.f32 %v2355_v13, %v2355_v13  ;;  %v727_v33 = vsel %vm701_vm1, %v717_v31, 0.0 }
 0x19e   : > { %698 = vst.msk [vmem:[%s2894_s11 + $0x4] sm:$0xf] %vm696_vm2, %v2150_v12  ;;  %v2153_v18 = vpack.c.bf16 %v1023_v15, %v1023_v15  ;;  %703 = vadd.xlane.f32.xlu0 %v702_v16  ;;  %1070 = vadd.xlane.f32.xlu1 %v1069_v17  ;;  %v2356_v19 = vpop.f32.mrb[2].mxu1  ;;  %v1063_v24 = vsel %vm701_vm1, %v1023_v15, 0.0  ;;  %v1075_v38 = vmul.f32 %v1023_v15, %v1023_v15  ;;  %v721_v41 = vsel %vm701_vm1, %v715_v39, 0.0 }
 0x19f   : > { %2056 = vst.msk [vmem:[%s2894_s11 + $0x18] sm:$0xf] %vm696_vm2, %v2155_v14  ;;  %v2156_v20 = vpack.c.bf16 %v2356_v19, %v2356_v19  ;;  %v1026_v21 = vpop.f32.mrb[3].mxu1  ;;  %v1072_v27 = vsel %vm701_vm1, %v2356_v19, 0.0  ;;  %v1085_v29 = vsel %vm701_vm1, %v1077_v28, 0.0  ;;  %v1078_v35 = vmul.f32 %v2356_v19, %v2356_v19 }
 0x1a0   : > { %2054 = vst.msk [vmem:[%s2894_s11 + $0x10] sm:$0xf] %vm696_vm2, %v2153_v18  ;;  %v2154_v22 = vpack.c.bf16 %v1026_v21, %v1026_v21  ;;  %v1066_v30 = vsel %vm701_vm1, %v1026_v21, 0.0  ;;  %v1079_v40 = vsel %vm701_vm1, %v1075_v38, 0.0  ;;  %v1076_v42 = vmul.f32 %v1026_v21, %v1026_v21 }
 0x1a1   : > { %2057 = vst.msk [vmem:[%s2894_s11 + $0x1c] sm:$0xf] %vm696_vm2, %v2156_v20  ;;  %v1088_v37 = vsel %vm701_vm1, %v1078_v35, 0.0 }
 0x1a2   : > { %2055 = vst.msk [vmem:[%s2894_s11 + $0x14] sm:$0xf] %vm696_vm2, %v2154_v22  ;;  %712 = vadd.xlane.f32.xlu0 %v711_v23  ;;  %1064 = vadd.xlane.f32.xlu1 %v1063_v24  ;;  %v1082_v43 = vsel %vm701_vm1, %v1076_v42, 0.0 }
 0x1a6   : > { %725 = vadd.xlane.f32.xlu1 %v724_v26  ;;  %1073 = vadd.xlane.f32.xlu0 %v1072_v27 }
 0x1aa   : > { %1086 = vadd.xlane.f32.xlu1 %v1085_v29  ;;  %1067 = vadd.xlane.f32.xlu0 %v1066_v30 }
 0x1ae   : > { %706 = vadd.xlane.f32.xlu1 %v705_v32  ;;  %728 = vadd.xlane.f32.xlu0 %v727_v33 }
 0x1b2   : > { %719 = vadd.xlane.f32.xlu1 %v718_v36  ;;  %1089 = vadd.xlane.f32.xlu0 %v1088_v37 }
 0x1b6   : > { %1080 = vadd.xlane.f32.xlu1 %v1079_v40  ;;  %722 = vadd.xlane.f32.xlu0 %v721_v41 }
 0x1ba   : > { %1083 = vadd.xlane.f32.xlu0 %v1082_v43 }
 0x1d8   : > { %v2403_v44 = vpop.f32.mrb[4].mxu0 }
 0x1d9   : > { %v2159_v45 = vpack.c.bf16 %v2403_v44, %v2403_v44  ;;  %v1404_v46 = vpop.f32.mrb[5].mxu0  ;;  %v1450_v47 = vsel %vm701_vm1, %v2403_v44, 0.0  ;;  %v1458_v3 = vmul.f32 %v2403_v44, %v2403_v44 }
 0x1da   : > { %v2157_v48 = vpack.c.bf16 %v1404_v46, %v1404_v46  ;;  %1451 = vadd.xlane.f32.xlu1 %v1450_v47  ;;  %v2404_v49 = vpop.f32.mrb[6].mxu0  ;;  %v1444_v0 = vsel %vm701_vm1, %v1404_v46, 0.0  ;;  %v1456_v7 = vmul.f32 %v1404_v46, %v1404_v46 }
 0x1db   : > { %2100 = vst.msk [vmem:[%s2894_s11 + $0x28] sm:$0xf] %vm696_vm2, %v2159_v45  ;;  %v2160_v50 = vpack.c.bf16 %v2404_v49, %v2404_v49  ;;  %v1407_v51 = vpop.f32.mrb[7].mxu0  ;;  %v1453_v52 = vsel %vm701_vm1, %v2404_v49, 0.0  ;;  %v1459_v5 = vmul.f32 %v2404_v49, %v2404_v49  ;;  %v1466_v6 = vsel %vm701_vm1, %v1458_v3, 0.0 }
 0x1dc   : > { %2098 = vst.msk [vmem:[%s2894_s11 + $0x20] sm:$0xf] %vm696_vm2, %v2157_v48  ;;  %v2158_v53 = vpack.c.bf16 %v1407_v51, %v1407_v51  ;;  %1454 = vadd.xlane.f32.xlu0 %v1453_v52  ;;  %v2451_v54 = vpop.f32.mrb[4].mxu1  ;;  %v1447_v1 = vsel %vm701_vm1, %v1407_v51, 0.0  ;;  %v1457_v8 = vmul.f32 %v1407_v51, %v1407_v51  ;;  %v1460_v10 = vsel %vm701_vm1, %v1456_v7, 0.0 }
 0x1dd   : > { %2101 = vst.msk [vmem:[%s2894_s11 + $0x2c] sm:$0xf] %vm696_vm2, %v2160_v50  ;;  %v2163_v55 = vpack.c.bf16 %v2451_v54, %v2451_v54  ;;  %v1761_v56 = vpop.f32.mrb[5].mxu1  ;;  %v1807_v57 = vsel %vm701_vm1, %v2451_v54, 0.0  ;;  %v1469_v9 = vsel %vm701_vm1, %v1459_v5, 0.0  ;;  %v1815_v15 = vmul.f32 %v2451_v54, %v2451_v54 }
 0x1de   : > { %2099 = vst.msk [vmem:[%s2894_s11 + $0x24] sm:$0xf] %vm696_vm2, %v2158_v53  ;;  %v2161_v58 = vpack.c.bf16 %v1761_v56, %v1761_v56  ;;  %1808 = vadd.xlane.f32.xlu1 %v1807_v57  ;;  %v2452_v59 = vpop.f32.mrb[6].mxu1  ;;  %v1801_v2 = vsel %vm701_vm1, %v1761_v56, 0.0  ;;  %v1813_v11 = vmul.f32 %v1761_v56, %v1761_v56  ;;  %v1463_v13 = vsel %vm701_vm1, %v1457_v8, 0.0 }
 0x1df   : > { %2140 = vst.msk [vmem:[%s2894_s11 + $0x38] sm:$0xf] %vm696_vm2, %v2163_v55  ;;  %v2164_v60 = vpack.c.bf16 %v2452_v59, %v2452_v59  ;;  %v1764_v61 = vpop.f32.mrb[7].mxu1  ;;  %v1810_v62 = vsel %vm701_vm1, %v2452_v59, 0.0  ;;  %v1816_v17 = vmul.f32 %v2452_v59, %v2452_v59  ;;  %v1823_v18 = vsel %vm701_vm1, %v1815_v15, 0.0 }
 0x1e0   : > { %2138 = vst.msk [vmem:[%s2894_s11 + $0x30] sm:$0xf] %vm696_vm2, %v2161_v58  ;;  %v2162_v63 = vpack.c.bf16 %v1764_v61, %v1764_v61  ;;  %1811 = vadd.xlane.f32.xlu0 %v1810_v62  ;;  %v1804_v4 = vsel %vm701_vm1, %v1764_v61, 0.0  ;;  %v1814_v12 = vmul.f32 %v1764_v61, %v1764_v61  ;;  %v1817_v14 = vsel %vm701_vm1, %v1813_v11, 0.0 }
 0x1e1   : > { %2141 = vst.msk [vmem:[%s2894_s11 + $0x3c] sm:$0xf] %vm696_vm2, %v2164_v60  ;;  %v1826_v19 = vsel %vm701_vm1, %v1816_v17, 0.0 }
 0x1e2   : > { %2139 = vst.msk [vmem:[%s2894_s11 + $0x34] sm:$0xf] %vm696_vm2, %v2162_v63  ;;  %1445 = vadd.xlane.f32.xlu1 %v1444_v0  ;;  %v1820_v16 = vsel %vm701_vm1, %v1814_v12, 0.0 }
 0x1e4   : > { %1448 = vadd.xlane.f32.xlu0 %v1447_v1 }
 0x1e6   : > { %1802 = vadd.xlane.f32.xlu1 %v1801_v2 }
 0x1e8   : > { %1805 = vadd.xlane.f32.xlu0 %v1804_v4 }
 0x1ea   : > { %1467 = vadd.xlane.f32.xlu1 %v1466_v6 }
 0x1ec   : > { %1470 = vadd.xlane.f32.xlu0 %v1469_v9 }
 0x1ee   : > { %1461 = vadd.xlane.f32.xlu1 %v1460_v10 }
 0x1f0   : > { %1464 = vadd.xlane.f32.xlu0 %v1463_v13 }
 0x1f2   : > { %1818 = vadd.xlane.f32.xlu1 %v1817_v14 }
 0x1f4   : > { %1821 = vadd.xlane.f32.xlu0 %v1820_v16 }
 0x1f6   : > { %1824 = vadd.xlane.f32.xlu1 %v1823_v18 }
 0x1f8   : > { %1827 = vadd.xlane.f32.xlu0 %v1826_v19 }
 0x227   : > { %v710_v20 = vpop.xlane.xlu0 %709 }
 0x22b   : > { %v704_v21 = vpop.xlane.xlu0 %703  ;;  %v1071_v22 = vpop.xlane.xlu1 %1070 }
 0x22c   : > { %v1093_v37 = vadd.f32 %v1071_v22, %v710_v20 }
 0x22f   : > { %v713_v23 = vpop.xlane.xlu0 %712  ;;  %v1065_v24 = vpop.xlane.xlu1 %1064 }
 0x230   : > { %v1091_v47 = vadd.f32 %v1065_v24, %v704_v21 }
 0x233   : > { %v1074_v25 = vpop.xlane.xlu0 %1073  ;;  %v726_v26 = vpop.xlane.xlu1 %725 }
 0x234   : > { %v1094_v39 = vadd.f32 %v1074_v25, %v713_v23 }
 0x237   : > { %v1068_v27 = vpop.xlane.xlu0 %1067  ;;  %v1087_v28 = vpop.xlane.xlu1 %1086 }
 0x238   : > { %v1097_v0 = vadd.f32 %v1087_v28, %v726_v26 }
 0x23b   : > { %v729_v29 = vpop.xlane.xlu0 %728  ;;  %v707_v30 = vpop.xlane.xlu1 %706 }
 0x23c   : > { %v1092_v49 = vadd.f32 %v1068_v27, %v707_v30 }
 0x23f   : > { %v1090_v31 = vpop.xlane.xlu0 %1089  ;;  %v720_v32 = vpop.xlane.xlu1 %719 }
 0x240   : > { %v1098_v4 = vadd.f32 %v1090_v31, %v729_v29 }
 0x243   : > { %v723_v33 = vpop.xlane.xlu0 %722  ;;  %v1081_v34 = vpop.xlane.xlu1 %1080 }
 0x244   : > { %v1095_v59 = vadd.f32 %v1081_v34, %v720_v32 }
 0x247   : > { %v1084_v35 = vpop.xlane.xlu0 %1083 }
 0x248   : > { %v1096_v61 = vadd.f32 %v1084_v35, %v723_v33 }
 0x267   : > { %v1452_v36 = vpop.xlane.xlu1 %1451 }
 0x268   : > { %v1474_v40 = vadd.f32 %v1452_v36, %v1093_v37 }
 0x269   : > { %v1455_v38 = vpop.xlane.xlu0 %1454 }
 0x26a   : > { %v1475_v42 = vadd.f32 %v1455_v38, %v1094_v39 }
 0x26b   : > { %v1809_v41 = vpop.xlane.xlu1 %1808 }
 0x26c   : > { %v1831_v43 = vadd.f32 %v1809_v41, %v1474_v40 }
 0x26d   : > { %v1812_v44 = vpop.xlane.xlu0 %1811 }
 0x26e   : > { %1840 = vst.msk [vmem:[%s2965_s15 + $0x10] sm:$0xff] %vm1837_vm3, %v1831_v43  ;;  %v1832_v45 = vadd.f32 %v1812_v44, %v1475_v42 }
 0x26f   : > { %v1446_v46 = vpop.xlane.xlu1 %1445 }
 0x270   : > { %1841 = vst.msk [vmem:[%s2965_s15 + $0x18] sm:$0xff] %vm1837_vm3, %v1832_v45  ;;  %v1472_v50 = vadd.f32 %v1446_v46, %v1091_v47 }
 0x271   : > { %v1449_v48 = vpop.xlane.xlu0 %1448 }
 0x272   : > { %v1473_v52 = vadd.f32 %v1449_v48, %v1092_v49 }
 0x273   : > { %v1803_v51 = vpop.xlane.xlu1 %1802 }
 0x274   : > { %v1829_v53 = vadd.f32 %v1803_v51, %v1472_v50 }
 0x275   : > { %v1806_v54 = vpop.xlane.xlu0 %1805 }
 0x276   : > { %1838 = vst.msk [vmem:[%s2965_s15] sm:$0xff] %vm1837_vm3, %v1829_v53  ;;  %v1830_v55 = vadd.f32 %v1806_v54, %v1473_v52 }
 0x277   : > { %v1468_v56 = vpop.xlane.xlu1 %1467 }
 0x278   : > { %1839 = vst.msk [vmem:[%s2965_s15 + $0x8] sm:$0xff] %vm1837_vm3, %v1830_v55  ;;  %v1478_v5 = vadd.f32 %v1468_v56, %v1097_v0 }
 0x279   : > { %v1471_v57 = vpop.xlane.xlu0 %1470 }
 0x27a   : > { %v1479_v8 = vadd.f32 %v1471_v57, %v1098_v4 }
 0x27b   : > { %v1462_v58 = vpop.xlane.xlu1 %1461 }
 0x27c   : > { %v1476_v62 = vadd.f32 %v1462_v58, %v1095_v59 }
 0x27d   : > { %v1465_v60 = vpop.xlane.xlu0 %1464 }
 0x27e   : > { %v1477_v1 = vadd.f32 %v1465_v60, %v1096_v61 }
 0x27f   : > { %v1819_v63 = vpop.xlane.xlu1 %1818 }
 0x280   : > { %v1833_v2 = vadd.f32 %v1819_v63, %v1476_v62 }
 0x281   : > { %v1822_v3 = vpop.xlane.xlu0 %1821 }
 0x282   : > { %1843 = vst.msk [vmem:[%s2965_s15] sm:$0xff] %vm1842_vm4, %v1833_v2  ;;  %v1834_v6 = vadd.f32 %v1822_v3, %v1477_v1 }
 0x283   : > { %v1825_v7 = vpop.xlane.xlu1 %1824 }
 0x284   : > { %1844 = vst.msk [vmem:[%s2965_s15 + $0x8] sm:$0xff] %vm1842_vm4, %v1834_v6  ;;  %v1835_v9 = vadd.f32 %v1825_v7, %v1478_v5 }
 0x285   : > { %v1828_v10 = vpop.xlane.xlu0 %1827 }
 0x286   : > { %1845 = vst.msk [vmem:[%s2965_s15 + $0x10] sm:$0xff] %vm1842_vm4, %v1835_v9  ;;  %v1836_v11 = vadd.f32 %v1828_v10, %v1479_v8 }
 0x288   : > { %1846 = vst.msk [vmem:[%s2965_s15 + $0x18] sm:$0xff] %vm1842_vm4, %v1836_v11 }
 0x289 PF: > { %s16_s18 = sadd.s32 1, %s2561_s18  }
 0x28a   : > { %p13_p8 = scmp.ge.s32.totalorder %s16_s18, 6  }
 0x28c   :  { %15 = sbr.rel (!%p13_p8) target bundleno = 1 (0x1), region = 102 }

// kernel: generator_forward.14
= control target key start
LH: loop header
LB: loop body
LE: loop exit
PB: predicated region body
PF: predicated region fallthrough
CT: control target
= control target key end

     0   :  { %s780_s12 = smov 0   ;;  %s1028_s0 = inlined_call_operand.vmem [shape: bf16[32,16,16], index: 0, kind: input, shape index: {}]   ;;  %s1029_s1 = inlined_call_operand.vmem [shape: f32[1,16,1], index: 1, kind: input, shape index: {}]   ;;  %s1030_s2 = inlined_call_operand.vmem [shape: f32[1,16,1], index: 2, kind: input, shape index: {}]   ;;  %s1031_s3 = inlined_call_operand.vmem [shape: bf16[32,16,16], index: 3, kind: output, shape index: {}]  }
   0x1 LB: > { %s582_s13 = sadd.s32 4294967295, %s757_s12   ;;  %p586_p0 = scmp.ge.s32.totalorder %s757_s12, 1  ;;  %s757_s12 = sphi %s780_s12, %s13_s12  }
   0x2   : > { %p139_p1 = scmp.lt.s32.totalorder %s757_s12, 3 }
   0x4   : > { %p140_p2 = pnand %p586_p0, %p139_p1 }
   0x5   : > { %v287_v0 = vld [vmem:[%s1030_s2] sm:$0xff] (!%p140_p2)  ;;  %v759_v2 = vmov (!%p140_p2), 0   ;;  %v288_v3 = vld [vmem:[%s1030_s2 + $0x8] sm:$0xff] (!%p140_p2)  ;;  %s587_s22 = sshll.u32 (!%p140_p2), %s582_s13, 4  ;;  %vm491_vm0 = vcmask (!%p140_p2), 125952  }
   0x6   : > { %143 = sbr.rel (%p140_p2) target bundleno = 178 (0xb2), region = 32  ;;  %v243_v1 = vld [vmem:[%s1029_s1] sm:$0xff] (!%p140_p2)  ;;  %750 = vset.pattern.permute.xlu1 (!%p140_p2), %v759_v2  ;;  %749 = vset.pattern.permute.xlu0 (!%p140_p2), %v759_v2  ;;  %v244_v4 = vld [vmem:[%s1029_s1 + $0x8] sm:$0xff] (!%p140_p2)  ;;  %p166_p3 = scmp.lt.s32.totalorder (!%p140_p2), %s587_s22, 31 }
   0x7   : > { %291 = vperm.xlu1 (!%p140_p2), %750, %v287_v0   ;;  %247 = vperm.xlu0 (!%p140_p2), %749, %v243_v1  }
   0xb   : > { %296 = vperm.xlu1 (!%p140_p2), %750, %v288_v3   ;;  %252 = vperm.xlu0 (!%p140_p2), %749, %v244_v4  }
   0xd   : > { %s1033_s22 = smov (!%p166_p3, %s587_s22), 31 }
   0xe   : > { %s627_s23 = sshll.u32 %s1033_s22, 3 }
   0xf   : > { %s808_s26 = scalar_lea.vmem %s1028_s0, %s627_s23  ;;  %s955_s29 = scalar_lea.vmem %s1031_s3, %s627_s23 }
  0x10   : > { %v811_v5 = vld [vmem:[%s808_s26] sm:$0xff]   ;;  %v814_v6 = vld [vmem:[%s808_s26 + $0x8] sm:$0xff]   ;;  %v817_v7 = vld [vmem:[%s808_s26 + $0x10] sm:$0xff]  }
  0x11   : > { %v820_v8 = vld [vmem:[%s808_s26 + $0x18] sm:$0xff]   ;;  %v823_v9 = vld [vmem:[%s808_s26 + $0x20] sm:$0xff]   ;;  %v826_v10 = vld [vmem:[%s808_s26 + $0x28] sm:$0xff]   ;;  %v663_v11 = vunpack.c.l.bf16 %v811_v5  ;;  %v664_v12 = vunpack.c.h.bf16 %v811_v5  ;;  %v667_v13 = vunpack.c.l.bf16 %v814_v6  ;;  %v668_v14 = vunpack.c.h.bf16 %v814_v6 }
  0x12   : > { %v833_v15 = vld [vmem:[%s808_s26 + $0x30] sm:$0xff]   ;;  %v836_v16 = vld [vmem:[%s808_s26 + $0x38] sm:$0xff]   ;;  %v671_v17 = vunpack.c.l.bf16 %v817_v7  ;;  %v672_v18 = vunpack.c.h.bf16 %v817_v7  ;;  %v675_v19 = vunpack.c.l.bf16 %v820_v8  ;;  %v676_v20 = vunpack.c.h.bf16 %v820_v8  ;;  %v732_v21 = vld [vmem:[%s808_s26 + $0x40] sm:$0xff]  }
  0x13   : > { %v733_v22 = vld [vmem:[%s808_s26 + $0x48] sm:$0xff]   ;;  %v679_v23 = vunpack.c.l.bf16 %v823_v9  ;;  %v680_v24 = vunpack.c.h.bf16 %v823_v9  ;;  %v683_v25 = vunpack.c.l.bf16 %v826_v10  ;;  %v684_v26 = vunpack.c.h.bf16 %v826_v10  ;;  %v734_v27 = vld [vmem:[%s808_s26 + $0x50] sm:$0xff]   ;;  %v735_v28 = vld [vmem:[%s808_s26 + $0x58] sm:$0xff]  }
  0x14   : > { %v687_v29 = vunpack.c.l.bf16 %v833_v15  ;;  %v688_v30 = vunpack.c.h.bf16 %v833_v15  ;;  %v691_v31 = vunpack.c.l.bf16 %v836_v16  ;;  %v692_v32 = vunpack.c.h.bf16 %v836_v16  ;;  %v736_v33 = vld [vmem:[%s808_s26 + $0x60] sm:$0xff]   ;;  %v737_v34 = vld [vmem:[%s808_s26 + $0x68] sm:$0xff]   ;;  %v738_v39 = vld [vmem:[%s808_s26 + $0x70] sm:$0xff]  }
  0x15   : > { %v695_v35 = vunpack.c.l.bf16 %v732_v21  ;;  %v696_v36 = vunpack.c.h.bf16 %v732_v21  ;;  %v699_v37 = vunpack.c.l.bf16 %v733_v22  ;;  %v700_v38 = vunpack.c.h.bf16 %v733_v22  ;;  %v739_v40 = vld [vmem:[%s808_s26 + $0x78] sm:$0xff]  }
  0x16   : > { %v703_v41 = vunpack.c.l.bf16 %v734_v27  ;;  %v704_v42 = vunpack.c.h.bf16 %v734_v27  ;;  %v707_v43 = vunpack.c.l.bf16 %v735_v28  ;;  %v708_v44 = vunpack.c.h.bf16 %v735_v28 }
  0x17   : > { %v711_v45 = vunpack.c.l.bf16 %v736_v33  ;;  %v712_v46 = vunpack.c.h.bf16 %v736_v33  ;;  %v715_v47 = vunpack.c.l.bf16 %v737_v34  ;;  %v716_v48 = vunpack.c.h.bf16 %v737_v34 }
  0x18   : > { %v719_v50 = vunpack.c.l.bf16 %v738_v39  ;;  %v720_v51 = vunpack.c.h.bf16 %v738_v39  ;;  %v723_v52 = vunpack.c.l.bf16 %v739_v40  ;;  %v724_v53 = vunpack.c.h.bf16 %v739_v40 }
  0x86   : > { %v248_v49 = vpop.permute.xlu0 %247  ;;  %v292_v58 = vpop.permute.xlu1 %291 }
  0x87   : > { %v255_v54 = vmul.f32 %v663_v11, %v248_v49  ;;  %v257_v55 = vmul.f32 %v667_v13, %v248_v49  ;;  %v259_v56 = vmul.f32 %v671_v17, %v248_v49  ;;  %v261_v57 = vmul.f32 %v675_v19, %v248_v49 }
  0x88   : > { %v263_v59 = vmul.f32 %v679_v23, %v248_v49  ;;  %v265_v60 = vmul.f32 %v683_v25, %v248_v49  ;;  %v267_v61 = vmul.f32 %v687_v29, %v248_v49  ;;  %v269_v62 = vmul.f32 %v691_v31, %v248_v49 }
  0x89   : > { %v271_v63 = vmul.f32 %v695_v35, %v248_v49  ;;  %v273_v0 = vmul.f32 %v699_v37, %v248_v49  ;;  %v275_v1 = vmul.f32 %v703_v41, %v248_v49  ;;  %v277_v2 = vmul.f32 %v707_v43, %v248_v49 }
  0x8a   : > { %v253_v3 = vpop.permute.xlu0 %252  ;;  %v279_v4 = vmul.f32 %v711_v45, %v248_v49  ;;  %v281_v5 = vmul.f32 %v715_v47, %v248_v49  ;;  %v283_v6 = vmul.f32 %v719_v50, %v248_v49  ;;  %v285_v7 = vmul.f32 %v723_v52, %v248_v49  ;;  %v297_v25 = vpop.permute.xlu1 %296 }
  0x8b   : > { %v256_v8 = vmul.f32 %v664_v12, %v253_v3  ;;  %v258_v9 = vmul.f32 %v668_v14, %v253_v3  ;;  %v260_v10 = vmul.f32 %v672_v18, %v253_v3  ;;  %v262_v11 = vmul.f32 %v676_v20, %v253_v3 }
  0x8c   : > { %v264_v13 = vmul.f32 %v680_v24, %v253_v3  ;;  %v266_v15 = vmul.f32 %v684_v26, %v253_v3  ;;  %v268_v16 = vmul.f32 %v688_v30, %v253_v3  ;;  %v270_v17 = vmul.f32 %v692_v32, %v253_v3 }
  0x8d   : > { %v272_v19 = vmul.f32 %v696_v36, %v253_v3  ;;  %v274_v21 = vmul.f32 %v700_v38, %v253_v3  ;;  %v276_v22 = vmul.f32 %v704_v42, %v253_v3  ;;  %v278_v23 = vmul.f32 %v708_v44, %v253_v3 }
  0x8e   : > { %v280_v27 = vmul.f32 %v712_v46, %v253_v3  ;;  %v282_v28 = vmul.f32 %v716_v48, %v253_v3  ;;  %v284_v29 = vmul.f32 %v720_v51, %v253_v3  ;;  %v286_v31 = vmul.f32 %v724_v53, %v253_v3 }
  0x8f   : > { %v858_v33 = vadd.f32 %v292_v58, %v255_v54  ;;  %v860_v34 = vadd.f32 %v297_v25, %v256_v8  ;;  %v862_v12 = vadd.f32 %v292_v58, %v257_v55  ;;  %v864_v14 = vadd.f32 %v297_v25, %v258_v9 }
  0x90   : > { %v866_v18 = vadd.f32 %v292_v58, %v259_v56  ;;  %v868_v20 = vadd.f32 %v297_v25, %v260_v10  ;;  %v870_v24 = vadd.f32 %v292_v58, %v261_v57  ;;  %v872_v26 = vadd.f32 %v297_v25, %v262_v11 }
  0x91   : > { %v874_v30 = vadd.f32 %v292_v58, %v263_v59  ;;  %v876_v32 = vadd.f32 %v297_v25, %v264_v13  ;;  %v878_v35 = vadd.f32 %v292_v58, %v265_v60  ;;  %v880_v36 = vadd.f32 %v297_v25, %v266_v15 }
  0x92   : > { %v882_v37 = vadd.f32 %v292_v58, %v267_v61  ;;  %v884_v38 = vadd.f32 %v297_v25, %v268_v16  ;;  %v886_v39 = vadd.f32 %v292_v58, %v269_v62  ;;  %v888_v40 = vadd.f32 %v297_v25, %v270_v17 }
  0x93   : > { %v890_v41 = vadd.f32 %v292_v58, %v271_v63  ;;  %v892_v42 = vadd.f32 %v297_v25, %v272_v19  ;;  %v894_v43 = vadd.f32 %v292_v58, %v273_v0  ;;  %v896_v44 = vadd.f32 %v297_v25, %v274_v21 }
  0x94   : > { %v898_v45 = vadd.f32 %v292_v58, %v275_v1  ;;  %v900_v46 = vadd.f32 %v297_v25, %v276_v22  ;;  %v902_v47 = vadd.f32 %v292_v58, %v277_v2  ;;  %v904_v48 = vadd.f32 %v297_v25, %v278_v23 }
  0x95   : > { %v906_v49 = vadd.f32 %v292_v58, %v279_v4  ;;  %v908_v50 = vadd.f32 %v297_v25, %v280_v27  ;;  %v910_v51 = vadd.f32 %v292_v58, %v281_v5  ;;  %v912_v52 = vadd.f32 %v297_v25, %v282_v28 }
  0x96   : > { %v914_v53 = vadd.f32 %v292_v58, %v283_v6  ;;  %v916_v54 = vadd.f32 %v297_v25, %v284_v29  ;;  %v918_v55 = vadd.f32 %v292_v58, %v285_v7  ;;  %v920_v56 = vadd.f32 %v297_v25, %v286_v31 }
  0x97   : > { %v331_v57 = vmax.f32 %v858_v33, 0.0  ;;  %v332_v59 = vmax.f32 %v860_v34, 0.0  ;;  %v333_v60 = vmax.f32 %v862_v12, 0.0  ;;  %v334_v61 = vmax.f32 %v864_v14, 0.0 }
  0x98   : > { %v335_v62 = vmax.f32 %v866_v18, 0.0  ;;  %v336_v63 = vmax.f32 %v868_v20, 0.0  ;;  %v337_v0 = vmax.f32 %v870_v24, 0.0  ;;  %v338_v1 = vmax.f32 %v872_v26, 0.0 }
  0x99   : > { %v339_v58 = vmax.f32 %v874_v30, 0.0  ;;  %v340_v2 = vmax.f32 %v876_v32, 0.0  ;;  %v341_v3 = vmax.f32 %v878_v35, 0.0  ;;  %v342_v4 = vmax.f32 %v880_v36, 0.0 }
  0x9a   : > { %v343_v5 = vmax.f32 %v882_v37, 0.0  ;;  %v344_v6 = vmax.f32 %v884_v38, 0.0  ;;  %v345_v7 = vmax.f32 %v886_v39, 0.0  ;;  %v346_v8 = vmax.f32 %v888_v40, 0.0 }
  0x9b   : > { %v347_v9 = vmax.f32 %v890_v41, 0.0  ;;  %v348_v10 = vmax.f32 %v892_v42, 0.0  ;;  %v349_v11 = vmax.f32 %v894_v43, 0.0  ;;  %v350_v13 = vmax.f32 %v896_v44, 0.0 }
  0x9c   : > { %v351_v15 = vmax.f32 %v898_v45, 0.0  ;;  %v352_v16 = vmax.f32 %v900_v46, 0.0  ;;  %v353_v17 = vmax.f32 %v902_v47, 0.0  ;;  %v354_v19 = vmax.f32 %v904_v48, 0.0 }
  0x9d   : > { %v355_v21 = vmax.f32 %v906_v49, 0.0  ;;  %v356_v22 = vmax.f32 %v908_v50, 0.0  ;;  %v357_v23 = vmax.f32 %v910_v51, 0.0  ;;  %v358_v25 = vmax.f32 %v912_v52, 0.0 }
  0x9e   : > { %v359_v27 = vmax.f32 %v914_v53, 0.0  ;;  %v360_v28 = vmax.f32 %v916_v54, 0.0  ;;  %v361_v29 = vmax.f32 %v918_v55, 0.0  ;;  %v362_v31 = vmax.f32 %v920_v56, 0.0 }
  0x9f   : > { %v629_v33 = vpack.c.bf16 %v331_v57, %v331_v57  ;;  %v630_v34 = vpack.c.bf16 %v332_v59, %v332_v59  ;;  %v631_v12 = vpack.c.bf16 %v333_v60, %v333_v60  ;;  %v632_v14 = vpack.c.bf16 %v334_v61, %v334_v61 }
  0xa0   : > { %v633_v18 = vpack.c.bf16 %v335_v62, %v335_v62  ;;  %v634_v20 = vpack.c.bf16 %v336_v63, %v336_v63  ;;  %v635_v24 = vpack.c.bf16 %v337_v0, %v337_v0  ;;  %v636_v26 = vpack.c.bf16 %v338_v1, %v338_v1 }
  0xa1   : > { %v637_v30 = vpack.c.bf16 %v339_v58, %v339_v58  ;;  %v638_v32 = vpack.c.bf16 %v340_v2, %v340_v2  ;;  %v639_v35 = vpack.c.bf16 %v341_v3, %v341_v3  ;;  %v640_v36 = vpack.c.bf16 %v342_v4, %v342_v4  ;;  %492 = vst.msk [vmem:[%s955_s29] sm:$0xf] %vm491_vm0, %v629_v33 }
  0xa2   : > { %493 = vst.msk [vmem:[%s955_s29 + $0x4] sm:$0xf] %vm491_vm0, %v630_v34  ;;  %494 = vst.msk [vmem:[%s955_s29 + $0x8] sm:$0xf] %vm491_vm0, %v631_v12  ;;  %v641_v37 = vpack.c.bf16 %v343_v5, %v343_v5  ;;  %v642_v38 = vpack.c.bf16 %v344_v6, %v344_v6  ;;  %v643_v39 = vpack.c.bf16 %v345_v7, %v345_v7 }
  0xa3   : > { %495 = vst.msk [vmem:[%s955_s29 + $0xc] sm:$0xf] %vm491_vm0, %v632_v14  ;;  %v644_v40 = vpack.c.bf16 %v346_v8, %v346_v8  ;;  %496 = vst.msk [vmem:[%s955_s29 + $0x10] sm:$0xf] %vm491_vm0, %v633_v18  ;;  %v645_v41 = vpack.c.bf16 %v347_v9, %v347_v9  ;;  %v646_v42 = vpack.c.bf16 %v348_v10, %v348_v10 }
  0xa4   : > { %497 = vst.msk [vmem:[%s955_s29 + $0x14] sm:$0xf] %vm491_vm0, %v634_v20  ;;  %498 = vst.msk [vmem:[%s955_s29 + $0x18] sm:$0xf] %vm491_vm0, %v635_v24  ;;  %v647_v43 = vpack.c.bf16 %v349_v11, %v349_v11  ;;  %v648_v44 = vpack.c.bf16 %v350_v13, %v350_v13  ;;  %v649_v45 = vpack.c.bf16 %v351_v15, %v351_v15 }
  0xa5   : > { %499 = vst.msk [vmem:[%s955_s29 + $0x1c] sm:$0xf] %vm491_vm0, %v636_v26  ;;  %500 = vst.msk [vmem:[%s955_s29 + $0x20] sm:$0xf] %vm491_vm0, %v637_v30  ;;  %v650_v46 = vpack.c.bf16 %v352_v16, %v352_v16  ;;  %v651_v47 = vpack.c.bf16 %v353_v17, %v353_v17  ;;  %v652_v48 = vpack.c.bf16 %v354_v19, %v354_v19 }
  0xa6   : > { %501 = vst.msk [vmem:[%s955_s29 + $0x24] sm:$0xf] %vm491_vm0, %v638_v32  ;;  %502 = vst.msk [vmem:[%s955_s29 + $0x28] sm:$0xf] %vm491_vm0, %v639_v35  ;;  %v653_v49 = vpack.c.bf16 %v355_v21, %v355_v21  ;;  %v654_v50 = vpack.c.bf16 %v356_v22, %v356_v22  ;;  %v655_v51 = vpack.c.bf16 %v357_v23, %v357_v23 }
  0xa7   : > { %503 = vst.msk [vmem:[%s955_s29 + $0x2c] sm:$0xf] %vm491_vm0, %v640_v36  ;;  %504 = vst.msk [vmem:[%s955_s29 + $0x30] sm:$0xf] %vm491_vm0, %v641_v37  ;;  %v656_v52 = vpack.c.bf16 %v358_v25, %v358_v25  ;;  %v657_v53 = vpack.c.bf16 %v359_v27, %v359_v27  ;;  %v658_v54 = vpack.c.bf16 %v360_v28, %v360_v28 }
  0xa8   : > { %505 = vst.msk [vmem:[%s955_s29 + $0x34] sm:$0xf] %vm491_vm0, %v642_v38  ;;  %506 = vst.msk [vmem:[%s955_s29 + $0x38] sm:$0xf] %vm491_vm0, %v643_v39  ;;  %v659_v55 = vpack.c.bf16 %v361_v29, %v361_v29  ;;  %v660_v56 = vpack.c.bf16 %v362_v31, %v362_v31 }
  0xa9   : > { %507 = vst.msk [vmem:[%s955_s29 + $0x3c] sm:$0xf] %vm491_vm0, %v644_v40  ;;  %508 = vst.msk [vmem:[%s955_s29 + $0x40] sm:$0xf] %vm491_vm0, %v645_v41 }
  0xaa   : > { %509 = vst.msk [vmem:[%s955_s29 + $0x44] sm:$0xf] %vm491_vm0, %v646_v42  ;;  %510 = vst.msk [vmem:[%s955_s29 + $0x48] sm:$0xf] %vm491_vm0, %v647_v43 }
  0xab   : > { %511 = vst.msk [vmem:[%s955_s29 + $0x4c] sm:$0xf] %vm491_vm0, %v648_v44  ;;  %512 = vst.msk [vmem:[%s955_s29 + $0x50] sm:$0xf] %vm491_vm0, %v649_v45 }
  0xac   : > { %513 = vst.msk [vmem:[%s955_s29 + $0x54] sm:$0xf] %vm491_vm0, %v650_v46  ;;  %514 = vst.msk [vmem:[%s955_s29 + $0x58] sm:$0xf] %vm491_vm0, %v651_v47 }
  0xad   : > { %515 = vst.msk [vmem:[%s955_s29 + $0x5c] sm:$0xf] %vm491_vm0, %v652_v48  ;;  %516 = vst.msk [vmem:[%s955_s29 + $0x60] sm:$0xf] %vm491_vm0, %v653_v49 }
  0xae   : > { %517 = vst.msk [vmem:[%s955_s29 + $0x64] sm:$0xf] %vm491_vm0, %v654_v50  ;;  %518 = vst.msk [vmem:[%s955_s29 + $0x68] sm:$0xf] %vm491_vm0, %v655_v51 }
  0xaf   : > { %519 = vst.msk [vmem:[%s955_s29 + $0x6c] sm:$0xf] %vm491_vm0, %v656_v52  ;;  %520 = vst.msk [vmem:[%s955_s29 + $0x70] sm:$0xf] %vm491_vm0, %v657_v53 }
  0xb0   : > { %521 = vst.msk [vmem:[%s955_s29 + $0x74] sm:$0xf] %vm491_vm0, %v658_v54  ;;  %522 = vst.msk [vmem:[%s955_s29 + $0x78] sm:$0xf] %vm491_vm0, %v659_v55 }
  0xb1   : > { %523 = vst.msk [vmem:[%s955_s29 + $0x7c] sm:$0xf] %vm491_vm0, %v660_v56 }
  0xb2 PF: > { %s13_s12 = sadd.s32 1, %s757_s12  }
  0xb3   : > { %p10_p4 = scmp.ge.s32.totalorder %s13_s12, 4  }
  0xb5   :  { %12 = sbr.rel (!%p10_p4) target bundleno = 1 (0x1), region = 62 }

// kernel: generator_forward.13
= control target key start
LH: loop header
LB: loop body
LE: loop exit
PB: predicated region body
PF: predicated region fallthrough
CT: control target
= control target key end

     0   :  { %s1875_s18 = smov 0   ;;  %s2094_s0 = inlined_call_operand.vmem [shape: bf16[16,16,32], index: 0, kind: input, shape index: {}]   ;;  %s2095_s1 = inlined_call_operand.vmem [shape: bf16[10,32,20], index: 1, kind: input, shape index: {}, may-alias: {1,2,3}]   ;;  %s2096_s2 = inlined_call_operand.vmem [shape: bf16[10,32,20], index: 2, kind: input, shape index: {}, may-alias: {1,2,3}]   ;;  %s2097_s3 = inlined_call_operand.vmem [shape: bf16[10,32,20], index: 3, kind: input, shape index: {}, may-alias: {1,2,3}]   ;;  %s2098_s4 = inlined_call_operand.vmem [shape: bf16[16,2,16,16], index: 4, kind: output, shape index: {0}]   ;;  %s2099_s5 = inlined_call_operand.vmem [shape: f32[8,16,2], index: 5, kind: output, shape index: {1}]  }
   0x1 LB: > { %s1881_s19 = sadd.s32 4294967295, %s1839_s18   ;;  %p1466_p0 = scmp.ge.s32.totalorder %s1839_s18, 1  ;;  %s1839_s18 = sphi %s1875_s18, %s16_s18  }
   0x2   : > { %p218_p1 = scmp.lt.s32.totalorder %s1839_s18, 9 }
   0x4   : > { %p219_p2 = pnand %p1466_p0, %p218_p1 }
   0x5   : > { %p264_p3 = scmp.lt.s32.totalorder (!%p219_p2), %s1881_s19, 9  ;;  %s269_s20 = sadd.s32 (!%p219_p2), 1, %s1881_s19  ;;  %v1841_v0 = vmov (!%p219_p2), 0.0   ;;  %vm1842_vm0 = vmmov (!%p219_p2), 0   ;;  %v1817_v10 = vld [vmem:[%s2094_s0 + $0x8] sm:$0xff] (!%p219_p2)   ;;  %vm334_vm1 = vcmask (!%p219_p2), 261120  }
   0x6   : > { %222 = sbr.rel (%p219_p2) target bundleno = 592 (0x250), region = 36  ;;  %1623 = vmatprep.subr.bf16.mxu0 (!%p219_p2), %v1841_v0  ;;  %1655 = vmatprep.subr.bf16.mxu1 (!%p219_p2), %v1841_v0  ;;  %p270_p4 = scmp.lt.s32.totalorder (!%p219_p2), %s269_s20, 9  ;;  %v1818_v12 = vld [vmem:[%s2094_s0 + $0x28] sm:$0xff] (!%p219_p2)   ;;  %v1819_v13 = vld [vmem:[%s2094_s0] sm:$0xff] (!%p219_p2)   ;;  %v1821_v17 = vld [vmem:[%s2094_s0 + $0x10] sm:$0xff] (!%p219_p2)   ;;  %vm567_vm2 = vcmask (!%p219_p2), 130048  }
   0x7   : > { %1627 = vmatprep.mubr.msk.bf16.mxu0 (!%p219_p2), %vm1842_vm0, %v1841_v0  ;;  %1659 = vmatprep.mubr.msk.bf16.mxu1 (!%p219_p2), %vm1842_vm0, %v1841_v0  ;;  %s276_s22 = sadd.s32 (!%p219_p2), 2, %s1881_s19  ;;  %s1843_s27 = smov (!%p219_p2), 126   ;;  %v1820_v14 = vld [vmem:[%s2094_s0 + $0x20] sm:$0xff] (!%p219_p2)   ;;  %v1822_v18 = vld [vmem:[%s2094_s0 + $0x30] sm:$0xff] (!%p219_p2)   ;;  %v1823_v21 = vld [vmem:[%s2094_s0 + $0x18] sm:$0xff] (!%p219_p2)   ;;  %vm564_vm3 = vcmask (!%p219_p2), 125952  }
   0x8   : > { %p277_p5 = scmp.lt.s32.totalorder (!%p219_p2), %s276_s22, 9  ;;  %s1844_s11 = smov (!%p219_p2), 124   ;;  %v1824_v22 = vld [vmem:[%s2094_s0 + $0x38] sm:$0xff] (!%p219_p2)   ;;  %v1825_v23 = vld [vmem:[%s2094_s0 + $0x48] sm:$0xff] (!%p219_p2)   ;;  %v1827_v25 = vld [vmem:[%s2094_s0 + $0x40] sm:$0xff] (!%p219_p2)   ;;  %vm1341_vm4 = vcmask (!%p219_p2), 7168  }
   0x9   : > { %v1826_v24 = vld [vmem:[%s2094_s0 + $0x68] sm:$0xff] (!%p219_p2)   ;;  %v1828_v26 = vld [vmem:[%s2094_s0 + $0x60] sm:$0xff] (!%p219_p2)   ;;  %v1829_v29 = vld [vmem:[%s2094_s0 + $0x50] sm:$0xff] (!%p219_p2)   ;;  %p290_p7 = scmp.lt.s32.totalorder (!%p219_p2), %s1881_s19, 7  ;;  %vm1344_vm5 = vcmask (!%p219_p2), 15368  }
   0xa   : > { %v1830_v30 = vld [vmem:[%s2094_s0 + $0x70] sm:$0xff] (!%p219_p2)   ;;  %v1831_v33 = vld [vmem:[%s2094_s0 + $0x58] sm:$0xff] (!%p219_p2)  }
   0xb   : > { %v1832_v34 = vld [vmem:[%s2094_s0 + $0x78] sm:$0xff] (!%p219_p2)  }
   0xd   : > { %s265_s21 = scalar_select %p264_p3, %s1881_s19, 9 }
   0xe   : > { %s2101_s20 = smov (!%p270_p4, %s269_s20), 9  ;;  %s2103_s22 = smov (!%p277_p5, %s276_s22), 9 }
   0xf   : > { %s1562_s23 = sshll.u32 %s265_s21, 4  ;;  %s1563_s28 = sshll.u32 %s2101_s20, 4 }
  0x10   : > { %s268_s26 = scalar_lea.vmem %s2095_s1, %s1562_s23  ;;  %s274_s6 = scalar_lea.vmem %s2096_s2, %s1563_s28 }
  0x11   : > { %v1811_v1 = vld [vmem:[%s268_s26] sm:$0xff]   ;;  %v1812_v2 = vld [vmem:[%s268_s26 + $0x8] sm:$0xff]   ;;  %s1564_s7 = sshll.u32 %s2103_s22, 4  ;;  %s1473_s23 = sshll.u32 %s1881_s19, 1 }
  0x12   : > { %328 = vrot.lane.b32.xlu0 %v1811_v1, %s1843_s27  ;;  %330 = vrot.lane.b32.xlu1 %v1812_v2, %s1843_s27  ;;  %s281_s10 = scalar_lea.vmem %s2097_s3, %s1564_s7  ;;  %v1904_v3 = vld [vmem:[%s274_s6] sm:$0xff]   ;;  %v1906_v4 = vld [vmem:[%s274_s6 + $0x8] sm:$0xff]   ;;  %p284_p6 = scmp.lt.s32.totalorder %s1473_s23, 15 }
  0x13   : > { %v1911_v5 = vld [vmem:[%s281_s10] sm:$0xff]   ;;  %v1914_v6 = vld [vmem:[%s281_s10 + $0x8] sm:$0xff]   ;;  %s2107_s19 = smov (!%p290_p7, %s1881_s19), 7 }
  0x14   : > { %s2105_s23 = smov (!%p284_p6, %s1473_s23), 15  ;;  %s1566_s28 = sshll.u32 %s2107_s19, 4 }
  0x15   : > { %s1565_s24 = sshll.u32 %s2105_s23, 4  ;;  %s294_s6 = scalar_lea.vmem %s2099_s5, %s1566_s28 }
  0x16   : > { %593 = vrot.lane.b32.xlu0 %v1811_v1, %s1844_s11  ;;  %595 = vrot.lane.b32.xlu1 %v1812_v2, %s1844_s11 }
  0x1a   : > { %504 = vrot.lane.b32.xlu0 %v1904_v3, %s1843_s27  ;;  %506 = vrot.lane.b32.xlu1 %v1906_v4, %s1843_s27 }
  0x1e   : > { %754 = vrot.lane.b32.xlu0 %v1904_v3, %s1844_s11  ;;  %756 = vrot.lane.b32.xlu1 %v1906_v4, %s1844_s11 }
  0x22   : > { %1013 = vrot.lane.b32.xlu0 %v1911_v5, %s1843_s27  ;;  %1015 = vrot.lane.b32.xlu1 %v1914_v6, %s1843_s27  ;;  %s2052_s27 = scalar_lea.vmem %s2098_s4, %s1565_s24 }
  0x26   : > { %1260 = vrot.lane.b32.xlu0 %v1911_v5, %s1844_s11  ;;  %1262 = vrot.lane.b32.xlu1 %v1914_v6, %s1844_s11 }
  0x84   : > { %v329_v7 = vpop.permute.xlu0 %328  ;;  %v331_v8 = vpop.permute.xlu1 %330 }
  0x85   : > { %1624 = vmatpush3.bf16.msra.mxu0 %v329_v7 }
  0x86   : > { %1625 = vmatprep.subr.bf16.mxu0 %v1841_v0 }
  0x88   : > { %v594_v9 = vpop.permute.xlu0 %593  ;;  %v596_v11 = vpop.permute.xlu1 %595 }
  0x89   : > { %1626 = vmatpush3.bf16.msra.mxu0 %v331_v8  ;;  %1656 = vmatpush3.bf16.msra.mxu1 %v594_v9 }
  0x8a   : > { %1631 = vmatprep.subr.bf16.mxu0 %v1841_v0  ;;  %1657 = vmatprep.subr.bf16.mxu1 %v1841_v0 }
  0x8c   : > { %1628 = vmatmul.mubr.msk.bf16.vlgmr.msra.gmra.mrb[0].mxu0 %vm334_vm1, %v1817_v10  ;;  %v505_v15 = vpop.permute.xlu0 %504  ;;  %v507_v16 = vpop.permute.xlu1 %506 }
  0x8d   : > { %1632 = vmatpush3.bf16.msra.mxu0 %v1811_v1  ;;  %1658 = vmatpush3.bf16.msra.mxu1 %v596_v11 }
  0x8e   : > { %1663 = vmatprep.subr.bf16.mxu1 %v1841_v0  ;;  %1633 = vmatprep.subr.bf16.mxu0 %v1841_v0 }
  0x8f   : > { %1635 = vmatprep.mubr.msk.bf16.mxu0 %vm1842_vm0, %v1841_v0 }
  0x90   : > { %1660 = vmatmul.mubr.msk.bf16.vlgmr.msra.gmra.mrb[0].mxu1 %vm334_vm1, %v1818_v12  ;;  %v755_v19 = vpop.permute.xlu0 %754  ;;  %v757_v20 = vpop.permute.xlu1 %756 }
  0x91   : > { %1664 = vmatpush3.bf16.msra.mxu1 %v329_v7  ;;  %1634 = vmatpush3.bf16.msra.mxu0 %v1812_v2 }
  0x92   : > { %1665 = vmatprep.subr.bf16.mxu1 %v1841_v0  ;;  %1639 = vmatprep.subr.bf16.mxu0 %v1841_v0 }
  0x93   : > { %1667 = vmatprep.mubr.msk.bf16.mxu1 %vm1842_vm0, %v1841_v0 }
  0x94   : > { %v1014_v27 = vpop.permute.xlu0 %1013  ;;  %v1016_v28 = vpop.permute.xlu1 %1015 }
  0x95   : > { %1666 = vmatpush3.bf16.msra.mxu1 %v331_v8 }
  0x96   : > { %1671 = vmatprep.subr.bf16.mxu1 %v1841_v0 }
  0x98   : > { %1636 = vmatmul.mubr.msk.bf16.vlgmr.msra.gmra.mrb[0].mxu0 %vm334_vm1, %v1819_v13  ;;  %v1261_v31 = vpop.permute.xlu0 %1260  ;;  %v1263_v32 = vpop.permute.xlu1 %1262 }
  0x99   : > { %1640 = vmatpush3.bf16.msra.mxu0 %v1904_v3  ;;  %1643 = vmatprep.mubr.msk.bf16.mxu0 %vm1842_vm0, %v1841_v0 }
  0x9a   : > { %1641 = vmatprep.subr.bf16.mxu0 %v1841_v0 }
  0x9c   : > { %1668 = vmatmul.mubr.msk.bf16.vlgmr.msra.gmra.mrb[0].mxu1 %vm334_vm1, %v1820_v14 }
  0x9d   : > { %1672 = vmatpush3.bf16.msra.mxu1 %v505_v15  ;;  %1642 = vmatpush3.bf16.msra.mxu0 %v1906_v4 }
  0x9e   : > { %1673 = vmatprep.subr.bf16.mxu1 %v1841_v0  ;;  %1647 = vmatprep.subr.bf16.mxu0 %v1841_v0 }
  0x9f   : > { %1675 = vmatprep.mubr.msk.bf16.mxu1 %vm1842_vm0, %v1841_v0 }
  0xa1   : > { %1674 = vmatpush3.bf16.msra.mxu1 %v507_v16 }
  0xa2   : > { %1679 = vmatprep.subr.bf16.mxu1 %v1841_v0 }
  0xa4   : > { %1644 = vmatmul.mubr.msk.bf16.vlgmr.msra.gmra.mrb[0].mxu0 %vm334_vm1, %v1821_v17 }
  0xa5   : > { %1648 = vmatpush3.bf16.msra.mxu0 %v505_v15  ;;  %1651 = vmatprep.mubr.msk.bf16.mxu0 %vm1842_vm0, %v1841_v0 }
  0xa6   : > { %1649 = vmatprep.subr.bf16.mxu0 %v1841_v0 }
  0xa8   : > { %1676 = vmatmul.mubr.msk.bf16.vlgmr.msra.gmra.mrb[0].mxu1 %vm334_vm1, %v1822_v18 }
  0xa9   : > { %1650 = vmatpush3.bf16.msra.mxu0 %v507_v16  ;;  %1680 = vmatpush3.bf16.msra.mxu1 %v755_v19 }
  0xaa   : > { %1681 = vmatprep.subr.bf16.mxu1 %v1841_v0  ;;  %1687 = vmatprep.subr.bf16.mxu0 %v1841_v0 }
  0xab   : > { %1683 = vmatprep.mubr.msk.bf16.mxu1 %vm1842_vm0, %v1841_v0 }
  0xad   : > { %1682 = vmatpush3.bf16.msra.mxu1 %v757_v20 }
  0xae   : > { %1719 = vmatprep.subr.bf16.mxu1 %v1841_v0 }
  0xb0   : > { %1652 = vmatmul.mubr.msk.bf16.vlgmr.msra.gmra.mrb[0].mxu0 %vm334_vm1, %v1823_v21 }
  0xb1   : > { %1688 = vmatpush3.bf16.msra.mxu0 %v505_v15  ;;  %1691 = vmatprep.mubr.msk.bf16.mxu0 %vm1842_vm0, %v1841_v0 }
  0xb2   : > { %1689 = vmatprep.subr.bf16.mxu0 %v1841_v0 }
  0xb4   : > { %1684 = vmatmul.mubr.msk.bf16.vlgmr.msra.gmra.mrb[0].mxu1 %vm334_vm1, %v1824_v22 }
  0xb5   : > { %1690 = vmatpush3.bf16.msra.mxu0 %v507_v16  ;;  %1720 = vmatpush3.bf16.msra.mxu1 %v755_v19 }
  0xb6   : > { %1721 = vmatprep.subr.bf16.mxu1 %v1841_v0  ;;  %1695 = vmatprep.subr.bf16.mxu0 %v1841_v0 }
  0xb7   : > { %1723 = vmatprep.mubr.msk.bf16.mxu1 %vm1842_vm0, %v1841_v0 }
  0xb8   : > { %1692 = vmatmul.mubr.msk.bf16.vlgmr.msra.gmra.mrb[4].mxu0 %vm334_vm1, %v1825_v23 }
  0xb9   : > { %1722 = vmatpush3.bf16.msra.mxu1 %v757_v20  ;;  %1696 = vmatpush3.bf16.msra.mxu0 %v1904_v3 }
  0xba   : > { %1727 = vmatprep.subr.bf16.mxu1 %v1841_v0  ;;  %1697 = vmatprep.subr.bf16.mxu0 %v1841_v0 }
  0xbb   : > { %1699 = vmatprep.mubr.msk.bf16.mxu0 %vm1842_vm0, %v1841_v0 }
  0xbc   : > { %1724 = vmatmul.mubr.msk.bf16.vlgmr.msra.gmra.mrb[4].mxu1 %vm334_vm1, %v1826_v24 }
  0xbd   : > { %1728 = vmatpush3.bf16.msra.mxu1 %v505_v15  ;;  %1698 = vmatpush3.bf16.msra.mxu0 %v1906_v4 }
  0xbe   : > { %1729 = vmatprep.subr.bf16.mxu1 %v1841_v0  ;;  %1703 = vmatprep.subr.bf16.mxu0 %v1841_v0 }
  0xbf   : > { %1731 = vmatprep.mubr.msk.bf16.mxu1 %vm1842_vm0, %v1841_v0 }
  0xc1   : > { %1730 = vmatpush3.bf16.msra.mxu1 %v507_v16 }
  0xc2   : > { %1735 = vmatprep.subr.bf16.mxu1 %v1841_v0 }
  0xc4   : > { %1700 = vmatmul.mubr.msk.bf16.vlgmr.msra.gmra.mrb[4].mxu0 %vm334_vm1, %v1827_v25 }
  0xc5   : > { %1704 = vmatpush3.bf16.msra.mxu0 %v1911_v5  ;;  %1707 = vmatprep.mubr.msk.bf16.mxu0 %vm1842_vm0, %v1841_v0 }
  0xc6   : > { %1705 = vmatprep.subr.bf16.mxu0 %v1841_v0 }
  0xc8   : > { %1732 = vmatmul.mubr.msk.bf16.vlgmr.msra.gmra.mrb[4].mxu1 %vm334_vm1, %v1828_v26 }
  0xc9   : > { %1736 = vmatpush3.bf16.msra.mxu1 %v1014_v27  ;;  %1706 = vmatpush3.bf16.msra.mxu0 %v1914_v6 }
  0xca   : > { %1737 = vmatprep.subr.bf16.mxu1 %v1841_v0  ;;  %1711 = vmatprep.subr.bf16.mxu0 %v1841_v0 }
  0xcb   : > { %1739 = vmatprep.mubr.msk.bf16.mxu1 %vm1842_vm0, %v1841_v0 }
  0xcd   : > { %1738 = vmatpush3.bf16.msra.mxu1 %v1016_v28 }
  0xce   : > { %1743 = vmatprep.subr.bf16.mxu1 %v1841_v0 }
  0xd0   : > { %1708 = vmatmul.mubr.msk.bf16.vlgmr.msra.gmra.mrb[4].mxu0 %vm334_vm1, %v1829_v29 }
  0xd1   : > { %1712 = vmatpush3.bf16.msra.mxu0 %v1014_v27  ;;  %1715 = vmatprep.mubr.msk.bf16.mxu0 %vm1842_vm0, %v1841_v0 }
  0xd2   : > { %1713 = vmatprep.subr.bf16.mxu0 %v1841_v0 }
  0xd4   : > { %1740 = vmatmul.mubr.msk.bf16.vlgmr.msra.gmra.mrb[4].mxu1 %vm334_vm1, %v1830_v30 }
  0xd5   : > { %1714 = vmatpush3.bf16.msra.mxu0 %v1016_v28  ;;  %1744 = vmatpush3.bf16.msra.mxu1 %v1261_v31 }
  0xd6   : > { %1745 = vmatprep.subr.bf16.mxu1 %v1841_v0  ;;  %1747 = vmatprep.mubr.msk.bf16.mxu1 %vm1842_vm0, %v1841_v0 }
  0xd9   : > { %1746 = vmatpush3.bf16.msra.mxu1 %v1263_v32 }
  0xdc   : > { %1716 = vmatmul.mubr.msk.bf16.vlgmr.msra.gmra.mrb[4].mxu0 %vm334_vm1, %v1831_v33 }
  0xe0   : > { %1748 = vmatmul.mubr.msk.bf16.vlgmr.msra.gmra.mrb[4].mxu1 %vm334_vm1, %v1832_v34 }
 0x183   : > { %v547_v35 = vpop.f32.mrb[0].mxu0 }
 0x184   : > { %v1567_v36 = vpack.c.bf16 %v547_v35, %v547_v35  ;;  %v1653_v37 = vpop.f32.mrb[1].mxu0  ;;  %v568_v38 = vsel %vm567_vm2, %v547_v35, 0.0  ;;  %v574_v39 = vmul.f32 %v547_v35, %v547_v35 }
 0x185   : > { %569 = vadd.xlane.f32.xlu0 %v568_v38  ;;  %v550_v40 = vpop.f32.mrb[2].mxu0 }
 0x186   : > { %565 = vst.msk [vmem:[%s2052_s27] sm:$0xf] %vm564_vm3, %v1567_v36  ;;  %v1568_v41 = vpack.c.bf16 %v550_v40, %v550_v40  ;;  %v1654_v42 = vpop.f32.mrb[3].mxu0  ;;  %v576_v46 = vsel %vm567_vm2, %v574_v39, 0.0  ;;  %v571_v51 = vsel %vm567_vm2, %v550_v40, 0.0  ;;  %v575_v54 = vmul.f32 %v550_v40, %v550_v40 }
 0x187   : > { %v797_v43 = vpop.f32.mrb[0].mxu1 }
 0x188   : > { %566 = vst.msk [vmem:[%s2052_s27 + $0x4] sm:$0xf] %vm564_vm3, %v1568_v41  ;;  %v1569_v44 = vpack.c.bf16 %v797_v43, %v797_v43  ;;  %v1685_v45 = vpop.f32.mrb[1].mxu1  ;;  %v817_v47 = vsel %vm567_vm2, %v797_v43, 0.0  ;;  %v823_v53 = vmul.f32 %v797_v43, %v797_v43  ;;  %v579_v56 = vsel %vm567_vm2, %v575_v54, 0.0 }
 0x189   : > { %577 = vadd.xlane.f32.xlu0 %v576_v46  ;;  %818 = vadd.xlane.f32.xlu1 %v817_v47  ;;  %v800_v48 = vpop.f32.mrb[2].mxu1 }
 0x18a   : > { %1516 = vst.msk [vmem:[%s2052_s27 + $0x8] sm:$0xf] %vm564_vm3, %v1569_v44  ;;  %v1570_v49 = vpack.c.bf16 %v800_v48, %v800_v48  ;;  %v1686_v50 = vpop.f32.mrb[3].mxu1  ;;  %v820_v52 = vsel %vm567_vm2, %v800_v48, 0.0  ;;  %v825_v55 = vsel %vm567_vm2, %v823_v53, 0.0  ;;  %v824_v57 = vmul.f32 %v800_v48, %v800_v48 }
 0x18c   : > { %1517 = vst.msk [vmem:[%s2052_s27 + $0xc] sm:$0xf] %vm564_vm3, %v1570_v49  ;;  %v828_v58 = vsel %vm567_vm2, %v824_v57, 0.0 }
 0x18d   : > { %572 = vadd.xlane.f32.xlu1 %v571_v51  ;;  %821 = vadd.xlane.f32.xlu0 %v820_v52 }
 0x191   : > { %826 = vadd.xlane.f32.xlu1 %v825_v55  ;;  %580 = vadd.xlane.f32.xlu0 %v579_v56 }
 0x195   : > { %829 = vadd.xlane.f32.xlu0 %v828_v58 }
 0x1af   : > { %v1056_v59 = vpop.f32.mrb[4].mxu0 }
 0x1b0   : > { %v1571_v60 = vpack.c.bf16 %v1056_v59, %v1056_v59  ;;  %v1717_v61 = vpop.f32.mrb[5].mxu0  ;;  %v1076_v62 = vsel %vm567_vm2, %v1056_v59, 0.0  ;;  %v1082_v7 = vmul.f32 %v1056_v59, %v1056_v59 }
 0x1b1   : > { %1077 = vadd.xlane.f32.xlu1 %v1076_v62  ;;  %v1059_v63 = vpop.f32.mrb[6].mxu0 }
 0x1b2   : > { %1538 = vst.msk [vmem:[%s2052_s27 + $0x10] sm:$0xf] %vm564_vm3, %v1571_v60  ;;  %v1572_v0 = vpack.c.bf16 %v1059_v63, %v1059_v63  ;;  %v1718_v1 = vpop.f32.mrb[7].mxu0  ;;  %v1079_v2 = vsel %vm567_vm2, %v1059_v63, 0.0  ;;  %v1083_v12 = vmul.f32 %v1059_v63, %v1059_v63  ;;  %v1084_v13 = vsel %vm567_vm2, %v1082_v7, 0.0 }
 0x1b3   : > { %1080 = vadd.xlane.f32.xlu0 %v1079_v2  ;;  %v1303_v3 = vpop.f32.mrb[4].mxu1 }
 0x1b4   : > { %1539 = vst.msk [vmem:[%s2052_s27 + $0x14] sm:$0xf] %vm564_vm3, %v1572_v0  ;;  %v1573_v4 = vpack.c.bf16 %v1303_v3, %v1303_v3  ;;  %v1749_v5 = vpop.f32.mrb[5].mxu1  ;;  %v1323_v6 = vsel %vm567_vm2, %v1303_v3, 0.0  ;;  %v1329_v14 = vmul.f32 %v1303_v3, %v1303_v3  ;;  %v1087_v15 = vsel %vm567_vm2, %v1083_v12, 0.0 }
 0x1b5   : > { %1324 = vadd.xlane.f32.xlu1 %v1323_v6  ;;  %v1306_v8 = vpop.f32.mrb[6].mxu1 }
 0x1b6   : > { %1558 = vst.msk [vmem:[%s2052_s27 + $0x18] sm:$0xf] %vm564_vm3, %v1573_v4  ;;  %v1574_v9 = vpack.c.bf16 %v1306_v8, %v1306_v8  ;;  %v1750_v10 = vpop.f32.mrb[7].mxu1  ;;  %v1326_v11 = vsel %vm567_vm2, %v1306_v8, 0.0  ;;  %v1330_v16 = vmul.f32 %v1306_v8, %v1306_v8  ;;  %v1331_v17 = vsel %vm567_vm2, %v1329_v14, 0.0 }
 0x1b7   : > { %1327 = vadd.xlane.f32.xlu0 %v1326_v11 }
 0x1b8   : > { %1559 = vst.msk [vmem:[%s2052_s27 + $0x1c] sm:$0xf] %vm564_vm3, %v1574_v9  ;;  %v1334_v18 = vsel %vm567_vm2, %v1330_v16, 0.0 }
 0x1b9   : > { %1085 = vadd.xlane.f32.xlu1 %v1084_v13 }
 0x1bb   : > { %1088 = vadd.xlane.f32.xlu0 %v1087_v15 }
 0x1bd   : > { %1332 = vadd.xlane.f32.xlu1 %v1331_v17 }
 0x1bf   : > { %1335 = vadd.xlane.f32.xlu0 %v1334_v18 }
 0x212   : > { %v570_v19 = vpop.xlane.xlu0 %569 }
 0x216   : > { %v578_v20 = vpop.xlane.xlu0 %577  ;;  %v819_v21 = vpop.xlane.xlu1 %818 }
 0x217   : > { %v831_v28 = vadd.f32 %v819_v21, %v570_v19 }
 0x21a   : > { %v822_v22 = vpop.xlane.xlu0 %821  ;;  %v573_v23 = vpop.xlane.xlu1 %572 }
 0x21b   : > { %v832_v30 = vadd.f32 %v822_v22, %v573_v23 }
 0x21e   : > { %v581_v24 = vpop.xlane.xlu0 %580  ;;  %v827_v25 = vpop.xlane.xlu1 %826 }
 0x21f   : > { %v833_v38 = vadd.f32 %v827_v25, %v578_v20 }
 0x222   : > { %v830_v26 = vpop.xlane.xlu0 %829 }
 0x223   : > { %v834_v40 = vadd.f32 %v830_v26, %v581_v24 }
 0x23e   : > { %v1078_v27 = vpop.xlane.xlu1 %1077 }
 0x23f   : > { %v1090_v31 = vadd.f32 %v1078_v27, %v831_v28 }
 0x240   : > { %v1081_v29 = vpop.xlane.xlu0 %1080 }
 0x241   : > { %v1091_v33 = vadd.f32 %v1081_v29, %v832_v30 }
 0x242   : > { %v1325_v32 = vpop.xlane.xlu1 %1324 }
 0x243   : > { %v1337_v34 = vadd.f32 %v1325_v32, %v1090_v31 }
 0x244   : > { %v1328_v35 = vpop.xlane.xlu0 %1327 }
 0x245   : > { %1342 = vst.msk [vmem:[%s294_s6] sm:$0xff] %vm1341_vm4, %v1337_v34  ;;  %v1338_v36 = vadd.f32 %v1328_v35, %v1091_v33 }
 0x246   : > { %v1086_v37 = vpop.xlane.xlu1 %1085 }
 0x247   : > { %1343 = vst.msk [vmem:[%s294_s6 + $0x8] sm:$0xff] %vm1341_vm4, %v1338_v36  ;;  %v1092_v41 = vadd.f32 %v1086_v37, %v833_v38 }
 0x248   : > { %v1089_v39 = vpop.xlane.xlu0 %1088 }
 0x249   : > { %v1093_v43 = vadd.f32 %v1089_v39, %v834_v40 }
 0x24a   : > { %v1333_v42 = vpop.xlane.xlu1 %1332 }
 0x24b   : > { %v1339_v44 = vadd.f32 %v1333_v42, %v1092_v41 }
 0x24c   : > { %v1336_v45 = vpop.xlane.xlu0 %1335 }
 0x24d   : > { %1345 = vst.msk [vmem:[%s294_s6] sm:$0xff] %vm1344_vm5, %v1339_v44  ;;  %v1340_v46 = vadd.f32 %v1336_v45, %v1093_v43 }
 0x24f   : > { %1346 = vst.msk [vmem:[%s294_s6 + $0x8] sm:$0xff] %vm1344_vm5, %v1340_v46 }
 0x250 PF: > { %s16_s18 = sadd.s32 1, %s1839_s18  }
 0x251   : > { %p13_p8 = scmp.ge.s32.totalorder %s16_s18, 10  }
 0x253   :  { %15 = sbr.rel (!%p13_p8) target bundleno = 1 (0x1), region = 102 }

// kernel: generator_forward.16
= control target key start
LH: loop header
LB: loop body
LE: loop exit
PB: predicated region body
PF: predicated region fallthrough
CT: control target
= control target key end

     0   :  { %s596_s12 = smov 0   ;;  %s806_s0 = inlined_call_operand.vmem [shape: bf16[64,8,32], index: 0, kind: input, shape index: {}]   ;;  %s807_s1 = inlined_call_operand.vmem [shape: f32[1,8,1], index: 1, kind: input, shape index: {}]   ;;  %s808_s2 = inlined_call_operand.vmem [shape: f32[1,8,1], index: 2, kind: input, shape index: {}]   ;;  %s809_s3 = inlined_call_operand.vmem [shape: bf16[64,8,32], index: 3, kind: output, shape index: {}]  }
   0x1 LB: > { %s467_s13 = sadd.s32 4294967295, %s573_s12   ;;  %p471_p0 = scmp.ge.s32.totalorder %s573_s12, 1  ;;  %s573_s12 = sphi %s596_s12, %s13_s12  }
   0x2   : > { %p138_p1 = scmp.lt.s32.totalorder %s573_s12, 3 }
   0x4   : > { %p139_p2 = pnand %p471_p0, %p138_p1 }
   0x5   : > { %v238_v0 = vld [vmem:[%s807_s1] sm:$0xff] (!%p139_p2)  ;;  %v575_v1 = vmov (!%p139_p2), 0   ;;  %s472_s18 = sshll.u32 (!%p139_p2), %s467_s13, 5  ;;  %vm378_vm0 = vcmask (!%p139_p2), 257024  }
   0x6   : > { %142 = sbr.rel (%p139_p2) target bundleno = 178 (0xb2), region = 32  ;;  %566 = vset.pattern.permute.xlu0 (!%p139_p2), %v575_v1  ;;  %v276_v2 = vld [vmem:[%s808_s2] sm:$0xff] (!%p139_p2)  ;;  %p163_p3 = scmp.lt.s32.totalorder (!%p139_p2), %s472_s18, 63 }
   0x7   : > { %241 = vperm.xlu0 (!%p139_p2), %566, %v238_v0  }
   0xb   : > { %279 = vperm.xlu0 (!%p139_p2), %566, %v276_v2  }
   0xd   : > { %s811_s18 = smov (!%p163_p3, %s472_s18), 63 }
   0xe   : > { %s473_s19 = sshll.u32 %s811_s18, 2 }
   0xf   : > { %s618_s22 = scalar_lea.vmem %s806_s0, %s473_s19  ;;  %s733_s25 = scalar_lea.vmem %s809_s3, %s473_s19 }
  0x10   : > { %v479_v3 = vld [vmem:[%s618_s22] sm:$0xff]   ;;  %v542_v4 = vld [vmem:[%s618_s22 + $0x8] sm:$0xff]   ;;  %v543_v5 = vld [vmem:[%s618_s22 + $0x10] sm:$0xff]  }
  0x11   : > { %v544_v6 = vld [vmem:[%s618_s22 + $0x18] sm:$0xff]   ;;  %v545_v7 = vld [vmem:[%s618_s22 + $0x20] sm:$0xff]   ;;  %v546_v8 = vld [vmem:[%s618_s22 + $0x28] sm:$0xff]   ;;  %v480_v9 = vunpack.c.l.bf16 %v479_v3  ;;  %v481_v10 = vunpack.c.h.bf16 %v479_v3  ;;  %v484_v11 = vunpack.c.l.bf16 %v542_v4  ;;  %v485_v12 = vunpack.c.h.bf16 %v542_v4 }
  0x12   : > { %v547_v13 = vld [vmem:[%s618_s22 + $0x30] sm:$0xff]   ;;  %v548_v14 = vld [vmem:[%s618_s22 + $0x38] sm:$0xff]   ;;  %v488_v15 = vunpack.c.l.bf16 %v543_v5  ;;  %v489_v16 = vunpack.c.h.bf16 %v543_v5  ;;  %v492_v17 = vunpack.c.l.bf16 %v544_v6  ;;  %v493_v18 = vunpack.c.h.bf16 %v544_v6  ;;  %v549_v19 = vld [vmem:[%s618_s22 + $0x40] sm:$0xff]  }
  0x13   : > { %v550_v20 = vld [vmem:[%s618_s22 + $0x48] sm:$0xff]   ;;  %v496_v21 = vunpack.c.l.bf16 %v545_v7  ;;  %v497_v22 = vunpack.c.h.bf16 %v545_v7  ;;  %v500_v23 = vunpack.c.l.bf16 %v546_v8  ;;  %v501_v24 = vunpack.c.h.bf16 %v546_v8  ;;  %v551_v25 = vld [vmem:[%s618_s22 + $0x50] sm:$0xff]   ;;  %v552_v26 = vld [vmem:[%s618_s22 + $0x58] sm:$0xff]  }
  0x14   : > { %v504_v27 = vunpack.c.l.bf16 %v547_v13  ;;  %v505_v28 = vunpack.c.h.bf16 %v547_v13  ;;  %v508_v29 = vunpack.c.l.bf16 %v548_v14  ;;  %v509_v30 = vunpack.c.h.bf16 %v548_v14  ;;  %v553_v31 = vld [vmem:[%s618_s22 + $0x60] sm:$0xff]   ;;  %v554_v32 = vld [vmem:[%s618_s22 + $0x68] sm:$0xff]   ;;  %v555_v37 = vld [vmem:[%s618_s22 + $0x70] sm:$0xff]  }
  0x15   : > { %v512_v33 = vunpack.c.l.bf16 %v549_v19  ;;  %v513_v34 = vunpack.c.h.bf16 %v549_v19  ;;  %v516_v35 = vunpack.c.l.bf16 %v550_v20  ;;  %v517_v36 = vunpack.c.h.bf16 %v550_v20  ;;  %v556_v38 = vld [vmem:[%s618_s22 + $0x78] sm:$0xff]  }
  0x16   : > { %v520_v39 = vunpack.c.l.bf16 %v551_v25  ;;  %v521_v40 = vunpack.c.h.bf16 %v551_v25  ;;  %v524_v41 = vunpack.c.l.bf16 %v552_v26  ;;  %v525_v42 = vunpack.c.h.bf16 %v552_v26 }
  0x17   : > { %v528_v43 = vunpack.c.l.bf16 %v553_v31  ;;  %v529_v44 = vunpack.c.h.bf16 %v553_v31  ;;  %v532_v45 = vunpack.c.l.bf16 %v554_v32  ;;  %v533_v46 = vunpack.c.h.bf16 %v554_v32 }
  0x18   : > { %v536_v48 = vunpack.c.l.bf16 %v555_v37  ;;  %v537_v49 = vunpack.c.h.bf16 %v555_v37  ;;  %v540_v50 = vunpack.c.l.bf16 %v556_v38  ;;  %v541_v51 = vunpack.c.h.bf16 %v556_v38 }
  0x86   : > { %v242_v47 = vpop.permute.xlu0 %241 }
  0x87   : > { %v244_v52 = vmul.f32 %v480_v9, %v242_v47  ;;  %v245_v53 = vmul.f32 %v481_v10, %v242_v47  ;;  %v246_v54 = vmul.f32 %v484_v11, %v242_v47  ;;  %v247_v55 = vmul.f32 %v485_v12, %v242_v47 }
  0x88   : > { %v248_v56 = vmul.f32 %v488_v15, %v242_v47  ;;  %v249_v57 = vmul.f32 %v489_v16, %v242_v47  ;;  %v250_v58 = vmul.f32 %v492_v17, %v242_v47  ;;  %v251_v59 = vmul.f32 %v493_v18, %v242_v47 }
  0x89   : > { %v252_v60 = vmul.f32 %v496_v21, %v242_v47  ;;  %v253_v61 = vmul.f32 %v497_v22, %v242_v47  ;;  %v254_v62 = vmul.f32 %v500_v23, %v242_v47  ;;  %v255_v63 = vmul.f32 %v501_v24, %v242_v47 }
  0x8a   : > { %v256_v0 = vmul.f32 %v504_v27, %v242_v47  ;;  %v257_v1 = vmul.f32 %v505_v28, %v242_v47  ;;  %v258_v2 = vmul.f32 %v508_v29, %v242_v47  ;;  %v259_v3 = vmul.f32 %v509_v30, %v242_v47  ;;  %v280_v8 = vpop.permute.xlu0 %279 }
  0x8b   : > { %v260_v4 = vmul.f32 %v512_v33, %v242_v47  ;;  %v261_v5 = vmul.f32 %v513_v34, %v242_v47  ;;  %v262_v6 = vmul.f32 %v516_v35, %v242_v47  ;;  %v263_v7 = vmul.f32 %v517_v36, %v242_v47 }
  0x8c   : > { %v264_v9 = vmul.f32 %v520_v39, %v242_v47  ;;  %v265_v10 = vmul.f32 %v521_v40, %v242_v47  ;;  %v266_v11 = vmul.f32 %v524_v41, %v242_v47  ;;  %v267_v12 = vmul.f32 %v525_v42, %v242_v47 }
  0x8d   : > { %v268_v13 = vmul.f32 %v528_v43, %v242_v47  ;;  %v269_v14 = vmul.f32 %v529_v44, %v242_v47  ;;  %v270_v15 = vmul.f32 %v532_v45, %v242_v47  ;;  %v271_v16 = vmul.f32 %v533_v46, %v242_v47 }
  0x8e   : > { %v272_v17 = vmul.f32 %v536_v48, %v242_v47  ;;  %v273_v18 = vmul.f32 %v537_v49, %v242_v47  ;;  %v274_v19 = vmul.f32 %v540_v50, %v242_v47  ;;  %v275_v20 = vmul.f32 %v541_v51, %v242_v47 }
  0x8f   : > { %v636_v21 = vadd.f32 %v280_v8, %v244_v52  ;;  %v638_v22 = vadd.f32 %v280_v8, %v245_v53  ;;  %v640_v23 = vadd.f32 %v280_v8, %v246_v54  ;;  %v642_v24 = vadd.f32 %v280_v8, %v247_v55 }
  0x90   : > { %v644_v25 = vadd.f32 %v280_v8, %v248_v56  ;;  %v646_v26 = vadd.f32 %v280_v8, %v249_v57  ;;  %v648_v27 = vadd.f32 %v280_v8, %v250_v58  ;;  %v650_v28 = vadd.f32 %v280_v8, %v251_v59 }
  0x91   : > { %v652_v29 = vadd.f32 %v280_v8, %v252_v60  ;;  %v654_v30 = vadd.f32 %v280_v8, %v253_v61  ;;  %v656_v31 = vadd.f32 %v280_v8, %v254_v62  ;;  %v658_v32 = vadd.f32 %v280_v8, %v255_v63 }
  0x92   : > { %v660_v33 = vadd.f32 %v280_v8, %v256_v0  ;;  %v662_v34 = vadd.f32 %v280_v8, %v257_v1  ;;  %v664_v35 = vadd.f32 %v280_v8, %v258_v2  ;;  %v666_v36 = vadd.f32 %v280_v8, %v259_v3 }
  0x93   : > { %v668_v37 = vadd.f32 %v280_v8, %v260_v4  ;;  %v670_v38 = vadd.f32 %v280_v8, %v261_v5  ;;  %v672_v39 = vadd.f32 %v280_v8, %v262_v6  ;;  %v674_v40 = vadd.f32 %v280_v8, %v263_v7 }
  0x94   : > { %v676_v41 = vadd.f32 %v280_v8, %v264_v9  ;;  %v678_v42 = vadd.f32 %v280_v8, %v265_v10  ;;  %v680_v43 = vadd.f32 %v280_v8, %v266_v11  ;;  %v682_v44 = vadd.f32 %v280_v8, %v267_v12 }
  0x95   : > { %v684_v45 = vadd.f32 %v280_v8, %v268_v13  ;;  %v686_v46 = vadd.f32 %v280_v8, %v269_v14  ;;  %v688_v47 = vadd.f32 %v280_v8, %v270_v15  ;;  %v690_v48 = vadd.f32 %v280_v8, %v271_v16 }
  0x96   : > { %v692_v49 = vadd.f32 %v280_v8, %v272_v17  ;;  %v694_v50 = vadd.f32 %v280_v8, %v273_v18  ;;  %v696_v51 = vadd.f32 %v280_v8, %v274_v19  ;;  %v698_v52 = vadd.f32 %v280_v8, %v275_v20 }
  0x97   : > { %v314_v53 = vmax.f32 %v636_v21, 0.0  ;;  %v315_v54 = vmax.f32 %v638_v22, 0.0  ;;  %v316_v55 = vmax.f32 %v640_v23, 0.0  ;;  %v317_v56 = vmax.f32 %v642_v24, 0.0 }
  0x98   : > { %v318_v57 = vmax.f32 %v644_v25, 0.0  ;;  %v319_v58 = vmax.f32 %v646_v26, 0.0  ;;  %v320_v59 = vmax.f32 %v648_v27, 0.0  ;;  %v321_v60 = vmax.f32 %v650_v28, 0.0 }
  0x99   : > { %v322_v61 = vmax.f32 %v652_v29, 0.0  ;;  %v323_v62 = vmax.f32 %v654_v30, 0.0  ;;  %v324_v63 = vmax.f32 %v656_v31, 0.0  ;;  %v325_v0 = vmax.f32 %v658_v32, 0.0 }
  0x9a   : > { %v326_v1 = vmax.f32 %v660_v33, 0.0  ;;  %v327_v2 = vmax.f32 %v662_v34, 0.0  ;;  %v328_v3 = vmax.f32 %v664_v35, 0.0  ;;  %v329_v4 = vmax.f32 %v666_v36, 0.0 }
  0x9b   : > { %v330_v5 = vmax.f32 %v668_v37, 0.0  ;;  %v331_v6 = vmax.f32 %v670_v38, 0.0  ;;  %v332_v7 = vmax.f32 %v672_v39, 0.0  ;;  %v333_v8 = vmax.f32 %v674_v40, 0.0 }
  0x9c   : > { %v334_v9 = vmax.f32 %v676_v41, 0.0  ;;  %v335_v10 = vmax.f32 %v678_v42, 0.0  ;;  %v336_v11 = vmax.f32 %v680_v43, 0.0  ;;  %v337_v12 = vmax.f32 %v682_v44, 0.0 }
  0x9d   : > { %v338_v13 = vmax.f32 %v684_v45, 0.0  ;;  %v339_v14 = vmax.f32 %v686_v46, 0.0  ;;  %v340_v15 = vmax.f32 %v688_v47, 0.0  ;;  %v341_v16 = vmax.f32 %v690_v48, 0.0 }
  0x9e   : > { %v342_v17 = vmax.f32 %v692_v49, 0.0  ;;  %v343_v18 = vmax.f32 %v694_v50, 0.0  ;;  %v344_v19 = vmax.f32 %v696_v51, 0.0  ;;  %v345_v20 = vmax.f32 %v698_v52, 0.0 }
  0x9f   : > { %v346_v21 = vpack.c.bf16 %v314_v53, %v314_v53  ;;  %v347_v22 = vpack.c.bf16 %v315_v54, %v315_v54  ;;  %v348_v23 = vpack.c.bf16 %v316_v55, %v316_v55  ;;  %v349_v24 = vpack.c.bf16 %v317_v56, %v317_v56 }
  0xa0   : > { %v350_v25 = vpack.c.bf16 %v318_v57, %v318_v57  ;;  %v351_v26 = vpack.c.bf16 %v319_v58, %v319_v58  ;;  %v352_v27 = vpack.c.bf16 %v320_v59, %v320_v59  ;;  %v353_v28 = vpack.c.bf16 %v321_v60, %v321_v60 }
  0xa1   : > { %v354_v29 = vpack.c.bf16 %v322_v61, %v322_v61  ;;  %v355_v30 = vpack.c.bf16 %v323_v62, %v323_v62  ;;  %v356_v31 = vpack.c.bf16 %v324_v63, %v324_v63  ;;  %v357_v32 = vpack.c.bf16 %v325_v0, %v325_v0  ;;  %379 = vst.msk [vmem:[%s733_s25] sm:$0xf] %vm378_vm0, %v346_v21 }
  0xa2   : > { %380 = vst.msk [vmem:[%s733_s25 + $0x4] sm:$0xf] %vm378_vm0, %v347_v22  ;;  %381 = vst.msk [vmem:[%s733_s25 + $0x8] sm:$0xf] %vm378_vm0, %v348_v23  ;;  %v358_v33 = vpack.c.bf16 %v326_v1, %v326_v1  ;;  %v359_v34 = vpack.c.bf16 %v327_v2, %v327_v2  ;;  %v360_v35 = vpack.c.bf16 %v328_v3, %v328_v3 }
  0xa3   : > { %382 = vst.msk [vmem:[%s733_s25 + $0xc] sm:$0xf] %vm378_vm0, %v349_v24  ;;  %v361_v36 = vpack.c.bf16 %v329_v4, %v329_v4  ;;  %383 = vst.msk [vmem:[%s733_s25 + $0x10] sm:$0xf] %vm378_vm0, %v350_v25  ;;  %v362_v37 = vpack.c.bf16 %v330_v5, %v330_v5  ;;  %v363_v38 = vpack.c.bf16 %v331_v6, %v331_v6 }
  0xa4   : > { %384 = vst.msk [vmem:[%s733_s25 + $0x14] sm:$0xf] %vm378_vm0, %v351_v26  ;;  %385 = vst.msk [vmem:[%s733_s25 + $0x18] sm:$0xf] %vm378_vm0, %v352_v27  ;;  %v364_v39 = vpack.c.bf16 %v332_v7, %v332_v7  ;;  %v365_v40 = vpack.c.bf16 %v333_v8, %v333_v8  ;;  %v366_v41 = vpack.c.bf16 %v334_v9, %v334_v9 }
  0xa5   : > { %386 = vst.msk [vmem:[%s733_s25 + $0x1c] sm:$0xf] %vm378_vm0, %v353_v28  ;;  %387 = vst.msk [vmem:[%s733_s25 + $0x20] sm:$0xf] %vm378_vm0, %v354_v29  ;;  %v367_v42 = vpack.c.bf16 %v335_v10, %v335_v10  ;;  %v368_v43 = vpack.c.bf16 %v336_v11, %v336_v11  ;;  %v369_v44 = vpack.c.bf16 %v337_v12, %v337_v12 }
  0xa6   : > { %388 = vst.msk [vmem:[%s733_s25 + $0x24] sm:$0xf] %vm378_vm0, %v355_v30  ;;  %389 = vst.msk [vmem:[%s733_s25 + $0x28] sm:$0xf] %vm378_vm0, %v356_v31  ;;  %v370_v45 = vpack.c.bf16 %v338_v13, %v338_v13  ;;  %v371_v46 = vpack.c.bf16 %v339_v14, %v339_v14  ;;  %v372_v47 = vpack.c.bf16 %v340_v15, %v340_v15 }
  0xa7   : > { %390 = vst.msk [vmem:[%s733_s25 + $0x2c] sm:$0xf] %vm378_vm0, %v357_v32  ;;  %391 = vst.msk [vmem:[%s733_s25 + $0x30] sm:$0xf] %vm378_vm0, %v358_v33  ;;  %v373_v48 = vpack.c.bf16 %v341_v16, %v341_v16  ;;  %v374_v49 = vpack.c.bf16 %v342_v17, %v342_v17  ;;  %v375_v50 = vpack.c.bf16 %v343_v18, %v343_v18 }
  0xa8   : > { %392 = vst.msk [vmem:[%s733_s25 + $0x34] sm:$0xf] %vm378_vm0, %v359_v34  ;;  %393 = vst.msk [vmem:[%s733_s25 + $0x38] sm:$0xf] %vm378_vm0, %v360_v35  ;;  %v376_v51 = vpack.c.bf16 %v344_v19, %v344_v19  ;;  %v377_v52 = vpack.c.bf16 %v345_v20, %v345_v20 }
  0xa9   : > { %394 = vst.msk [vmem:[%s733_s25 + $0x3c] sm:$0xf] %vm378_vm0, %v361_v36  ;;  %395 = vst.msk [vmem:[%s733_s25 + $0x40] sm:$0xf] %vm378_vm0, %v362_v37 }
  0xaa   : > { %396 = vst.msk [vmem:[%s733_s25 + $0x44] sm:$0xf] %vm378_vm0, %v363_v38  ;;  %397 = vst.msk [vmem:[%s733_s25 + $0x48] sm:$0xf] %vm378_vm0, %v364_v39 }
  0xab   : > { %398 = vst.msk [vmem:[%s733_s25 + $0x4c] sm:$0xf] %vm378_vm0, %v365_v40  ;;  %399 = vst.msk [vmem:[%s733_s25 + $0x50] sm:$0xf] %vm378_vm0, %v366_v41 }
  0xac   : > { %400 = vst.msk [vmem:[%s733_s25 + $0x54] sm:$0xf] %vm378_vm0, %v367_v42  ;;  %401 = vst.msk [vmem:[%s733_s25 + $0x58] sm:$0xf] %vm378_vm0, %v368_v43 }
  0xad   : > { %402 = vst.msk [vmem:[%s733_s25 + $0x5c] sm:$0xf] %vm378_vm0, %v369_v44  ;;  %403 = vst.msk [vmem:[%s733_s25 + $0x60] sm:$0xf] %vm378_vm0, %v370_v45 }
  0xae   : > { %404 = vst.msk [vmem:[%s733_s25 + $0x64] sm:$0xf] %vm378_vm0, %v371_v46  ;;  %405 = vst.msk [vmem:[%s733_s25 + $0x68] sm:$0xf] %vm378_vm0, %v372_v47 }
  0xaf   : > { %406 = vst.msk [vmem:[%s733_s25 + $0x6c] sm:$0xf] %vm378_vm0, %v373_v48  ;;  %407 = vst.msk [vmem:[%s733_s25 + $0x70] sm:$0xf] %vm378_vm0, %v374_v49 }
  0xb0   : > { %408 = vst.msk [vmem:[%s733_s25 + $0x74] sm:$0xf] %vm378_vm0, %v375_v50  ;;  %409 = vst.msk [vmem:[%s733_s25 + $0x78] sm:$0xf] %vm378_vm0, %v376_v51 }
  0xb1   : > { %410 = vst.msk [vmem:[%s733_s25 + $0x7c] sm:$0xf] %vm378_vm0, %v377_v52 }
  0xb2 PF: > { %s13_s12 = sadd.s32 1, %s573_s12  }
  0xb3   : > { %p10_p4 = scmp.ge.s32.totalorder %s13_s12, 4  }
  0xb5   :  { %12 = sbr.rel (!%p10_p4) target bundleno = 1 (0x1), region = 62 }

// kernel: generator_forward.15
= control target key start
LH: loop header
LB: loop body
LE: loop exit
PB: predicated region body
PF: predicated region fallthrough
CT: control target
= control target key end

     0   :  { %s1519_s18 = smov 0   ;;  %s1689_s0 = inlined_call_operand.vmem [shape: bf16[16,8,16], index: 0, kind: input, shape index: {}]   ;;  %s1690_s1 = inlined_call_operand.vmem [shape: bf16[18,16,36], index: 1, kind: input, shape index: {}, may-alias: {1,2,3}]   ;;  %s1691_s2 = inlined_call_operand.vmem [shape: bf16[18,16,36], index: 2, kind: input, shape index: {}, may-alias: {1,2,3}]   ;;  %s1692_s3 = inlined_call_operand.vmem [shape: bf16[18,16,36], index: 3, kind: input, shape index: {}, may-alias: {1,2,3}]   ;;  %s1693_s4 = inlined_call_operand.vmem [shape: bf16[32,2,8,32], index: 4, kind: output, shape index: {0}]   ;;  %s1694_s5 = inlined_call_operand.vmem [shape: f32[16,8,2], index: 5, kind: output, shape index: {1}]  }
   0x1 LB: > { %s1525_s19 = sadd.s32 4294967295, %s1483_s18   ;;  %p1232_p0 = scmp.ge.s32.totalorder %s1483_s18, 1  ;;  %s1483_s18 = sphi %s1519_s18, %s16_s18  }
   0x2   : > { %p218_p1 = scmp.lt.s32.totalorder %s1483_s18, 17 }
   0x4   : > { %p219_p2 = pnand %p1232_p0, %p218_p1 }
   0x5   : > { %p263_p3 = scmp.lt.s32.totalorder (!%p219_p2), %s1525_s19, 17  ;;  %s268_s20 = sadd.s32 (!%p219_p2), 1, %s1525_s19  ;;  %v1485_v0 = vmov (!%p219_p2), 0.0   ;;  %vm1486_vm0 = vmmov (!%p219_p2), 0   ;;  %v1243_v5 = vld [vmem:[%s1689_s0 + $0x4] sm:$0xf] (!%p219_p2) }
   0x6   : > { %222 = sbr.rel (%p219_p2) target bundleno = 580 (0x244), region = 36  ;;  %1318 = vmatprep.subr.bf16.mxu0 (!%p219_p2), %v1485_v0  ;;  %1320 = vmatprep.mubr.msk.bf16.mxu0 (!%p219_p2), %vm1486_vm0, %v1485_v0  ;;  %p269_p4 = scmp.lt.s32.totalorder (!%p219_p2), %s268_s20, 17  ;;  %vm311_vm1 = vcmask (!%p219_p2), 130048   ;;  %v1253_v7 = vld [vmem:[%s1689_s0 + $0x14] sm:$0xf] (!%p219_p2)  ;;  %vm503_vm2 = vcmask (!%p219_p2), 261120  }
   0x7   : > { %1342 = vmatprep.subr.bf16.mxu1 (!%p219_p2), %v1485_v0  ;;  %1344 = vmatprep.mubr.msk.bf16.mxu1 (!%p219_p2), %vm1486_vm0, %v1485_v0  ;;  %s275_s22 = sadd.s32 (!%p219_p2), 2, %s1525_s19  ;;  %s1487_s27 = smov (!%p219_p2), 126   ;;  %v300_v8 = vld [vmem:[%s1689_s0] sm:$0xf] (!%p219_p2)  ;;  %v1252_v9 = vld [vmem:[%s1689_s0 + $0x10] sm:$0xf] (!%p219_p2) }
   0x8   : > { %p276_p5 = scmp.lt.s32.totalorder (!%p219_p2), %s275_s22, 17  ;;  %s1488_s11 = smov (!%p219_p2), 124   ;;  %v1247_v11 = vld [vmem:[%s1689_s0 + $0x8] sm:$0xf] (!%p219_p2)  ;;  %v1256_v12 = vld [vmem:[%s1689_s0 + $0x18] sm:$0xf] (!%p219_p2) }
   0x9   : > { %v1250_v14 = vld [vmem:[%s1689_s0 + $0xc] sm:$0xf] (!%p219_p2)  ;;  %v1258_v15 = vld [vmem:[%s1689_s0 + $0x1c] sm:$0xf] (!%p219_p2)  ;;  %v1262_v16 = vld [vmem:[%s1689_s0 + $0x24] sm:$0xf] (!%p219_p2) }
   0xa   : > { %v1272_v17 = vld [vmem:[%s1689_s0 + $0x34] sm:$0xf] (!%p219_p2)  ;;  %v1261_v18 = vld [vmem:[%s1689_s0 + $0x20] sm:$0xf] (!%p219_p2)  ;;  %v1271_v19 = vld [vmem:[%s1689_s0 + $0x30] sm:$0xf] (!%p219_p2) }
   0xb   : > { %v1265_v21 = vld [vmem:[%s1689_s0 + $0x28] sm:$0xf] (!%p219_p2)  ;;  %v1275_v22 = vld [vmem:[%s1689_s0 + $0x38] sm:$0xf] (!%p219_p2)  ;;  %v1268_v24 = vld [vmem:[%s1689_s0 + $0x2c] sm:$0xf] (!%p219_p2) }
   0xc   : > { %v1277_v25 = vld [vmem:[%s1689_s0 + $0x3c] sm:$0xf] (!%p219_p2)  ;;  %vm501_vm3 = vcmask (!%p219_p2), 257024   ;;  %p289_p7 = scmp.lt.s32.totalorder (!%p219_p2), %s1525_s19, 15  ;;  %vm1111_vm4 = vcmask (!%p219_p2), 7168   ;;  %vm1113_vm5 = vcmask (!%p219_p2), 15368  }
   0xd   : > { %s264_s21 = scalar_select %p263_p3, %s1525_s19, 17 }
   0xe   : > { %s1696_s20 = smov (!%p269_p4, %s268_s20), 17  ;;  %s1698_s22 = smov (!%p276_p5, %s275_s22), 17 }
   0xf   : > { %s1282_s23 = sshll.u32 %s264_s21, 3  ;;  %s1283_s28 = sshll.u32 %s1696_s20, 3 }
  0x10   : > { %s267_s26 = scalar_lea.vmem %s1690_s1, %s1282_s23  ;;  %s273_s6 = scalar_lea.vmem %s1691_s2, %s1283_s28 }
  0x11   : > { %v1474_v1 = vld [vmem:[%s267_s26] sm:$0xff]   ;;  %s1284_s7 = sshll.u32 %s1698_s22, 3  ;;  %s1239_s23 = sshll.u32 %s1525_s19, 1 }
  0x12   : > { %308 = vrot.lane.b32.xlu0 %v1474_v1, %s1487_s27  ;;  %v1475_v2 = vld [vmem:[%s273_s6] sm:$0xff]   ;;  %s280_s10 = scalar_lea.vmem %s1692_s3, %s1284_s7  ;;  %p283_p6 = scmp.lt.s32.totalorder %s1239_s23, 31 }
  0x13   : > { %453 = vrot.lane.b32.xlu1 %v1475_v2, %s1487_s27  ;;  %v1548_v3 = vld [vmem:[%s280_s10] sm:$0xff]   ;;  %s1702_s19 = smov (!%p289_p7, %s1525_s19), 15 }
  0x14   : > { %s1700_s23 = smov (!%p283_p6, %s1239_s23), 31  ;;  %s1242_s28 = sshll.u32 %s1702_s19, 3 }
  0x15   : > { %s1285_s24 = sshll.u32 %s1700_s23, 3  ;;  %s292_s6 = scalar_lea.vmem %s1694_s5, %s1242_s28 }
  0x16   : > { %515 = vrot.lane.b32.xlu0 %v1474_v1, %s1488_s11 }
  0x17   : > { %652 = vrot.lane.b32.xlu1 %v1475_v2, %s1488_s11 }
  0x1a   : > { %855 = vrot.lane.b32.xlu0 %v1548_v3, %s1487_s27  ;;  %s1663_s27 = scalar_lea.vmem %s1693_s4, %s1285_s24 }
  0x1b   : > { %1052 = vrot.lane.b32.xlu1 %v1548_v3, %s1488_s11 }
  0x84   : > { %v309_v4 = vpop.permute.xlu0 %308 }
  0x85   : > { %1319 = vmatpush3.bf16.msra.mxu0 %v309_v4  ;;  %v454_v10 = vpop.permute.xlu1 %453 }
  0x86   : > { %1324 = vmatprep.subr.bf16.mxu0 %v1485_v0 }
  0x88   : > { %1321 = vmatmul.mubr.msk.bf16.vlgmr.msra.gmra.mrb[0].mxu0 %vm311_vm1, %v1243_v5  ;;  %v516_v6 = vpop.permute.xlu0 %515 }
  0x89   : > { %1325 = vmatpush3.bf16.msra.mxu0 %v1474_v1  ;;  %1343 = vmatpush3.bf16.msra.mxu1 %v516_v6  ;;  %v653_v13 = vpop.permute.xlu1 %652 }
  0x8a   : > { %1348 = vmatprep.subr.bf16.mxu1 %v1485_v0  ;;  %1326 = vmatprep.mubr.msk.bf16.mxu0 %vm1486_vm0, %v1485_v0 }
  0x8b   : > { %1330 = vmatprep.subr.bf16.mxu0 %v1485_v0 }
  0x8c   : > { %1345 = vmatmul.mubr.msk.bf16.vlgmr.msra.gmra.mrb[0].mxu1 %vm311_vm1, %v1253_v7  ;;  %v856_v20 = vpop.permute.xlu0 %855 }
  0x8d   : > { %1349 = vmatpush3.bf16.msra.mxu1 %v309_v4  ;;  %1350 = vmatprep.mubr.msk.bf16.mxu1 %vm1486_vm0, %v1485_v0  ;;  %v1053_v23 = vpop.permute.xlu1 %1052 }
  0x8e   : > { %1354 = vmatprep.subr.bf16.mxu1 %v1485_v0 }
  0x94   : > { %1327 = vmatmul.mubr.msk.bf16.vlgmr.msra.gmra.mrb[0].mxu0 %vm311_vm1, %v300_v8 }
  0x95   : > { %1331 = vmatpush3.bf16.msra.mxu0 %v1475_v2  ;;  %1332 = vmatprep.mubr.msk.bf16.mxu0 %vm1486_vm0, %v1485_v0 }
  0x96   : > { %1336 = vmatprep.subr.bf16.mxu0 %v1485_v0 }
  0x98   : > { %1351 = vmatmul.mubr.msk.bf16.vlgmr.msra.gmra.mrb[0].mxu1 %vm311_vm1, %v1252_v9 }
  0x99   : > { %1355 = vmatpush3.bf16.msra.mxu1 %v454_v10  ;;  %1356 = vmatprep.mubr.msk.bf16.mxu1 %vm1486_vm0, %v1485_v0 }
  0x9a   : > { %1360 = vmatprep.subr.bf16.mxu1 %v1485_v0 }
  0xa0   : > { %1333 = vmatmul.mubr.msk.bf16.vlgmr.msra.gmra.mrb[0].mxu0 %vm311_vm1, %v1247_v11 }
  0xa1   : > { %1337 = vmatpush3.bf16.msra.mxu0 %v454_v10  ;;  %1338 = vmatprep.mubr.msk.bf16.mxu0 %vm1486_vm0, %v1485_v0 }
  0xa2   : > { %1366 = vmatprep.subr.bf16.mxu0 %v1485_v0 }
  0xa4   : > { %1357 = vmatmul.mubr.msk.bf16.vlgmr.msra.gmra.mrb[0].mxu1 %vm311_vm1, %v1256_v12 }
  0xa5   : > { %1361 = vmatpush3.bf16.msra.mxu1 %v653_v13  ;;  %1362 = vmatprep.mubr.msk.bf16.mxu1 %vm1486_vm0, %v1485_v0 }
  0xa6   : > { %1390 = vmatprep.subr.bf16.mxu1 %v1485_v0 }
  0xac   : > { %1339 = vmatmul.mubr.msk.bf16.vlgmr.msra.gmra.mrb[0].mxu0 %vm311_vm1, %v1250_v14 }
  0xad   : > { %1367 = vmatpush3.bf16.msra.mxu0 %v454_v10  ;;  %1368 = vmatprep.mubr.msk.bf16.mxu0 %vm1486_vm0, %v1485_v0 }
  0xae   : > { %1372 = vmatprep.subr.bf16.mxu0 %v1485_v0 }
  0xb0   : > { %1363 = vmatmul.mubr.msk.bf16.vlgmr.msra.gmra.mrb[0].mxu1 %vm311_vm1, %v1258_v15 }
  0xb1   : > { %1391 = vmatpush3.bf16.msra.mxu1 %v653_v13  ;;  %1392 = vmatprep.mubr.msk.bf16.mxu1 %vm1486_vm0, %v1485_v0 }
  0xb2   : > { %1396 = vmatprep.subr.bf16.mxu1 %v1485_v0 }
  0xb4   : > { %1369 = vmatmul.mubr.msk.bf16.vlgmr.msra.gmra.mrb[4].mxu0 %vm311_vm1, %v1262_v16 }
  0xb5   : > { %1373 = vmatpush3.bf16.msra.mxu0 %v1475_v2  ;;  %1374 = vmatprep.mubr.msk.bf16.mxu0 %vm1486_vm0, %v1485_v0 }
  0xb6   : > { %1378 = vmatprep.subr.bf16.mxu0 %v1485_v0 }
  0xb8   : > { %1393 = vmatmul.mubr.msk.bf16.vlgmr.msra.gmra.mrb[4].mxu1 %vm311_vm1, %v1272_v17 }
  0xb9   : > { %1397 = vmatpush3.bf16.msra.mxu1 %v454_v10  ;;  %1398 = vmatprep.mubr.msk.bf16.mxu1 %vm1486_vm0, %v1485_v0 }
  0xba   : > { %1402 = vmatprep.subr.bf16.mxu1 %v1485_v0 }
  0xc0   : > { %1375 = vmatmul.mubr.msk.bf16.vlgmr.msra.gmra.mrb[4].mxu0 %vm311_vm1, %v1261_v18 }
  0xc1   : > { %1379 = vmatpush3.bf16.msra.mxu0 %v1548_v3  ;;  %1380 = vmatprep.mubr.msk.bf16.mxu0 %vm1486_vm0, %v1485_v0 }
  0xc2   : > { %1384 = vmatprep.subr.bf16.mxu0 %v1485_v0 }
  0xc4   : > { %1399 = vmatmul.mubr.msk.bf16.vlgmr.msra.gmra.mrb[4].mxu1 %vm311_vm1, %v1271_v19 }
  0xc5   : > { %1403 = vmatpush3.bf16.msra.mxu1 %v856_v20  ;;  %1404 = vmatprep.mubr.msk.bf16.mxu1 %vm1486_vm0, %v1485_v0 }
  0xc6   : > { %1408 = vmatprep.subr.bf16.mxu1 %v1485_v0 }
  0xcc   : > { %1381 = vmatmul.mubr.msk.bf16.vlgmr.msra.gmra.mrb[4].mxu0 %vm311_vm1, %v1265_v21 }
  0xcd   : > { %1385 = vmatpush3.bf16.msra.mxu0 %v856_v20  ;;  %1386 = vmatprep.mubr.msk.bf16.mxu0 %vm1486_vm0, %v1485_v0 }
  0xd0   : > { %1405 = vmatmul.mubr.msk.bf16.vlgmr.msra.gmra.mrb[4].mxu1 %vm311_vm1, %v1275_v22 }
  0xd1   : > { %1409 = vmatpush3.bf16.msra.mxu1 %v1053_v23  ;;  %1410 = vmatprep.mubr.msk.bf16.mxu1 %vm1486_vm0, %v1485_v0 }
  0xd8   : > { %1387 = vmatmul.mubr.msk.bf16.vlgmr.msra.gmra.mrb[4].mxu0 %vm311_vm1, %v1268_v24 }
  0xdc   : > { %1411 = vmatmul.mubr.msk.bf16.vlgmr.msra.gmra.mrb[4].mxu1 %vm311_vm1, %v1277_v25 }
 0x17f   : > { %v493_v26 = vpop.f32.mrb[0].mxu0 }
 0x180   : > { %v500_v27 = vpack.c.bf16 %v493_v26, %v493_v26  ;;  %v1340_v28 = vpop.f32.mrb[1].mxu0  ;;  %v504_v29 = vsel %vm503_vm2, %v493_v26, 0.0  ;;  %v507_v30 = vmul.f32 %v493_v26, %v493_v26 }
 0x181   : > { %505 = vadd.xlane.f32.xlu0 %v504_v29  ;;  %v496_v31 = vpop.f32.mrb[2].mxu0 }
 0x182   : > { %502 = vst.msk [vmem:[%s1663_s27] sm:$0xf] %vm501_vm3, %v500_v27  ;;  %v1341_v32 = vpop.f32.mrb[3].mxu0  ;;  %v508_v33 = vsel %vm503_vm2, %v507_v30, 0.0 }
 0x183   : > { %509 = vadd.xlane.f32.xlu1 %v508_v33  ;;  %v692_v34 = vpop.f32.mrb[0].mxu1 }
 0x184   : > { %v699_v35 = vpack.c.bf16 %v692_v34, %v692_v34  ;;  %v1364_v36 = vpop.f32.mrb[1].mxu1  ;;  %v702_v37 = vsel %vm503_vm2, %v692_v34, 0.0  ;;  %v705_v38 = vmul.f32 %v692_v34, %v692_v34 }
 0x185   : > { %703 = vadd.xlane.f32.xlu0 %v702_v37  ;;  %v695_v39 = vpop.f32.mrb[2].mxu1 }
 0x186   : > { %1260 = vst.msk [vmem:[%s1663_s27 + $0x4] sm:$0xf] %vm501_vm3, %v699_v35  ;;  %v1365_v40 = vpop.f32.mrb[3].mxu1  ;;  %v706_v41 = vsel %vm503_vm2, %v705_v38, 0.0 }
 0x189   : > { %707 = vadd.xlane.f32.xlu0 %v706_v41 }
 0x1ab   : > { %v895_v42 = vpop.f32.mrb[4].mxu0 }
 0x1ac   : > { %v902_v43 = vpack.c.bf16 %v895_v42, %v895_v42  ;;  %v1388_v44 = vpop.f32.mrb[5].mxu0  ;;  %v905_v45 = vsel %vm503_vm2, %v895_v42, 0.0  ;;  %v908_v46 = vmul.f32 %v895_v42, %v895_v42 }
 0x1ad   : > { %906 = vadd.xlane.f32.xlu1 %v905_v45  ;;  %v898_v47 = vpop.f32.mrb[6].mxu0 }
 0x1ae   : > { %1270 = vst.msk [vmem:[%s1663_s27 + $0x8] sm:$0xf] %vm501_vm3, %v902_v43  ;;  %v1389_v48 = vpop.f32.mrb[7].mxu0  ;;  %v909_v49 = vsel %vm503_vm2, %v908_v46, 0.0 }
 0x1af   : > { %v1092_v50 = vpop.f32.mrb[4].mxu1  ;;  %910 = vadd.xlane.f32.xlu0 %v909_v49 }
 0x1b0   : > { %v1099_v51 = vpack.c.bf16 %v1092_v50, %v1092_v50  ;;  %v1412_v52 = vpop.f32.mrb[5].mxu1  ;;  %v1102_v53 = vsel %vm503_vm2, %v1092_v50, 0.0  ;;  %v1105_v54 = vmul.f32 %v1092_v50, %v1092_v50 }
 0x1b1   : > { %v1095_v55 = vpop.f32.mrb[6].mxu1  ;;  %1103 = vadd.xlane.f32.xlu1 %v1102_v53 }
 0x1b2   : > { %1279 = vst.msk [vmem:[%s1663_s27 + $0xc] sm:$0xf] %vm501_vm3, %v1099_v51  ;;  %v1413_v56 = vpop.f32.mrb[7].mxu1  ;;  %v1106_v57 = vsel %vm503_vm2, %v1105_v54, 0.0 }
 0x1b3   : > { %1107 = vadd.xlane.f32.xlu0 %v1106_v57 }
 0x20e   : > { %v506_v58 = vpop.xlane.xlu0 %505 }
 0x210   : > { %v510_v60 = vpop.xlane.xlu1 %509 }
 0x212   : > { %v704_v59 = vpop.xlane.xlu0 %703 }
 0x213   : > { %v709_v63 = vadd.f32 %v704_v59, %v506_v58 }
 0x216   : > { %v708_v61 = vpop.xlane.xlu0 %707 }
 0x217   : > { %v710_v1 = vadd.f32 %v708_v61, %v510_v60 }
 0x23a   : > { %v907_v62 = vpop.xlane.xlu1 %906 }
 0x23b   : > { %v912_v2 = vadd.f32 %v907_v62, %v709_v63 }
 0x23c   : > { %v911_v0 = vpop.xlane.xlu0 %910 }
 0x23d   : > { %v913_v4 = vadd.f32 %v911_v0, %v710_v1 }
 0x23e   : > { %v1104_v3 = vpop.xlane.xlu1 %1103 }
 0x23f   : > { %v1109_v5 = vadd.f32 %v1104_v3, %v912_v2 }
 0x240   : > { %v1108_v6 = vpop.xlane.xlu0 %1107 }
 0x241   : > { %1112 = vst.msk [vmem:[%s292_s6] sm:$0xff] %vm1111_vm4, %v1109_v5  ;;  %v1110_v7 = vadd.f32 %v1108_v6, %v913_v4 }
 0x243   : > { %1114 = vst.msk [vmem:[%s292_s6] sm:$0xff] %vm1113_vm5, %v1110_v7 }
 0x244 PF: > { %s16_s18 = sadd.s32 1, %s1483_s18  }
 0x245   : > { %p13_p8 = scmp.ge.s32.totalorder %s16_s18, 18  }
 0x247   :  { %15 = sbr.rel (!%p13_p8) target bundleno = 1 (0x1), region = 102 }

// kernel: generator_forward.17
= control target key start
LH: loop header
LB: loop body
LE: loop exit
PB: predicated region body
PF: predicated region fallthrough
CT: control target
= control target key end

     0   :  { %s1424_s18 = smov 0   ;;  %s1602_s0 = inlined_call_operand.vmem [shape: bf16[16,3,8], index: 0, kind: input, shape index: {}]   ;;  %s1603_s1 = inlined_call_operand.vmem [shape: bf16[34,8,68], index: 1, kind: input, shape index: {}, may-alias: {1,2,3}]   ;;  %s1604_s2 = inlined_call_operand.vmem [shape: bf16[34,8,68], index: 2, kind: input, shape index: {}, may-alias: {1,2,3}]   ;;  %s1605_s3 = inlined_call_operand.vmem [shape: bf16[34,8,68], index: 3, kind: input, shape index: {}, may-alias: {1,2,3}]   ;;  %s1606_s4 = inlined_call_operand.vmem [shape: f32[1,3,1], index: 4, kind: input, shape index: {}]   ;;  %s1607_s5 = inlined_call_operand.vmem [shape: f32[64,2,3,64], index: 5, kind: output, shape index: {}]  }
   0x1 LB: > { %s1430_s19 = sadd.s32 4294967295, %s1387_s18   ;;  %p1180_p0 = scmp.ge.s32.totalorder %s1387_s18, 1  ;;  %s1387_s18 = sphi %s1424_s18, %s15_s18  }
   0x2   : > { %p212_p1 = scmp.lt.s32.totalorder %s1387_s18, 33 }
   0x4   : > { %p213_p2 = pnand %p1180_p0, %p212_p1 }
   0x5   : > { %p250_p3 = scmp.lt.s32.totalorder (!%p213_p2), %s1430_s19, 33  ;;  %s254_s20 = sadd.s32 (!%p213_p2), 1, %s1430_s19  ;;  %v1389_v0 = vmov (!%p213_p2), 0.0   ;;  %vm1390_vm0 = vmmov (!%p213_p2), 0   ;;  %vm289_vm1 = vcmask (!%p213_p2), 1043456   ;;  %vm285_vm2 = vcmask (!%p213_p2), 64512  }
   0x6   : > { %216 = sbr.rel (%p213_p2) target bundleno = 425 (0x1a9), region = 40  ;;  %1265 = vmatprep.subr.bf16.mxu1 (!%p213_p2), %v1389_v0  ;;  %1267 = vmatprep.mubr.msk.bf16.mxu1 (!%p213_p2), %vm1390_vm0, %v1389_v0  ;;  %p255_p4 = scmp.lt.s32.totalorder (!%p213_p2), %s254_s20, 33  ;;  %v277_v4 = vld [vmem:[%s1602_s0] sm:$0x3] (!%p213_p2)  ;;  %v1393_v11 = vmov (!%p213_p2), 0   ;;  %vm490_vm3 = vcmask (!%p213_p2), 518144  }
   0x7   : > { %1259 = vmatprep.subr.bf16.mxu0 (!%p213_p2), %v1389_v0  ;;  %1261 = vmatprep.mubr.msk.bf16.mxu0 (!%p213_p2), %vm1390_vm0, %v1389_v0  ;;  %s260_s22 = sadd.s32 (!%p213_p2), 2, %s1430_s19  ;;  %s1391_s30 = smov (!%p213_p2), 126   ;;  %v482_v9 = vld [vmem:[%s1606_s4] sm:$0x7] (!%p213_p2)  ;;  %v1193_v20 = vld [vmem:[%s1602_s0 + $0x6] sm:$0x3] (!%p213_p2) }
   0x8   : > { %p261_p5 = scmp.lt.s32.totalorder (!%p213_p2), %s260_s22, 33  ;;  %s1392_s9 = smov (!%p213_p2), 124   ;;  %v684_v10 = vld [vmem:[%s1606_s4] sm:$0x7] (!%p213_p2)  ;;  %1368 = vset.pattern.permute.xlu0 (!%p213_p2), %v1393_v11  ;;  %1369 = vset.pattern.permute.xlu1 (!%p213_p2), %v1393_v11  ;;  %v1191_v22 = vld [vmem:[%s1602_s0 + $0x4] sm:$0x3] (!%p213_p2) }
   0x9   : > { %v887_v12 = vld [vmem:[%s1606_s4] sm:$0x7] (!%p213_p2)  ;;  %v1196_v25 = vld [vmem:[%s1602_s0 + $0x8] sm:$0x3] (!%p213_p2)  ;;  %v1197_v27 = vld [vmem:[%s1602_s0 + $0xa] sm:$0x3] (!%p213_p2) }
   0xa   : > { %v1084_v13 = vld [vmem:[%s1606_s4] sm:$0x7] (!%p213_p2)  ;;  %v1202_v28 = vld [vmem:[%s1602_s0 + $0xe] sm:$0x3] (!%p213_p2)  ;;  %v1200_v29 = vld [vmem:[%s1602_s0 + $0xc] sm:$0x3] (!%p213_p2) }
   0xb   : > { %v1187_v16 = vld [vmem:[%s1602_s0 + $0x2] sm:$0x3] (!%p213_p2)  ;;  %v1205_v31 = vld [vmem:[%s1602_s0 + $0x10] sm:$0x3] (!%p213_p2)  ;;  %v1206_v33 = vld [vmem:[%s1602_s0 + $0x12] sm:$0x3] (!%p213_p2) }
   0xc   : > { %v1211_v35 = vld [vmem:[%s1602_s0 + $0x16] sm:$0x3] (!%p213_p2)  ;;  %v1209_v36 = vld [vmem:[%s1602_s0 + $0x14] sm:$0x3] (!%p213_p2)  ;;  %v1215_v38 = vld [vmem:[%s1602_s0 + $0x18] sm:$0x3] (!%p213_p2) }
   0xd   : > { %s251_s21 = scalar_select %p250_p3, %s1430_s19, 33  ;;  %v1216_v40 = vld [vmem:[%s1602_s0 + $0x1a] sm:$0x3]  ;;  %v1221_v41 = vld [vmem:[%s1602_s0 + $0x1e] sm:$0x3] }
   0xe   : > { %s1609_s20 = smov (!%p255_p4, %s254_s20), 33  ;;  %s1611_s22 = smov (!%p261_p5, %s260_s22), 33  ;;  %v1219_v42 = vld [vmem:[%s1602_s0 + $0x1c] sm:$0x3] }
   0xf   : > { %s1181_s23 = sshll.u32 %s251_s21, 2  ;;  %s1182_s27 = sshll.u32 %s1609_s20, 2 }
  0x10   : > { %s253_s26 = scalar_lea.vmem %s1603_s1, %s1181_s23  ;;  %s258_s8 = scalar_lea.vmem %s1604_s2, %s1182_s27 }
  0x11   : > { %v274_v1 = vld [vmem:[%s253_s26] sm:$0xf]  ;;  %s1183_s10 = sshll.u32 %s1611_s22, 2  ;;  %s1184_s6 = sshll.u32 %s1430_s19, 1 }
  0x12   : > { %v1188_v2 = vcombine.low %v274_v1, %v274_v1  ;;  %v337_v3 = vsel %vm289_vm1, %v274_v1, 0  ;;  %v275_v5 = vld [vmem:[%s258_s8] sm:$0xf]  ;;  %s264_s13 = scalar_lea.vmem %s1605_s3, %s1183_s10  ;;  %p267_p6 = scmp.lt.s32.totalorder %s1184_s6, 63 }
  0x13   : > { %1266 = vmatpush3.bf16.msra.mxu1 %v337_v3  ;;  %v1194_v6 = vcombine.low %v275_v5, %v275_v5  ;;  %v1458_v7 = vld [vmem:[%s264_s13] sm:$0xf]  ;;  %v385_v17 = vsel %vm289_vm1, %v275_v5, 0 }
  0x14   : > { %283 = vrot.lane.b32.xlu0 %v1188_v2, %s1391_s30  ;;  %496 = vrot.lane.b32.xlu1 %v1188_v2, %s1392_s9  ;;  %v1212_v8 = vcombine.low %v1458_v7, %v1458_v7  ;;  %v790_v34 = vsel %vm289_vm1, %v1458_v7, 0  ;;  %s1613_s6 = smov (!%p267_p6, %s1184_s6), 63 }
  0x15   : > { %1277 = vmatprep.subr.bf16.mxu1 %v1389_v0  ;;  %s1226_s7 = sshll.u32 %s1613_s6, 3 }
  0x16   : > { %1268 = vmatmul.mubr.msk.bf16.vlgmr.msra.gmra.mrb[0].mxu1 %vm285_vm2, %v277_v4 }
  0x17   : > { %1279 = vmatprep.mubr.msk.bf16.mxu1 %vm1390_vm0, %v1389_v0 }
  0x18   : > { %433 = vrot.lane.b32.xlu0 %v1194_v6, %s1391_s30  ;;  %635 = vrot.lane.b32.xlu1 %v1194_v6, %s1392_s9 }
  0x1c   : > { %838 = vrot.lane.b32.xlu0 %v1212_v8, %s1391_s30  ;;  %1035 = vrot.lane.b32.xlu1 %v1212_v8, %s1392_s9  ;;  %s1589_s9 = scalar_lea.vmem %s1607_s5, %s1226_s7 }
  0x20   : > { %485 = vperm.xlu0 %1368, %v482_v9   ;;  %687 = vperm.xlu1 %1369, %v684_v10  }
  0x24   : > { %890 = vperm.xlu1 %1369, %v887_v12   ;;  %1087 = vperm.xlu0 %1368, %v1084_v13  }
  0x86   : > { %v284_v14 = vpop.permute.xlu0 %283  ;;  %v497_v21 = vpop.permute.xlu1 %496 }
  0x87   : > { %v291_v15 = vsel %vm289_vm1, %v284_v14, 0  ;;  %v502_v23 = vsel %vm289_vm1, %v497_v21, 0 }
  0x88   : > { %1260 = vmatpush3.bf16.msra.mxu0 %v291_v15 }
  0x89   : > { %1271 = vmatprep.subr.bf16.mxu0 %v1389_v0 }
  0x8a   : > { %v434_v18 = vpop.permute.xlu0 %433  ;;  %v636_v24 = vpop.permute.xlu1 %635 }
  0x8b   : > { %v439_v19 = vsel %vm289_vm1, %v434_v18, 0  ;;  %1262 = vmatmul.mubr.msk.bf16.vlgmr.msra.gmra.mrb[0].mxu0 %vm285_vm2, %v1187_v16  ;;  %v641_v26 = vsel %vm289_vm1, %v636_v24, 0 }
  0x8c   : > { %1272 = vmatpush3.bf16.msra.mxu0 %v385_v17  ;;  %1278 = vmatpush3.bf16.msra.mxu1 %v439_v19 }
  0x8d   : > { %1289 = vmatprep.subr.bf16.mxu1 %v1389_v0  ;;  %1273 = vmatprep.mubr.msk.bf16.mxu0 %vm1390_vm0, %v1389_v0 }
  0x8e   : > { %1283 = vmatprep.subr.bf16.mxu0 %v1389_v0  ;;  %v839_v30 = vpop.permute.xlu0 %838  ;;  %v1036_v37 = vpop.permute.xlu1 %1035 }
  0x8f   : > { %1280 = vmatmul.mubr.msk.bf16.vlgmr.msra.gmra.mrb[4].mxu1 %vm285_vm2, %v1193_v20  ;;  %v844_v32 = vsel %vm289_vm1, %v839_v30, 0  ;;  %v1041_v39 = vsel %vm289_vm1, %v1036_v37, 0 }
  0x90   : > { %1290 = vmatpush3.bf16.msra.mxu1 %v291_v15  ;;  %1291 = vmatprep.mubr.msk.bf16.mxu1 %vm1390_vm0, %v1389_v0 }
  0x91   : > { %1301 = vmatprep.subr.bf16.mxu1 %v1389_v0 }
  0x93   : > { %1274 = vmatmul.mubr.msk.bf16.vlgmr.msra.gmra.mrb[4].mxu0 %vm285_vm2, %v1191_v22 }
  0x94   : > { %1284 = vmatpush3.bf16.msra.mxu0 %v502_v23  ;;  %1285 = vmatprep.mubr.msk.bf16.mxu0 %vm1390_vm0, %v1389_v0 }
  0x95   : > { %1295 = vmatprep.subr.bf16.mxu0 %v1389_v0 }
  0x97   : > { %1292 = vmatmul.mubr.msk.bf16.vlgmr.msra.gmra.mrb[8].mxu1 %vm285_vm2, %v1196_v25 }
  0x98   : > { %1302 = vmatpush3.bf16.msra.mxu1 %v641_v26  ;;  %1303 = vmatprep.mubr.msk.bf16.mxu1 %vm1390_vm0, %v1389_v0 }
  0x99   : > { %1313 = vmatprep.subr.bf16.mxu1 %v1389_v0 }
  0x9b   : > { %1286 = vmatmul.mubr.msk.bf16.vlgmr.msra.gmra.mrb[8].mxu0 %vm285_vm2, %v1197_v27 }
  0x9c   : > { %1296 = vmatpush3.bf16.msra.mxu0 %v439_v19  ;;  %1297 = vmatprep.mubr.msk.bf16.mxu0 %vm1390_vm0, %v1389_v0 }
  0x9d   : > { %1307 = vmatprep.subr.bf16.mxu0 %v1389_v0 }
  0x9f   : > { %1304 = vmatmul.mubr.msk.bf16.vlgmr.msra.gmra.mrb[12].mxu1 %vm285_vm2, %v1202_v28  ;;  %v486_v60 = vpop.permute.xlu0 %485  ;;  %v688_v18 = vpop.permute.xlu1 %687 }
  0xa0   : > { %1314 = vmatpush3.bf16.msra.mxu1 %v385_v17  ;;  %1315 = vmatprep.mubr.msk.bf16.mxu1 %vm1390_vm0, %v1389_v0 }
  0xa1   : > { %1325 = vmatprep.subr.bf16.mxu1 %v1389_v0 }
  0xa3   : > { %1298 = vmatmul.mubr.msk.bf16.vlgmr.msra.gmra.mrb[12].mxu0 %vm285_vm2, %v1200_v29 }
  0xa4   : > { %1308 = vmatpush3.bf16.msra.mxu0 %v439_v19  ;;  %1309 = vmatprep.mubr.msk.bf16.mxu0 %vm1390_vm0, %v1389_v0 }
  0xa5   : > { %1319 = vmatprep.subr.bf16.mxu0 %v1389_v0 }
  0xa7   : > { %1316 = vmatmul.mubr.msk.bf16.vlgmr.msra.gmra.mrb[16].mxu1 %vm285_vm2, %v1205_v31 }
  0xa8   : > { %1326 = vmatpush3.bf16.msra.mxu1 %v844_v32  ;;  %1327 = vmatprep.mubr.msk.bf16.mxu1 %vm1390_vm0, %v1389_v0 }
  0xa9   : > { %1337 = vmatprep.subr.bf16.mxu1 %v1389_v0 }
  0xab   : > { %1310 = vmatmul.mubr.msk.bf16.vlgmr.msra.gmra.mrb[16].mxu0 %vm285_vm2, %v1206_v33 }
  0xac   : > { %1320 = vmatpush3.bf16.msra.mxu0 %v790_v34  ;;  %1321 = vmatprep.mubr.msk.bf16.mxu0 %vm1390_vm0, %v1389_v0 }
  0xad   : > { %1331 = vmatprep.subr.bf16.mxu0 %v1389_v0 }
  0xaf   : > { %1328 = vmatmul.mubr.msk.bf16.vlgmr.msra.gmra.mrb[20].mxu1 %vm285_vm2, %v1211_v35 }
  0xb0   : > { %1338 = vmatpush3.bf16.msra.mxu1 %v439_v19  ;;  %1339 = vmatprep.mubr.msk.bf16.mxu1 %vm1390_vm0, %v1389_v0 }
  0xb1   : > { %1349 = vmatprep.subr.bf16.mxu1 %v1389_v0 }
  0xb3   : > { %1322 = vmatmul.mubr.msk.bf16.vlgmr.msra.gmra.mrb[20].mxu0 %vm285_vm2, %v1209_v36 }
  0xb4   : > { %1332 = vmatpush3.bf16.msra.mxu0 %v641_v26  ;;  %1333 = vmatprep.mubr.msk.bf16.mxu0 %vm1390_vm0, %v1389_v0 }
  0xb5   : > { %1343 = vmatprep.subr.bf16.mxu0 %v1389_v0 }
  0xb7   : > { %1340 = vmatmul.mubr.msk.bf16.vlgmr.msra.gmra.mrb[24].mxu1 %vm285_vm2, %v1215_v38 }
  0xb8   : > { %1350 = vmatpush3.bf16.msra.mxu1 %v1041_v39  ;;  %1351 = vmatprep.mubr.msk.bf16.mxu1 %vm1390_vm0, %v1389_v0 }
  0xbb   : > { %1334 = vmatmul.mubr.msk.bf16.vlgmr.msra.gmra.mrb[24].mxu0 %vm285_vm2, %v1216_v40  ;;  %v891_v40 = vpop.permute.xlu1 %890 }
  0xbc   : > { %1344 = vmatpush3.bf16.msra.mxu0 %v844_v32  ;;  %1345 = vmatprep.mubr.msk.bf16.mxu0 %vm1390_vm0, %v1389_v0 }
  0xbf   : > { %1352 = vmatmul.mubr.msk.bf16.vlgmr.msra.gmra.mrb[28].mxu1 %vm285_vm2, %v1221_v41 }
  0xc3   : > { %1346 = vmatmul.mubr.msk.bf16.vlgmr.msra.gmra.mrb[28].mxu0 %vm285_vm2, %v1219_v42 }
  0xe9   : > { %v373_v43 = vpop.f32.mrb[0].mxu1 }
  0xea   : > { %v1269_v44 = vpop.f32.mrb[1].mxu1 }
  0xeb   : > { %v376_v45 = vpop.f32.mrb[2].mxu1 }
  0xec   : > { %v1270_v46 = vpop.f32.mrb[3].mxu1 }
 0x15e   : > { %v327_v47 = vpop.f32.mrb[0].mxu0 }
 0x15f   : > { %v374_v48 = vadd.f32 %v373_v43, %v327_v47  ;;  %v1263_v49 = vpop.f32.mrb[1].mxu0 }
 0x160   : > { %v330_v50 = vpop.f32.mrb[2].mxu0 }
 0x161   : > { %v1264_v51 = vpop.f32.mrb[3].mxu0 }
 0x162   : > { %v475_v52 = vpop.f32.mrb[4].mxu1 }
 0x163   : > { %v1281_v53 = vpop.f32.mrb[5].mxu1 }
 0x164   : > { %v478_v54 = vpop.f32.mrb[6].mxu1 }
 0x165   : > { %v1282_v55 = vpop.f32.mrb[7].mxu1 }
 0x166   : > { %v421_v56 = vpop.f32.mrb[4].mxu0 }
 0x167   : > { %v427_v57 = vadd.f32 %v421_v56, %v374_v48  ;;  %v1275_v58 = vpop.f32.mrb[5].mxu0 }
 0x168   : > { %v424_v59 = vpop.f32.mrb[6].mxu0 }
 0x169   : > { %v481_v61 = vadd.f32 %v475_v52, %v427_v57  ;;  %v1276_v62 = vpop.f32.mrb[7].mxu0 }
 0x16a   : > { %v581_v63 = vpop.f32.mrb[8].mxu1 }
 0x16b   : > { %v488_v0 = vadd.f32 %v486_v60, %v481_v61  ;;  %v1293_v1 = vpop.f32.mrb[9].mxu1 }
 0x16c   : > { %v584_v2 = vpop.f32.mrb[10].mxu1 }
 0x16d   : > { %1373 = vtanh.f32 %v488_v0  ;;  %v1294_v3 = vpop.f32.mrb[11].mxu1  ;;  %v1088_v0 = vpop.permute.xlu0 %1087 }
 0x16e   : > { %v538_v4 = vpop.f32.mrb[8].mxu0 }
 0x16f   : > { %v582_v5 = vadd.f32 %v581_v63, %v538_v4  ;;  %v1287_v6 = vpop.f32.mrb[9].mxu0 }
 0x170   : > { %v541_v7 = vpop.f32.mrb[10].mxu0 }
 0x171   : > { %v1288_v8 = vpop.f32.mrb[11].mxu0 }
 0x172   : > { %v677_v9 = vpop.f32.mrb[12].mxu1 }
 0x173   : > { %v1305_v10 = vpop.f32.mrb[13].mxu1 }
 0x174   : > { %v680_v11 = vpop.f32.mrb[14].mxu1 }
 0x175   : > { %v1306_v12 = vpop.f32.mrb[15].mxu1 }
 0x176   : > { %v626_v13 = vpop.f32.mrb[12].mxu0 }
 0x177   : > { %v1374_v14 = vpop.eup %1373  ;;  %v632_v15 = vadd.f32 %v626_v13, %v582_v5  ;;  %v1299_v16 = vpop.f32.mrb[13].mxu0 }
 0x178   : > { %491 = vst.msk [vmem:[%s1589_s9] sm:$0x7] %vm490_vm3, %v1374_v14  ;;  %v629_v17 = vpop.f32.mrb[14].mxu0 }
 0x179   : > { %v683_v19 = vadd.f32 %v677_v9, %v632_v15  ;;  %v1300_v20 = vpop.f32.mrb[15].mxu0 }
 0x17a   : > { %v778_v21 = vpop.f32.mrb[16].mxu1 }
 0x17b   : > { %v690_v22 = vadd.f32 %v688_v18, %v683_v19  ;;  %v1317_v23 = vpop.f32.mrb[17].mxu1 }
 0x17c   : > { %v781_v24 = vpop.f32.mrb[18].mxu1 }
 0x17d   : > { %1375 = vtanh.f32 %v690_v22  ;;  %v1318_v25 = vpop.f32.mrb[19].mxu1 }
 0x17e   : > { %v735_v26 = vpop.f32.mrb[16].mxu0 }
 0x17f   : > { %v779_v27 = vadd.f32 %v778_v21, %v735_v26  ;;  %v1311_v28 = vpop.f32.mrb[17].mxu0 }
 0x180   : > { %v738_v29 = vpop.f32.mrb[18].mxu0 }
 0x181   : > { %v1312_v30 = vpop.f32.mrb[19].mxu0 }
 0x182   : > { %v880_v31 = vpop.f32.mrb[20].mxu1 }
 0x183   : > { %v1329_v32 = vpop.f32.mrb[21].mxu1 }
 0x184   : > { %v883_v33 = vpop.f32.mrb[22].mxu1 }
 0x185   : > { %v1330_v34 = vpop.f32.mrb[23].mxu1 }
 0x186   : > { %v826_v35 = vpop.f32.mrb[20].mxu0 }
 0x187   : > { %v1376_v36 = vpop.eup %1375  ;;  %v832_v37 = vadd.f32 %v826_v35, %v779_v27  ;;  %v1323_v38 = vpop.f32.mrb[21].mxu0 }
 0x188   : > { %1204 = vst.msk [vmem:[%s1589_s9 + $0x4] sm:$0x7] %vm490_vm3, %v1376_v36  ;;  %v829_v39 = vpop.f32.mrb[22].mxu0 }
 0x189   : > { %v886_v41 = vadd.f32 %v880_v31, %v832_v37  ;;  %v1324_v42 = vpop.f32.mrb[23].mxu0 }
 0x18a   : > { %v981_v43 = vpop.f32.mrb[24].mxu1 }
 0x18b   : > { %v893_v44 = vadd.f32 %v891_v40, %v886_v41  ;;  %v1341_v45 = vpop.f32.mrb[25].mxu1 }
 0x18c   : > { %v984_v46 = vpop.f32.mrb[26].mxu1 }
 0x18d   : > { %1377 = vtanh.f32 %v893_v44  ;;  %v1342_v47 = vpop.f32.mrb[27].mxu1 }
 0x18e   : > { %v938_v48 = vpop.f32.mrb[24].mxu0 }
 0x18f   : > { %v982_v49 = vadd.f32 %v981_v43, %v938_v48  ;;  %v1335_v50 = vpop.f32.mrb[25].mxu0 }
 0x190   : > { %v941_v51 = vpop.f32.mrb[26].mxu0 }
 0x191   : > { %v1336_v52 = vpop.f32.mrb[27].mxu0 }
 0x192   : > { %v1077_v53 = vpop.f32.mrb[28].mxu1 }
 0x193   : > { %v1353_v54 = vpop.f32.mrb[29].mxu1 }
 0x194   : > { %v1080_v55 = vpop.f32.mrb[30].mxu1 }
 0x195   : > { %v1354_v56 = vpop.f32.mrb[31].mxu1 }
 0x196   : > { %v1026_v57 = vpop.f32.mrb[28].mxu0 }
 0x197   : > { %v1378_v58 = vpop.eup %1377  ;;  %v1032_v59 = vadd.f32 %v1026_v57, %v982_v49  ;;  %v1347_v60 = vpop.f32.mrb[29].mxu0 }
 0x198   : > { %1214 = vst.msk [vmem:[%s1589_s9 + $0x8] sm:$0x7] %vm490_vm3, %v1378_v58  ;;  %v1029_v61 = vpop.f32.mrb[30].mxu0 }
 0x199   : > { %v1083_v62 = vadd.f32 %v1077_v53, %v1032_v59  ;;  %v1348_v63 = vpop.f32.mrb[31].mxu0 }
 0x19b   : > { %v1090_v1 = vadd.f32 %v1088_v0, %v1083_v62 }
 0x19d   : > { %1379 = vtanh.f32 %v1090_v1 }
 0x1a7   : > { %v1380_v2 = vpop.eup %1379 }
 0x1a8   : > { %1223 = vst.msk [vmem:[%s1589_s9 + $0xc] sm:$0x7] %vm490_vm3, %v1380_v2 }
 0x1a9 PF: > { %s15_s18 = sadd.s32 1, %s1387_s18  }
 0x1aa   : > { %p12_p7 = scmp.ge.s32.totalorder %s15_s18, 34  }
 0x1ac   :  { %14 = sbr.rel (!%p12_p7) target bundleno = 1 (0x1), region = 94 }

</bundles_post_ra>
